<compile_context>
chip_gen: v7x
topology: tpu7x:2x2x1
jax: 0.10.0
libtpu: 0.0.40
codegen_flags: <defaults>
</compile_context>

<pallas_src>
import functools
import math

import jax
import jax.numpy as jnp
from jax import lax
from jax.experimental import pallas as pl
from jax.experimental.pallas import tpu as pltpu


def _self_attention_kernel(norm_fact, block_b, seq_len, d_k, d_v, v_pad, mxu_dtype,
                           ids_ref, emb_ref, wvqk_ref, wbd_ref, mask_ref, fcb_ref,
                           out_ref):
    # ids_ref : (rows, 1) int32      flattened token ids for this block
    # emb_ref : (vocab, E)           embedding table (VMEM resident)
    # wvqk_ref: (v_pad + 2*d_k, E)   fused [Wv|0pad ; Wq ; Wk] in (out, in) layout
    # wbd_ref : (2*block_b, rows)    block-diagonal, class-major fc weight
    # mask_ref: (rows, rows) f32     block-diagonal additive attention mask
    # fcb_ref : (2,) f32 in SMEM     fc bias (scalar reads)
    # out_ref : (2*block_b, v_pad)   lane-dense log-softmax slab (first d_v lanes valid)
    rows = block_b * seq_len
    vocab = emb_ref.shape[0]

    # ---- Embedding fused as a one-hot MXU matmul (no separate XLA gather) ----
    onehot = (lax.broadcasted_iota(jnp.int32, (rows, vocab), 1) == ids_ref[...]
              ).astype(mxu_dtype)                                    # (rows, vocab)
    x = jnp.dot(onehot, emb_ref[...],
                preferred_element_type=jnp.float32)                  # (rows, E) f32

    # ---- Fused V|Q|K projection: one MXU pass over the whole block ----------
    vqk = lax.dot_general(x.astype(mxu_dtype), wvqk_ref[...],
                          dimension_numbers=(((1,), (1,)), ((), ())),
                          preferred_element_type=jnp.float32)        # (rows, v_pad+2dk)
    v = vqk[:, :v_pad]                           # tile-aligned; cols >= d_v are zero
    q = vqk[:, v_pad:v_pad + d_k] * norm_fact    # tile-aligned start
    k = vqk[:, v_pad + d_k:]                     # small sub-tile lane slice (d_k cols)

    # ---- Dense masked attention over the flattened block_b*L rows -----------
    s = lax.dot_general(q.astype(mxu_dtype), k.astype(mxu_dtype),
                        dimension_numbers=(((1,), (1,)), ((), ())),
                        preferred_element_type=jnp.float32)          # (rows, rows)
    s = s + mask_ref[...]                        # -1e30 outside each sequence block
    s = s - jnp.max(s, axis=-1, keepdims=True)
    p = jnp.exp(s)
    w = p * pl.reciprocal(jnp.sum(p, axis=-1, keepdims=True), approx=False)
    a = jnp.dot(w.astype(mxu_dtype), v.astype(mxu_dtype),
                preferred_element_type=jnp.float32)                  # (rows, v_pad)

    # ---- fc(A.T) as ONE matmul against the block-diagonal class-major weight -
    z = jnp.dot(wbd_ref[...], a.astype(mxu_dtype),
                preferred_element_type=jnp.float32)                  # (2*block_b, v_pad)
    z0 = z[:block_b] + fcb_ref[0]
    z1 = z[block_b:] + fcb_ref[1]

    # ---- 2-class log-softmax, stored as unmasked full-lane rows --------------
    m = jnp.maximum(z0, z1)
    lse = m + jnp.log(jnp.exp(z0 - m) + jnp.exp(z1 - m))
    out_ref[:block_b, :] = z0 - lse
    out_ref[block_b:, :] = z1 - lse


def _default_num_blocks():
    # v7x has 2 TensorCores per chip -> two "parallel" grid blocks; v5e/v6e: one.
    try:
        kind = jax.devices()[0].device_kind.lower()
    except Exception:
        return 1
    return 2 if "v7" in kind else 1


@functools.partial(jax.jit, static_argnames=("num_blocks", "mxu_dtype"))
def self_attention_forward(token_ids, embed_table, wq, wk, wv, fc_w, fc_b,
                           *, num_blocks=None, mxu_dtype=jnp.float32):
    """Batched forward of the Self_Attention module.

    token_ids   : (B, L) or (L,) int32
    embed_table : (vocab, E) f32
    wq, wk      : (d_k, E) f32   (PyTorch Linear layout: (out, in))
    wv          : (d_v, E) f32
    fc_w        : (2, L)   f32
    fc_b        : (2,)     f32
    returns     : (B, d_v, 2)  (or (d_v, 2) for a single sequence)
    """
    token_ids = jnp.asarray(token_ids, jnp.int32)
    single = token_ids.ndim == 1
    if single:
        token_ids = token_ids[None, :]
    batch, seq_len = token_ids.shape
    vocab, embed_size = embed_table.shape
    d_k = wq.shape[0]
    d_v = wv.shape[0]
    norm_fact = 1.0 / math.sqrt(d_k)
    v_pad = max(128, ((d_v + 127) // 128) * 128)   # keep V/A/Z/out 128-lane wide

    # --- grid layout: 1 block (v5e/v6e) or 2 parallel blocks (v7x) -----------
    if num_blocks is None:
        num_blocks = _default_num_blocks()
    num_blocks = max(1, min(int(num_blocks), batch))
    block_b = -(-batch // num_blocks)
    if num_blocks > 1 and ((block_b * seq_len) % 8 != 0 or block_b % 4 != 0):
        num_blocks = 1          # fall back if multi-block tiling breaks (8,128) rules
        block_b = batch
    b_pad = num_blocks * block_b
    rows = block_b * seq_len

    # Pad the batch (padded rows use token 0; their outputs are sliced off below).
    if b_pad != batch:
        token_ids = jnp.concatenate(
            [token_ids, jnp.zeros((b_pad - batch, seq_len), jnp.int32)], axis=0)
    ids2 = token_ids.reshape(b_pad * seq_len, 1)

    # Fused projection weight, (out, in) layout, ordered [Wv | zero-pad ; Wq ; Wk].
    wv_pad = jnp.pad(wv, ((0, v_pad - d_v), (0, 0)))
    w_vqk = jnp.concatenate([wv_pad, wq, wk], axis=0).astype(mxu_dtype)

    # Block-diagonal, class-major fc weight: W_bd[j*block_b + b, b*L + l] = fc_w[j, l].
    eye_b = jnp.eye(block_b, dtype=fc_w.dtype)
    w_bd = (fc_w[:, None, None, :] * eye_b[None, :, :, None]
            ).reshape(2 * block_b, rows).astype(mxu_dtype)

    # Additive block-diagonal attention mask (0 within a sequence, -1e30 across).
    seq_id = jnp.arange(rows, dtype=jnp.int32) // seq_len
    mask = jnp.where(seq_id[:, None] == seq_id[None, :],
                     jnp.float32(0.0), jnp.float32(-1e30))

    emb = embed_table.astype(mxu_dtype)
    fc_b32 = fc_b.astype(jnp.float32)

    kernel = functools.partial(_self_attention_kernel, norm_fact, block_b,
                               seq_len, d_k, d_v, v_pad, mxu_dtype)

    out_flat = pl.pallas_call(
        kernel,
        out_shape=jax.ShapeDtypeStruct((2 * b_pad, v_pad), jnp.float32),
        grid=(num_blocks,),
        in_specs=[
            pl.BlockSpec((rows, 1), lambda i: (i, 0)),                    # token ids
            pl.BlockSpec((vocab, embed_size), lambda i: (0, 0)),          # embedding
            pl.BlockSpec((v_pad + 2 * d_k, embed_size), lambda i: (0, 0)),# fused Wv|Wq|Wk
            pl.BlockSpec((2 * block_b, rows), lambda i: (0, 0)),          # block-diag fc
            pl.BlockSpec((rows, rows), lambda i: (0, 0)),                 # attention mask
            pl.BlockSpec(memory_space=pltpu.MemorySpace.SMEM),            # fc bias scalars
        ],
        out_specs=pl.BlockSpec((2 * block_b, v_pad), lambda i: (i, 0)),
        compiler_params=pltpu.CompilerParams(
            dimension_semantics=("parallel",),
            vmem_limit_bytes=32 * 1024 * 1024),
    )(ids2, emb, w_vqk, w_bd, mask, fc_b32)

    # Layout plumbing back to the module's (B, d_v, 2) (free wrapper-side reshapes).
    out = out_flat.reshape(num_blocks, 2, block_b, v_pad)
    out = out.transpose(0, 2, 3, 1).reshape(b_pad, v_pad, 2)[:batch, :d_v, :]
    return out[0] if single else out


def _reference_forward(token_ids, embed_table, wq, wk, wv, fc_w, fc_b, d_k):
    """Pure-JAX reference mirroring the PyTorch module exactly (vmapped over batch)."""
    def one(ids):
        x = jnp.take(embed_table, ids, axis=0)
        q = x @ wq.T
        k = x @ wk.T
        v = x @ wv.T
        s = (q @ k.T) * (1.0 / math.sqrt(d_k))
        w = jax.nn.softmax(s, axis=-1)
        a = w @ v
        z = a.T @ fc_w.T + fc_b
        return jax.nn.log_softmax(z, axis=-1)
    return jax.vmap(one)(jnp.atleast_2d(token_ids))


if __name__ == "__main__":
    # Module hyperparameters (consistent with the PyTorch forward pass).
    input_size = 16     # vocab size
    embed_size = 32
    d_k = 16
    d_v = 16
    max_length = 8      # sequence length L (== fc input features)
    batch = 64

    key = jax.random.PRNGKey(0)
    k_emb, k_wq, k_wk, k_wv, k_fcw, k_fcb, k_tok = jax.random.split(key, 7)

    embed_table = jax.random.normal(k_emb, (input_size, embed_size), jnp.float32)
    wq = jax.random.normal(k_wq, (d_k, embed_size), jnp.float32) / math.sqrt(embed_size)
    wk = jax.random.normal(k_wk, (d_k, embed_size), jnp.float32) / math.sqrt(embed_size)
    wv = jax.random.normal(k_wv, (d_v, embed_size), jnp.float32) / math.sqrt(embed_size)
    fc_w = jax.random.normal(k_fcw, (2, max_length), jnp.float32) / math.sqrt(max_length)
    fc_b = jax.random.normal(k_fcb, (2,), jnp.float32) * 0.01

    token_ids = jax.random.randint(k_tok, (batch, max_length), 0, input_size, jnp.int32)

    ref = _reference_forward(token_ids, embed_table, wq, wk, wv, fc_w, fc_b, d_k)

    # Default (f32 MXU inputs, exact reciprocal) path: tight tolerance.
    out = self_attention_forward(token_ids, embed_table, wq, wk, wv, fc_w, fc_b)
    out = jax.block_until_ready(out)
    assert out.shape == (batch, d_v, 2), out.shape
    assert jnp.allclose(out, ref, atol=1e-3, rtol=1e-3), \
        float(jnp.max(jnp.abs(out - ref)))

    # bf16 MXU-input path (perf-review extra): halved weight DMA, 1-pass MXU.
    out_bf16 = self_attention_forward(token_ids, embed_table, wq, wk, wv, fc_w, fc_b,
                                      mxu_dtype=jnp.bfloat16)
    out_bf16 = jax.block_until_ready(out_bf16)
    assert jnp.allclose(out_bf16, ref, atol=1e-1, rtol=1e-1), \
        float(jnp.max(jnp.abs(out_bf16 - ref)))

    # Explicit 2-block tiling (v7x-style split across TensorCores) also works anywhere.
    out2 = self_attention_forward(token_ids, embed_table, wq, wk, wv, fc_w, fc_b,
                                  num_blocks=2)
    out2 = jax.block_until_ready(out2)
    assert jnp.allclose(out2, ref, atol=1e-3, rtol=1e-3)

    # Single-sequence path keeps the original module interface: (d_v, 2).
    out1 = self_attention_forward(token_ids[0], embed_table, wq, wk, wv, fc_w, fc_b)
    out1 = jax.block_until_ready(out1)
    assert out1.shape == (d_v, 2), out1.shape
    assert jnp.allclose(out1, ref[0], atol=1e-3, rtol=1e-3)

    print("KERNEL_OK")
</pallas_src>

<mosaic_0001>
module attributes {stable_mosaic.version = 11 : i64} {
  func.func @_self_attention_kernel(%arg0: i32, %arg1: memref<512x1xi32, #tpu.memory_space<vmem>>, %arg2: memref<16x32xf32, #tpu.memory_space<vmem>>, %arg3: memref<160x32xf32, #tpu.memory_space<vmem>>, %arg4: memref<128x512xf32, #tpu.memory_space<vmem>>, %arg5: memref<512x512xf32, #tpu.memory_space<vmem>>, %arg6: memref<2xf32, #tpu.memory_space<smem>>, %arg7: memref<128x128xf32, #tpu.memory_space<vmem>>) attributes {dimension_semantics = [#tpu.dimension_semantics<parallel>], iteration_bounds = array<i64: 1>, scalar_prefetch = 0 : i64, scratch_operands = 0 : i64, tpu.core_type = #tpu.core_type<tc>, window_params = [{transform_indices = @transform_0, window_bounds = array<i64: 512, 1>}, {pipeline_mode = #tpu.pipeline_mode<synchronous>, transform_indices = @transform_1, window_bounds = array<i64: 16, 32>}, {pipeline_mode = #tpu.pipeline_mode<synchronous>, transform_indices = @transform_2, window_bounds = array<i64: 160, 32>}, {pipeline_mode = #tpu.pipeline_mode<synchronous>, transform_indices = @transform_3, window_bounds = array<i64: 128, 512>}, {pipeline_mode = #tpu.pipeline_mode<synchronous>, transform_indices = @transform_4, window_bounds = array<i64: 512, 512>}, {transform_indices = @transform_5, window_bounds = array<i64: 2>}, {transform_indices = @transform_6, window_bounds = array<i64: 128, 128>}]} {
    %0 = tpu.iota {dimensions = array<i32: 1>} : vector<512x16xi32>
    %c0 = arith.constant 0 : index
    %c0_0 = arith.constant 0 : index
    %1 = vector.load %arg1[%c0, %c0_0] : memref<512x1xi32, #tpu.memory_space<vmem>>, vector<512x1xi32>
    %2 = vector.broadcast %1 : vector<512x1xi32> to vector<512x16xi32>
    %3 = arith.cmpi eq, %0, %2 : vector<512x16xi32>
    %4 = arith.extui %3 : vector<512x16xi1> to vector<512x16xi32>
    %5 = arith.sitofp %4 : vector<512x16xi32> to vector<512x16xf32>
    %c0_1 = arith.constant 0 : index
    %c0_2 = arith.constant 0 : index
    %6 = vector.load %arg2[%c0_1, %c0_2] : memref<16x32xf32, #tpu.memory_space<vmem>>, vector<16x32xf32>
    %cst = arith.constant dense<0.000000e+00> : vector<512x32xf32>
    %7 = tpu.matmul %5, %6, %cst {dimension_numbers = #tpu.dot_dimension_numbers<[1], [0], [0], [1], [0, 0, 1, 1], [], []>} : vector<512x16xf32>, vector<16x32xf32>, vector<512x32xf32> -> vector<512x32xf32>
    %c0_3 = arith.constant 0 : index
    %c0_4 = arith.constant 0 : index
    %8 = vector.load %arg3[%c0_3, %c0_4] : memref<160x32xf32, #tpu.memory_space<vmem>>, vector<160x32xf32>
    %cst_5 = arith.constant dense<0.000000e+00> : vector<512x160xf32>
    %9 = tpu.matmul %7, %8, %cst_5 {dimension_numbers = #tpu.dot_dimension_numbers<[1], [1], [0], [0], [0, 0, 1, 0], [], []>} : vector<512x32xf32>, vector<160x32xf32>, vector<512x160xf32> -> vector<512x160xf32>
    %10 = vector.extract_strided_slice %9 {offsets = [0, 0], sizes = [512, 128], strides = [1, 1]} : vector<512x160xf32> to vector<512x128xf32>
    %11 = vector.extract_strided_slice %9 {offsets = [0, 128], sizes = [512, 16], strides = [1, 1]} : vector<512x160xf32> to vector<512x16xf32>
    %cst_6 = arith.constant 2.500000e-01 : f32
    %12 = vector.broadcast %cst_6 : f32 to vector<512x16xf32>
    %13 = arith.mulf %11, %12 : vector<512x16xf32>
    %14 = vector.extract_strided_slice %9 {offsets = [0, 144], sizes = [512, 16], strides = [1, 1]} : vector<512x160xf32> to vector<512x16xf32>
    %cst_7 = arith.constant dense<0.000000e+00> : vector<512x512xf32>
    %15 = tpu.matmul %13, %14, %cst_7 {dimension_numbers = #tpu.dot_dimension_numbers<[1], [1], [0], [0], [0, 0, 1, 0], [], []>} : vector<512x16xf32>, vector<512x16xf32>, vector<512x512xf32> -> vector<512x512xf32>
    %c0_8 = arith.constant 0 : index
    %c0_9 = arith.constant 0 : index
    %16 = vector.load %arg5[%c0_8, %c0_9] : memref<512x512xf32, #tpu.memory_space<vmem>>, vector<512x512xf32>
    %17 = arith.addf %15, %16 : vector<512x512xf32>
    %cst_10 = arith.constant dense<0xFF800000> : vector<512xf32>
    %18 = vector.multi_reduction <maximumf>, %17, %cst_10 [1] : vector<512x512xf32> to vector<512xf32>
    %19 = vector.shape_cast %18 : vector<512xf32> to vector<512x1xf32>
    %20 = vector.broadcast %19 : vector<512x1xf32> to vector<512x512xf32>
    %21 = arith.subf %17, %20 : vector<512x512xf32>
    %22 = math.exp %21 : vector<512x512xf32>
    %cst_11 = arith.constant dense<0.000000e+00> : vector<512xf32>
    %23 = vector.multi_reduction <add>, %22, %cst_11 [1] : vector<512x512xf32> to vector<512xf32>
    %24 = vector.shape_cast %23 : vector<512xf32> to vector<512x1xf32>
    %25 = tpu.reciprocal %24 : vector<512x1xf32> -> vector<512x1xf32>
    %26 = vector.broadcast %25 : vector<512x1xf32> to vector<512x512xf32>
    %27 = arith.mulf %22, %26 : vector<512x512xf32>
    %cst_12 = arith.constant dense<0.000000e+00> : vector<512x128xf32>
    %28 = tpu.matmul %27, %10, %cst_12 {dimension_numbers = #tpu.dot_dimension_numbers<[1], [0], [0], [1], [0, 0, 1, 1], [], []>} : vector<512x512xf32>, vector<512x128xf32>, vector<512x128xf32> -> vector<512x128xf32>
    %c0_13 = arith.constant 0 : index
    %c0_14 = arith.constant 0 : index
    %29 = vector.load %arg4[%c0_13, %c0_14] : memref<128x512xf32, #tpu.memory_space<vmem>>, vector<128x512xf32>
    %cst_15 = arith.constant dense<0.000000e+00> : vector<128x128xf32>
    %30 = tpu.matmul %29, %28, %cst_15 {dimension_numbers = #tpu.dot_dimension_numbers<[1], [0], [0], [1], [0, 0, 1, 1], [], []>} : vector<128x512xf32>, vector<512x128xf32>, vector<128x128xf32> -> vector<128x128xf32>
    %31 = vector.extract_strided_slice %30 {offsets = [0, 0], sizes = [64, 128], strides = [1, 1]} : vector<128x128xf32> to vector<64x128xf32>
    %c0_16 = arith.constant 0 : index
    %32 = memref.load %arg6[%c0_16] : memref<2xf32, #tpu.memory_space<smem>>
    %33 = vector.broadcast %32 : f32 to vector<64x128xf32>
    %34 = arith.addf %31, %33 : vector<64x128xf32>
    %35 = vector.extract_strided_slice %30 {offsets = [64, 0], sizes = [64, 128], strides = [1, 1]} : vector<128x128xf32> to vector<64x128xf32>
    %c1 = arith.constant 1 : index
    %36 = memref.load %arg6[%c1] : memref<2xf32, #tpu.memory_space<smem>>
    %37 = vector.broadcast %36 : f32 to vector<64x128xf32>
    %38 = arith.addf %35, %37 : vector<64x128xf32>
    %39 = arith.maximumf %34, %38 : vector<64x128xf32>
    %40 = arith.subf %34, %39 : vector<64x128xf32>
    %41 = math.exp %40 : vector<64x128xf32>
    %42 = arith.subf %38, %39 : vector<64x128xf32>
    %43 = math.exp %42 : vector<64x128xf32>
    %44 = arith.addf %41, %43 : vector<64x128xf32>
    %45 = math.log %44 : vector<64x128xf32>
    %46 = arith.addf %39, %45 : vector<64x128xf32>
    %47 = arith.subf %34, %46 : vector<64x128xf32>
    %c0_17 = arith.constant 0 : index
    %c0_18 = arith.constant 0 : index
    %48 = vector.load %arg7[%c0_17, %c0_18] : memref<128x128xf32, #tpu.memory_space<vmem>>, vector<64x128xf32>
    tpu.vector_store %arg7[%c0_17, %c0_18], %47 {strides = array<i32>} : memref<128x128xf32, #tpu.memory_space<vmem>>, vector<64x128xf32>,
    %49 = arith.subf %38, %46 : vector<64x128xf32>
    %c64 = arith.constant 64 : index
    %c0_19 = arith.constant 0 : index
    %50 = vector.load %arg7[%c64, %c0_19] : memref<128x128xf32, #tpu.memory_space<vmem>>, vector<64x128xf32>
    tpu.vector_store %arg7[%c64, %c0_19], %49 {strides = array<i32>} : memref<128x128xf32, #tpu.memory_space<vmem>>, vector<64x128xf32>,
    return
  }
  func.func @transform_0(%arg0: i32) -> (i32, i32) {
    %c0_i32 = arith.constant 0 : i32
    %c0_i32_0 = arith.constant 0 : i32
    return %arg0, %c0_i32 : i32, i32
  }
  func.func @transform_1(%arg0: i32) -> (i32, i32) {
    %c0_i32 = arith.constant 0 : i32
    %c0_i32_0 = arith.constant 0 : i32
    %c0_i32_1 = arith.constant 0 : i32
    return %c0_i32, %c0_i32_0 : i32, i32
  }
  func.func @transform_2(%arg0: i32) -> (i32, i32) {
    %c0_i32 = arith.constant 0 : i32
    %c0_i32_0 = arith.constant 0 : i32
    %c0_i32_1 = arith.constant 0 : i32
    return %c0_i32, %c0_i32_0 : i32, i32
  }
  func.func @transform_3(%arg0: i32) -> (i32, i32) {
    %c0_i32 = arith.constant 0 : i32
    %c0_i32_0 = arith.constant 0 : i32
    %c0_i32_1 = arith.constant 0 : i32
    return %c0_i32, %c0_i32_0 : i32, i32
  }
  func.func @transform_4(%arg0: i32) -> (i32, i32) {
    %c0_i32 = arith.constant 0 : i32
    %c0_i32_0 = arith.constant 0 : i32
    %c0_i32_1 = arith.constant 0 : i32
    return %c0_i32, %c0_i32_0 : i32, i32
  }
  func.func @transform_5(%arg0: i32) -> i32 {
    %c0_i32 = arith.constant 0 : i32
    %c0_i32_0 = arith.constant 0 : i32
    return %c0_i32 : i32
  }
  func.func @transform_6(%arg0: i32) -> (i32, i32) {
    %c0_i32 = arith.constant 0 : i32
    %c0_i32_0 = arith.constant 0 : i32
    return %arg0, %c0_i32 : i32, i32
  }
}

</mosaic_0001>

<bundles_post_ra>
// kernel: self_attention_forward.1
= control target key start
LH: loop header
LB: loop body
LE: loop exit
PB: predicated region body
PF: predicated region fallthrough
CT: control target
= control target key end

     0   :  { %11 = vsyncpa [#allocation3], 0  ;;  %s15537_s0 = inlined_call_operand.vmem [shape: s32[512,1], index: 0, kind: input, shape index: {}]   ;;  %s15538_s1 = inlined_call_operand.vmem [shape: f32[16,32], index: 1, kind: input, shape index: {}]   ;;  %s15539_s2 = inlined_call_operand.vmem [shape: f32[160,32], index: 2, kind: input, shape index: {}]   ;;  %s15540_s3 = inlined_call_operand.vmem [shape: f32[128,512], index: 3, kind: input, shape index: {}]   ;;  %s15541_s4 = inlined_call_operand.vmem [shape: f32[512,512], index: 4, kind: input, shape index: {}]   ;;  %s15542_s5 = inlined_call_operand.vmem [shape: f32[2], index: 5, kind: input, shape index: {}]   ;;  %s15543_s6 = inlined_call_operand.vmem [shape: f32[128,128], index: 6, kind: output, shape index: {}]  }
   0x1   :  { %s28_s23 = sshll.u32 %s15542_s5, 4  ;;  %s29_s23 = int_to_ptr.vmem [resolvable:$true] %s28_s23 }
   0x2   :  { %s8865_s24 = scalar_lea.vmem %s29_s23, 16  ;;  %p8870_p1 = scmp.lt.s32.totalorder %s29_s23, %s29_s23 }
   0x3   :  { %p8866_p0 = scmp.ne.s32.totalorder %s29_s23, %s8865_s24  ;;  %p8871_p2 = scmp.lt.s32.totalorder %s8865_s24, %s8865_s24 }
   0x5   :  { %p8872_p3 = por %p8871_p2, %p8870_p1 }
   0x7   :  { %p8873_p4 = pnand %p8872_p3, %p8866_p0 }
   0x9   :  { %8876 = shalt.err (!%p8873_p4)
}
   0xa   :  { %s8879_s25 = smov [#allocation2]  }
   0xb   :  { %31 = dma.vmem_to_smem %s29_s23, 16, %s8879_s25, [#allocation3]  }
   0xc   :  { %8877 = dma.done.wait [#allocation3], 16  }
   0xd   :  { %8878 = vsyncadd [#allocation3], 4294967280 }
   0xe   :  { %35 = sfence }
   0xf   :  { %v40_v0 = vld [vmem:[%s15537_s0 + $0x10] sm:$0xff]  ;;  %v38_v1 = vld [vmem:[%s15537_s0] sm:$0xff]  ;;  %v8880_v2 = vmov 0   ;;  %v41_v3 = vld [vmem:[%s15537_s0 + $0x18] sm:$0xff]  ;;  %v8881_v5 = vmov 0.0   ;;  %vm488_vm0 = vcmask 130048  }
  0x10   :  { %8016 = vset.pattern.permute.xlu1 %v8880_v2  ;;  %8015 = vset.pattern.permute.xlu0 %v8880_v2  ;;  %v39_v4 = vld [vmem:[%s15537_s0 + $0x8] sm:$0xff]  ;;  %v42_v7 = vld [vmem:[%s15537_s0 + $0x20] sm:$0xff]  ;;  %v45_v8 = vld [vmem:[%s15537_s0 + $0x38] sm:$0xff]  ;;  %vm1086_vm3 = vcmask 261120   ;;  %s6919_s8 = sld [smem:[#allocation2 + $0x1]] }
  0x11   :  { %109 = vperm.xlu1 %8016, %v40_v0   ;;  %103 = vperm.xlu0 %8015, %v38_v1   ;;  %v43_v6 = vld [vmem:[%s15537_s0 + $0x28] sm:$0xff]  ;;  %v44_v9 = vld [vmem:[%s15537_s0 + $0x30] sm:$0xff]  ;;  %v46_v11 = vld [vmem:[%s15537_s0 + $0x40] sm:$0xff] }
  0x12   :  { %1403 = vmatprep.mubr.f32.mxu1 %v8881_v5  ;;  %v47_v10 = vld [vmem:[%s15537_s0 + $0x48] sm:$0xff]  ;;  %v49_v12 = vld [vmem:[%s15537_s0 + $0x58] sm:$0xff]  ;;  %v48_v13 = vld [vmem:[%s15537_s0 + $0x50] sm:$0xff] }
  0x13   :  { %v486_v14 = vld [vmem:[%s15538_s1] sm:$0xff]  ;;  %v487_v15 = vld [vmem:[%s15538_s1 + $0x8] sm:$0xff]  ;;  %v53_v19 = vld [vmem:[%s15537_s0 + $0x78] sm:$0xff] }
  0x14   :  { %v7566_v16 = vpack.c.bf16 %v487_v15, %v486_v14  ;;  %v51_v17 = vld [vmem:[%s15537_s0 + $0x68] sm:$0xff]  ;;  %v50_v18 = vld [vmem:[%s15537_s0 + $0x60] sm:$0xff]  ;;  %v52_v20 = vld [vmem:[%s15537_s0 + $0x70] sm:$0xff]  ;;  %v15544_v15 = vmov 0.0|0.0  }
  0x15   :  { %112 = vperm.xlu1 %8016, %v41_v3   ;;  %106 = vperm.xlu0 %8015, %v39_v4   ;;  %v55_v21 = vld [vmem:[%s15537_s0 + $0x88] sm:$0xff]  ;;  %v54_v22 = vld [vmem:[%s15537_s0 + $0x80] sm:$0xff]  ;;  %v57_v23 = vld [vmem:[%s15537_s0 + $0x98] sm:$0xff]  ;;  %v36_v3 = vlaneseq }
  0x16   :  { %7567 = vmatprep.subr.bf16.mxu0 %v7566_v16  ;;  %v56_v24 = vld [vmem:[%s15537_s0 + $0x90] sm:$0xff]  ;;  %v59_v25 = vld [vmem:[%s15537_s0 + $0xa8] sm:$0xff]  ;;  %v58_v26 = vld [vmem:[%s15537_s0 + $0xa0] sm:$0xff]  ;;  %7570 = vmatprep.subr.bf16.mxu1 %v15544_v15 }
  0x17   :  { %7569 = vmatpush3.bf16.msra.mxu0 %v7566_v16  ;;  %v61_v27 = vld [vmem:[%s15537_s0 + $0xb8] sm:$0xff]  ;;  %v60_v28 = vld [vmem:[%s15537_s0 + $0xb0] sm:$0xff]  ;;  %v63_v29 = vld [vmem:[%s15537_s0 + $0xc8] sm:$0xff] }
  0x18   :  { %v62_v30 = vld [vmem:[%s15537_s0 + $0xc0] sm:$0xff]  ;;  %v65_v31 = vld [vmem:[%s15537_s0 + $0xd8] sm:$0xff]  ;;  %v64_v32 = vld [vmem:[%s15537_s0 + $0xd0] sm:$0xff] }
  0x19   :  { %118 = vperm.xlu1 %8016, %v43_v6   ;;  %115 = vperm.xlu0 %8015, %v42_v7   ;;  %v67_v33 = vld [vmem:[%s15537_s0 + $0xe8] sm:$0xff]  ;;  %v66_v34 = vld [vmem:[%s15537_s0 + $0xe0] sm:$0xff]  ;;  %v69_v35 = vld [vmem:[%s15537_s0 + $0xf8] sm:$0xff]  ;;  %v9121_v7 = vand.u32 127, %v36_v3 }
  0x1a   :  { %v68_v36 = vld [vmem:[%s15537_s0 + $0xf0] sm:$0xff]  ;;  %v71_v37 = vld [vmem:[%s15537_s0 + $0x108] sm:$0xff]  ;;  %v70_v38 = vld [vmem:[%s15537_s0 + $0x100] sm:$0xff] }
  0x1b   :  { %v73_v39 = vld [vmem:[%s15537_s0 + $0x118] sm:$0xff]  ;;  %v72_v40 = vld [vmem:[%s15537_s0 + $0x110] sm:$0xff]  ;;  %v75_v41 = vld [vmem:[%s15537_s0 + $0x128] sm:$0xff] }
  0x1c   :  { %v74_v42 = vld [vmem:[%s15537_s0 + $0x120] sm:$0xff]  ;;  %v77_v43 = vld [vmem:[%s15537_s0 + $0x138] sm:$0xff]  ;;  %v76_v44 = vld [vmem:[%s15537_s0 + $0x130] sm:$0xff] }
  0x1d   :  { %124 = vperm.xlu1 %8016, %v45_v8   ;;  %121 = vperm.xlu0 %8015, %v44_v9   ;;  %v79_v45 = vld [vmem:[%s15537_s0 + $0x148] sm:$0xff]  ;;  %v78_v46 = vld [vmem:[%s15537_s0 + $0x140] sm:$0xff]  ;;  %v81_v47 = vld [vmem:[%s15537_s0 + $0x158] sm:$0xff] }
  0x1e   :  { %v80_v48 = vld [vmem:[%s15537_s0 + $0x150] sm:$0xff]  ;;  %v83_v49 = vld [vmem:[%s15537_s0 + $0x168] sm:$0xff]  ;;  %v82_v50 = vld [vmem:[%s15537_s0 + $0x160] sm:$0xff] }
  0x1f   :  { %v85_v51 = vld [vmem:[%s15537_s0 + $0x178] sm:$0xff]  ;;  %v84_v52 = vld [vmem:[%s15537_s0 + $0x170] sm:$0xff]  ;;  %v87_v53 = vld [vmem:[%s15537_s0 + $0x188] sm:$0xff] }
  0x20   :  { %v86_v54 = vld [vmem:[%s15537_s0 + $0x180] sm:$0xff]  ;;  %v89_v55 = vld [vmem:[%s15537_s0 + $0x198] sm:$0xff]  ;;  %v88_v56 = vld [vmem:[%s15537_s0 + $0x190] sm:$0xff] }
  0x21   :  { %130 = vperm.xlu1 %8016, %v47_v10   ;;  %127 = vperm.xlu0 %8015, %v46_v11   ;;  %v91_v57 = vld [vmem:[%s15537_s0 + $0x1a8] sm:$0xff]  ;;  %v90_v58 = vld [vmem:[%s15537_s0 + $0x1a0] sm:$0xff]  ;;  %v93_v59 = vld [vmem:[%s15537_s0 + $0x1b8] sm:$0xff] }
  0x22   :  { %v92_v60 = vld [vmem:[%s15537_s0 + $0x1b0] sm:$0xff]  ;;  %v95_v61 = vld [vmem:[%s15537_s0 + $0x1c8] sm:$0xff]  ;;  %v94_v62 = vld [vmem:[%s15537_s0 + $0x1c0] sm:$0xff] }
  0x23   :  { %v97_v63 = vld [vmem:[%s15537_s0 + $0x1d8] sm:$0xff]  ;;  %v96_v0 = vld [vmem:[%s15537_s0 + $0x1d0] sm:$0xff]  ;;  %v99_v1 = vld [vmem:[%s15537_s0 + $0x1e8] sm:$0xff] }
  0x24   :  { %v98_v2 = vld [vmem:[%s15537_s0 + $0x1e0] sm:$0xff]  ;;  %v101_v4 = vld [vmem:[%s15537_s0 + $0x1f8] sm:$0xff]  ;;  %v100_v6 = vld [vmem:[%s15537_s0 + $0x1f0] sm:$0xff] }
  0x25   :  { %136 = vperm.xlu1 %8016, %v49_v12   ;;  %133 = vperm.xlu0 %8015, %v48_v13   ;;  %v1066_v11 = vld [vmem:[%s15539_s2] sm:$0xff]  ;;  %v1067_v12 = vld [vmem:[%s15539_s2 + $0x8] sm:$0xff]  ;;  %vm9136_vm4 = vmpackc.low %vm1086_vm3, %vm1086_vm3 }
  0x26   :  { %v7571_v16 = vpack.c.bf16 %v1067_v12, %v1066_v11 }
  0x28   :  { %7573 = vmatpush1.bf16.xpose.msk.msra.mxu1 %vm9136_vm4, %v7571_v16 }
  0x29   :  { %142 = vperm.xlu1 %8016, %v51_v17   ;;  %139 = vperm.xlu0 %8015, %v50_v18  }
  0x2a   :  { %7574 = vmatprep.subr.bf16.mxu1 %v15544_v15 }
  0x2d   :  { %148 = vperm.xlu1 %8016, %v53_v19   ;;  %145 = vperm.xlu0 %8015, %v52_v20   ;;  %v1068_v20 = vld [vmem:[%s15539_s2 + $0x10] sm:$0xff] }
  0x31   :  { %154 = vperm.xlu1 %8016, %v55_v21   ;;  %151 = vperm.xlu0 %8015, %v54_v22   ;;  %v1069_v21 = vld [vmem:[%s15539_s2 + $0x18] sm:$0xff] }
  0x35   :  { %160 = vperm.xlu1 %8016, %v57_v23   ;;  %157 = vperm.xlu0 %8015, %v56_v24  }
  0x39   :  { %166 = vperm.xlu1 %8016, %v59_v25   ;;  %163 = vperm.xlu0 %8015, %v58_v26   ;;  %v7575_v26 = vpack.c.bf16 %v1069_v21, %v1068_v20 }
  0x3b   :  { %7577 = vmatpush1.bf16.xpose.msk.msra.mxu1 %vm9136_vm4, %v7575_v26  ;;  %v1080_v26 = vld [vmem:[%s15539_s2 + $0x70] sm:$0xff] }
  0x3c   :  { %7578 = vmatprep.subr.bf16.mxu1 %v15544_v15 }
  0x3d   :  { %172 = vperm.xlu1 %8016, %v61_v27   ;;  %169 = vperm.xlu0 %8015, %v60_v28  }
  0x41   :  { %178 = vperm.xlu1 %8016, %v63_v29   ;;  %175 = vperm.xlu0 %8015, %v62_v30  }
  0x45   :  { %184 = vperm.xlu1 %8016, %v65_v31   ;;  %181 = vperm.xlu0 %8015, %v64_v32   ;;  %v1070_v31 = vld [vmem:[%s15539_s2 + $0x20] sm:$0xff]  ;;  %v1071_v32 = vld [vmem:[%s15539_s2 + $0x28] sm:$0xff] }
  0x49   :  { %190 = vperm.xlu1 %8016, %v67_v33   ;;  %187 = vperm.xlu0 %8015, %v66_v34  }
  0x4d   :  { %196 = vperm.xlu1 %8016, %v69_v35   ;;  %193 = vperm.xlu0 %8015, %v68_v36  }
  0x51   :  { %202 = vperm.xlu1 %8016, %v71_v37   ;;  %199 = vperm.xlu0 %8015, %v70_v38   ;;  %v7579_v37 = vpack.c.bf16 %v1071_v32, %v1070_v31 }
  0x53   :  { %7581 = vmatpush1.bf16.xpose.msk.msra.mxu1 %vm9136_vm4, %v7579_v37  ;;  %v1082_v37 = vld [vmem:[%s15539_s2 + $0x80] sm:$0xff] }
  0x54   :  { %7582 = vmatprep.subr.bf16.mxu1 %v15544_v15 }
  0x55   :  { %208 = vperm.xlu1 %8016, %v73_v39   ;;  %205 = vperm.xlu0 %8015, %v72_v40  }
  0x59   :  { %214 = vperm.xlu1 %8016, %v75_v41   ;;  %211 = vperm.xlu0 %8015, %v74_v42   ;;  %v1072_v42 = vld [vmem:[%s15539_s2 + $0x30] sm:$0xff] }
  0x5d   :  { %220 = vperm.xlu1 %8016, %v77_v43   ;;  %217 = vperm.xlu0 %8015, %v76_v44   ;;  %v1073_v43 = vld [vmem:[%s15539_s2 + $0x38] sm:$0xff] }
  0x61   :  { %226 = vperm.xlu1 %8016, %v79_v45   ;;  %223 = vperm.xlu0 %8015, %v78_v46  }
  0x65   :  { %232 = vperm.xlu1 %8016, %v81_v47   ;;  %229 = vperm.xlu0 %8015, %v80_v48   ;;  %v7583_v48 = vpack.c.bf16 %v1073_v43, %v1072_v42 }
  0x67   :  { %7585 = vmatpush1.bf16.xpose.msk.msra.mxu1 %vm9136_vm4, %v7583_v48  ;;  %v1084_v48 = vld [vmem:[%s15539_s2 + $0x90] sm:$0xff] }
  0x68   :  { %7586 = vmatprep.subr.bf16.mxu1 %v15544_v15 }
  0x69   :  { %238 = vperm.xlu1 %8016, %v83_v49   ;;  %235 = vperm.xlu0 %8015, %v82_v50  }
  0x6d   :  { %244 = vperm.xlu1 %8016, %v85_v51   ;;  %241 = vperm.xlu0 %8015, %v84_v52  }
  0x71   :  { %250 = vperm.xlu1 %8016, %v87_v53   ;;  %247 = vperm.xlu0 %8015, %v86_v54   ;;  %v1074_v53 = vld [vmem:[%s15539_s2 + $0x40] sm:$0xff]  ;;  %v1075_v54 = vld [vmem:[%s15539_s2 + $0x48] sm:$0xff] }
  0x75   :  { %256 = vperm.xlu1 %8016, %v89_v55   ;;  %253 = vperm.xlu0 %8015, %v88_v56  }
  0x79   :  { %262 = vperm.xlu1 %8016, %v91_v57   ;;  %259 = vperm.xlu0 %8015, %v90_v58  }
  0x7d   :  { %268 = vperm.xlu1 %8016, %v93_v59   ;;  %265 = vperm.xlu0 %8015, %v92_v60   ;;  %v7587_v59 = vpack.c.bf16 %v1075_v54, %v1074_v53 }
  0x7f   :  { %7589 = vmatpush1.bf16.xpose.msk.msra.mxu1 %vm9136_vm4, %v7587_v59 }
  0x80   :  { %7590 = vmatprep.subr.bf16.mxu1 %v15544_v15 }
  0x81   :  { %274 = vperm.xlu1 %8016, %v95_v61   ;;  %271 = vperm.xlu0 %8015, %v94_v62  }
  0x85   :  { %280 = vperm.xlu1 %8016, %v97_v63   ;;  %277 = vperm.xlu0 %8015, %v96_v0   ;;  %v1076_v0 = vld [vmem:[%s15539_s2 + $0x50] sm:$0xff] }
  0x89   :  { %286 = vperm.xlu1 %8016, %v99_v1   ;;  %283 = vperm.xlu0 %8015, %v98_v2   ;;  %v1077_v1 = vld [vmem:[%s15539_s2 + $0x58] sm:$0xff] }
  0x8d   :  { %292 = vperm.xlu1 %8016, %v101_v4   ;;  %289 = vperm.xlu0 %8015, %v100_v6  }
  0x90   :  { %v110_v8 = vpop.permute.xlu1 %109  ;;  %v104_v9 = vpop.permute.xlu0 %103 }
  0x91   :  { %vm294_vm1 = vcmp.eq.s32.totalorder %v9121_v7, %v104_v9  ;;  %vm296_vm2 = vcmp.eq.s32.totalorder %v9121_v7, %v110_v8  ;;  %v7591_v8 = vpack.c.bf16 %v1077_v1, %v1076_v0 }
  0x92   :  { %v6515_v10 = vsel %vm294_vm1, 1.0, %v8881_v5  ;;  %v6517_v18 = vsel %vm296_vm2, 1.0, %v8881_v5 }
  0x93   :  { %7470 = vmatprep.mubr.msk.f32.mxu0 %vm488_vm0, %v6515_v10  ;;  %7593 = vmatpush1.bf16.xpose.msk.msra.mxu1 %vm9136_vm4, %v7591_v8 }
  0x94   :  { %v113_v13 = vpop.permute.xlu1 %112  ;;  %v107_v14 = vpop.permute.xlu0 %106  ;;  %7594 = vmatprep.subr.bf16.mxu1 %v15544_v15 }
  0x95   :  { %vm297_vm5 = vcmp.eq.s32.totalorder %v9121_v7, %v113_v13  ;;  %vm295_vm6 = vcmp.eq.s32.totalorder %v9121_v7, %v107_v14  ;;  %v1078_v13 = vld [vmem:[%s15539_s2 + $0x60] sm:$0xff]  ;;  %v1079_v14 = vld [vmem:[%s15539_s2 + $0x68] sm:$0xff] }
  0x96   :  { %v6516_v19 = vsel %vm295_vm6, 1.0, %v8881_v5  ;;  %v6518_v22 = vsel %vm297_vm5, 1.0, %v8881_v5  ;;  %v7595_v21 = vpack.c.bf16 %v1079_v14, %v1078_v13 }
  0x97   :  { %7471 = vmatmul.mubr.msk.f32.vlgmr.msra.gmra.mrb[0].mxu0 %vm488_vm0, %v6516_v19 }
  0x98   :  { %v119_v23 = vpop.permute.xlu1 %118  ;;  %v116_v24 = vpop.permute.xlu0 %115  ;;  %7473 = vmatprep.mubr.msk.f32.mxu0 %vm488_vm0, %v6517_v18 }
  0x99   :  { %vm298_vm7 = vcmp.eq.s32.totalorder %v9121_v7, %v116_v24  ;;  %vm299_vm8 = vcmp.eq.s32.totalorder %v9121_v7, %v119_v23 }
  0x9a   :  { %v6519_v25 = vsel %vm298_vm7, 1.0, %v8881_v5  ;;  %v6520_v29 = vsel %vm299_vm8, 1.0, %v8881_v5 }
  0x9b   :  { %7474 = vmatmul.mubr.msk.f32.gmra.mrb[2].mxu0 %vm488_vm0, %v6518_v22  ;;  %7597 = vmatpush1.bf16.xpose.msk.msra.mxu1 %vm9136_vm4, %v7595_v21 }
  0x9c   :  { %v125_v27 = vpop.permute.xlu1 %124  ;;  %v122_v28 = vpop.permute.xlu0 %121  ;;  %7476 = vmatprep.mubr.msk.f32.mxu0 %vm488_vm0, %v6519_v25  ;;  %7598 = vmatprep.subr.bf16.mxu1 %v15544_v15 }
  0x9d   :  { %vm300_vm9 = vcmp.eq.s32.totalorder %v9121_v7, %v122_v28  ;;  %vm301_vm10 = vcmp.eq.s32.totalorder %v9121_v7, %v125_v27  ;;  %v1081_v27 = vld [vmem:[%s15539_s2 + $0x78] sm:$0xff] }
  0x9e   :  { %v6521_v30 = vsel %vm300_vm9, 1.0, %v8881_v5  ;;  %v6522_v35 = vsel %vm301_vm10, 1.0, %v8881_v5  ;;  %v7599_v32 = vpack.c.bf16 %v1081_v27, %v1080_v26 }
  0x9f   :  { %7477 = vmatmul.mubr.msk.f32.gmra.mrb[4].mxu0 %vm488_vm0, %v6520_v29 }
  0xa0   :  { %v131_v33 = vpop.permute.xlu1 %130  ;;  %v128_v34 = vpop.permute.xlu0 %127  ;;  %7479 = vmatprep.mubr.msk.f32.mxu0 %vm488_vm0, %v6521_v30 }
  0xa1   :  { %vm302_vm11 = vcmp.eq.s32.totalorder %v9121_v7, %v128_v34  ;;  %vm303_vm12 = vcmp.eq.s32.totalorder %v9121_v7, %v131_v33 }
  0xa2   :  { %v6523_v36 = vsel %vm302_vm11, 1.0, %v8881_v5  ;;  %v6524_v40 = vsel %vm303_vm12, 1.0, %v8881_v5 }
  0xa3   :  { %7480 = vmatmul.mubr.msk.f32.gmra.mrb[6].mxu0 %vm488_vm0, %v6522_v35  ;;  %7601 = vmatpush1.bf16.xpose.msk.msra.mxu1 %vm9136_vm4, %v7599_v32 }
  0xa4   :  { %v137_v38 = vpop.permute.xlu1 %136  ;;  %v134_v39 = vpop.permute.xlu0 %133  ;;  %7482 = vmatprep.mubr.msk.f32.mxu0 %vm488_vm0, %v6523_v36  ;;  %7602 = vmatprep.subr.bf16.mxu1 %v15544_v15 }
  0xa5   :  { %vm304_vm13 = vcmp.eq.s32.totalorder %v9121_v7, %v134_v39  ;;  %vm305_vm14 = vcmp.eq.s32.totalorder %v9121_v7, %v137_v38  ;;  %v1083_v38 = vld [vmem:[%s15539_s2 + $0x88] sm:$0xff] }
  0xa6   :  { %v6525_v41 = vsel %vm304_vm13, 1.0, %v8881_v5  ;;  %v6526_v46 = vsel %vm305_vm14, 1.0, %v8881_v5  ;;  %v7603_v43 = vpack.c.bf16 %v1083_v38, %v1082_v37 }
  0xa7   :  { %7483 = vmatmul.mubr.msk.f32.gmra.mrb[8].mxu0 %vm488_vm0, %v6524_v40 }
  0xa8   :  { %v143_v44 = vpop.permute.xlu1 %142  ;;  %v140_v45 = vpop.permute.xlu0 %139  ;;  %7485 = vmatprep.mubr.msk.f32.mxu0 %vm488_vm0, %v6525_v41 }
  0xa9   :  { %vm306_vm15 = vcmp.eq.s32.totalorder %v9121_v7, %v140_v45  ;;  %vm307_vm1 = vcmp.eq.s32.totalorder %v9121_v7, %v143_v44 }
  0xaa   :  { %v6527_v47 = vsel %vm306_vm15, 1.0, %v8881_v5  ;;  %v6528_v51 = vsel %vm307_vm1, 1.0, %v8881_v5 }
  0xab   :  { %7486 = vmatmul.mubr.msk.f32.gmra.mrb[10].mxu0 %vm488_vm0, %v6526_v46  ;;  %7605 = vmatpush1.bf16.xpose.msk.msra.mxu1 %vm9136_vm4, %v7603_v43 }
  0xac   :  { %v149_v49 = vpop.permute.xlu1 %148  ;;  %v146_v50 = vpop.permute.xlu0 %145  ;;  %7488 = vmatprep.mubr.msk.f32.mxu0 %vm488_vm0, %v6527_v47  ;;  %7606 = vmatprep.subr.bf16.mxu1 %v15544_v15 }
  0xad   :  { %vm308_vm2 = vcmp.eq.s32.totalorder %v9121_v7, %v146_v50  ;;  %vm309_vm5 = vcmp.eq.s32.totalorder %v9121_v7, %v149_v49  ;;  %v1085_v49 = vld [vmem:[%s15539_s2 + $0x98] sm:$0xff]  ;;  %s8883_s2 = smov 112  }
  0xae   :  { %v6529_v52 = vsel %vm308_vm2, 1.0, %v8881_v5  ;;  %v6530_v57 = vsel %vm309_vm5, 1.0, %v8881_v5  ;;  %v7607_v54 = vpack.c.bf16 %v1085_v49, %v1084_v48 }
  0xaf   :  { %7489 = vmatmul.mubr.msk.f32.gmra.mrb[12].mxu0 %vm488_vm0, %v6528_v51 }
  0xb0   :  { %v155_v55 = vpop.permute.xlu1 %154  ;;  %v152_v56 = vpop.permute.xlu0 %151  ;;  %7491 = vmatprep.mubr.msk.f32.mxu0 %vm488_vm0, %v6529_v52 }
  0xb1   :  { %vm310_vm6 = vcmp.eq.s32.totalorder %v9121_v7, %v152_v56  ;;  %vm311_vm7 = vcmp.eq.s32.totalorder %v9121_v7, %v155_v55 }
  0xb2   :  { %v6531_v58 = vsel %vm310_vm6, 1.0, %v8881_v5  ;;  %v6532_v62 = vsel %vm311_vm7, 1.0, %v8881_v5 }
  0xb3   :  { %7492 = vmatmul.mubr.msk.f32.gmra.mrb[14].mxu0 %vm488_vm0, %v6530_v57  ;;  %7609 = vmatpush1.bf16.xpose.msk.msra.mxu1 %vm9136_vm4, %v7607_v54 }
  0xb4   :  { %v161_v60 = vpop.permute.xlu1 %160  ;;  %v158_v61 = vpop.permute.xlu0 %157  ;;  %7494 = vmatprep.mubr.msk.f32.mxu0 %vm488_vm0, %v6531_v58 }
  0xb5   :  { %vm312_vm8 = vcmp.eq.s32.totalorder %v9121_v7, %v158_v61  ;;  %vm313_vm9 = vcmp.eq.s32.totalorder %v9121_v7, %v161_v60 }
  0xb6   :  { %v6533_v63 = vsel %vm312_vm8, 1.0, %v8881_v5  ;;  %v6534_v4 = vsel %vm313_vm9, 1.0, %v8881_v5 }
  0xb7   :  { %7495 = vmatmul.mubr.msk.f32.gmra.mrb[16].mxu0 %vm488_vm0, %v6532_v62 }
  0xb8   :  { %v167_v2 = vpop.permute.xlu1 %166  ;;  %v164_v3 = vpop.permute.xlu0 %163  ;;  %7497 = vmatprep.mubr.msk.f32.mxu0 %vm488_vm0, %v6533_v63 }
  0xb9   :  { %vm314_vm10 = vcmp.eq.s32.totalorder %v9121_v7, %v164_v3  ;;  %vm315_vm11 = vcmp.eq.s32.totalorder %v9121_v7, %v167_v2 }
  0xba   :  { %v6535_v6 = vsel %vm314_vm10, 1.0, %v8881_v5  ;;  %v6536_v11 = vsel %vm315_vm11, 1.0, %v8881_v5 }
  0xbb   :  { %7498 = vmatmul.mubr.msk.f32.gmra.mrb[18].mxu0 %vm488_vm0, %v6534_v4 }
  0xbc   :  { %v173_v9 = vpop.permute.xlu1 %172  ;;  %v170_v10 = vpop.permute.xlu0 %169  ;;  %7500 = vmatprep.mubr.msk.f32.mxu0 %vm488_vm0, %v6535_v6 }
  0xbd   :  { %vm316_vm12 = vcmp.eq.s32.totalorder %v9121_v7, %v170_v10  ;;  %vm317_vm13 = vcmp.eq.s32.totalorder %v9121_v7, %v173_v9 }
  0xbe   :  { %v6537_v12 = vsel %vm316_vm12, 1.0, %v8881_v5  ;;  %v6538_v19 = vsel %vm317_vm13, 1.0, %v8881_v5 }
  0xbf   :  { %7501 = vmatmul.mubr.msk.f32.gmra.mrb[20].mxu0 %vm488_vm0, %v6536_v11 }
  0xc0   :  { %v179_v16 = vpop.permute.xlu1 %178  ;;  %v176_v18 = vpop.permute.xlu0 %175  ;;  %7503 = vmatprep.mubr.msk.f32.mxu0 %vm488_vm0, %v6537_v12 }
  0xc1   :  { %vm318_vm14 = vcmp.eq.s32.totalorder %v9121_v7, %v176_v18  ;;  %vm319_vm15 = vcmp.eq.s32.totalorder %v9121_v7, %v179_v16 }
  0xc2   :  { %v6539_v20 = vsel %vm318_vm14, 1.0, %v8881_v5  ;;  %v6540_v24 = vsel %vm319_vm15, 1.0, %v8881_v5 }
  0xc3   :  { %7504 = vmatmul.mubr.msk.f32.gmra.mrb[22].mxu0 %vm488_vm0, %v6538_v19 }
  0xc4   :  { %v185_v22 = vpop.permute.xlu1 %184  ;;  %v182_v23 = vpop.permute.xlu0 %181  ;;  %7506 = vmatprep.mubr.msk.f32.mxu0 %vm488_vm0, %v6539_v20 }
  0xc5   :  { %vm320_vm1 = vcmp.eq.s32.totalorder %v9121_v7, %v182_v23  ;;  %vm321_vm2 = vcmp.eq.s32.totalorder %v9121_v7, %v185_v22 }
  0xc6   :  { %v6541_v25 = vsel %vm320_vm1, 1.0, %v8881_v5  ;;  %v6542_v30 = vsel %vm321_vm2, 1.0, %v8881_v5 }
  0xc7   :  { %7507 = vmatmul.mubr.msk.f32.gmra.mrb[24].mxu0 %vm488_vm0, %v6540_v24 }
  0xc8   :  { %v191_v28 = vpop.permute.xlu1 %190  ;;  %v188_v29 = vpop.permute.xlu0 %187  ;;  %7509 = vmatprep.mubr.msk.f32.mxu0 %vm488_vm0, %v6541_v25 }
  0xc9   :  { %vm322_vm5 = vcmp.eq.s32.totalorder %v9121_v7, %v188_v29  ;;  %vm323_vm6 = vcmp.eq.s32.totalorder %v9121_v7, %v191_v28 }
  0xca   :  { %v6543_v31 = vsel %vm322_vm5, 1.0, %v8881_v5  ;;  %v6544_v35 = vsel %vm323_vm6, 1.0, %v8881_v5 }
  0xcb   :  { %7510 = vmatmul.mubr.msk.f32.gmra.mrb[26].mxu0 %vm488_vm0, %v6542_v30 }
  0xcc   :  { %v197_v33 = vpop.permute.xlu1 %196  ;;  %v194_v34 = vpop.permute.xlu0 %193  ;;  %7512 = vmatprep.mubr.msk.f32.mxu0 %vm488_vm0, %v6543_v31 }
  0xcd   :  { %vm324_vm7 = vcmp.eq.s32.totalorder %v9121_v7, %v194_v34  ;;  %vm325_vm8 = vcmp.eq.s32.totalorder %v9121_v7, %v197_v33 }
  0xce   :  { %v6545_v36 = vsel %vm324_vm7, 1.0, %v8881_v5  ;;  %v6546_v41 = vsel %vm325_vm8, 1.0, %v8881_v5 }
  0xcf   :  { %7513 = vmatmul.mubr.msk.f32.gmra.mrb[28].mxu0 %vm488_vm0, %v6544_v35 }
  0xd0   :  { %v203_v39 = vpop.permute.xlu1 %202  ;;  %v200_v40 = vpop.permute.xlu0 %199  ;;  %7515 = vmatprep.mubr.msk.f32.mxu0 %vm488_vm0, %v6545_v36 }
  0xd1   :  { %vm326_vm9 = vcmp.eq.s32.totalorder %v9121_v7, %v200_v40  ;;  %vm327_vm10 = vcmp.eq.s32.totalorder %v9121_v7, %v203_v39 }
  0xd2   :  { %v6547_v42 = vsel %vm326_vm9, 1.0, %v8881_v5  ;;  %v6548_v46 = vsel %vm327_vm10, 1.0, %v8881_v5 }
  0xd3   :  { %7516 = vmatmul.mubr.msk.f32.gmra.mrb[30].mxu0 %vm488_vm0, %v6546_v41 }
  0xd4   :  { %v209_v44 = vpop.permute.xlu1 %208  ;;  %v206_v45 = vpop.permute.xlu0 %205  ;;  %7518 = vmatprep.mubr.msk.f32.mxu0 %vm488_vm0, %v6547_v42 }
  0xd5   :  { %vm328_vm11 = vcmp.eq.s32.totalorder %v9121_v7, %v206_v45  ;;  %vm329_vm12 = vcmp.eq.s32.totalorder %v9121_v7, %v209_v44 }
  0xd6   :  { %v6549_v47 = vsel %vm328_vm11, 1.0, %v8881_v5  ;;  %v6550_v52 = vsel %vm329_vm12, 1.0, %v8881_v5 }
  0xd7   :  { %7519 = vmatmul.mubr.msk.f32.gmra.mrb[32].mxu0 %vm488_vm0, %v6548_v46 }
  0xd8   :  { %v215_v50 = vpop.permute.xlu1 %214  ;;  %v212_v51 = vpop.permute.xlu0 %211  ;;  %7521 = vmatprep.mubr.msk.f32.mxu0 %vm488_vm0, %v6549_v47 }
  0xd9   :  { %vm330_vm13 = vcmp.eq.s32.totalorder %v9121_v7, %v212_v51  ;;  %vm331_vm14 = vcmp.eq.s32.totalorder %v9121_v7, %v215_v50 }
  0xda   :  { %v6551_v53 = vsel %vm330_vm13, 1.0, %v8881_v5  ;;  %v6552_v57 = vsel %vm331_vm14, 1.0, %v8881_v5 }
  0xdb   :  { %7522 = vmatmul.mubr.msk.f32.gmra.mrb[34].mxu0 %vm488_vm0, %v6550_v52 }
  0xdc   :  { %v221_v55 = vpop.permute.xlu1 %220  ;;  %v218_v56 = vpop.permute.xlu0 %217  ;;  %7524 = vmatprep.mubr.msk.f32.mxu0 %vm488_vm0, %v6551_v53 }
  0xdd   :  { %vm332_vm15 = vcmp.eq.s32.totalorder %v9121_v7, %v218_v56  ;;  %vm333_vm1 = vcmp.eq.s32.totalorder %v9121_v7, %v221_v55 }
  0xde   :  { %v6553_v58 = vsel %vm332_vm15, 1.0, %v8881_v5  ;;  %v6554_v61 = vsel %vm333_vm1, 1.0, %v8881_v5 }
  0xdf   :  { %7525 = vmatmul.mubr.msk.f32.gmra.mrb[36].mxu0 %vm488_vm0, %v6552_v57 }
  0xe0   :  { %v227_v59 = vpop.permute.xlu1 %226  ;;  %v224_v60 = vpop.permute.xlu0 %223  ;;  %7527 = vmatprep.mubr.msk.f32.mxu0 %vm488_vm0, %v6553_v58 }
  0xe1   :  { %vm334_vm2 = vcmp.eq.s32.totalorder %v9121_v7, %v224_v60  ;;  %vm335_vm5 = vcmp.eq.s32.totalorder %v9121_v7, %v227_v59 }
  0xe2   :  { %v6555_v62 = vsel %vm334_vm2, 1.0, %v8881_v5  ;;  %v6556_v0 = vsel %vm335_vm5, 1.0, %v8881_v5 }
  0xe3   :  { %7528 = vmatmul.mubr.msk.f32.gmra.mrb[38].mxu0 %vm488_vm0, %v6554_v61 }
  0xe4   :  { %v233_v17 = vpop.permute.xlu1 %232  ;;  %v230_v63 = vpop.permute.xlu0 %229  ;;  %7530 = vmatprep.mubr.msk.f32.mxu0 %vm488_vm0, %v6555_v62 }
  0xe5   :  { %vm336_vm4 = vcmp.eq.s32.totalorder %v9121_v7, %v230_v63  ;;  %vm337_vm6 = vcmp.eq.s32.totalorder %v9121_v7, %v233_v17 }
  0xe6   :  { %v6557_v1 = vsel %vm336_vm4, 1.0, %v8881_v5  ;;  %v6558_v4 = vsel %vm337_vm6, 1.0, %v8881_v5 }
  0xe7   :  { %7531 = vmatmul.mubr.msk.f32.gmra.mrb[40].mxu0 %vm488_vm0, %v6556_v0 }
  0xe8   :  { %v239_v2 = vpop.permute.xlu1 %238  ;;  %v236_v3 = vpop.permute.xlu0 %235  ;;  %7533 = vmatprep.mubr.msk.f32.mxu0 %vm488_vm0, %v6557_v1 }
  0xe9   :  { %vm338_vm7 = vcmp.eq.s32.totalorder %v9121_v7, %v236_v3  ;;  %vm339_vm8 = vcmp.eq.s32.totalorder %v9121_v7, %v239_v2 }
  0xea   :  { %v6559_v6 = vsel %vm338_vm7, 1.0, %v8881_v5  ;;  %v6560_v10 = vsel %vm339_vm8, 1.0, %v8881_v5 }
  0xeb   :  { %7534 = vmatmul.mubr.msk.f32.gmra.mrb[42].mxu0 %vm488_vm0, %v6558_v4 }
  0xec   :  { %v245_v8 = vpop.permute.xlu1 %244  ;;  %v242_v9 = vpop.permute.xlu0 %241  ;;  %7536 = vmatprep.mubr.msk.f32.mxu0 %vm488_vm0, %v6559_v6 }
  0xed   :  { %vm340_vm9 = vcmp.eq.s32.totalorder %v9121_v7, %v242_v9  ;;  %vm341_vm10 = vcmp.eq.s32.totalorder %v9121_v7, %v245_v8 }
  0xee   :  { %v6561_v11 = vsel %vm340_vm9, 1.0, %v8881_v5  ;;  %v6562_v14 = vsel %vm341_vm10, 1.0, %v8881_v5 }
  0xef   :  { %7537 = vmatmul.mubr.msk.f32.gmra.mrb[44].mxu0 %vm488_vm0, %v6560_v10 }
  0xf0   :  { %v251_v12 = vpop.permute.xlu1 %250  ;;  %v248_v13 = vpop.permute.xlu0 %247  ;;  %7539 = vmatprep.mubr.msk.f32.mxu0 %vm488_vm0, %v6561_v11 }
  0xf1   :  { %vm342_vm11 = vcmp.eq.s32.totalorder %v9121_v7, %v248_v13  ;;  %vm343_vm12 = vcmp.eq.s32.totalorder %v9121_v7, %v251_v12 }
  0xf2   :  { %v6563_v16 = vsel %vm342_vm11, 1.0, %v8881_v5  ;;  %v6564_v20 = vsel %vm343_vm12, 1.0, %v8881_v5 }
  0xf3   :  { %7540 = vmatmul.mubr.msk.f32.gmra.mrb[46].mxu0 %vm488_vm0, %v6562_v14 }
  0xf4   :  { %v257_v18 = vpop.permute.xlu1 %256  ;;  %v254_v19 = vpop.permute.xlu0 %253  ;;  %7542 = vmatprep.mubr.msk.f32.mxu0 %vm488_vm0, %v6563_v16 }
  0xf5   :  { %vm344_vm13 = vcmp.eq.s32.totalorder %v9121_v7, %v254_v19  ;;  %vm345_vm14 = vcmp.eq.s32.totalorder %v9121_v7, %v257_v18 }
  0xf6   :  { %v6565_v21 = vsel %vm344_vm13, 1.0, %v8881_v5  ;;  %v6566_v24 = vsel %vm345_vm14, 1.0, %v8881_v5 }
  0xf7   :  { %7543 = vmatmul.mubr.msk.f32.gmra.mrb[48].mxu0 %vm488_vm0, %v6564_v20 }
  0xf8   :  { %v263_v22 = vpop.permute.xlu1 %262  ;;  %v260_v23 = vpop.permute.xlu0 %259  ;;  %7545 = vmatprep.mubr.msk.f32.mxu0 %vm488_vm0, %v6565_v21 }
  0xf9   :  { %vm346_vm15 = vcmp.eq.s32.totalorder %v9121_v7, %v260_v23  ;;  %vm347_vm1 = vcmp.eq.s32.totalorder %v9121_v7, %v263_v22 }
  0xfa   :  { %v6567_v25 = vsel %vm346_vm15, 1.0, %v8881_v5  ;;  %v6568_v28 = vsel %vm347_vm1, 1.0, %v8881_v5 }
  0xfb   :  { %7546 = vmatmul.mubr.msk.f32.gmra.mrb[50].mxu0 %vm488_vm0, %v6566_v24 }
  0xfc   :  { %v269_v26 = vpop.permute.xlu1 %268  ;;  %v266_v27 = vpop.permute.xlu0 %265  ;;  %7548 = vmatprep.mubr.msk.f32.mxu0 %vm488_vm0, %v6567_v25 }
  0xfd   :  { %vm348_vm2 = vcmp.eq.s32.totalorder %v9121_v7, %v266_v27  ;;  %vm349_vm5 = vcmp.eq.s32.totalorder %v9121_v7, %v269_v26 }
  0xfe   :  { %v6569_v29 = vsel %vm348_vm2, 1.0, %v8881_v5  ;;  %v6570_v32 = vsel %vm349_vm5, 1.0, %v8881_v5 }
  0xff   :  { %7549 = vmatmul.mubr.msk.f32.gmra.mrb[52].mxu0 %vm488_vm0, %v6568_v28 }
 0x100   :  { %v275_v30 = vpop.permute.xlu1 %274  ;;  %v272_v31 = vpop.permute.xlu0 %271  ;;  %7551 = vmatprep.mubr.msk.f32.mxu0 %vm488_vm0, %v6569_v29 }
 0x101   :  { %vm350_vm4 = vcmp.eq.s32.totalorder %v9121_v7, %v272_v31  ;;  %vm351_vm6 = vcmp.eq.s32.totalorder %v9121_v7, %v275_v30 }
 0x102   :  { %v6571_v33 = vsel %vm350_vm4, 1.0, %v8881_v5  ;;  %v6572_v36 = vsel %vm351_vm6, 1.0, %v8881_v5 }
 0x103   :  { %7552 = vmatmul.mubr.msk.f32.gmra.mrb[54].mxu0 %vm488_vm0, %v6570_v32 }
 0x104   :  { %v281_v34 = vpop.permute.xlu1 %280  ;;  %v278_v35 = vpop.permute.xlu0 %277  ;;  %7554 = vmatprep.mubr.msk.f32.mxu0 %vm488_vm0, %v6571_v33 }
 0x105   :  { %vm352_vm7 = vcmp.eq.s32.totalorder %v9121_v7, %v278_v35  ;;  %vm353_vm8 = vcmp.eq.s32.totalorder %v9121_v7, %v281_v34 }
 0x106   :  { %v6573_v37 = vsel %vm352_vm7, 1.0, %v8881_v5  ;;  %v6574_v40 = vsel %vm353_vm8, 1.0, %v8881_v5 }
 0x107   :  { %7555 = vmatmul.mubr.msk.f32.gmra.mrb[56].mxu0 %vm488_vm0, %v6572_v36 }
 0x108   :  { %v287_v38 = vpop.permute.xlu1 %286  ;;  %v284_v39 = vpop.permute.xlu0 %283  ;;  %7557 = vmatprep.mubr.msk.f32.mxu0 %vm488_vm0, %v6573_v37 }
 0x109   :  { %vm354_vm9 = vcmp.eq.s32.totalorder %v9121_v7, %v284_v39  ;;  %vm355_vm10 = vcmp.eq.s32.totalorder %v9121_v7, %v287_v38 }
 0x10a   :  { %v6575_v41 = vsel %vm354_vm9, 1.0, %v8881_v5  ;;  %v6576_v44 = vsel %vm355_vm10, 1.0, %v8881_v5 }
 0x10b   :  { %7558 = vmatmul.mubr.msk.f32.gmra.mrb[58].mxu0 %vm488_vm0, %v6574_v40 }
 0x10c   :  { %v293_v42 = vpop.permute.xlu1 %292  ;;  %v290_v43 = vpop.permute.xlu0 %289  ;;  %7560 = vmatprep.mubr.msk.f32.mxu0 %vm488_vm0, %v6575_v41 }
 0x10d   :  { %vm356_vm11 = vcmp.eq.s32.totalorder %v9121_v7, %v290_v43  ;;  %vm357_vm12 = vcmp.eq.s32.totalorder %v9121_v7, %v293_v42 }
 0x10e   :  { %v6577_v45 = vsel %vm356_vm11, 1.0, %v8881_v5  ;;  %v6578_v46 = vsel %vm357_vm12, 1.0, %v8881_v5 }
 0x10f   :  { %7561 = vmatmul.mubr.msk.f32.gmra.mrb[60].mxu0 %vm488_vm0, %v6576_v44 }
 0x110   :  { %7563 = vmatprep.mubr.msk.f32.mxu0 %vm488_vm0, %v6577_v45 }
 0x113   :  { %7564 = vmatmul.mubr.msk.f32.gmra.mrb[62].mxu0 %vm488_vm0, %v6578_v46 }
 0x16a   :  { %v7472_v47 = vpop.f32.mrb[0].mxu0 }
 0x16b   :  { %v747_v48 = vpop.f32.mrb[1].mxu0 }
 0x16c   :  { %6663 = vmatmul.mubr.msk.f32.vlgmr.msra.gmra.mrb[0].mxu1 %vm1086_vm3, %v747_v48 }
 0x16d   :  { %1409 = vmatprep.mubr.f32.mxu1 %v8881_v5 }
 0x16e   :  { %v7475_v49 = vpop.f32.mrb[2].mxu0 }
 0x16f   :  { %v757_v50 = vpop.f32.mrb[3].mxu0 }
 0x170   :  { %6664 = vmatmul.mubr.msk.f32.gmra.mrb[2].mxu1 %vm1086_vm3, %v7472_v47 }
 0x171   :  { %1415 = vmatprep.mubr.f32.mxu1 %v8881_v5 }
 0x172   :  { %v7478_v7 = vpop.f32.mrb[4].mxu0 }
 0x173   :  { %v767_v51 = vpop.f32.mrb[5].mxu0 }
 0x174   :  { %6665 = vmatmul.mubr.msk.f32.gmra.mrb[4].mxu1 %vm1086_vm3, %v757_v50 }
 0x175   :  { %1421 = vmatprep.mubr.f32.mxu1 %v8881_v5 }
 0x176   :  { %v7481_v52 = vpop.f32.mrb[6].mxu0 }
 0x177   :  { %v777_v53 = vpop.f32.mrb[7].mxu0 }
 0x178   :  { %6666 = vmatmul.mubr.msk.f32.gmra.mrb[6].mxu1 %vm1086_vm3, %v7475_v49 }
 0x179   :  { %1427 = vmatprep.mubr.f32.mxu1 %v8881_v5 }
 0x17a   :  { %v7484_v54 = vpop.f32.mrb[8].mxu0 }
 0x17b   :  { %v787_v55 = vpop.f32.mrb[9].mxu0 }
 0x17c   :  { %6667 = vmatmul.mubr.msk.f32.gmra.mrb[8].mxu1 %vm1086_vm3, %v767_v51 }
 0x17d   :  { %1433 = vmatprep.mubr.f32.mxu1 %v8881_v5 }
 0x17e   :  { %v7487_v56 = vpop.f32.mrb[10].mxu0 }
 0x17f   :  { %v797_v57 = vpop.f32.mrb[11].mxu0 }
 0x180   :  { %6668 = vmatmul.mubr.msk.f32.gmra.mrb[10].mxu1 %vm1086_vm3, %v7478_v7 }
 0x181   :  { %1439 = vmatprep.mubr.f32.mxu1 %v8881_v5 }
 0x182   :  { %v7490_v58 = vpop.f32.mrb[12].mxu0 }
 0x183   :  { %v807_v59 = vpop.f32.mrb[13].mxu0 }
 0x184   :  { %6669 = vmatmul.mubr.msk.f32.gmra.mrb[12].mxu1 %vm1086_vm3, %v777_v53 }
 0x185   :  { %1445 = vmatprep.mubr.f32.mxu1 %v8881_v5 }
 0x186   :  { %v7493_v60 = vpop.f32.mrb[14].mxu0 }
 0x187   :  { %v817_v61 = vpop.f32.mrb[15].mxu0 }
 0x188   :  { %6670 = vmatmul.mubr.msk.f32.gmra.mrb[14].mxu1 %vm1086_vm3, %v7481_v52 }
 0x189   :  { %1451 = vmatprep.mubr.f32.mxu1 %v8881_v5 }
 0x18a   :  { %v7496_v62 = vpop.f32.mrb[16].mxu0 }
 0x18b   :  { %v827_v17 = vpop.f32.mrb[17].mxu0 }
 0x18c   :  { %6671 = vmatmul.mubr.msk.f32.gmra.mrb[16].mxu1 %vm1086_vm3, %v787_v55 }
 0x18d   :  { %1457 = vmatprep.mubr.f32.mxu1 %v8881_v5 }
 0x18e   :  { %v7499_v63 = vpop.f32.mrb[18].mxu0 }
 0x18f   :  { %v837_v0 = vpop.f32.mrb[19].mxu0 }
 0x190   :  { %6672 = vmatmul.mubr.msk.f32.gmra.mrb[18].mxu1 %vm1086_vm3, %v7484_v54 }
 0x191   :  { %1463 = vmatprep.mubr.f32.mxu1 %v8881_v5 }
 0x192   :  { %v7502_v1 = vpop.f32.mrb[20].mxu0 }
 0x193   :  { %v847_v2 = vpop.f32.mrb[21].mxu0 }
 0x194   :  { %6673 = vmatmul.mubr.msk.f32.gmra.mrb[20].mxu1 %vm1086_vm3, %v797_v57 }
 0x195   :  { %1469 = vmatprep.mubr.f32.mxu1 %v8881_v5 }
 0x196   :  { %v7505_v3 = vpop.f32.mrb[22].mxu0 }
 0x197   :  { %v857_v4 = vpop.f32.mrb[23].mxu0 }
 0x198   :  { %6674 = vmatmul.mubr.msk.f32.gmra.mrb[22].mxu1 %vm1086_vm3, %v7487_v56 }
 0x199   :  { %1475 = vmatprep.mubr.f32.mxu1 %v8881_v5 }
 0x19a   :  { %v7508_v6 = vpop.f32.mrb[24].mxu0 }
 0x19b   :  { %v867_v8 = vpop.f32.mrb[25].mxu0 }
 0x19c   :  { %6675 = vmatmul.mubr.msk.f32.gmra.mrb[24].mxu1 %vm1086_vm3, %v807_v59 }
 0x19d   :  { %1481 = vmatprep.mubr.f32.mxu1 %v8881_v5 }
 0x19e   :  { %v7511_v9 = vpop.f32.mrb[26].mxu0 }
 0x19f   :  { %v877_v10 = vpop.f32.mrb[27].mxu0 }
 0x1a0   :  { %6676 = vmatmul.mubr.msk.f32.gmra.mrb[26].mxu1 %vm1086_vm3, %v7490_v58 }
 0x1a1   :  { %1487 = vmatprep.mubr.f32.mxu1 %v8881_v5 }
 0x1a2   :  { %v7514_v11 = vpop.f32.mrb[28].mxu0 }
 0x1a3   :  { %v887_v12 = vpop.f32.mrb[29].mxu0 }
 0x1a4   :  { %6677 = vmatmul.mubr.msk.f32.gmra.mrb[28].mxu1 %vm1086_vm3, %v817_v61 }
 0x1a5   :  { %1493 = vmatprep.mubr.f32.mxu1 %v8881_v5 }
 0x1a6   :  { %v9441_v13 = vpop.f32.mrb[30].mxu0 }
 0x1a7   :  { %v897_v14 = vpop.f32.mrb[31].mxu0 }
 0x1a8   :  { %6678 = vmatmul.mubr.msk.f32.gmra.mrb[30].mxu1 %vm1086_vm3, %v7493_v60 }
 0x1a9   :  { %1499 = vmatprep.mubr.f32.mxu1 %v8881_v5 }
 0x1aa   :  { %v9445_v16 = vpop.f32.mrb[32].mxu0 }
 0x1ab   :  { %v9447_v18 = vpop.f32.mrb[33].mxu0 }
 0x1ac   :  { %6679 = vmatmul.mubr.msk.f32.gmra.mrb[32].mxu1 %vm1086_vm3, %v827_v17 }
 0x1ad   :  { %1505 = vmatprep.mubr.f32.mxu1 %v8881_v5 }
 0x1ae   :  { %v9451_v19 = vpop.f32.mrb[34].mxu0 }
 0x1af   :  { %v9453_v20 = vpop.f32.mrb[35].mxu0 }
 0x1b0   :  { %6680 = vmatmul.mubr.msk.f32.gmra.mrb[34].mxu1 %vm1086_vm3, %v7496_v62 }
 0x1b1   :  { %1511 = vmatprep.mubr.f32.mxu1 %v8881_v5 }
 0x1b2   :  { %v9457_v21 = vpop.f32.mrb[36].mxu0 }
 0x1b3   :  { %v9459_v22 = vpop.f32.mrb[37].mxu0 }
 0x1b4   :  { %6681 = vmatmul.mubr.msk.f32.gmra.mrb[36].mxu1 %vm1086_vm3, %v837_v0 }
 0x1b5   :  { %1517 = vmatprep.mubr.f32.mxu1 %v8881_v5 }
 0x1b6   :  { %v9463_v23 = vpop.f32.mrb[38].mxu0 }
 0x1b7   :  { %v9465_v24 = vpop.f32.mrb[39].mxu0 }
 0x1b8   :  { %6682 = vmatmul.mubr.msk.f32.gmra.mrb[38].mxu1 %vm1086_vm3, %v7499_v63 }
 0x1b9   :  { %1523 = vmatprep.mubr.f32.mxu1 %v8881_v5 }
 0x1ba   :  { %v9469_v25 = vpop.f32.mrb[40].mxu0 }
 0x1bb   :  { %v9471_v26 = vpop.f32.mrb[41].mxu0 }
 0x1bc   :  { %6683 = vmatmul.mubr.msk.f32.gmra.mrb[40].mxu1 %vm1086_vm3, %v847_v2 }
 0x1bd   :  { %1529 = vmatprep.mubr.f32.mxu1 %v8881_v5 }
 0x1be   :  { %v9475_v27 = vpop.f32.mrb[42].mxu0 }
 0x1bf   :  { %v9477_v28 = vpop.f32.mrb[43].mxu0 }
 0x1c0   :  { %6684 = vmatmul.mubr.msk.f32.gmra.mrb[42].mxu1 %vm1086_vm3, %v7502_v1 }
 0x1c1   :  { %1535 = vmatprep.mubr.f32.mxu1 %v8881_v5 }
 0x1c2   :  { %v9481_v29 = vpop.f32.mrb[44].mxu0 }
 0x1c3   :  { %v9483_v30 = vpop.f32.mrb[45].mxu0 }
 0x1c4   :  { %6685 = vmatmul.mubr.msk.f32.gmra.mrb[44].mxu1 %vm1086_vm3, %v857_v4 }
 0x1c5   :  { %1541 = vmatprep.mubr.f32.mxu1 %v8881_v5 }
 0x1c6   :  { %v9487_v31 = vpop.f32.mrb[46].mxu0 }
 0x1c7   :  { %v9489_v32 = vpop.f32.mrb[47].mxu0 }
 0x1c8   :  { %6686 = vmatmul.mubr.msk.f32.gmra.mrb[46].mxu1 %vm1086_vm3, %v7505_v3 }
 0x1c9   :  { %1547 = vmatprep.mubr.f32.mxu1 %v8881_v5 }
 0x1ca   :  { %v9493_v33 = vpop.f32.mrb[48].mxu0 }
 0x1cb   :  { %v9495_v34 = vpop.f32.mrb[49].mxu0 }
 0x1cc   :  { %6687 = vmatmul.mubr.msk.f32.gmra.mrb[48].mxu1 %vm1086_vm3, %v867_v8 }
 0x1cd   :  { %1553 = vmatprep.mubr.f32.mxu1 %v8881_v5 }
 0x1ce   :  { %v9499_v35 = vpop.f32.mrb[50].mxu0 }
 0x1cf   :  { %v9501_v36 = vpop.f32.mrb[51].mxu0 }
 0x1d0   :  { %6688 = vmatmul.mubr.msk.f32.gmra.mrb[50].mxu1 %vm1086_vm3, %v7508_v6 }
 0x1d1   :  { %1559 = vmatprep.mubr.f32.mxu1 %v8881_v5 }
 0x1d2   :  { %v9505_v37 = vpop.f32.mrb[52].mxu0 }
 0x1d3   :  { %v9507_v38 = vpop.f32.mrb[53].mxu0 }
 0x1d4   :  { %6689 = vmatmul.mubr.msk.f32.gmra.mrb[52].mxu1 %vm1086_vm3, %v877_v10 }
 0x1d5   :  { %1565 = vmatprep.mubr.f32.mxu1 %v8881_v5 }
 0x1d6   :  { %v9511_v39 = vpop.f32.mrb[54].mxu0 }
 0x1d7   :  { %v9513_v40 = vpop.f32.mrb[55].mxu0 }
 0x1d8   :  { %6690 = vmatmul.mubr.msk.f32.gmra.mrb[54].mxu1 %vm1086_vm3, %v7511_v9 }
 0x1d9   :  { %1571 = vmatprep.mubr.f32.mxu1 %v8881_v5 }
 0x1da   :  { %v9517_v41 = vpop.f32.mrb[56].mxu0 }
 0x1db   :  { %v9519_v42 = vpop.f32.mrb[57].mxu0 }
 0x1dc   :  { %6691 = vmatmul.mubr.msk.f32.gmra.mrb[56].mxu1 %vm1086_vm3, %v887_v12 }
 0x1dd   :  { %1577 = vmatprep.mubr.f32.mxu1 %v8881_v5 }
 0x1de   :  { %v9523_v43 = vpop.f32.mrb[58].mxu0 }
 0x1df   :  { %v9525_v44 = vpop.f32.mrb[59].mxu0 }
 0x1e0   :  { %6692 = vmatmul.mubr.msk.f32.gmra.mrb[58].mxu1 %vm1086_vm3, %v7514_v11 }
 0x1e1   :  { %1583 = vmatprep.mubr.f32.mxu1 %v8881_v5 }
 0x1e2   :  { %v9529_v45 = vpop.f32.mrb[60].mxu0 }
 0x1e3   :  { %v9531_v46 = vpop.f32.mrb[61].mxu0 }
 0x1e4   :  { %6693 = vmatmul.mubr.msk.f32.gmra.mrb[60].mxu1 %vm1086_vm3, %v897_v14 }
 0x1e5   :  { %1589 = vmatprep.mubr.f32.mxu1 %v8881_v5 }
 0x1e6   :  { %v9535_v47 = vpop.f32.mrb[62].mxu0 }
 0x1e7   :  { %v9537_v48 = vpop.f32.mrb[63].mxu0 }
 0x1e8   :  { %6694 = vmatmul.mubr.msk.f32.gmra.mrb[62].mxu1 %vm1086_vm3, %v9441_v13 }
 0x1e9   :  { %1595 = vmatprep.mubr.f32.mxu1 %v8881_v5 }
 0x1ec   :  { %6695 = vmatmul.mubr.msk.f32.gmra.mrb[64].mxu1 %vm1086_vm3, %v9447_v18 }
 0x1ed   :  { %1601 = vmatprep.mubr.f32.mxu1 %v8881_v5 }
 0x1f0   :  { %6696 = vmatmul.mubr.msk.f32.gmra.mrb[66].mxu1 %vm1086_vm3, %v9445_v16 }
 0x1f1   :  { %1607 = vmatprep.mubr.f32.mxu1 %v8881_v5 }
 0x1f4   :  { %6697 = vmatmul.mubr.msk.f32.gmra.mrb[68].mxu1 %vm1086_vm3, %v9453_v20 }
 0x1f5   :  { %1613 = vmatprep.mubr.f32.mxu1 %v8881_v5 }
 0x1f8   :  { %6698 = vmatmul.mubr.msk.f32.gmra.mrb[70].mxu1 %vm1086_vm3, %v9451_v19 }
 0x1f9   :  { %1619 = vmatprep.mubr.f32.mxu1 %v8881_v5 }
 0x1fc   :  { %6699 = vmatmul.mubr.msk.f32.gmra.mrb[72].mxu1 %vm1086_vm3, %v9459_v22 }
 0x1fd   :  { %1625 = vmatprep.mubr.f32.mxu1 %v8881_v5 }
 0x200   :  { %6700 = vmatmul.mubr.msk.f32.gmra.mrb[74].mxu1 %vm1086_vm3, %v9457_v21 }
 0x201   :  { %1631 = vmatprep.mubr.f32.mxu1 %v8881_v5 }
 0x204   :  { %6701 = vmatmul.mubr.msk.f32.gmra.mrb[76].mxu1 %vm1086_vm3, %v9465_v24 }
 0x205   :  { %1637 = vmatprep.mubr.f32.mxu1 %v8881_v5 }
 0x208   :  { %6702 = vmatmul.mubr.msk.f32.gmra.mrb[78].mxu1 %vm1086_vm3, %v9463_v23 }
 0x209   :  { %1643 = vmatprep.mubr.f32.mxu1 %v8881_v5 }
 0x20c   :  { %6703 = vmatmul.mubr.msk.f32.gmra.mrb[80].mxu1 %vm1086_vm3, %v9471_v26 }
 0x20d   :  { %1649 = vmatprep.mubr.f32.mxu1 %v8881_v5 }
 0x210   :  { %6704 = vmatmul.mubr.msk.f32.gmra.mrb[82].mxu1 %vm1086_vm3, %v9469_v25 }
 0x211   :  { %1655 = vmatprep.mubr.f32.mxu1 %v8881_v5 }
 0x214   :  { %6705 = vmatmul.mubr.msk.f32.gmra.mrb[84].mxu1 %vm1086_vm3, %v9477_v28 }
 0x215   :  { %1661 = vmatprep.mubr.f32.mxu1 %v8881_v5 }
 0x218   :  { %6706 = vmatmul.mubr.msk.f32.gmra.mrb[86].mxu1 %vm1086_vm3, %v9475_v27 }
 0x219   :  { %1667 = vmatprep.mubr.f32.mxu1 %v8881_v5 }
 0x21c   :  { %6707 = vmatmul.mubr.msk.f32.gmra.mrb[88].mxu1 %vm1086_vm3, %v9483_v30 }
 0x21d   :  { %1673 = vmatprep.mubr.f32.mxu1 %v8881_v5 }
 0x220   :  { %6708 = vmatmul.mubr.msk.f32.gmra.mrb[90].mxu1 %vm1086_vm3, %v9481_v29 }
 0x221   :  { %1679 = vmatprep.mubr.f32.mxu1 %v8881_v5 }
 0x224   :  { %6709 = vmatmul.mubr.msk.f32.gmra.mrb[92].mxu1 %vm1086_vm3, %v9489_v32 }
 0x225   :  { %1685 = vmatprep.mubr.f32.mxu1 %v8881_v5 }
 0x228   :  { %6710 = vmatmul.mubr.msk.f32.gmra.mrb[94].mxu1 %vm1086_vm3, %v9487_v31 }
 0x229   :  { %1691 = vmatprep.mubr.f32.mxu1 %v8881_v5 }
 0x22c   :  { %6711 = vmatmul.mubr.msk.f32.gmra.mrb[96].mxu1 %vm1086_vm3, %v9495_v34 }
 0x22d   :  { %1697 = vmatprep.mubr.f32.mxu1 %v8881_v5 }
 0x230   :  { %6712 = vmatmul.mubr.msk.f32.gmra.mrb[98].mxu1 %vm1086_vm3, %v9493_v33 }
 0x231   :  { %1703 = vmatprep.mubr.f32.mxu1 %v8881_v5 }
 0x234   :  { %6713 = vmatmul.mubr.msk.f32.gmra.mrb[100].mxu1 %vm1086_vm3, %v9501_v36 }
 0x235   :  { %1709 = vmatprep.mubr.f32.mxu1 %v8881_v5 }
 0x238   :  { %6714 = vmatmul.mubr.msk.f32.gmra.mrb[102].mxu1 %vm1086_vm3, %v9499_v35 }
 0x239   :  { %1715 = vmatprep.mubr.f32.mxu1 %v8881_v5 }
 0x23c   :  { %6715 = vmatmul.mubr.msk.f32.gmra.mrb[104].mxu1 %vm1086_vm3, %v9507_v38 }
 0x23d   :  { %1721 = vmatprep.mubr.f32.mxu1 %v8881_v5 }
 0x23f   :  { %v9605_v49 = vpop.f32.mrb[0].mxu1 }
 0x240   :  { %v1407_v50 = vpop.f32.mrb[1].mxu1  ;;  %6716 = vmatmul.mubr.msk.f32.gmra.mrb[106].mxu1 %vm1086_vm3, %v9505_v37 }
 0x241   :  { %v9609_v7 = vmul.f32 0.25, %v1407_v50  ;;  %1727 = vmatprep.mubr.f32.mxu1 %v8881_v5 }
 0x243   :  { %v9612_v51 = vpop.f32.mrb[2].mxu1  ;;  %7018 = vmatprep.mubr.msk.f32.mxu0 %vm488_vm0, %v9609_v7 }
 0x244   :  { %v9618_v53 = vpop.f32.mrb[3].mxu1  ;;  %6717 = vmatmul.mubr.msk.f32.gmra.mrb[108].mxu1 %vm1086_vm3, %v9513_v40 }
 0x245   :  { %v8022_v54 = vpack.i.bf16 %v9618_v53, %v1407_v50  ;;  %1733 = vmatprep.mubr.f32.mxu1 %v8881_v5 }
 0x247   :  { %8023 = vrot.lane.b32.xlu1 %v8022_v54, %s8883_s2  ;;  %v9625_v55 = vpop.f32.mrb[4].mxu1 }
 0x248   :  { %v9627_v56 = vpop.f32.mrb[5].mxu1  ;;  %6718 = vmatmul.mubr.msk.f32.gmra.mrb[110].mxu1 %vm1086_vm3, %v9511_v39 }
 0x249   :  { %1739 = vmatprep.mubr.f32.mxu1 %v8881_v5 }
 0x24b   :  { %v9632_v57 = vpop.f32.mrb[6].mxu1 }
 0x24c   :  { %v9636_v59 = vpop.f32.mrb[7].mxu1  ;;  %6719 = vmatmul.mubr.msk.f32.gmra.mrb[112].mxu1 %vm1086_vm3, %v9519_v42 }
 0x24d   :  { %v8032_v60 = vpack.i.bf16 %v9636_v59, %v9627_v56  ;;  %1745 = vmatprep.mubr.f32.mxu1 %v8881_v5 }
 0x24f   :  { %8033 = vrot.lane.b32.xlu1 %v8032_v60, %s8883_s2  ;;  %v9644_v61 = vpop.f32.mrb[8].mxu1 }
 0x250   :  { %v9646_v62 = vpop.f32.mrb[9].mxu1  ;;  %6720 = vmatmul.mubr.msk.f32.gmra.mrb[114].mxu1 %vm1086_vm3, %v9517_v41 }
 0x251   :  { %1751 = vmatprep.mubr.f32.mxu1 %v8881_v5 }
 0x253   :  { %v9651_v17 = vpop.f32.mrb[10].mxu1 }
 0x254   :  { %v9655_v0 = vpop.f32.mrb[11].mxu1  ;;  %6721 = vmatmul.mubr.msk.f32.gmra.mrb[116].mxu1 %vm1086_vm3, %v9525_v44 }
 0x255   :  { %v8042_v1 = vpack.i.bf16 %v9655_v0, %v9646_v62  ;;  %1757 = vmatprep.mubr.f32.mxu1 %v8881_v5 }
 0x257   :  { %8043 = vrot.lane.b32.xlu1 %v8042_v1, %s8883_s2  ;;  %v9663_v2 = vpop.f32.mrb[12].mxu1 }
 0x258   :  { %v9665_v3 = vpop.f32.mrb[13].mxu1  ;;  %6722 = vmatmul.mubr.msk.f32.gmra.mrb[118].mxu1 %vm1086_vm3, %v9523_v43 }
 0x259   :  { %1763 = vmatprep.mubr.f32.mxu1 %v8881_v5 }
 0x25b   :  { %v9670_v4 = vpop.f32.mrb[14].mxu1 }
 0x25c   :  { %v9674_v8 = vpop.f32.mrb[15].mxu1  ;;  %6723 = vmatmul.mubr.msk.f32.gmra.mrb[120].mxu1 %vm1086_vm3, %v9531_v46 }
 0x25d   :  { %v8052_v9 = vpack.i.bf16 %v9674_v8, %v9665_v3  ;;  %1769 = vmatprep.mubr.f32.mxu1 %v8881_v5 }
 0x25f   :  { %8053 = vrot.lane.b32.xlu1 %v8052_v9, %s8883_s2  ;;  %v9682_v10 = vpop.f32.mrb[16].mxu1 }
 0x260   :  { %v9684_v11 = vpop.f32.mrb[17].mxu1  ;;  %6724 = vmatmul.mubr.msk.f32.gmra.mrb[122].mxu1 %vm1086_vm3, %v9529_v45 }
 0x261   :  { %1775 = vmatprep.mubr.f32.mxu1 %v8881_v5 }
 0x263   :  { %v9689_v12 = vpop.f32.mrb[18].mxu1 }
 0x264   :  { %v9693_v14 = vpop.f32.mrb[19].mxu1  ;;  %6725 = vmatmul.mubr.msk.f32.gmra.mrb[124].mxu1 %vm1086_vm3, %v9537_v48 }
 0x265   :  { %v8062_v16 = vpack.i.bf16 %v9693_v14, %v9684_v11  ;;  %1781 = vmatprep.mubr.f32.mxu1 %v8881_v5 }
 0x267   :  { %8063 = vrot.lane.b32.xlu1 %v8062_v16, %s8883_s2  ;;  %v9701_v18 = vpop.f32.mrb[20].mxu1 }
 0x268   :  { %v9703_v19 = vpop.f32.mrb[21].mxu1  ;;  %6726 = vmatmul.mubr.msk.f32.gmra.mrb[126].mxu1 %vm1086_vm3, %v9535_v47  ;;  %vm9946_vm3 = vmpackc.low %vm488_vm0, %vm488_vm0 }
 0x26b   :  { %v9707_v20 = vpop.f32.mrb[22].mxu1 }
 0x26c   :  { %v9711_v22 = vpop.f32.mrb[23].mxu1 }
 0x26d   :  { %v8072_v23 = vpack.i.bf16 %v9711_v22, %v9703_v19 }
 0x26f   :  { %8073 = vrot.lane.b32.xlu1 %v8072_v23, %s8883_s2  ;;  %v9716_v5 = vpop.f32.mrb[24].mxu1 }
 0x270   :  { %v9718_v24 = vpop.f32.mrb[25].mxu1 }
 0x273   :  { %v9720_v25 = vpop.f32.mrb[26].mxu1 }
 0x274   :  { %v9724_v27 = vpop.f32.mrb[27].mxu1 }
 0x275   :  { %16138 = vst [vmem:[#allocation5_spill] sm:$0xff] %v9724_v27  ;;  %v8082_v28 = vpack.i.bf16 %v9724_v27, %v9718_v24 }
 0x277   :  { %8083 = vrot.lane.b32.xlu1 %v8082_v28, %s8883_s2  ;;  %v9729_v29 = vpop.f32.mrb[28].mxu1 }
 0x278   :  { %v9731_v30 = vpop.f32.mrb[29].mxu1 }
 0x279   :  { %16139 = vst [vmem:[#allocation6_spill] sm:$0xff] %v9731_v30 }
 0x27b   :  { %v9733_v31 = vpop.f32.mrb[30].mxu1 }
 0x27c   :  { %v9737_v33 = vpop.f32.mrb[31].mxu1 }
 0x27d   :  { %16140 = vst [vmem:[#allocation7_spill] sm:$0xff] %v9737_v33  ;;  %v8092_v34 = vpack.i.bf16 %v9737_v33, %v9731_v30 }
 0x27f   :  { %8093 = vrot.lane.b32.xlu1 %v8092_v34, %s8883_s2  ;;  %v9742_v35 = vpop.f32.mrb[32].mxu1 }
 0x280   :  { %v9744_v36 = vpop.f32.mrb[33].mxu1 }
 0x281   :  { %16141 = vst [vmem:[#allocation8_spill] sm:$0xff] %v9744_v36 }
 0x283   :  { %v9746_v37 = vpop.f32.mrb[34].mxu1 }
 0x284   :  { %v9750_v39 = vpop.f32.mrb[35].mxu1 }
 0x285   :  { %16142 = vst [vmem:[#allocation9_spill] sm:$0xff] %v9750_v39  ;;  %v8017_v40 = vpack.i.bf16 %v9750_v39, %v9744_v36 }
 0x287   :  { %8018 = vrot.lane.b32.xlu0 %v8017_v40, %s8883_s2  ;;  %v9755_v41 = vpop.f32.mrb[36].mxu1 }
 0x288   :  { %v9757_v42 = vpop.f32.mrb[37].mxu1 }
 0x289   :  { %16143 = vst [vmem:[#allocation10_spill] sm:$0xff] %v9757_v42 }
 0x28b   :  { %v9759_v43 = vpop.f32.mrb[38].mxu1 }
 0x28c   :  { %v9763_v45 = vpop.f32.mrb[39].mxu1 }
 0x28d   :  { %16144 = vst [vmem:[#allocation11_spill] sm:$0xff] %v9763_v45  ;;  %v8027_v46 = vpack.i.bf16 %v9763_v45, %v9757_v42 }
 0x28f   :  { %8028 = vrot.lane.b32.xlu0 %v8027_v46, %s8883_s2  ;;  %v9768_v47 = vpop.f32.mrb[40].mxu1 }
 0x290   :  { %v9770_v48 = vpop.f32.mrb[41].mxu1 }
 0x291   :  { %16145 = vst [vmem:[#allocation12_spill] sm:$0xff] %v9770_v48 }
 0x293   :  { %v9772_v50 = vpop.f32.mrb[42].mxu1 }
 0x294   :  { %v9776_v60 = vpop.f32.mrb[43].mxu1 }
 0x295   :  { %16146 = vst [vmem:[#allocation13_spill] sm:$0xff] %v9776_v60  ;;  %v8037_v1 = vpack.i.bf16 %v9776_v60, %v9770_v48 }
 0x297   :  { %8038 = vrot.lane.b32.xlu0 %v8037_v1, %s8883_s2  ;;  %v9781_v9 = vpop.f32.mrb[44].mxu1 }
 0x298   :  { %16147 = vst [vmem:[#allocation14_spill] sm:$0xff] %v9781_v9  ;;  %v9783_v16 = vpop.f32.mrb[45].mxu1 }
 0x299   :  { %16148 = vst [vmem:[#allocation15_spill] sm:$0xff] %v9783_v16 }
 0x29b   :  { %v9785_v23 = vpop.f32.mrb[46].mxu1 }
 0x29c   :  { %16149 = vst [vmem:[#allocation16_spill] sm:$0xff] %v9785_v23  ;;  %v9789_v34 = vpop.f32.mrb[47].mxu1 }
 0x29d   :  { %16150 = vst [vmem:[#allocation17_spill] sm:$0xff] %v9789_v34  ;;  %v8047_v40 = vpack.i.bf16 %v9789_v34, %v9783_v16 }
 0x29f   :  { %8048 = vrot.lane.b32.xlu0 %v8047_v40, %s8883_s2  ;;  %v9794_v46 = vpop.f32.mrb[48].mxu1 }
 0x2a0   :  { %16151 = vst [vmem:[#allocation18_spill] sm:$0xff] %v9794_v46  ;;  %v9796_v54 = vpop.f32.mrb[49].mxu1 }
 0x2a1   :  { %16152 = vst [vmem:[#allocation19_spill] sm:$0xff] %v9796_v54 }
 0x2a3   :  { %v9798_v1 = vpop.f32.mrb[50].mxu1 }
 0x2a4   :  { %16153 = vst [vmem:[#allocation20_spill] sm:$0xff] %v9798_v1  ;;  %v9802_v38 = vpop.f32.mrb[51].mxu1 }
 0x2a5   :  { %16154 = vst [vmem:[#allocation21_spill] sm:$0xff] %v9802_v38  ;;  %v8057_v28 = vpack.i.bf16 %v9802_v38, %v9796_v54 }
 0x2a7   :  { %8058 = vrot.lane.b32.xlu0 %v8057_v28, %s8883_s2  ;;  %v9807_v32 = vpop.f32.mrb[52].mxu1 }
 0x2a8   :  { %16155 = vst [vmem:[#allocation22_spill] sm:$0xff] %v9807_v32  ;;  %v9809_v26 = vpop.f32.mrb[53].mxu1 }
 0x2a9   :  { %16156 = vst [vmem:[#allocation23_spill] sm:$0xff] %v9809_v26 }
 0x2ab   :  { %v9811_v40 = vpop.f32.mrb[54].mxu1 }
 0x2ac   :  { %16157 = vst [vmem:[#allocation24_spill] sm:$0xff] %v9811_v40  ;;  %v9815_v13 = vpop.f32.mrb[55].mxu1 }
 0x2ad   :  { %16158 = vst [vmem:[#allocation25_spill] sm:$0xff] %v9815_v13  ;;  %v8067_v44 = vpack.i.bf16 %v9815_v13, %v9809_v26 }
 0x2af   :  { %8068 = vrot.lane.b32.xlu0 %v8067_v44, %s8883_s2  ;;  %v9820_v6 = vpop.f32.mrb[56].mxu1 }
 0x2b0   :  { %16159 = vst [vmem:[#allocation26_spill] sm:$0xff] %v9820_v6  ;;  %v9822_v63 = vpop.f32.mrb[57].mxu1 }
 0x2b1   :  { %16160 = vst [vmem:[#allocation27_spill] sm:$0xff] %v9822_v63 }
 0x2b3   :  { %v9824_v28 = vpop.f32.mrb[58].mxu1 }
 0x2b4   :  { %16161 = vst [vmem:[#allocation28_spill] sm:$0xff] %v9824_v28  ;;  %v9828_v52 = vpop.f32.mrb[59].mxu1 }
 0x2b5   :  { %16162 = vst [vmem:[#allocation29_spill] sm:$0xff] %v9828_v52  ;;  %v8077_v21 = vpack.i.bf16 %v9828_v52, %v9822_v63 }
 0x2b7   :  { %8078 = vrot.lane.b32.xlu0 %v8077_v21, %s8883_s2  ;;  %v9833_v15 = vpop.f32.mrb[60].mxu1 }
 0x2b8   :  { %16163 = vst [vmem:[#allocation30_spill] sm:$0xff] %v9833_v15  ;;  %v9835_v13 = vpop.f32.mrb[61].mxu1 }
 0x2b9   :  { %16164 = vst [vmem:[#allocation31_spill] sm:$0xff] %v9835_v13 }
 0x2bb   :  { %v9837_v44 = vpop.f32.mrb[62].mxu1 }
 0x2bc   :  { %16165 = vst [vmem:[#allocation32_spill] sm:$0xff] %v9837_v44  ;;  %v9841_v38 = vpop.f32.mrb[63].mxu1 }
 0x2bd   :  { %16166 = vst [vmem:[#allocation33_spill] sm:$0xff] %v9841_v38  ;;  %v8087_v58 = vpack.i.bf16 %v9841_v38, %v9835_v13 }
 0x2bf   :  { %8088 = vrot.lane.b32.xlu0 %v8087_v58, %s8883_s2  ;;  %v9846_v54 = vpop.f32.mrb[64].mxu1 }
 0x2c0   :  { %16167 = vst [vmem:[#allocation34_spill] sm:$0xff] %v9846_v54  ;;  %v9848_v52 = vpop.f32.mrb[65].mxu1 }
 0x2c1   :  { %16168 = vst [vmem:[#allocation35_spill] sm:$0xff] %v9848_v52 }
 0x2c3   :  { %v9850_v21 = vpop.f32.mrb[66].mxu1 }
 0x2c4   :  { %16169 = vst [vmem:[#allocation36_spill] sm:$0xff] %v9850_v21  ;;  %v9854_v34 = vpop.f32.mrb[67].mxu1 }
 0x2c5   :  { %16170 = vst [vmem:[#allocation37_spill] sm:$0xff] %v9854_v34  ;;  %v8102_v26 = vpack.i.bf16 %v9854_v34, %v9848_v52 }
 0x2c7   :  { %8103 = vrot.lane.b32.xlu1 %v8102_v26, %s8883_s2  ;;  %v9859_v16 = vpop.f32.mrb[68].mxu1 }
 0x2c8   :  { %16171 = vst [vmem:[#allocation38_spill] sm:$0xff] %v9859_v16  ;;  %v9861_v38 = vpop.f32.mrb[69].mxu1 }
 0x2c9   :  { %16172 = vst [vmem:[#allocation39_spill] sm:$0xff] %v9861_v38 }
 0x2cb   :  { %v9863_v58 = vpop.f32.mrb[70].mxu1 }
 0x2cc   :  { %16173 = vst [vmem:[#allocation40_spill] sm:$0xff] %v9863_v58  ;;  %v9867_v60 = vpop.f32.mrb[71].mxu1 }
 0x2cd   :  { %16174 = vst [vmem:[#allocation41_spill] sm:$0xff] %v9867_v60  ;;  %v8112_v63 = vpack.i.bf16 %v9867_v60, %v9861_v38 }
 0x2cf   :  { %8113 = vrot.lane.b32.xlu1 %v8112_v63, %s8883_s2  ;;  %v9872_v54 = vpop.f32.mrb[72].mxu1 }
 0x2d0   :  { %16175 = vst [vmem:[#allocation42_spill] sm:$0xff] %v9872_v54  ;;  %v9874_v21 = vpop.f32.mrb[73].mxu1 }
 0x2d1   :  { %16176 = vst [vmem:[#allocation43_spill] sm:$0xff] %v9874_v21 }
 0x2d3   :  { %v9876_v26 = vpop.f32.mrb[74].mxu1 }
 0x2d4   :  { %16177 = vst [vmem:[#allocation44_spill] sm:$0xff] %v9876_v26  ;;  %v9880_v52 = vpop.f32.mrb[75].mxu1 }
 0x2d5   :  { %16178 = vst [vmem:[#allocation45_spill] sm:$0xff] %v9880_v52  ;;  %v8122_v13 = vpack.i.bf16 %v9880_v52, %v9874_v21 }
 0x2d7   :  { %8123 = vrot.lane.b32.xlu1 %v8122_v13, %s8883_s2  ;;  %v9885_v16 = vpop.f32.mrb[76].mxu1 }
 0x2d8   :  { %16179 = vst [vmem:[#allocation46_spill] sm:$0xff] %v9885_v16  ;;  %v9887_v58 = vpop.f32.mrb[77].mxu1 }
 0x2d9   :  { %16180 = vst [vmem:[#allocation47_spill] sm:$0xff] %v9887_v58 }
 0x2db   :  { %v9889_v63 = vpop.f32.mrb[78].mxu1 }
 0x2dc   :  { %16181 = vst [vmem:[#allocation48_spill] sm:$0xff] %v9889_v63  ;;  %v9893_v38 = vpop.f32.mrb[79].mxu1 }
 0x2dd   :  { %16182 = vst [vmem:[#allocation49_spill] sm:$0xff] %v9893_v38  ;;  %v8132_v34 = vpack.i.bf16 %v9893_v38, %v9887_v58  ;;  %v16271_v58 = vld [vmem:[#allocation39_spill] sm:$0xff] }
 0x2df   :  { %8133 = vrot.lane.b32.xlu1 %v8132_v34, %s8883_s2  ;;  %v9898_v54 = vpop.f32.mrb[80].mxu1 }
 0x2e0   :  { %16183 = vst [vmem:[#allocation50_spill] sm:$0xff] %v9898_v54  ;;  %v9900_v26 = vpop.f32.mrb[81].mxu1 }
 0x2e1   :  { %16184 = vst [vmem:[#allocation51_spill] sm:$0xff] %v9900_v26 }
 0x2e3   :  { %v9902_v13 = vpop.f32.mrb[82].mxu1 }
 0x2e4   :  { %16185 = vst [vmem:[#allocation52_spill] sm:$0xff] %v9902_v13  ;;  %v9906_v21 = vpop.f32.mrb[83].mxu1 }
 0x2e5   :  { %16186 = vst [vmem:[#allocation53_spill] sm:$0xff] %v9906_v21  ;;  %v8142_v60 = vpack.i.bf16 %v9906_v21, %v9900_v26 }
 0x2e7   :  { %8143 = vrot.lane.b32.xlu1 %v8142_v60, %s8883_s2  ;;  %v9911_v16 = vpop.f32.mrb[84].mxu1 }
 0x2e8   :  { %16187 = vst [vmem:[#allocation54_spill] sm:$0xff] %v9911_v16  ;;  %v1659_v63 = vpop.f32.mrb[85].mxu1  ;;  %v8024_v16 = vpop.permute.xlu1 %8023 }
 0x2e9   :  { %v9913_v34 = vmul.f32 0.25, %v1659_v63  ;;  %v8025_v45 = vunpack.i.l.bf16 %v8024_v16 }
 0x2eb   :  { %v9915_v38 = vpop.f32.mrb[86].mxu1  ;;  %7102 = vmatprep.mubr.msk.f32.mxu1 %vm488_vm0, %v9913_v34 }
 0x2ec   :  { %16188 = vst [vmem:[#allocation55_spill] sm:$0xff] %v9915_v38  ;;  %v9921_v54 = vpop.f32.mrb[87].mxu1  ;;  %v8026_v38 = vunpack.i.h.bf16 %v8024_v16  ;;  %v8034_v6 = vpop.permute.xlu1 %8033 }
 0x2ed   :  { %v8152_v13 = vpack.i.bf16 %v9921_v54, %v1659_v63 }
 0x2ee   :  { %v7613_v36 = vpack.c.bf16 %v8026_v38, %v8025_v45 }
 0x2ef   :  { %8153 = vrot.lane.b32.xlu1 %v8152_v13, %s8883_s2  ;;  %v9925_v60 = vpop.f32.mrb[88].mxu1 }
 0x2f0   :  { %16189 = vst [vmem:[#allocation56_spill] sm:$0xff] %v9925_v60  ;;  %v9927_v21 = vpop.f32.mrb[89].mxu1 }
 0x2f3   :  { %v9929_v26 = vpop.f32.mrb[90].mxu1 }
 0x2f4   :  { %16190 = vst [vmem:[#allocation57_spill] sm:$0xff] %v9929_v26  ;;  %v9933_v48 = vpop.f32.mrb[91].mxu1 }
 0x2f5   :  { %v8162_v52 = vpack.i.bf16 %v9933_v48, %v9927_v21 }
 0x2f7   :  { %8163 = vrot.lane.b32.xlu1 %v8162_v52, %s8883_s2  ;;  %v9938_v63 = vpop.f32.mrb[92].mxu1 }
 0x2f8   :  { %16191 = vst [vmem:[#allocation58_spill] sm:$0xff] %v9938_v63  ;;  %v9940_v13 = vpop.f32.mrb[93].mxu1 }
 0x2f9   :  { %v8019_v42 = vpop.permute.xlu0 %8018 }
 0x2fa   :  { %v8021_v39 = vunpack.i.h.bf16 %v8019_v42  ;;  %v8020_v15 = vunpack.i.l.bf16 %v8019_v42  ;;  %v8035_v42 = vunpack.i.l.bf16 %v8034_v6 }
 0x2fb   :  { %v9942_v44 = vpop.f32.mrb[94].mxu1 }
 0x2fc   :  { %16192 = vst [vmem:[#allocation59_spill] sm:$0xff] %v9942_v44  ;;  %v7610_v60 = vpack.c.bf16 %v8021_v39, %v8020_v15  ;;  %v9952_v26 = vpop.f32.mrb[95].mxu1  ;;  %v8036_v39 = vunpack.i.h.bf16 %v8034_v6 }
 0x2fd   :  { %v8172_v16 = vpack.i.bf16 %v9952_v26, %v9940_v13 }
 0x2fe   :  { %7612 = vmatprep.subr.msk.bf16.mxu0 %vm9946_vm3, %v7610_v60  ;;  %7866 = vmatprep.subr.msk.bf16.mxu1 %vm9946_vm3, %v7610_v60 }
 0x2ff   :  { %7615 = vmatpush3.bf16.xpose.msk.msra.mxu0 %vm9946_vm3, %v7613_v36  ;;  %7874 = vmatpush3.bf16.xpose.msk.msra.mxu1 %vm9946_vm3, %v7613_v36  ;;  %v9964_v15 = vpop.f32.mrb[96].mxu1  ;;  %v7619_v36 = vpack.c.bf16 %v8036_v39, %v8035_v42 }
 0x300   :  { %16195 = vst [vmem:[#allocation60_spill] sm:$0xff] %v9964_v15  ;;  %8173 = vrot.lane.b32.xlu1 %v8172_v16, %s8883_s2  ;;  %v9967_v38 = vpop.f32.mrb[97].mxu1  ;;  %v8044_v16 = vpop.permute.xlu1 %8043 }
 0x301   :  { %v8029_v45 = vpop.permute.xlu0 %8028  ;;  %v8045_v39 = vunpack.i.l.bf16 %v8044_v16 }
 0x302   :  { %v8031_v52 = vunpack.i.h.bf16 %v8029_v45  ;;  %v8030_v63 = vunpack.i.l.bf16 %v8029_v45 }
 0x303   :  { %v9969_v44 = vpop.f32.mrb[98].mxu1 }
 0x304   :  { %16196 = vst [vmem:[#allocation61_spill] sm:$0xff] %v9969_v44  ;;  %v7616_v60 = vpack.c.bf16 %v8031_v52, %v8030_v63  ;;  %v9973_v33 = vpop.f32.mrb[99].mxu1  ;;  %v8046_v52 = vunpack.i.h.bf16 %v8044_v16 }
 0x305   :  { %v8097_v32 = vpack.i.bf16 %v9973_v33, %v9967_v38 }
 0x306   :  { %7618 = vmatprep.subr.msk.bf16.mxu0 %vm9946_vm3, %v7616_v60  ;;  %7867 = vmatprep.subr.msk.bf16.mxu1 %vm9946_vm3, %v7616_v60 }
 0x307   :  { %7621 = vmatpush3.bf16.xpose.msk.msra.mxu0 %vm9946_vm3, %v7619_v36  ;;  %7875 = vmatpush3.bf16.xpose.msk.msra.mxu1 %vm9946_vm3, %v7619_v36  ;;  %v9985_v6 = vpop.f32.mrb[100].mxu1  ;;  %v7625_v36 = vpack.c.bf16 %v8046_v52, %v8045_v39 }
 0x308   :  { %16197 = vst [vmem:[#allocation62_spill] sm:$0xff] %v9985_v6  ;;  %8098 = vrot.lane.b32.xlu0 %v8097_v32, %s8883_s2  ;;  %v9988_v63 = vpop.f32.mrb[101].mxu1  ;;  %v8054_v32 = vpop.permute.xlu1 %8053 }
 0x309   :  { %v8039_v42 = vpop.permute.xlu0 %8038  ;;  %v8056_v52 = vunpack.i.h.bf16 %v8054_v32  ;;  %v8055_v39 = vunpack.i.l.bf16 %v8054_v32 }
 0x30a   :  { %v8041_v45 = vunpack.i.h.bf16 %v8039_v42  ;;  %v8040_v28 = vunpack.i.l.bf16 %v8039_v42 }
 0x30b   :  { %v9990_v15 = vpop.f32.mrb[102].mxu1 }
 0x30c   :  { %16198 = vst [vmem:[#allocation63_spill] sm:$0xff] %v9990_v15  ;;  %v7622_v60 = vpack.c.bf16 %v8041_v45, %v8040_v28  ;;  %v9994_v40 = vpop.f32.mrb[103].mxu1 }
 0x30d   :  { %v8107_v30 = vpack.i.bf16 %v9994_v40, %v9988_v63 }
 0x30e   :  { %7624 = vmatprep.subr.msk.bf16.mxu0 %vm9946_vm3, %v7622_v60  ;;  %7868 = vmatprep.subr.msk.bf16.mxu1 %vm9946_vm3, %v7622_v60 }
 0x30f   :  { %7627 = vmatpush3.bf16.xpose.msk.msra.mxu0 %vm9946_vm3, %v7625_v36  ;;  %7876 = vmatpush3.bf16.xpose.msk.msra.mxu1 %vm9946_vm3, %v7625_v36  ;;  %v10006_v28 = vpop.f32.mrb[104].mxu1  ;;  %v7631_v36 = vpack.c.bf16 %v8056_v52, %v8055_v39 }
 0x310   :  { %16199 = vst [vmem:[#allocation64_spill] sm:$0xff] %v10006_v28  ;;  %8108 = vrot.lane.b32.xlu0 %v8107_v30, %s8883_s2  ;;  %v10009_v16 = vpop.f32.mrb[105].mxu1  ;;  %v8064_v30 = vpop.permute.xlu1 %8063 }
 0x311   :  { %v8049_v42 = vpop.permute.xlu0 %8048  ;;  %v8066_v52 = vunpack.i.h.bf16 %v8064_v30  ;;  %v8065_v39 = vunpack.i.l.bf16 %v8064_v30 }
 0x312   :  { %v8051_v45 = vunpack.i.h.bf16 %v8049_v42  ;;  %v8050_v44 = vunpack.i.l.bf16 %v8049_v42 }
 0x313   :  { %v10011_v6 = vpop.f32.mrb[106].mxu1 }
 0x314   :  { %16200 = vst [vmem:[#allocation65_spill] sm:$0xff] %v10011_v6  ;;  %v7628_v60 = vpack.c.bf16 %v8051_v45, %v8050_v44  ;;  %v10015_v46 = vpop.f32.mrb[107].mxu1 }
 0x315   :  { %v8117_v1 = vpack.i.bf16 %v10015_v46, %v10009_v16 }
 0x316   :  { %7630 = vmatprep.subr.msk.bf16.mxu0 %vm9946_vm3, %v7628_v60  ;;  %7869 = vmatprep.subr.msk.bf16.mxu1 %vm9946_vm3, %v7628_v60 }
 0x317   :  { %7633 = vmatpush3.bf16.xpose.msk.msra.mxu0 %vm9946_vm3, %v7631_v36  ;;  %7877 = vmatpush3.bf16.xpose.msk.msra.mxu1 %vm9946_vm3, %v7631_v36  ;;  %v10027_v44 = vpop.f32.mrb[108].mxu1  ;;  %v7637_v36 = vpack.c.bf16 %v8066_v52, %v8065_v39 }
 0x318   :  { %16201 = vst [vmem:[#allocation66_spill] sm:$0xff] %v10027_v44  ;;  %8118 = vrot.lane.b32.xlu0 %v8117_v1, %s8883_s2  ;;  %v10030_v32 = vpop.f32.mrb[109].mxu1  ;;  %v8074_v1 = vpop.permute.xlu1 %8073 }
 0x319   :  { %v8059_v42 = vpop.permute.xlu0 %8058  ;;  %v8076_v52 = vunpack.i.h.bf16 %v8074_v1  ;;  %v8075_v39 = vunpack.i.l.bf16 %v8074_v1 }
 0x31a   :  { %v8061_v45 = vunpack.i.h.bf16 %v8059_v42  ;;  %v8060_v15 = vunpack.i.l.bf16 %v8059_v42 }
 0x31b   :  { %v10032_v28 = vpop.f32.mrb[110].mxu1 }
 0x31c   :  { %16202 = vst [vmem:[#allocation67_spill] sm:$0xff] %v10032_v28  ;;  %v7634_v60 = vpack.c.bf16 %v8061_v45, %v8060_v15  ;;  %v10036_v27 = vpop.f32.mrb[111].mxu1 }
 0x31d   :  { %16203 = vst [vmem:[#allocation68_spill] sm:$0xff] %v10036_v27  ;;  %v8127_v9 = vpack.i.bf16 %v10036_v27, %v10030_v32 }
 0x31e   :  { %7636 = vmatprep.subr.msk.bf16.mxu0 %vm9946_vm3, %v7634_v60  ;;  %7870 = vmatprep.subr.msk.bf16.mxu1 %vm9946_vm3, %v7634_v60 }
 0x31f   :  { %7639 = vmatpush3.bf16.xpose.msk.msra.mxu0 %vm9946_vm3, %v7637_v36  ;;  %7878 = vmatpush3.bf16.xpose.msk.msra.mxu1 %vm9946_vm3, %v7637_v36  ;;  %v10048_v15 = vpop.f32.mrb[112].mxu1  ;;  %v7643_v36 = vpack.c.bf16 %v8076_v52, %v8075_v39 }
 0x320   :  { %16204 = vst [vmem:[#allocation69_spill] sm:$0xff] %v10048_v15  ;;  %8128 = vrot.lane.b32.xlu0 %v8127_v9, %s8883_s2  ;;  %v10051_v30 = vpop.f32.mrb[113].mxu1  ;;  %v8084_v9 = vpop.permute.xlu1 %8083 }
 0x321   :  { %16205 = vst [vmem:[#allocation70_spill] sm:$0xff] %v10051_v30  ;;  %v8069_v42 = vpop.permute.xlu0 %8068  ;;  %v8086_v52 = vunpack.i.h.bf16 %v8084_v9  ;;  %v8085_v39 = vunpack.i.l.bf16 %v8084_v9 }
 0x322   :  { %v8071_v45 = vunpack.i.h.bf16 %v8069_v42  ;;  %v8070_v6 = vunpack.i.l.bf16 %v8069_v42 }
 0x323   :  { %v10053_v44 = vpop.f32.mrb[114].mxu1 }
 0x324   :  { %16206 = vst [vmem:[#allocation71_spill] sm:$0xff] %v10053_v44  ;;  %v7640_v60 = vpack.c.bf16 %v8071_v45, %v8070_v6  ;;  %v10057_v27 = vpop.f32.mrb[115].mxu1 }
 0x325   :  { %16207 = vst [vmem:[#allocation72_spill] sm:$0xff] %v10057_v27  ;;  %v8137_v23 = vpack.i.bf16 %v10057_v27, %v10051_v30 }
 0x326   :  { %7642 = vmatprep.subr.msk.bf16.mxu0 %vm9946_vm3, %v7640_v60  ;;  %7871 = vmatprep.subr.msk.bf16.mxu1 %vm9946_vm3, %v7640_v60 }
 0x327   :  { %7645 = vmatpush3.bf16.xpose.msk.msra.mxu0 %vm9946_vm3, %v7643_v36  ;;  %7879 = vmatpush3.bf16.xpose.msk.msra.mxu1 %vm9946_vm3, %v7643_v36  ;;  %v10069_v6 = vpop.f32.mrb[116].mxu1  ;;  %v7649_v36 = vpack.c.bf16 %v8086_v52, %v8085_v39 }
 0x328   :  { %16208 = vst [vmem:[#allocation73_spill] sm:$0xff] %v10069_v6  ;;  %8138 = vrot.lane.b32.xlu0 %v8137_v23, %s8883_s2  ;;  %v10072_v1 = vpop.f32.mrb[117].mxu1  ;;  %v8094_v23 = vpop.permute.xlu1 %8093 }
 0x329   :  { %16209 = vst [vmem:[#allocation74_spill] sm:$0xff] %v10072_v1  ;;  %v8079_v42 = vpop.permute.xlu0 %8078  ;;  %v8096_v52 = vunpack.i.h.bf16 %v8094_v23  ;;  %v8095_v39 = vunpack.i.l.bf16 %v8094_v23  ;;  %v16215_v23 = vmov 0.0|0.0  }
 0x32a   :  { %v8081_v45 = vunpack.i.h.bf16 %v8079_v42  ;;  %v8080_v28 = vunpack.i.l.bf16 %v8079_v42 }
 0x32b   :  { %v10074_v15 = vpop.f32.mrb[118].mxu1 }
 0x32c   :  { %16210 = vst [vmem:[#allocation75_spill] sm:$0xff] %v10074_v15  ;;  %v7646_v60 = vpack.c.bf16 %v8081_v45, %v8080_v28  ;;  %v10078_v27 = vpop.f32.mrb[119].mxu1 }
 0x32d   :  { %16211 = vst [vmem:[#allocation76_spill] sm:$0xff] %v10078_v27  ;;  %v8147_v30 = vpack.i.bf16 %v10078_v27, %v10072_v1 }
 0x32e   :  { %7648 = vmatprep.subr.msk.bf16.mxu0 %vm9946_vm3, %v7646_v60  ;;  %7872 = vmatprep.subr.msk.bf16.mxu1 %vm9946_vm3, %v7646_v60 }
 0x32f   :  { %7651 = vmatpush3.bf16.xpose.msk.msra.mxu0 %vm9946_vm3, %v7649_v36  ;;  %7880 = vmatpush3.bf16.xpose.msk.msra.mxu1 %vm9946_vm3, %v7649_v36  ;;  %v10090_v28 = vpop.f32.mrb[120].mxu1  ;;  %v7655_v36 = vpack.c.bf16 %v8096_v52, %v8095_v39 }
 0x330   :  { %16212 = vst [vmem:[#allocation77_spill] sm:$0xff] %v10090_v28  ;;  %8148 = vrot.lane.b32.xlu0 %v8147_v30, %s8883_s2  ;;  %v10093_v9 = vpop.f32.mrb[121].mxu1 }
 0x331   :  { %v8089_v42 = vpop.permute.xlu0 %8088 }
 0x332   :  { %v8091_v45 = vunpack.i.h.bf16 %v8089_v42  ;;  %v8090_v44 = vunpack.i.l.bf16 %v8089_v42 }
 0x333   :  { %v10095_v6 = vpop.f32.mrb[122].mxu1 }
 0x334   :  { %16213 = vst [vmem:[#allocation78_spill] sm:$0xff] %v10095_v6  ;;  %v7652_v60 = vpack.c.bf16 %v8091_v45, %v8090_v44  ;;  %v10099_v27 = vpop.f32.mrb[123].mxu1  ;;  %v10124_v45 = vmul.f32 0.25, %v9618_v53  ;;  %v16217_v53 = vpack.c.bf16 %v9612_v51, %v9605_v49  ;;  %v16218_v49 = vpack.c.bf16 %v9632_v57, %v9625_v55 }
 0x335   :  { %v8157_v1 = vpack.i.bf16 %v10099_v27, %v10093_v9  ;;  %v10162_v51 = vmul.f32 0.25, %v9636_v59  ;;  %v16219_v55 = vpack.c.bf16 %v9651_v17, %v9644_v61  ;;  %v10180_v57 = vmul.f32 0.25, %v9646_v62 }
 0x336   :  { %7654 = vmatprep.subr.msk.bf16.mxu0 %vm9946_vm3, %v7652_v60  ;;  %7873 = vmatprep.subr.msk.bf16.mxu1 %vm9946_vm3, %v7652_v60  ;;  %v10127_v60 = vmul.f32 0.25, %v9921_v54  ;;  %v10144_v54 = vmul.f32 0.25, %v9627_v56  ;;  %v10165_v56 = vmul.f32 0.25, %v9933_v48  ;;  %v10183_v59 = vmul.f32 0.25, %v9940_v13  ;;  %v16231_v48 = vld [vmem:[#allocation5_spill] sm:$0xff] }
 0x337   :  { %7657 = vmatpush3.bf16.xpose.msk.msra.mxu0 %vm9946_vm3, %v7655_v36  ;;  %7881 = vmatpush3.bf16.xpose.msk.msra.mxu1 %vm9946_vm3, %v7655_v36  ;;  %v10111_v44 = vpop.f32.mrb[124].mxu1  ;;  %v10147_v36 = vmul.f32 0.25, %v9927_v21  ;;  %v16220_v61 = vpack.c.bf16 %v9670_v4, %v9663_v2  ;;  %v10198_v62 = vmul.f32 0.25, %v9655_v0  ;;  %v10201_v17 = vmul.f32 0.25, %v9952_v26  ;;  %v16233_v21 = vld [vmem:[#allocation20_spill] sm:$0xff]  ;;  %v16234_v26 = vld [vmem:[#allocation18_spill] sm:$0xff] }
 0x338   :  { %16214 = vst [vmem:[#allocation79_spill] sm:$0xff] %v10111_v44  ;;  %8158 = vrot.lane.b32.xlu0 %v8157_v1, %s8883_s2  ;;  %v10114_v30 = vpop.f32.mrb[125].mxu1  ;;  %7706 = vmatprep.subr.bf16.mxu0 %v16215_v23  ;;  %v16221_v0 = vpack.c.bf16 %v9689_v12, %v9682_v10  ;;  %v10216_v2 = vmul.f32 0.25, %v9665_v3  ;;  %v10219_v4 = vmul.f32 0.25, %v9967_v38  ;;  %v16222_v3 = vpack.c.bf16 %v9707_v20, %v9701_v18  ;;  %v16236_v38 = vld [vmem:[#allocation6_spill] sm:$0xff] }
 0x339   :  { %v10234_v10 = vmul.f32 0.25, %v9674_v8  ;;  %v10237_v12 = vmul.f32 0.25, %v9973_v33  ;;  %v16223_v8 = vpack.c.bf16 %v9720_v25, %v9716_v5  ;;  %v10252_v18 = vmul.f32 0.25, %v9684_v11 }
 0x33a   :  { %v10255_v20 = vmul.f32 0.25, %v9988_v63  ;;  %v16224_v11 = vpack.c.bf16 %v9733_v31, %v9729_v29  ;;  %v10270_v5 = vmul.f32 0.25, %v9693_v14  ;;  %v10273_v25 = vmul.f32 0.25, %v9994_v40 }
 0x33b   :  { %v10117_v52 = vpop.f32.mrb[126].mxu1  ;;  %v16225_v14 = vpack.c.bf16 %v9746_v37, %v9742_v35  ;;  %v10288_v29 = vmul.f32 0.25, %v9703_v19  ;;  %v10291_v31 = vmul.f32 0.25, %v10009_v16  ;;  %v16226_v19 = vpack.c.bf16 %v9759_v43, %v9755_v41  ;;  %v16228_v43 = vld [vmem:[#allocation16_spill] sm:$0xff]  ;;  %v16237_v16 = vld [vmem:[#allocation70_spill] sm:$0xff] }
 0x33c   :  { %16216 = vst [vmem:[#allocation80_spill] sm:$0xff] %v10117_v52  ;;  %v10121_v42 = vpop.f32.mrb[127].mxu1  ;;  %v10306_v33 = vmul.f32 0.25, %v9711_v22  ;;  %v10309_v35 = vmul.f32 0.25, %v10015_v46  ;;  %v16227_v22 = vpack.c.bf16 %v9772_v50, %v9768_v47  ;;  %v10324_v37 = vmul.f32 0.25, %v9718_v24  ;;  %v16229_v24 = vld [vmem:[#allocation14_spill] sm:$0xff] }
 0x33d   :  { %v8167_v1 = vpack.i.bf16 %v10121_v42, %v10114_v30  ;;  %v10327_v41 = vmul.f32 0.25, %v10030_v32  ;;  %v16230_v47 = vpack.c.bf16 %v16228_v43, %v16229_v24  ;;  %v10342_v50 = vmul.f32 0.25, %v16231_v48  ;;  %v16232_v46 = vld [vmem:[#allocation68_spill] sm:$0xff]  ;;  %v16247_v24 = vld [vmem:[#allocation74_spill] sm:$0xff] }
 0x33e   :  { %7019 = vmatmul.mubr.msk.f32.vlgmr.msra.gmra.mrb[64].mxu0 %vm488_vm0, %v9609_v7  ;;  %7103 = vmatmul.mubr.msk.f32.vlgmr.msra.gmra.mrb[128].mxu1 %vm488_vm0, %v9913_v34  ;;  %v10345_v40 = vmul.f32 0.25, %v16232_v46  ;;  %v16235_v13 = vpack.c.bf16 %v16233_v21, %v16234_v26  ;;  %v10360_v63 = vmul.f32 0.25, %v16236_v38  ;;  %v10363_v32 = vmul.f32 0.25, %v16237_v16  ;;  %v16248_v38 = vld [vmem:[#allocation32_spill] sm:$0xff]  ;;  %v16249_v16 = vld [vmem:[#allocation30_spill] sm:$0xff] }
 0x33f   :  { %7020 = vmatprep.mubr.msk.f32.mxu0 %vm488_vm0, %v10124_v45  ;;  %7104 = vmatprep.mubr.msk.f32.mxu1 %vm488_vm0, %v10127_v60 }
 0x340   :  { %7708 = vmatpush1.bf16.msra.mxu0 %v16217_v53  ;;  %8168 = vrot.lane.b32.xlu0 %v8167_v1, %s8883_s2  ;;  %v16238_v1 = vld [vmem:[#allocation24_spill] sm:$0xff]  ;;  %v16239_v53 = vld [vmem:[#allocation22_spill] sm:$0xff] }
 0x341   :  { %7709 = vmatprep.subr.bf16.mxu0 %v16215_v23 }
 0x342   :  { %7021 = vmatmul.mubr.msk.f32.gmra.mrb[66].mxu0 %vm488_vm0, %v10124_v45  ;;  %7105 = vmatmul.mubr.msk.f32.gmra.mrb[130].mxu1 %vm488_vm0, %v10127_v60 }
 0x343   :  { %7022 = vmatprep.mubr.msk.f32.mxu0 %vm488_vm0, %v10144_v54  ;;  %7106 = vmatprep.mubr.msk.f32.mxu1 %vm488_vm0, %v10147_v36 }
 0x344   :  { %7711 = vmatpush1.bf16.msra.mxu0 %v16218_v49  ;;  %v16240_v49 = vpack.c.bf16 %v16238_v1, %v16239_v53  ;;  %v16250_v1 = vpack.c.bf16 %v16248_v38, %v16249_v16  ;;  %v16251_v53 = vld [vmem:[#allocation9_spill] sm:$0xff]  ;;  %v16254_v38 = vld [vmem:[#allocation11_spill] sm:$0xff] }
 0x345   :  { %7712 = vmatprep.subr.bf16.mxu0 %v16215_v23 }
 0x346   :  { %7023 = vmatmul.mubr.msk.f32.gmra.mrb[68].mxu0 %vm488_vm0, %v10144_v54  ;;  %7107 = vmatmul.mubr.msk.f32.gmra.mrb[132].mxu1 %vm488_vm0, %v10147_v36 }
 0x347   :  { %7024 = vmatprep.mubr.msk.f32.mxu0 %vm488_vm0, %v10162_v51  ;;  %7108 = vmatprep.mubr.msk.f32.mxu1 %vm488_vm0, %v10165_v56 }
 0x348   :  { %7714 = vmatpush1.bf16.msra.mxu0 %v16219_v55  ;;  %v16241_v55 = vld [vmem:[#allocation7_spill] sm:$0xff] }
 0x349   :  { %7715 = vmatprep.subr.bf16.mxu0 %v16215_v23 }
 0x34a   :  { %7025 = vmatmul.mubr.msk.f32.gmra.mrb[70].mxu0 %vm488_vm0, %v10162_v51  ;;  %7109 = vmatmul.mubr.msk.f32.gmra.mrb[134].mxu1 %vm488_vm0, %v10165_v56 }
 0x34b   :  { %7026 = vmatprep.mubr.msk.f32.mxu0 %vm488_vm0, %v10180_v57  ;;  %7110 = vmatprep.mubr.msk.f32.mxu1 %vm488_vm0, %v10183_v59 }
 0x34c   :  { %7717 = vmatpush1.bf16.msra.mxu0 %v16220_v61  ;;  %v10378_v61 = vmul.f32 0.25, %v16241_v55 }
 0x34d   :  { %7718 = vmatprep.subr.bf16.mxu0 %v16215_v23 }
 0x34e   :  { %7027 = vmatmul.mubr.msk.f32.gmra.mrb[72].mxu0 %vm488_vm0, %v10180_v57  ;;  %7111 = vmatmul.mubr.msk.f32.gmra.mrb[136].mxu1 %vm488_vm0, %v10183_v59 }
 0x34f   :  { %7028 = vmatprep.mubr.msk.f32.mxu0 %vm488_vm0, %v10198_v62  ;;  %7112 = vmatprep.mubr.msk.f32.mxu1 %vm488_vm0, %v10201_v17 }
 0x350   :  { %7720 = vmatpush1.bf16.msra.mxu0 %v16221_v0  ;;  %v16242_v0 = vld [vmem:[#allocation72_spill] sm:$0xff] }
 0x351   :  { %7721 = vmatprep.subr.bf16.mxu0 %v16215_v23 }
 0x352   :  { %7029 = vmatmul.mubr.msk.f32.gmra.mrb[74].mxu0 %vm488_vm0, %v10198_v62  ;;  %7113 = vmatmul.mubr.msk.f32.gmra.mrb[138].mxu1 %vm488_vm0, %v10201_v17 }
 0x353   :  { %7030 = vmatprep.mubr.msk.f32.mxu0 %vm488_vm0, %v10216_v2  ;;  %7114 = vmatprep.mubr.msk.f32.mxu1 %vm488_vm0, %v10219_v4 }
 0x354   :  { %7723 = vmatpush1.bf16.msra.mxu0 %v16222_v3  ;;  %v10381_v3 = vmul.f32 0.25, %v16242_v0  ;;  %v16252_v0 = vld [vmem:[#allocation76_spill] sm:$0xff] }
 0x355   :  { %7724 = vmatprep.subr.bf16.mxu0 %v16215_v23 }
 0x356   :  { %7031 = vmatmul.mubr.msk.f32.gmra.mrb[76].mxu0 %vm488_vm0, %v10216_v2  ;;  %7115 = vmatmul.mubr.msk.f32.gmra.mrb[140].mxu1 %vm488_vm0, %v10219_v4 }
 0x357   :  { %7032 = vmatprep.mubr.msk.f32.mxu0 %vm488_vm0, %v10234_v10  ;;  %7116 = vmatprep.mubr.msk.f32.mxu1 %vm488_vm0, %v10237_v12 }
 0x358   :  { %7726 = vmatpush1.bf16.msra.mxu0 %v16223_v8  ;;  %v8104_v8 = vpop.permute.xlu1 %8103 }
 0x359   :  { %7727 = vmatprep.subr.bf16.mxu0 %v16215_v23  ;;  %v8106_v48 = vunpack.i.h.bf16 %v8104_v8  ;;  %v8105_v46 = vunpack.i.l.bf16 %v8104_v8  ;;  %v10418_v8 = vmul.f32 0.25, %v16252_v0 }
 0x35a   :  { %7033 = vmatmul.mubr.msk.f32.gmra.mrb[78].mxu0 %vm488_vm0, %v10234_v10  ;;  %7117 = vmatmul.mubr.msk.f32.gmra.mrb[142].mxu1 %vm488_vm0, %v10237_v12 }
 0x35b   :  { %7034 = vmatprep.mubr.msk.f32.mxu0 %vm488_vm0, %v10252_v18  ;;  %7118 = vmatprep.mubr.msk.f32.mxu1 %vm488_vm0, %v10255_v20 }
 0x35c   :  { %7729 = vmatpush1.bf16.msra.mxu0 %v16224_v11  ;;  %v16243_v11 = vld [vmem:[#allocation28_spill] sm:$0xff] }
 0x35d   :  { %7730 = vmatprep.subr.bf16.mxu0 %v16215_v23 }
 0x35e   :  { %7035 = vmatmul.mubr.msk.f32.gmra.mrb[80].mxu0 %vm488_vm0, %v10252_v18  ;;  %7119 = vmatmul.mubr.msk.f32.gmra.mrb[144].mxu1 %vm488_vm0, %v10255_v20 }
 0x35f   :  { %7036 = vmatprep.mubr.msk.f32.mxu0 %vm488_vm0, %v10270_v5  ;;  %7120 = vmatprep.mubr.msk.f32.mxu1 %vm488_vm0, %v10273_v25 }
 0x360   :  { %7732 = vmatpush1.bf16.msra.mxu0 %v16225_v14  ;;  %v16244_v14 = vld [vmem:[#allocation26_spill] sm:$0xff] }
 0x361   :  { %7733 = vmatprep.subr.bf16.mxu0 %v16215_v23 }
 0x362   :  { %7037 = vmatmul.mubr.msk.f32.gmra.mrb[82].mxu0 %vm488_vm0, %v10270_v5  ;;  %7121 = vmatmul.mubr.msk.f32.gmra.mrb[146].mxu1 %vm488_vm0, %v10273_v25 }
 0x363   :  { %7038 = vmatprep.mubr.msk.f32.mxu0 %vm488_vm0, %v10288_v29  ;;  %7122 = vmatprep.mubr.msk.f32.mxu1 %vm488_vm0, %v10291_v31 }
 0x364   :  { %7735 = vmatpush1.bf16.msra.mxu0 %v16226_v19  ;;  %v16245_v19 = vpack.c.bf16 %v16243_v11, %v16244_v14  ;;  %v7661_v11 = vpack.c.bf16 %v8106_v48, %v8105_v46  ;;  %v8114_v14 = vpop.permute.xlu1 %8113 }
 0x365   :  { %7736 = vmatprep.subr.bf16.mxu0 %v16215_v23  ;;  %v8116_v48 = vunpack.i.h.bf16 %v8114_v14  ;;  %v8115_v46 = vunpack.i.l.bf16 %v8114_v14 }
 0x366   :  { %7039 = vmatmul.mubr.msk.f32.gmra.mrb[84].mxu0 %vm488_vm0, %v10288_v29  ;;  %7123 = vmatmul.mubr.msk.f32.gmra.mrb[148].mxu1 %vm488_vm0, %v10291_v31 }
 0x367   :  { %7040 = vmatprep.mubr.msk.f32.mxu0 %vm488_vm0, %v10306_v33  ;;  %7124 = vmatprep.mubr.msk.f32.mxu1 %vm488_vm0, %v10309_v35 }
 0x368   :  { %7738 = vmatpush1.bf16.msra.mxu0 %v16227_v22  ;;  %v16246_v22 = vld [vmem:[#allocation8_spill] sm:$0xff] }
 0x369   :  { %7739 = vmatprep.subr.bf16.mxu0 %v16215_v23  ;;  %v10396_v43 = vmul.f32 0.25, %v16246_v22 }
 0x36a   :  { %7041 = vmatmul.mubr.msk.f32.gmra.mrb[86].mxu0 %vm488_vm0, %v10306_v33  ;;  %7125 = vmatmul.mubr.msk.f32.gmra.mrb[150].mxu1 %vm488_vm0, %v10309_v35 }
 0x36b   :  { %7042 = vmatprep.mubr.msk.f32.mxu0 %vm488_vm0, %v10324_v37  ;;  %7126 = vmatprep.mubr.msk.f32.mxu1 %vm488_vm0, %v10327_v41 }
 0x36c   :  { %7741 = vmatpush1.bf16.msra.mxu0 %v16230_v47  ;;  %v10399_v47 = vmul.f32 0.25, %v16247_v24  ;;  %v10436_v24 = vmul.f32 0.25, %v10093_v9  ;;  %v10447_v9 = vmul.f32 0.25, %v16254_v38  ;;  %v10482_v38 = vmul.f32 0.25, %v10121_v42  ;;  %v16259_v42 = vld [vmem:[#allocation15_spill] sm:$0xff] }
 0x36d   :  { %7742 = vmatprep.subr.bf16.mxu0 %v16215_v23 }
 0x36e   :  { %7043 = vmatmul.mubr.msk.f32.gmra.mrb[88].mxu0 %vm488_vm0, %v10324_v37  ;;  %7127 = vmatmul.mubr.msk.f32.gmra.mrb[152].mxu1 %vm488_vm0, %v10327_v41  ;;  %16258 = vst [vmem:[#allocation14_spill] sm:$0xff] %v10482_v38 }
 0x36f   :  { %7044 = vmatprep.mubr.msk.f32.mxu0 %vm488_vm0, %v10342_v50  ;;  %7128 = vmatprep.mubr.msk.f32.mxu1 %vm488_vm0, %v10345_v40 }
 0x370   :  { %7744 = vmatpush1.bf16.msra.mxu0 %v16235_v13 }
 0x371   :  { %7745 = vmatprep.subr.bf16.mxu0 %v16215_v23 }
 0x372   :  { %7045 = vmatmul.mubr.msk.f32.gmra.mrb[90].mxu0 %vm488_vm0, %v10342_v50  ;;  %7129 = vmatmul.mubr.msk.f32.gmra.mrb[154].mxu1 %vm488_vm0, %v10345_v40 }
 0x373   :  { %7046 = vmatprep.mubr.msk.f32.mxu0 %vm488_vm0, %v10360_v63  ;;  %7130 = vmatprep.mubr.msk.f32.mxu1 %vm488_vm0, %v10363_v32 }
 0x374   :  { %7747 = vmatpush1.bf16.msra.mxu0 %v16240_v49  ;;  %v10414_v49 = vmul.f32 0.25, %v16251_v53  ;;  %v7667_v53 = vpack.c.bf16 %v8116_v48, %v8115_v46 }
 0x375   :  { %7748 = vmatprep.subr.bf16.mxu0 %v16215_v23 }
 0x376   :  { %7047 = vmatmul.mubr.msk.f32.gmra.mrb[92].mxu0 %vm488_vm0, %v10360_v63  ;;  %7131 = vmatmul.mubr.msk.f32.gmra.mrb[156].mxu1 %vm488_vm0, %v10363_v32 }
 0x377   :  { %7048 = vmatprep.mubr.msk.f32.mxu0 %vm488_vm0, %v10378_v61  ;;  %7132 = vmatprep.mubr.msk.f32.mxu1 %vm488_vm0, %v10381_v3 }
 0x378   :  { %7750 = vmatpush1.bf16.msra.mxu0 %v16245_v19  ;;  %v16253_v19 = vld [vmem:[#allocation10_spill] sm:$0xff] }
 0x379   :  { %7751 = vmatprep.subr.bf16.mxu0 %v16215_v23  ;;  %v10433_v22 = vmul.f32 0.25, %v16253_v19 }
 0x37a   :  { %v8099_v21 = vpop.permute.xlu0 %8098  ;;  %7049 = vmatmul.mubr.msk.f32.gmra.mrb[94].mxu0 %vm488_vm0, %v10378_v61  ;;  %7133 = vmatmul.mubr.msk.f32.gmra.mrb[158].mxu1 %vm488_vm0, %v10381_v3 }
 0x37b   :  { %v8101_v26 = vunpack.i.h.bf16 %v8099_v21  ;;  %v8100_v13 = vunpack.i.l.bf16 %v8099_v21  ;;  %7050 = vmatprep.mubr.msk.f32.mxu0 %vm488_vm0, %v10396_v43  ;;  %7134 = vmatprep.mubr.msk.f32.mxu1 %vm488_vm0, %v10399_v47 }
 0x37c   :  { %7753 = vmatpush1.bf16.msra.mxu0 %v16250_v1  ;;  %v10450_v1 = vmul.f32 0.25, %v10099_v27  ;;  %v16255_v27 = vld [vmem:[#allocation12_spill] sm:$0xff] }
 0x37d   :  { %v7658_v55 = vpack.c.bf16 %v8101_v26, %v8100_v13  ;;  %7754 = vmatprep.subr.bf16.mxu0 %v16215_v23  ;;  %v10465_v0 = vmul.f32 0.25, %v16255_v27 }
 0x37e   :  { %7051 = vmatmul.mubr.msk.f32.gmra.mrb[96].mxu0 %vm488_vm0, %v10396_v43  ;;  %7135 = vmatmul.mubr.msk.f32.gmra.mrb[160].mxu1 %vm488_vm0, %v10399_v47 }
 0x37f   :  { %7660 = vmatprep.subr.msk.bf16.mxu1 %vm9946_vm3, %v7658_v55  ;;  %7052 = vmatprep.mubr.msk.f32.mxu0 %vm488_vm0, %v10414_v49  ;;  %v8124_v55 = vpop.permute.xlu1 %8123 }
 0x380   :  { %7136 = vmatprep.mubr.msk.f32.mxu1 %vm488_vm0, %v10418_v8  ;;  %7663 = vmatpush3.bf16.xpose.msk.msra.mxu1 %vm9946_vm3, %v7661_v11  ;;  %v10468_v11 = vmul.f32 0.25, %v10114_v30  ;;  %v8126_v14 = vunpack.i.h.bf16 %v8124_v55  ;;  %v8125_v19 = vunpack.i.l.bf16 %v8124_v55  ;;  %v10497_v55 = vmul.f32 0.25, %v16259_v42  ;;  %v16261_v42 = vld [vmem:[#allocation19_spill] sm:$0xff] }
 0x382   :  { %v8109_v21 = vpop.permute.xlu0 %8108  ;;  %7053 = vmatmul.mubr.msk.f32.gmra.mrb[98].mxu0 %vm488_vm0, %v10414_v49  ;;  %7137 = vmatmul.mubr.msk.f32.gmra.mrb[162].mxu1 %vm488_vm0, %v10418_v8  ;;  %16256 = vst [vmem:[#allocation16_spill] sm:$0xff] %v10468_v11 }
 0x383   :  { %v8111_v26 = vunpack.i.h.bf16 %v8109_v21  ;;  %v8110_v13 = vunpack.i.l.bf16 %v8109_v21  ;;  %7054 = vmatprep.mubr.msk.f32.mxu0 %vm488_vm0, %v10433_v22  ;;  %7138 = vmatprep.mubr.msk.f32.mxu1 %vm488_vm0, %v10436_v24 }
 0x385   :  { %v7664_v16 = vpack.c.bf16 %v8111_v26, %v8110_v13  ;;  %v16257_v26 = vld [vmem:[#allocation13_spill] sm:$0xff] }
 0x386   :  { %7055 = vmatmul.mubr.msk.f32.gmra.mrb[100].mxu0 %vm488_vm0, %v10433_v22  ;;  %7139 = vmatmul.mubr.msk.f32.gmra.mrb[164].mxu1 %vm488_vm0, %v10436_v24  ;;  %v10479_v30 = vmul.f32 0.25, %v16257_v26 }
 0x387   :  { %7666 = vmatprep.subr.msk.bf16.mxu1 %vm9946_vm3, %v7664_v16  ;;  %7056 = vmatprep.mubr.msk.f32.mxu0 %vm488_vm0, %v10447_v9  ;;  %v7673_v16 = vpack.c.bf16 %v8126_v14, %v8125_v19 }
 0x388   :  { %7140 = vmatprep.mubr.msk.f32.mxu1 %vm488_vm0, %v10450_v1  ;;  %7669 = vmatpush3.bf16.xpose.msk.msra.mxu1 %vm9946_vm3, %v7667_v53  ;;  %v8134_v53 = vpop.permute.xlu1 %8133 }
 0x389   :  { %v8136_v27 = vunpack.i.h.bf16 %v8134_v53  ;;  %v8135_v14 = vunpack.i.l.bf16 %v8134_v53 }
 0x38a   :  { %v8119_v48 = vpop.permute.xlu0 %8118  ;;  %7057 = vmatmul.mubr.msk.f32.gmra.mrb[102].mxu0 %vm488_vm0, %v10447_v9  ;;  %7141 = vmatmul.mubr.msk.f32.gmra.mrb[166].mxu1 %vm488_vm0, %v10450_v1 }
 0x38b   :  { %v8121_v46 = vunpack.i.h.bf16 %v8119_v48  ;;  %v8120_v21 = vunpack.i.l.bf16 %v8119_v48  ;;  %7058 = vmatprep.mubr.msk.f32.mxu0 %vm488_vm0, %v10465_v0  ;;  %7142 = vmatprep.mubr.msk.f32.mxu1 %vm488_vm0, %v10468_v11 }
 0x38c   :  { %v8144_v53 = vpop.permute.xlu1 %8143 }
 0x38d   :  { %v7670_v13 = vpack.c.bf16 %v8121_v46, %v8120_v21  ;;  %v16260_v21 = vld [vmem:[#allocation17_spill] sm:$0xff]  ;;  %v8145_v39 = vunpack.i.l.bf16 %v8144_v53 }
 0x38e   :  { %7059 = vmatmul.mubr.msk.f32.gmra.mrb[104].mxu0 %vm488_vm0, %v10465_v0  ;;  %7143 = vmatmul.mubr.msk.f32.gmra.mrb[168].mxu1 %vm488_vm0, %v10468_v11  ;;  %v10508_v26 = vmul.f32 0.25, %v16260_v21  ;;  %v8146_v21 = vunpack.i.h.bf16 %v8144_v53  ;;  %v16263_v53 = vld [vmem:[#allocation23_spill] sm:$0xff] }
 0x38f   :  { %7672 = vmatprep.subr.msk.bf16.mxu1 %vm9946_vm3, %v7670_v13  ;;  %7060 = vmatprep.mubr.msk.f32.mxu0 %vm488_vm0, %v10479_v30 }
 0x390   :  { %7144 = vmatprep.mubr.msk.f32.mxu1 %vm488_vm0, %v10482_v38  ;;  %7675 = vmatpush3.bf16.xpose.msk.msra.mxu1 %vm9946_vm3, %v7673_v16  ;;  %v7679_v16 = vpack.c.bf16 %v8136_v27, %v8135_v14  ;;  %v7685_v44 = vpack.c.bf16 %v8146_v21, %v8145_v39 }
 0x392   :  { %v8129_v19 = vpop.permute.xlu0 %8128  ;;  %7061 = vmatmul.mubr.msk.f32.gmra.mrb[106].mxu0 %vm488_vm0, %v10479_v30  ;;  %7145 = vmatmul.mubr.msk.f32.gmra.mrb[170].mxu1 %vm488_vm0, %v10482_v38 }
 0x393   :  { %v8131_v48 = vunpack.i.h.bf16 %v8129_v19  ;;  %v8130_v46 = vunpack.i.l.bf16 %v8129_v19  ;;  %7062 = vmatprep.mubr.msk.f32.mxu0 %vm488_vm0, %v10497_v55  ;;  %7178 = vmatprep.mubr.msk.f32.mxu1 %vm488_vm0, %v9609_v7  ;;  %v10519_v19 = vmul.f32 0.25, %v16261_v42  ;;  %v10537_v42 = vmul.f32 0.25, %v16263_v53 }
 0x395   :  { %v7676_v13 = vpack.c.bf16 %v8131_v48, %v8130_v46  ;;  %v16262_v46 = vld [vmem:[#allocation21_spill] sm:$0xff] }
 0x396   :  { %7063 = vmatmul.mubr.msk.f32.gmra.mrb[108].mxu0 %vm488_vm0, %v10497_v55 }
 0x397   :  { %7678 = vmatprep.subr.msk.bf16.mxu1 %vm9946_vm3, %v7676_v13  ;;  %7064 = vmatprep.mubr.msk.f32.mxu0 %vm488_vm0, %v10508_v26  ;;  %v10526_v13 = vmul.f32 0.25, %v16262_v46 }
 0x398   :  { %7681 = vmatpush3.bf16.xpose.msk.msra.mxu1 %vm9946_vm3, %v7679_v16  ;;  %v8154_v16 = vpop.permute.xlu1 %8153 }
 0x399   :  { %v8155_v46 = vunpack.i.l.bf16 %v8154_v16 }
 0x39a   :  { %v8139_v48 = vpop.permute.xlu0 %8138  ;;  %7065 = vmatmul.mubr.msk.f32.gmra.mrb[110].mxu0 %vm488_vm0, %v10508_v26 }
 0x39b   :  { %v8141_v27 = vunpack.i.h.bf16 %v8139_v48  ;;  %v8140_v14 = vunpack.i.l.bf16 %v8139_v48  ;;  %7066 = vmatprep.mubr.msk.f32.mxu0 %vm488_vm0, %v10519_v19  ;;  %v8156_v48 = vunpack.i.h.bf16 %v8154_v16  ;;  %v16265_v16 = vld [vmem:[#allocation27_spill] sm:$0xff] }
 0x39c   :  { %v10555_v53 = vmul.f32 0.25, %v16265_v16 }
 0x39d   :  { %v7682_v15 = vpack.c.bf16 %v8141_v27, %v8140_v14  ;;  %v7691_v28 = vpack.c.bf16 %v8156_v48, %v8155_v46 }
 0x39e   :  { %7067 = vmatmul.mubr.msk.f32.gmra.mrb[112].mxu0 %vm488_vm0, %v10519_v19 }
 0x39f   :  { %7684 = vmatprep.subr.msk.bf16.mxu1 %vm9946_vm3, %v7682_v15  ;;  %7068 = vmatprep.mubr.msk.f32.mxu0 %vm488_vm0, %v10526_v13  ;;  %v16264_v15 = vld [vmem:[#allocation25_spill] sm:$0xff] }
 0x3a0   :  { %7687 = vmatpush3.bf16.xpose.msk.msra.mxu1 %vm9946_vm3, %v7685_v44  ;;  %v10544_v14 = vmul.f32 0.25, %v16264_v15  ;;  %v8164_v44 = vpop.permute.xlu1 %8163 }
 0x3a1   :  { %v8165_v15 = vunpack.i.l.bf16 %v8164_v44 }
 0x3a2   :  { %v8149_v27 = vpop.permute.xlu0 %8148  ;;  %7069 = vmatmul.mubr.msk.f32.gmra.mrb[114].mxu0 %vm488_vm0, %v10526_v13 }
 0x3a3   :  { %v8151_v39 = vunpack.i.h.bf16 %v8149_v27  ;;  %v8150_v21 = vunpack.i.l.bf16 %v8149_v27  ;;  %7070 = vmatprep.mubr.msk.f32.mxu0 %vm488_vm0, %v10537_v42  ;;  %v8166_v27 = vunpack.i.h.bf16 %v8164_v44  ;;  %v16267_v44 = vld [vmem:[#allocation31_spill] sm:$0xff] }
 0x3a4   :  { %v10573_v16 = vmul.f32 0.25, %v16267_v44  ;;  %v16270_v44 = vld [vmem:[#allocation37_spill] sm:$0xff] }
 0x3a5   :  { %v7688_v52 = vpack.c.bf16 %v8151_v39, %v8150_v21  ;;  %v7697_v23 = vpack.c.bf16 %v8166_v27, %v8165_v15 }
 0x3a6   :  { %7071 = vmatmul.mubr.msk.f32.gmra.mrb[116].mxu0 %vm488_vm0, %v10537_v42 }
 0x3a7   :  { %7690 = vmatprep.subr.msk.bf16.mxu1 %vm9946_vm3, %v7688_v52  ;;  %7072 = vmatprep.mubr.msk.f32.mxu0 %vm488_vm0, %v10544_v14  ;;  %v16266_v52 = vld [vmem:[#allocation29_spill] sm:$0xff] }
 0x3a8   :  { %7693 = vmatpush3.bf16.xpose.msk.msra.mxu1 %vm9946_vm3, %v7691_v28  ;;  %v10562_v21 = vmul.f32 0.25, %v16266_v52  ;;  %v8174_v28 = vpop.permute.xlu1 %8173 }
 0x3a9   :  { %v8175_v52 = vunpack.i.l.bf16 %v8174_v28 }
 0x3aa   :  { %v8159_v39 = vpop.permute.xlu0 %8158  ;;  %7073 = vmatmul.mubr.msk.f32.gmra.mrb[118].mxu0 %vm488_vm0, %v10544_v14 }
 0x3ab   :  { %v8161_v48 = vunpack.i.h.bf16 %v8159_v39  ;;  %v8160_v46 = vunpack.i.l.bf16 %v8159_v39  ;;  %7074 = vmatprep.mubr.msk.f32.mxu0 %vm488_vm0, %v10555_v53  ;;  %v8176_v39 = vunpack.i.h.bf16 %v8174_v28 }
 0x3ad   :  { %v7694_v6 = vpack.c.bf16 %v8161_v48, %v8160_v46  ;;  %v7703_v11 = vpack.c.bf16 %v8176_v39, %v8175_v52  ;;  %v10598_v39 = vmul.f32 0.25, %v16270_v44 }
 0x3ae   :  { %7075 = vmatmul.mubr.msk.f32.gmra.mrb[120].mxu0 %vm488_vm0, %v10555_v53 }
 0x3af   :  { %7696 = vmatprep.subr.msk.bf16.mxu1 %vm9946_vm3, %v7694_v6  ;;  %7076 = vmatprep.mubr.msk.f32.mxu0 %vm488_vm0, %v10562_v21  ;;  %v16268_v6 = vld [vmem:[#allocation33_spill] sm:$0xff] }
 0x3b0   :  { %7699 = vmatpush3.bf16.xpose.msk.msra.mxu1 %vm9946_vm3, %v7697_v23  ;;  %v10580_v46 = vmul.f32 0.25, %v16268_v6  ;;  %v16269_v23 = vld [vmem:[#allocation35_spill] sm:$0xff] }
 0x3b1   :  { %v10591_v28 = vmul.f32 0.25, %v16269_v23 }
 0x3b2   :  { %v8169_v48 = vpop.permute.xlu0 %8168  ;;  %7077 = vmatmul.mubr.msk.f32.gmra.mrb[122].mxu0 %vm488_vm0, %v10562_v21 }
 0x3b3   :  { %v8171_v27 = vunpack.i.h.bf16 %v8169_v48  ;;  %v8170_v15 = vunpack.i.l.bf16 %v8169_v48  ;;  %7078 = vmatprep.mubr.msk.f32.mxu0 %vm488_vm0, %v10573_v16 }
 0x3b5   :  { %v7700_v38 = vpack.c.bf16 %v8171_v27, %v8170_v15 }
 0x3b6   :  { %7079 = vmatmul.mubr.msk.f32.gmra.mrb[124].mxu0 %vm488_vm0, %v10573_v16 }
 0x3b7   :  { %7702 = vmatprep.subr.msk.bf16.mxu1 %vm9946_vm3, %v7700_v38  ;;  %7080 = vmatprep.mubr.msk.f32.mxu0 %vm488_vm0, %v10580_v46 }
 0x3b8   :  { %7705 = vmatpush3.bf16.xpose.msk.msra.mxu1 %vm9946_vm3, %v7703_v11  ;;  %v10609_v11 = vmul.f32 0.25, %v16271_v58 }
 0x3ba   :  { %7081 = vmatmul.mubr.msk.f32.gmra.mrb[126].mxu0 %vm488_vm0, %v10580_v46 }
 0x3bb   :  { %7082 = vmatprep.mubr.msk.f32.mxu0 %vm488_vm0, %v10591_v28 }
 0x3be   :  { %7083 = vmatmul.mubr.msk.f32.gmra.mrb[128].mxu0 %vm488_vm0, %v10591_v28 }
 0x3bf   :  { %7179 = vmatmul.mubr.msk.f32.vlgmr.msra.gmra.mrb[172].mxu1 %vm488_vm0, %v9609_v7  ;;  %7084 = vmatprep.mubr.msk.f32.mxu0 %vm488_vm0, %v10598_v39  ;;  %v16272_v7 = vld [vmem:[#allocation41_spill] sm:$0xff] }
 0x3c0   :  { %7180 = vmatprep.mubr.msk.f32.mxu1 %vm488_vm0, %v10124_v45  ;;  %v10620_v38 = vmul.f32 0.25, %v16272_v7 }
 0x3c2   :  { %7085 = vmatmul.mubr.msk.f32.gmra.mrb[130].mxu0 %vm488_vm0, %v10598_v39 }
 0x3c3   :  { %7181 = vmatmul.mubr.msk.f32.gmra.mrb[174].mxu1 %vm488_vm0, %v10124_v45  ;;  %7086 = vmatprep.mubr.msk.f32.mxu0 %vm488_vm0, %v10609_v11  ;;  %v16273_v45 = vld [vmem:[#allocation43_spill] sm:$0xff] }
 0x3c4   :  { %7182 = vmatprep.mubr.msk.f32.mxu1 %vm488_vm0, %v10144_v54  ;;  %v10631_v52 = vmul.f32 0.25, %v16273_v45 }
 0x3c6   :  { %7087 = vmatmul.mubr.msk.f32.gmra.mrb[132].mxu0 %vm488_vm0, %v10609_v11 }
 0x3c7   :  { %7183 = vmatmul.mubr.msk.f32.gmra.mrb[176].mxu1 %vm488_vm0, %v10144_v54  ;;  %7088 = vmatprep.mubr.msk.f32.mxu0 %vm488_vm0, %v10620_v38  ;;  %v16274_v54 = vld [vmem:[#allocation45_spill] sm:$0xff] }
 0x3c8   :  { %7184 = vmatprep.mubr.msk.f32.mxu1 %vm488_vm0, %v10162_v51  ;;  %v10642_v48 = vmul.f32 0.25, %v16274_v54 }
 0x3ca   :  { %7089 = vmatmul.mubr.msk.f32.gmra.mrb[134].mxu0 %vm488_vm0, %v10620_v38 }
 0x3cb   :  { %7185 = vmatmul.mubr.msk.f32.gmra.mrb[178].mxu1 %vm488_vm0, %v10162_v51  ;;  %7090 = vmatprep.mubr.msk.f32.mxu0 %vm488_vm0, %v10631_v52  ;;  %v16275_v51 = vld [vmem:[#allocation47_spill] sm:$0xff] }
 0x3cc   :  { %7186 = vmatprep.mubr.msk.f32.mxu1 %vm488_vm0, %v10180_v57  ;;  %v10653_v27 = vmul.f32 0.25, %v16275_v51 }
 0x3ce   :  { %7091 = vmatmul.mubr.msk.f32.gmra.mrb[136].mxu0 %vm488_vm0, %v10631_v52 }
 0x3cf   :  { %7187 = vmatmul.mubr.msk.f32.gmra.mrb[180].mxu1 %vm488_vm0, %v10180_v57  ;;  %7092 = vmatprep.mubr.msk.f32.mxu0 %vm488_vm0, %v10642_v48  ;;  %v16276_v57 = vld [vmem:[#allocation49_spill] sm:$0xff] }
 0x3d0   :  { %7188 = vmatprep.mubr.msk.f32.mxu1 %vm488_vm0, %v10198_v62  ;;  %v10664_v15 = vmul.f32 0.25, %v16276_v57 }
 0x3d2   :  { %7093 = vmatmul.mubr.msk.f32.gmra.mrb[138].mxu0 %vm488_vm0, %v10642_v48 }
 0x3d3   :  { %7189 = vmatmul.mubr.msk.f32.gmra.mrb[182].mxu1 %vm488_vm0, %v10198_v62  ;;  %7094 = vmatprep.mubr.msk.f32.mxu0 %vm488_vm0, %v10653_v27  ;;  %v16277_v62 = vld [vmem:[#allocation51_spill] sm:$0xff] }
 0x3d4   :  { %7190 = vmatprep.mubr.msk.f32.mxu1 %vm488_vm0, %v10216_v2  ;;  %v10675_v6 = vmul.f32 0.25, %v16277_v62 }
 0x3d6   :  { %7095 = vmatmul.mubr.msk.f32.gmra.mrb[140].mxu0 %vm488_vm0, %v10653_v27 }
 0x3d7   :  { %7191 = vmatmul.mubr.msk.f32.gmra.mrb[184].mxu1 %vm488_vm0, %v10216_v2  ;;  %7096 = vmatprep.mubr.msk.f32.mxu0 %vm488_vm0, %v10664_v15  ;;  %v16278_v2 = vld [vmem:[#allocation53_spill] sm:$0xff] }
 0x3d8   :  { %7192 = vmatprep.mubr.msk.f32.mxu1 %vm488_vm0, %v10234_v10  ;;  %v10686_v23 = vmul.f32 0.25, %v16278_v2 }
 0x3da   :  { %7097 = vmatmul.mubr.msk.f32.gmra.mrb[142].mxu0 %vm488_vm0, %v10664_v15 }
 0x3db   :  { %7193 = vmatmul.mubr.msk.f32.gmra.mrb[186].mxu1 %vm488_vm0, %v10234_v10  ;;  %7098 = vmatprep.mubr.msk.f32.mxu0 %vm488_vm0, %v10675_v6 }
 0x3dc   :  { %7194 = vmatprep.mubr.msk.f32.mxu1 %vm488_vm0, %v10252_v18 }
 0x3de   :  { %7099 = vmatmul.mubr.msk.f32.gmra.mrb[144].mxu0 %vm488_vm0, %v10675_v6 }
 0x3df   :  { %7195 = vmatmul.mubr.msk.f32.gmra.mrb[188].mxu1 %vm488_vm0, %v10252_v18  ;;  %7100 = vmatprep.mubr.msk.f32.mxu0 %vm488_vm0, %v10686_v23 }
 0x3e0   :  { %7196 = vmatprep.mubr.msk.f32.mxu1 %vm488_vm0, %v10270_v5 }
 0x3e2   :  { %7101 = vmatmul.mubr.msk.f32.gmra.mrb[146].mxu0 %vm488_vm0, %v10686_v23 }
 0x3e3   :  { %7197 = vmatmul.mubr.msk.f32.gmra.mrb[190].mxu1 %vm488_vm0, %v10270_v5 }
 0x3e4   :  { %7198 = vmatprep.mubr.msk.f32.mxu1 %vm488_vm0, %v10288_v29 }
 0x3e7   :  { %7199 = vmatmul.mubr.msk.f32.gmra.mrb[192].mxu1 %vm488_vm0, %v10288_v29 }
 0x3e8   :  { %7200 = vmatprep.mubr.msk.f32.mxu1 %vm488_vm0, %v10306_v33 }
 0x3eb   :  { %7201 = vmatmul.mubr.msk.f32.gmra.mrb[194].mxu1 %vm488_vm0, %v10306_v33 }
 0x3ec   :  { %7202 = vmatprep.mubr.msk.f32.mxu1 %vm488_vm0, %v10324_v37 }
 0x3ef   :  { %7203 = vmatmul.mubr.msk.f32.gmra.mrb[196].mxu1 %vm488_vm0, %v10324_v37 }
 0x3f0   :  { %7204 = vmatprep.mubr.msk.f32.mxu1 %vm488_vm0, %v10342_v50 }
 0x3f3   :  { %7205 = vmatmul.mubr.msk.f32.gmra.mrb[198].mxu1 %vm488_vm0, %v10342_v50 }
 0x3f4   :  { %7206 = vmatprep.mubr.msk.f32.mxu1 %vm488_vm0, %v10360_v63 }
 0x3f7   :  { %7207 = vmatmul.mubr.msk.f32.gmra.mrb[200].mxu1 %vm488_vm0, %v10360_v63 }
 0x3f8   :  { %7208 = vmatprep.mubr.msk.f32.mxu1 %vm488_vm0, %v10378_v61 }
 0x3fb   :  { %7209 = vmatmul.mubr.msk.f32.gmra.mrb[202].mxu1 %vm488_vm0, %v10378_v61 }
 0x3fc   :  { %7210 = vmatprep.mubr.msk.f32.mxu1 %vm488_vm0, %v10396_v43 }
 0x3ff   :  { %7211 = vmatmul.mubr.msk.f32.gmra.mrb[204].mxu1 %vm488_vm0, %v10396_v43 }
 0x400   :  { %7212 = vmatprep.mubr.msk.f32.mxu1 %vm488_vm0, %v10414_v49 }
 0x403   :  { %7213 = vmatmul.mubr.msk.f32.gmra.mrb[206].mxu1 %vm488_vm0, %v10414_v49 }
 0x404   :  { %7214 = vmatprep.mubr.msk.f32.mxu1 %vm488_vm0, %v10433_v22 }
 0x407   :  { %7215 = vmatmul.mubr.msk.f32.gmra.mrb[208].mxu1 %vm488_vm0, %v10433_v22 }
 0x408   :  { %7216 = vmatprep.mubr.msk.f32.mxu1 %vm488_vm0, %v10447_v9 }
 0x40b   :  { %7217 = vmatmul.mubr.msk.f32.gmra.mrb[210].mxu1 %vm488_vm0, %v10447_v9 }
 0x40c   :  { %7218 = vmatprep.mubr.msk.f32.mxu1 %vm488_vm0, %v10465_v0 }
 0x40f   :  { %7219 = vmatmul.mubr.msk.f32.gmra.mrb[212].mxu1 %vm488_vm0, %v10465_v0 }
 0x410   :  { %7220 = vmatprep.mubr.msk.f32.mxu1 %vm488_vm0, %v10479_v30 }
 0x411   :  { %v10746_v10 = vpop.f32.mrb[64].mxu0  ;;  %v10748_v18 = vpop.f32.mrb[128].mxu1 }
 0x412   :  { %16279 = vst [vmem:[#allocation5_spill] sm:$0xff] %v10748_v18  ;;  %v10750_v5 = vpop.f32.mrb[65].mxu0  ;;  %v10752_v29 = vpop.f32.mrb[129].mxu1 }
 0x413   :  { %16280 = vst [vmem:[#allocation68_spill] sm:$0xff] %v10752_v29  ;;  %7221 = vmatmul.mubr.msk.f32.gmra.mrb[214].mxu1 %vm488_vm0, %v10479_v30 }
 0x414   :  { %7222 = vmatprep.mubr.msk.f32.mxu1 %vm488_vm0, %v10497_v55 }
 0x415   :  { %v10758_v33 = vpop.f32.mrb[66].mxu0  ;;  %v10760_v37 = vpop.f32.mrb[130].mxu1 }
 0x416   :  { %16281 = vst [vmem:[#allocation20_spill] sm:$0xff] %v10760_v37  ;;  %v10762_v50 = vpop.f32.mrb[67].mxu0  ;;  %v10764_v63 = vpop.f32.mrb[131].mxu1 }
 0x417   :  { %16282 = vst [vmem:[#allocation18_spill] sm:$0xff] %v10764_v63  ;;  %7223 = vmatmul.mubr.msk.f32.gmra.mrb[216].mxu1 %vm488_vm0, %v10497_v55 }
 0x418   :  { %7224 = vmatprep.mubr.msk.f32.mxu1 %vm488_vm0, %v10508_v26 }
 0x419   :  { %v10770_v61 = vpop.f32.mrb[68].mxu0  ;;  %v10772_v43 = vpop.f32.mrb[132].mxu1 }
 0x41a   :  { %16283 = vst [vmem:[#allocation6_spill] sm:$0xff] %v10772_v43  ;;  %v10774_v49 = vpop.f32.mrb[69].mxu0  ;;  %v10776_v22 = vpop.f32.mrb[133].mxu1 }
 0x41b   :  { %16284 = vst [vmem:[#allocation70_spill] sm:$0xff] %v10776_v22  ;;  %7225 = vmatmul.mubr.msk.f32.gmra.mrb[218].mxu1 %vm488_vm0, %v10508_v26 }
 0x41c   :  { %7226 = vmatprep.mubr.msk.f32.mxu1 %vm488_vm0, %v10519_v19 }
 0x41d   :  { %v10782_v9 = vpop.f32.mrb[70].mxu0  ;;  %v10784_v0 = vpop.f32.mrb[134].mxu1 }
 0x41e   :  { %16285 = vst [vmem:[#allocation24_spill] sm:$0xff] %v10784_v0  ;;  %v10786_v30 = vpop.f32.mrb[71].mxu0  ;;  %v10788_v55 = vpop.f32.mrb[135].mxu1 }
 0x41f   :  { %16286 = vst [vmem:[#allocation22_spill] sm:$0xff] %v10788_v55  ;;  %7227 = vmatmul.mubr.msk.f32.gmra.mrb[220].mxu1 %vm488_vm0, %v10519_v19 }
 0x420   :  { %7228 = vmatprep.mubr.msk.f32.mxu1 %vm488_vm0, %v10526_v13 }
 0x421   :  { %v10794_v44 = vpop.f32.mrb[72].mxu0  ;;  %v10796_v26 = vpop.f32.mrb[136].mxu1 }
 0x422   :  { %16287 = vst [vmem:[#allocation7_spill] sm:$0xff] %v10796_v26  ;;  %v10798_v58 = vpop.f32.mrb[73].mxu0  ;;  %v10800_v7 = vpop.f32.mrb[137].mxu1 }
 0x423   :  { %16288 = vst [vmem:[#allocation72_spill] sm:$0xff] %v10800_v7  ;;  %7229 = vmatmul.mubr.msk.f32.gmra.mrb[222].mxu1 %vm488_vm0, %v10526_v13 }
 0x424   :  { %7230 = vmatprep.mubr.msk.f32.mxu1 %vm488_vm0, %v10537_v42 }
 0x425   :  { %v10806_v45 = vpop.f32.mrb[74].mxu0  ;;  %v10808_v19 = vpop.f32.mrb[138].mxu1 }
 0x426   :  { %16289 = vst [vmem:[#allocation28_spill] sm:$0xff] %v10808_v19  ;;  %v10810_v54 = vpop.f32.mrb[75].mxu0  ;;  %v10812_v51 = vpop.f32.mrb[139].mxu1 }
 0x427   :  { %16290 = vst [vmem:[#allocation26_spill] sm:$0xff] %v10812_v51  ;;  %7231 = vmatmul.mubr.msk.f32.gmra.mrb[224].mxu1 %vm488_vm0, %v10537_v42 }
 0x428   :  { %7232 = vmatprep.mubr.msk.f32.mxu1 %vm488_vm0, %v10544_v14 }
 0x429   :  { %v10818_v57 = vpop.f32.mrb[76].mxu0  ;;  %v10820_v13 = vpop.f32.mrb[140].mxu1 }
 0x42a   :  { %16291 = vst [vmem:[#allocation8_spill] sm:$0xff] %v10820_v13  ;;  %v10822_v62 = vpop.f32.mrb[77].mxu0  ;;  %v10824_v2 = vpop.f32.mrb[141].mxu1 }
 0x42b   :  { %16292 = vst [vmem:[#allocation74_spill] sm:$0xff] %v10824_v2  ;;  %7233 = vmatmul.mubr.msk.f32.gmra.mrb[226].mxu1 %vm488_vm0, %v10544_v14 }
 0x42c   :  { %7234 = vmatprep.mubr.msk.f32.mxu1 %vm488_vm0, %v10555_v53 }
 0x42d   :  { %v10830_v51 = vpop.f32.mrb[78].mxu0  ;;  %v10832_v42 = vpop.f32.mrb[142].mxu1 }
 0x42e   :  { %16293 = vst [vmem:[#allocation32_spill] sm:$0xff] %v10832_v42  ;;  %v10834_v19 = vpop.f32.mrb[79].mxu0  ;;  %v10836_v7 = vpop.f32.mrb[143].mxu1 }
 0x42f   :  { %16294 = vst [vmem:[#allocation30_spill] sm:$0xff] %v10836_v7  ;;  %7235 = vmatmul.mubr.msk.f32.gmra.mrb[228].mxu1 %vm488_vm0, %v10555_v53 }
 0x430   :  { %7236 = vmatprep.mubr.msk.f32.mxu1 %vm488_vm0, %v10562_v21 }
 0x431   :  { %v10842_v2 = vpop.f32.mrb[80].mxu0  ;;  %v10844_v14 = vpop.f32.mrb[144].mxu1 }
 0x432   :  { %16295 = vst [vmem:[#allocation9_spill] sm:$0xff] %v10844_v14  ;;  %v10846_v13 = vpop.f32.mrb[81].mxu0  ;;  %v10848_v26 = vpop.f32.mrb[145].mxu1 }
 0x433   :  { %16296 = vst [vmem:[#allocation76_spill] sm:$0xff] %v10848_v26  ;;  %7237 = vmatmul.mubr.msk.f32.gmra.mrb[230].mxu1 %vm488_vm0, %v10562_v21 }
 0x434   :  { %7238 = vmatprep.mubr.msk.f32.mxu1 %vm488_vm0, %v10573_v16 }
 0x435   :  { %v10854_v7 = vpop.f32.mrb[82].mxu0  ;;  %v10856_v53 = vpop.f32.mrb[146].mxu1 }
 0x436   :  { %16297 = vst [vmem:[#allocation10_spill] sm:$0xff] %v10856_v53  ;;  %v10858_v42 = vpop.f32.mrb[83].mxu0  ;;  %v10860_v55 = vpop.f32.mrb[147].mxu1 }
 0x437   :  { %16298 = vst [vmem:[#allocation11_spill] sm:$0xff] %v10860_v55  ;;  %7239 = vmatmul.mubr.msk.f32.gmra.mrb[232].mxu1 %vm488_vm0, %v10573_v16 }
 0x438   :  { %7240 = vmatprep.mubr.msk.f32.mxu1 %vm488_vm0, %v10580_v46 }
 0x439   :  { %v10866_v26 = vpop.f32.mrb[84].mxu0  ;;  %v10868_v21 = vpop.f32.mrb[148].mxu1 }
 0x43a   :  { %16299 = vst [vmem:[#allocation12_spill] sm:$0xff] %v10868_v21  ;;  %v10870_v14 = vpop.f32.mrb[85].mxu0  ;;  %v10872_v0 = vpop.f32.mrb[149].mxu1 }
 0x43b   :  { %16300 = vst [vmem:[#allocation13_spill] sm:$0xff] %v10872_v0  ;;  %7241 = vmatmul.mubr.msk.f32.gmra.mrb[234].mxu1 %vm488_vm0, %v10580_v46 }
 0x43c   :  { %7242 = vmatprep.mubr.msk.f32.mxu1 %vm488_vm0, %v10591_v28 }
 0x43d   :  { %v10878_v55 = vpop.f32.mrb[86].mxu0  ;;  %v10880_v16 = vpop.f32.mrb[150].mxu1 }
 0x43e   :  { %16301 = vst [vmem:[#allocation15_spill] sm:$0xff] %v10880_v16  ;;  %v10882_v53 = vpop.f32.mrb[87].mxu0  ;;  %v10884_v22 = vpop.f32.mrb[151].mxu1 }
 0x43f   :  { %16302 = vst [vmem:[#allocation17_spill] sm:$0xff] %v10884_v22  ;;  %7243 = vmatmul.mubr.msk.f32.gmra.mrb[236].mxu1 %vm488_vm0, %v10591_v28 }
 0x440   :  { %7244 = vmatprep.mubr.msk.f32.mxu1 %vm488_vm0, %v10598_v39 }
 0x441   :  { %v10890_v0 = vpop.f32.mrb[88].mxu0  ;;  %v10892_v46 = vpop.f32.mrb[152].mxu1 }
 0x442   :  { %16303 = vst [vmem:[#allocation19_spill] sm:$0xff] %v10892_v46  ;;  %v10894_v21 = vpop.f32.mrb[89].mxu0  ;;  %v10896_v43 = vpop.f32.mrb[153].mxu1 }
 0x443   :  { %16304 = vst [vmem:[#allocation21_spill] sm:$0xff] %v10896_v43  ;;  %7245 = vmatmul.mubr.msk.f32.gmra.mrb[238].mxu1 %vm488_vm0, %v10598_v39 }
 0x444   :  { %7246 = vmatprep.mubr.msk.f32.mxu1 %vm488_vm0, %v10609_v11 }
 0x445   :  { %v10902_v22 = vpop.f32.mrb[90].mxu0  ;;  %v10904_v28 = vpop.f32.mrb[154].mxu1 }
 0x446   :  { %16305 = vst [vmem:[#allocation23_spill] sm:$0xff] %v10904_v28  ;;  %v10906_v16 = vpop.f32.mrb[91].mxu0  ;;  %v10908_v63 = vpop.f32.mrb[155].mxu1 }
 0x447   :  { %16306 = vst [vmem:[#allocation25_spill] sm:$0xff] %v10908_v63  ;;  %7247 = vmatmul.mubr.msk.f32.gmra.mrb[240].mxu1 %vm488_vm0, %v10609_v11 }
 0x448   :  { %7248 = vmatprep.mubr.msk.f32.mxu1 %vm488_vm0, %v10620_v38 }
 0x449   :  { %v10914_v43 = vpop.f32.mrb[92].mxu0  ;;  %v10916_v39 = vpop.f32.mrb[156].mxu1 }
 0x44a   :  { %16307 = vst [vmem:[#allocation27_spill] sm:$0xff] %v10916_v39  ;;  %v10918_v46 = vpop.f32.mrb[93].mxu0  ;;  %v10920_v37 = vpop.f32.mrb[157].mxu1 }
 0x44b   :  { %16308 = vst [vmem:[#allocation29_spill] sm:$0xff] %v10920_v37  ;;  %7249 = vmatmul.mubr.msk.f32.gmra.mrb[242].mxu1 %vm488_vm0, %v10620_v38 }
 0x44c   :  { %7250 = vmatprep.mubr.msk.f32.mxu1 %vm488_vm0, %v10631_v52 }
 0x44d   :  { %v10926_v63 = vpop.f32.mrb[94].mxu0  ;;  %v10928_v11 = vpop.f32.mrb[158].mxu1 }
 0x44e   :  { %16309 = vst [vmem:[#allocation31_spill] sm:$0xff] %v10928_v11  ;;  %v10930_v28 = vpop.f32.mrb[95].mxu0  ;;  %v10932_v29 = vpop.f32.mrb[159].mxu1 }
 0x44f   :  { %16310 = vst [vmem:[#allocation33_spill] sm:$0xff] %v10930_v28  ;;  %16311 = vst [vmem:[#allocation35_spill] sm:$0xff] %v10932_v29  ;;  %7251 = vmatmul.mubr.msk.f32.gmra.mrb[244].mxu1 %vm488_vm0, %v10631_v52 }
 0x450   :  { %7252 = vmatprep.mubr.msk.f32.mxu1 %vm488_vm0, %v10642_v48 }
 0x451   :  { %v10938_v37 = vpop.f32.mrb[96].mxu0  ;;  %v10940_v38 = vpop.f32.mrb[160].mxu1 }
 0x452   :  { %16312 = vst [vmem:[#allocation37_spill] sm:$0xff] %v10940_v38  ;;  %v10942_v39 = vpop.f32.mrb[97].mxu0  ;;  %v10944_v18 = vpop.f32.mrb[161].mxu1 }
 0x453   :  { %16313 = vst [vmem:[#allocation39_spill] sm:$0xff] %v10942_v39  ;;  %16314 = vst [vmem:[#allocation41_spill] sm:$0xff] %v10944_v18  ;;  %7253 = vmatmul.mubr.msk.f32.gmra.mrb[246].mxu1 %vm488_vm0, %v10642_v48 }
 0x454   :  { %7254 = vmatprep.mubr.msk.f32.mxu1 %vm488_vm0, %v10653_v27 }
 0x455   :  { %v10950_v29 = vpop.f32.mrb[98].mxu0  ;;  %v10952_v52 = vpop.f32.mrb[162].mxu1 }
 0x456   :  { %16315 = vst [vmem:[#allocation43_spill] sm:$0xff] %v10952_v52  ;;  %v10954_v11 = vpop.f32.mrb[99].mxu0  ;;  %v10956_v28 = vpop.f32.mrb[163].mxu1 }
 0x457   :  { %16316 = vst [vmem:[#allocation45_spill] sm:$0xff] %v10954_v11  ;;  %16317 = vst [vmem:[#allocation47_spill] sm:$0xff] %v10956_v28  ;;  %7255 = vmatmul.mubr.msk.f32.gmra.mrb[248].mxu1 %vm488_vm0, %v10653_v27 }
 0x458   :  { %7256 = vmatprep.mubr.msk.f32.mxu1 %vm488_vm0, %v10664_v15 }
 0x459   :  { %v10962_v18 = vpop.f32.mrb[100].mxu0  ;;  %v10964_v48 = vpop.f32.mrb[164].mxu1 }
 0x45a   :  { %16318 = vst [vmem:[#allocation49_spill] sm:$0xff] %v10964_v48  ;;  %v10966_v38 = vpop.f32.mrb[101].mxu0  ;;  %v10968_v39 = vpop.f32.mrb[165].mxu1 }
 0x45b   :  { %16319 = vst [vmem:[#allocation51_spill] sm:$0xff] %v10966_v38  ;;  %16320 = vst [vmem:[#allocation53_spill] sm:$0xff] %v10968_v39  ;;  %7257 = vmatmul.mubr.msk.f32.gmra.mrb[250].mxu1 %vm488_vm0, %v10664_v15 }
 0x45c   :  { %7258 = vmatprep.mubr.msk.f32.mxu1 %vm488_vm0, %v10675_v6 }
 0x45d   :  { %v10974_v28 = vpop.f32.mrb[102].mxu0  ;;  %v10976_v27 = vpop.f32.mrb[166].mxu1 }
 0x45e   :  { %16321 = vst [vmem:[#allocation81_spill] sm:$0xff] %v10976_v27  ;;  %v10978_v52 = vpop.f32.mrb[103].mxu0  ;;  %v10980_v11 = vpop.f32.mrb[167].mxu1 }
 0x45f   :  { %16322 = vst [vmem:[#allocation82_spill] sm:$0xff] %v10978_v52  ;;  %16323 = vst [vmem:[#allocation83_spill] sm:$0xff] %v10980_v11  ;;  %7259 = vmatmul.mubr.msk.f32.gmra.mrb[252].mxu1 %vm488_vm0, %v10675_v6 }
 0x460   :  { %7260 = vmatprep.mubr.msk.f32.mxu1 %vm488_vm0, %v10686_v23 }
 0x461   :  { %v10986_v39 = vpop.f32.mrb[104].mxu0  ;;  %v10988_v15 = vpop.f32.mrb[168].mxu1 }
 0x462   :  { %16324 = vst [vmem:[#allocation84_spill] sm:$0xff] %v10988_v15  ;;  %v10990_v48 = vpop.f32.mrb[105].mxu0  ;;  %v10992_v38 = vpop.f32.mrb[169].mxu1 }
 0x463   :  { %16325 = vst [vmem:[#allocation85_spill] sm:$0xff] %v10992_v38  ;;  %7261 = vmatmul.mubr.msk.f32.gmra.mrb[254].mxu1 %vm488_vm0, %v10686_v23 }
 0x464   :  { %7262 = vmatprep.mubr.msk.f32.mxu1 %vm488_vm0, %v9913_v34 }
 0x465   :  { %v10998_v11 = vpop.f32.mrb[106].mxu0  ;;  %v11000_v6 = vpop.f32.mrb[170].mxu1 }
 0x466   :  { %16326 = vst [vmem:[#allocation86_spill] sm:$0xff] %v11000_v6  ;;  %v11002_v27 = vpop.f32.mrb[107].mxu0  ;;  %v11004_v52 = vpop.f32.mrb[171].mxu1 }
 0x467   :  { %16327 = vst [vmem:[#allocation87_spill] sm:$0xff] %v11004_v52  ;;  %7263 = vmatmul.mubr.msk.f32.gmra.mrb[0].mxu1 %vm488_vm0, %v9913_v34 }
 0x468   :  { %7264 = vmatprep.mubr.msk.f32.mxu1 %vm488_vm0, %v10127_v60 }
 0x469   :  { %v11010_v38 = vpop.f32.mrb[108].mxu0 }
 0x46a   :  { %v11012_v23 = vpop.f32.mrb[109].mxu0 }
 0x46b   :  { %7265 = vmatmul.mubr.msk.f32.gmra.mrb[2].mxu1 %vm488_vm0, %v10127_v60 }
 0x46c   :  { %7266 = vmatprep.mubr.msk.f32.mxu1 %vm488_vm0, %v10147_v36 }
 0x46d   :  { %v11018_v6 = vpop.f32.mrb[110].mxu0 }
 0x46e   :  { %16328 = vst [vmem:[#allocation88_spill] sm:$0xff] %v11018_v6  ;;  %v11020_v15 = vpop.f32.mrb[111].mxu0 }
 0x46f   :  { %7267 = vmatmul.mubr.msk.f32.gmra.mrb[4].mxu1 %vm488_vm0, %v10147_v36 }
 0x470   :  { %7268 = vmatprep.mubr.msk.f32.mxu1 %vm488_vm0, %v10165_v56 }
 0x471   :  { %v11026_v34 = vpop.f32.mrb[112].mxu0 }
 0x472   :  { %16329 = vst [vmem:[#allocation89_spill] sm:$0xff] %v11026_v34  ;;  %v11028_v52 = vpop.f32.mrb[113].mxu0 }
 0x473   :  { %7269 = vmatmul.mubr.msk.f32.gmra.mrb[6].mxu1 %vm488_vm0, %v10165_v56 }
 0x474   :  { %7270 = vmatprep.mubr.msk.f32.mxu1 %vm488_vm0, %v10183_v59 }
 0x475   :  { %v11034_v60 = vpop.f32.mrb[114].mxu0 }
 0x476   :  { %16330 = vst [vmem:[#allocation90_spill] sm:$0xff] %v11034_v60  ;;  %v11036_v6 = vpop.f32.mrb[115].mxu0 }
 0x477   :  { %16331 = vst [vmem:[#allocation91_spill] sm:$0xff] %v11036_v6  ;;  %7271 = vmatmul.mubr.msk.f32.gmra.mrb[8].mxu1 %vm488_vm0, %v10183_v59 }
 0x478   :  { %7272 = vmatprep.mubr.msk.f32.mxu1 %vm488_vm0, %v10201_v17 }
 0x479   :  { %v11042_v36 = vpop.f32.mrb[116].mxu0 }
 0x47a   :  { %16332 = vst [vmem:[#allocation92_spill] sm:$0xff] %v11042_v36  ;;  %v11044_v34 = vpop.f32.mrb[117].mxu0 }
 0x47b   :  { %16333 = vst [vmem:[#allocation93_spill] sm:$0xff] %v11044_v34  ;;  %7273 = vmatmul.mubr.msk.f32.gmra.mrb[10].mxu1 %vm488_vm0, %v10201_v17 }
 0x47c   :  { %7274 = vmatprep.mubr.msk.f32.mxu1 %vm488_vm0, %v10219_v4 }
 0x47d   :  { %v11050_v56 = vpop.f32.mrb[118].mxu0 }
 0x47e   :  { %16334 = vst [vmem:[#allocation94_spill] sm:$0xff] %v11050_v56  ;;  %v11052_v60 = vpop.f32.mrb[119].mxu0 }
 0x47f   :  { %16335 = vst [vmem:[#allocation95_spill] sm:$0xff] %v11052_v60  ;;  %7275 = vmatmul.mubr.msk.f32.gmra.mrb[12].mxu1 %vm488_vm0, %v10219_v4 }
 0x480   :  { %7276 = vmatprep.mubr.msk.f32.mxu1 %vm488_vm0, %v10237_v12 }
 0x481   :  { %v11058_v59 = vpop.f32.mrb[120].mxu0 }
 0x482   :  { %16336 = vst [vmem:[#allocation96_spill] sm:$0xff] %v11058_v59  ;;  %v11060_v36 = vpop.f32.mrb[121].mxu0 }
 0x483   :  { %16337 = vst [vmem:[#allocation97_spill] sm:$0xff] %v11060_v36  ;;  %7277 = vmatmul.mubr.msk.f32.gmra.mrb[14].mxu1 %vm488_vm0, %v10237_v12  ;;  %v1852_v12 = vld [vmem:[%s15541_s4] sm:$0xff]  ;;  %v1857_v36 = vld [vmem:[%s15541_s4 + $0x28] sm:$0xff] }
 0x484   :  { %7278 = vmatprep.mubr.msk.f32.mxu1 %vm488_vm0, %v10255_v20 }
 0x485   :  { %v11066_v17 = vpop.f32.mrb[122].mxu0 }
 0x486   :  { %16338 = vst [vmem:[#allocation98_spill] sm:$0xff] %v11066_v17  ;;  %v11068_v56 = vpop.f32.mrb[123].mxu0 }
 0x487   :  { %16339 = vst [vmem:[#allocation99_spill] sm:$0xff] %v11068_v56  ;;  %7279 = vmatmul.mubr.msk.f32.gmra.mrb[16].mxu1 %vm488_vm0, %v10255_v20  ;;  %v1853_v56 = vld [vmem:[%s15541_s4 + $0x8] sm:$0xff] }
 0x488   :  { %7280 = vmatprep.mubr.msk.f32.mxu1 %vm488_vm0, %v10273_v25 }
 0x489   :  { %v11074_v4 = vpop.f32.mrb[124].mxu0 }
 0x48a   :  { %16340 = vst [vmem:[#allocation100_spill] sm:$0xff] %v11074_v4  ;;  %v11076_v59 = vpop.f32.mrb[125].mxu0  ;;  %v1856_v4 = vld [vmem:[%s15541_s4 + $0x20] sm:$0xff] }
 0x48b   :  { %16341 = vst [vmem:[#allocation101_spill] sm:$0xff] %v11076_v59  ;;  %7281 = vmatmul.mubr.msk.f32.gmra.mrb[18].mxu1 %vm488_vm0, %v10273_v25  ;;  %v11093_v59 = vadd.f32 %v10746_v10, %v1852_v12  ;;  %v11096_v25 = vadd.f32 %v10750_v5, %v1853_v56  ;;  %v1854_v10 = vld [vmem:[%s15541_s4 + $0x10] sm:$0xff]  ;;  %v1855_v56 = vld [vmem:[%s15541_s4 + $0x18] sm:$0xff]  ;;  %v11117_v12 = vadd.f32 %v10758_v33, %v1856_v4  ;;  %v1860_v33 = vld [vmem:[%s15541_s4 + $0x40] sm:$0xff] }
 0x48c   :  { %7282 = vmatprep.mubr.msk.f32.mxu1 %vm488_vm0, %v10291_v31  ;;  %v1858_v4 = vld [vmem:[%s15541_s4 + $0x30] sm:$0xff] }
 0x48d   :  { %v11088_v20 = vpop.f32.mrb[126].mxu0  ;;  %16344 = vst [vmem:[#allocation104_spill] sm:$0xff] %v11093_v59  ;;  %16345 = vst [vmem:[#allocation105_spill] sm:$0xff] %v11096_v25  ;;  %v3518_v60 = vmax.f32 %v11093_v59, %v11096_v25  ;;  %v11154_v59 = vadd.f32 %v10770_v61, %v1860_v33 }
 0x48e   :  { %16342 = vst [vmem:[#allocation102_spill] sm:$0xff] %v11088_v20  ;;  %v11090_v17 = vpop.f32.mrb[127].mxu0  ;;  %16346 = vst [vmem:[#allocation106_spill] sm:$0xff] %v11117_v12 }
 0x48f   :  { %16343 = vst [vmem:[#allocation103_spill] sm:$0xff] %v11090_v17  ;;  %7283 = vmatmul.mubr.msk.f32.gmra.mrb[20].mxu1 %vm488_vm0, %v10291_v31  ;;  %v11120_v17 = vadd.f32 %v10762_v50, %v1857_v36  ;;  %v1861_v50 = vld [vmem:[%s15541_s4 + $0x48] sm:$0xff]  ;;  %16351 = vst [vmem:[#allocation111_spill] sm:$0xff] %v11154_v59 }
 0x490   :  { %7284 = vmatprep.mubr.msk.f32.mxu1 %vm488_vm0, %v10309_v35 }
 0x491   :  { %v11111_v5 = vpop.f32.mrb[128].mxu0  ;;  %16347 = vst [vmem:[#allocation107_spill] sm:$0xff] %v11120_v17  ;;  %v3523_v25 = vmax.f32 %v11117_v12, %v11120_v17 }
 0x492   :  { %v3135_v31 = vpop.f32.mrb[172].mxu1  ;;  %v11122_v20 = vpop.f32.mrb[129].mxu0 }
 0x493   :  { %16348 = vst [vmem:[#allocation108_spill] sm:$0xff] %v11122_v20  ;;  %v11126_v34 = vadd.f32 %v3135_v31, %v1854_v10  ;;  %v3137_v6 = vpop.f32.mrb[173].mxu1  ;;  %7285 = vmatmul.mubr.msk.f32.gmra.mrb[22].mxu1 %vm488_vm0, %v10309_v35  ;;  %v1859_v31 = vld [vmem:[%s15541_s4 + $0x38] sm:$0xff]  ;;  %v11157_v20 = vadd.f32 %v10774_v49, %v1861_v50  ;;  %v1862_v49 = vld [vmem:[%s15541_s4 + $0x50] sm:$0xff] }
 0x494   :  { %v11136_v36 = vadd.f32 %v3137_v6, %v1855_v56  ;;  %7286 = vmatprep.mubr.msk.f32.mxu1 %vm488_vm0, %v10327_v41 }
 0x495   :  { %16349 = vst [vmem:[#allocation109_spill] sm:$0xff] %v11126_v34  ;;  %v3519_v10 = vmax.f32 %v3518_v60, %v11126_v34  ;;  %v11144_v35 = vpop.f32.mrb[130].mxu0  ;;  %16352 = vst [vmem:[#allocation112_spill] sm:$0xff] %v11157_v20  ;;  %v1864_v60 = vld [vmem:[%s15541_s4 + $0x60] sm:$0xff]  ;;  %v1865_v34 = vld [vmem:[%s15541_s4 + $0x68] sm:$0xff]  ;;  %v3528_v12 = vmax.f32 %v11154_v59, %v11157_v20 }
 0x496   :  { %16350 = vst [vmem:[#allocation110_spill] sm:$0xff] %v11144_v35  ;;  %v3141_v6 = vpop.f32.mrb[174].mxu1  ;;  %v11151_v56 = vpop.f32.mrb[131].mxu0 }
 0x497   :  { %v11165_v35 = vadd.f32 %v3141_v6, %v1858_v4  ;;  %v3143_v17 = vpop.f32.mrb[175].mxu1  ;;  %7287 = vmatmul.mubr.msk.f32.gmra.mrb[24].mxu1 %vm488_vm0, %v10327_v41  ;;  %v3520_v61 = vmax.f32 %v3519_v10, %v11136_v36  ;;  %v1863_v41 = vld [vmem:[%s15541_s4 + $0x58] sm:$0xff]  ;;  %v11184_v10 = vadd.f32 %v10782_v9, %v1864_v60  ;;  %v1868_v9 = vld [vmem:[%s15541_s4 + $0x80] sm:$0xff]  ;;  %v1866_v60 = vld [vmem:[%s15541_s4 + $0x70] sm:$0xff] }
 0x498   :  { %v11170_v33 = vadd.f32 %v3143_v17, %v1859_v31  ;;  %7288 = vmatprep.mubr.msk.f32.mxu1 %vm488_vm0, %v10345_v40  ;;  %v11187_v17 = vadd.f32 %v10786_v30, %v1865_v34  ;;  %v1869_v30 = vld [vmem:[%s15541_s4 + $0x88] sm:$0xff]  ;;  %v11222_v20 = vadd.f32 %v10794_v44, %v1868_v9 }
 0x499   :  { %16353 = vst [vmem:[#allocation113_spill] sm:$0xff] %v11165_v35  ;;  %v3524_v50 = vmax.f32 %v3523_v25, %v11165_v35  ;;  %3521 = vmax.xlane.f32.xlu0 %v3520_v61  ;;  %v11178_v4 = vpop.f32.mrb[132].mxu0  ;;  %16354 = vst [vmem:[#allocation114_spill] sm:$0xff] %v11184_v10  ;;  %v11225_v59 = vadd.f32 %v10798_v58, %v1869_v30  ;;  %v1870_v58 = vld [vmem:[%s15541_s4 + $0x90] sm:$0xff] }
 0x49a   :  { %16355 = vst [vmem:[#allocation115_spill] sm:$0xff] %v11187_v17  ;;  %v3147_v31 = vpop.f32.mrb[176].mxu1  ;;  %v11189_v6 = vpop.f32.mrb[133].mxu0  ;;  %16357 = vst [vmem:[#allocation117_spill] sm:$0xff] %v11222_v20 }
 0x49b   :  { %v11193_v25 = vadd.f32 %v3147_v31, %v1862_v49  ;;  %v3149_v61 = vpop.f32.mrb[177].mxu1  ;;  %7289 = vmatmul.mubr.msk.f32.gmra.mrb[26].mxu1 %vm488_vm0, %v10345_v40  ;;  %v3525_v35 = vmax.f32 %v3524_v50, %v11170_v33  ;;  %v1867_v50 = vld [vmem:[%s15541_s4 + $0x78] sm:$0xff]  ;;  %16358 = vst [vmem:[#allocation118_spill] sm:$0xff] %v11225_v59 }
 0x49c   :  { %v11204_v34 = vadd.f32 %v3149_v61, %v1863_v41  ;;  %7290 = vmatprep.mubr.msk.f32.mxu1 %vm488_vm0, %v10363_v32  ;;  %v3533_v41 = vmax.f32 %v11184_v10, %v11187_v17 }
 0x49d   :  { %16356 = vst [vmem:[#allocation116_spill] sm:$0xff] %v11193_v25  ;;  %v3529_v40 = vmax.f32 %v3528_v12, %v11193_v25  ;;  %3526 = vmax.xlane.f32.xlu1 %v3525_v35  ;;  %v11212_v49 = vpop.f32.mrb[134].mxu0  ;;  %v1872_v12 = vld [vmem:[%s15541_s4 + $0xa0] sm:$0xff]  ;;  %v1873_v35 = vld [vmem:[%s15541_s4 + $0xa8] sm:$0xff] }
 0x49e   :  { %v3153_v31 = vpop.f32.mrb[178].mxu1  ;;  %v11219_v61 = vpop.f32.mrb[135].mxu0 }
 0x49f   :  { %v3530_v25 = vmax.f32 %v3529_v40, %v11204_v34  ;;  %v11234_v17 = vadd.f32 %v3153_v31, %v1866_v60  ;;  %v3155_v10 = vpop.f32.mrb[179].mxu1  ;;  %7291 = vmatmul.mubr.msk.f32.gmra.mrb[28].mxu1 %vm488_vm0, %v10363_v32  ;;  %v1871_v60 = vld [vmem:[%s15541_s4 + $0x98] sm:$0xff]  ;;  %v11252_v32 = vadd.f32 %v10806_v45, %v1872_v12  ;;  %v3538_v31 = vmax.f32 %v11222_v20, %v11225_v59  ;;  %v1876_v45 = vld [vmem:[%s15541_s4 + $0xc0] sm:$0xff] }
 0x4a0   :  { %v11238_v44 = vadd.f32 %v3155_v10, %v1867_v50  ;;  %7292 = vmatprep.mubr.msk.f32.mxu1 %vm488_vm0, %v10381_v3  ;;  %v11255_v10 = vadd.f32 %v10810_v54, %v1873_v35  ;;  %v1877_v54 = vld [vmem:[%s15541_s4 + $0xc8] sm:$0xff]  ;;  %v1874_v35 = vld [vmem:[%s15541_s4 + $0xb0] sm:$0xff]  ;;  %v11290_v59 = vadd.f32 %v10818_v57, %v1876_v45 }
 0x4a1   :  { %16359 = vst [vmem:[#allocation119_spill] sm:$0xff] %v11234_v17  ;;  %v3534_v9 = vmax.f32 %v3533_v41, %v11234_v17  ;;  %3531 = vmax.xlane.f32.xlu0 %v3530_v25  ;;  %v11246_v30 = vpop.f32.mrb[136].mxu0  ;;  %16360 = vst [vmem:[#allocation120_spill] sm:$0xff] %v11252_v32  ;;  %v11293_v20 = vadd.f32 %v10822_v62, %v1877_v54  ;;  %v1878_v62 = vld [vmem:[%s15541_s4 + $0xd0] sm:$0xff] }
 0x4a2   :  { %16361 = vst [vmem:[#allocation121_spill] sm:$0xff] %v11255_v10  ;;  %v3159_v40 = vpop.f32.mrb[180].mxu1  ;;  %v11257_v50 = vpop.f32.mrb[137].mxu0  ;;  %16363 = vst [vmem:[#allocation123_spill] sm:$0xff] %v11290_v59 }
 0x4a3   :  { %v3535_v25 = vmax.f32 %v3534_v9, %v11238_v44  ;;  %v11262_v41 = vadd.f32 %v3159_v40, %v1870_v58  ;;  %v3161_v17 = vpop.f32.mrb[181].mxu1  ;;  %7293 = vmatmul.mubr.msk.f32.gmra.mrb[30].mxu1 %vm488_vm0, %v10381_v3  ;;  %v1875_v9 = vld [vmem:[%s15541_s4 + $0xb8] sm:$0xff]  ;;  %16364 = vst [vmem:[#allocation124_spill] sm:$0xff] %v11293_v20 }
 0x4a4   :  { %v11272_v12 = vadd.f32 %v3161_v17, %v1871_v60  ;;  %7294 = vmatprep.mubr.msk.f32.mxu1 %vm488_vm0, %v10399_v47  ;;  %v3543_v17 = vmax.f32 %v11252_v32, %v11255_v10 }
 0x4a5   :  { %16362 = vst [vmem:[#allocation122_spill] sm:$0xff] %v11262_v41  ;;  %v3539_v58 = vmax.f32 %v3538_v31, %v11262_v41  ;;  %3536 = vmax.xlane.f32.xlu0 %v3535_v25  ;;  %v11280_v3 = vpop.f32.mrb[138].mxu0  ;;  %v1880_v31 = vld [vmem:[%s15541_s4 + $0xe0] sm:$0xff]  ;;  %v1881_v25 = vld [vmem:[%s15541_s4 + $0xe8] sm:$0xff] }
 0x4a6   :  { %v3165_v60 = vpop.f32.mrb[182].mxu1  ;;  %v11287_v40 = vpop.f32.mrb[139].mxu0 }
 0x4a7   :  { %v3540_v41 = vmax.f32 %v3539_v58, %v11272_v12  ;;  %v11302_v10 = vadd.f32 %v3165_v60, %v1874_v35  ;;  %v3167_v32 = vpop.f32.mrb[183].mxu1  ;;  %7295 = vmatmul.mubr.msk.f32.gmra.mrb[32].mxu1 %vm488_vm0, %v10399_v47  ;;  %v1879_v35 = vld [vmem:[%s15541_s4 + $0xd8] sm:$0xff]  ;;  %v11320_v47 = vadd.f32 %v10830_v51, %v1880_v31  ;;  %v3548_v60 = vmax.f32 %v11290_v59, %v11293_v20  ;;  %v1884_v51 = vld [vmem:[%s15541_s4 + $0x100] sm:$0xff] }
 0x4a8   :  { %v11306_v57 = vadd.f32 %v3167_v32, %v1875_v9  ;;  %7296 = vmatprep.mubr.msk.f32.mxu1 %vm488_vm0, %v10418_v8  ;;  %v11323_v32 = vadd.f32 %v10834_v19, %v1881_v25  ;;  %v1885_v19 = vld [vmem:[%s15541_s4 + $0x108] sm:$0xff]  ;;  %v1882_v25 = vld [vmem:[%s15541_s4 + $0xf0] sm:$0xff]  ;;  %v11358_v20 = vadd.f32 %v10842_v2, %v1884_v51 }
 0x4a9   :  { %16365 = vst [vmem:[#allocation125_spill] sm:$0xff] %v11302_v10  ;;  %v3544_v45 = vmax.f32 %v3543_v17, %v11302_v10  ;;  %3541 = vmax.xlane.f32.xlu1 %v3540_v41  ;;  %v11314_v54 = vpop.f32.mrb[140].mxu0  ;;  %16366 = vst [vmem:[#allocation126_spill] sm:$0xff] %v11320_v47  ;;  %v11361_v59 = vadd.f32 %v10846_v13, %v1885_v19  ;;  %v1886_v13 = vld [vmem:[%s15541_s4 + $0x110] sm:$0xff] }
 0x4aa   :  { %16367 = vst [vmem:[#allocation127_spill] sm:$0xff] %v11323_v32  ;;  %v3171_v58 = vpop.f32.mrb[184].mxu1  ;;  %v11325_v9 = vpop.f32.mrb[141].mxu0  ;;  %16369 = vst [vmem:[#allocation129_spill] sm:$0xff] %v11358_v20 }
 0x4ab   :  { %v3545_v41 = vmax.f32 %v3544_v45, %v11306_v57  ;;  %v11330_v17 = vadd.f32 %v3171_v58, %v1878_v62  ;;  %v3173_v10 = vpop.f32.mrb[185].mxu1  ;;  %7297 = vmatmul.mubr.msk.f32.gmra.mrb[34].mxu1 %vm488_vm0, %v10418_v8  ;;  %v1883_v45 = vld [vmem:[%s15541_s4 + $0xf8] sm:$0xff]  ;;  %16370 = vst [vmem:[#allocation130_spill] sm:$0xff] %v11361_v59 }
 0x4ac   :  { %v11340_v31 = vadd.f32 %v3173_v10, %v1879_v35  ;;  %7298 = vmatprep.mubr.msk.f32.mxu1 %vm488_vm0, %v10436_v24  ;;  %v3553_v10 = vmax.f32 %v11320_v47, %v11323_v32 }
 0x4ad   :  { %16368 = vst [vmem:[#allocation128_spill] sm:$0xff] %v11330_v17  ;;  %v3549_v62 = vmax.f32 %v3548_v60, %v11330_v17  ;;  %3546 = vmax.xlane.f32.xlu0 %v3545_v41  ;;  %v11348_v8 = vpop.f32.mrb[142].mxu0  ;;  %v1888_v60 = vld [vmem:[%s15541_s4 + $0x120] sm:$0xff]  ;;  %v1889_v41 = vld [vmem:[%s15541_s4 + $0x128] sm:$0xff] }
 0x4ae   :  { %v3177_v35 = vpop.f32.mrb[186].mxu1  ;;  %v11355_v58 = vpop.f32.mrb[143].mxu0 }
 0x4af   :  { %v3550_v17 = vmax.f32 %v3549_v62, %v11340_v31  ;;  %v11370_v32 = vadd.f32 %v3177_v35, %v1882_v25  ;;  %v3179_v47 = vpop.f32.mrb[187].mxu1  ;;  %7299 = vmatmul.mubr.msk.f32.gmra.mrb[36].mxu1 %vm488_vm0, %v10436_v24  ;;  %v1887_v25 = vld [vmem:[%s15541_s4 + $0x118] sm:$0xff]  ;;  %v11388_v24 = vadd.f32 %v10854_v7, %v1888_v60  ;;  %v3558_v35 = vmax.f32 %v11358_v20, %v11361_v59  ;;  %v1892_v7 = vld [vmem:[%s15541_s4 + $0x140] sm:$0xff] }
 0x4b0   :  { %v11374_v2 = vadd.f32 %v3179_v47, %v1883_v45  ;;  %7300 = vmatprep.mubr.msk.f32.mxu1 %vm488_vm0, %v10450_v1  ;;  %v11391_v47 = vadd.f32 %v10858_v42, %v1889_v41  ;;  %v1893_v42 = vld [vmem:[%s15541_s4 + $0x148] sm:$0xff]  ;;  %v16377_v41 = vld [vmem:[#allocation16_spill] sm:$0xff]  ;;  %v11426_v20 = vadd.f32 %v10866_v26, %v1892_v7  ;;  %v1894_v7 = vld [vmem:[%s15541_s4 + $0x150] sm:$0xff] }
 0x4b1   :  { %16371 = vst [vmem:[#allocation131_spill] sm:$0xff] %v11370_v32  ;;  %v3554_v51 = vmax.f32 %v3553_v10, %v11370_v32  ;;  %3551 = vmax.xlane.f32.xlu1 %v3550_v17  ;;  %v11382_v19 = vpop.f32.mrb[144].mxu0  ;;  %16373 = vst [vmem:[#allocation133_spill] sm:$0xff] %v11388_v24 }
 0x4b2   :  { %16372 = vst [vmem:[#allocation132_spill] sm:$0xff] %v11374_v2  ;;  %16374 = vst [vmem:[#allocation134_spill] sm:$0xff] %v11391_v47  ;;  %v3183_v62 = vpop.f32.mrb[188].mxu1  ;;  %v11393_v45 = vpop.f32.mrb[145].mxu0 }
 0x4b3   :  { %v3555_v17 = vmax.f32 %v3554_v51, %v11374_v2  ;;  %v11398_v10 = vadd.f32 %v3183_v62, %v1886_v13  ;;  %v3185_v32 = vpop.f32.mrb[189].mxu1  ;;  %7301 = vmatmul.mubr.msk.f32.gmra.mrb[38].mxu1 %vm488_vm0, %v10450_v1  ;;  %v1890_v13 = vld [vmem:[%s15541_s4 + $0x130] sm:$0xff]  ;;  %v1891_v62 = vld [vmem:[%s15541_s4 + $0x138] sm:$0xff]  ;;  %16378 = vst [vmem:[#allocation16_spill] sm:$0xff] %v11426_v20  ;;  %v11429_v2 = vadd.f32 %v10870_v14, %v1893_v42  ;;  %v16382_v14 = vld [vmem:[#allocation14_spill] sm:$0xff] }
 0x4b4   :  { %v11408_v60 = vadd.f32 %v3185_v32, %v1887_v25  ;;  %7302 = vmatprep.mubr.msk.f32.mxu1 %vm488_vm0, %v16377_v41  ;;  %v3563_v32 = vmax.f32 %v11388_v24, %v11391_v47 }
 0x4b5   :  { %16375 = vst [vmem:[#allocation135_spill] sm:$0xff] %v11398_v10  ;;  %v3559_v51 = vmax.f32 %v3558_v35, %v11398_v10  ;;  %3556 = vmax.xlane.f32.xlu0 %v3555_v17  ;;  %v11416_v1 = vpop.f32.mrb[146].mxu0  ;;  %16379 = vst [vmem:[#allocation137_spill] sm:$0xff] %v11429_v2  ;;  %v1896_v35 = vld [vmem:[%s15541_s4 + $0x160] sm:$0xff]  ;;  %v1897_v17 = vld [vmem:[%s15541_s4 + $0x168] sm:$0xff] }
 0x4b6   :  { %16376 = vst [vmem:[#allocation136_spill] sm:$0xff] %v11408_v60  ;;  %v3189_v25 = vpop.f32.mrb[190].mxu1  ;;  %v11423_v59 = vpop.f32.mrb[147].mxu0 }
 0x4b7   :  { %v3560_v10 = vmax.f32 %v3559_v51, %v11408_v60  ;;  %v11438_v47 = vadd.f32 %v3189_v25, %v1890_v13  ;;  %v3191_v24 = vpop.f32.mrb[191].mxu1  ;;  %7303 = vmatmul.mubr.msk.f32.gmra.mrb[40].mxu1 %vm488_vm0, %v16377_v41  ;;  %v1895_v13 = vld [vmem:[%s15541_s4 + $0x158] sm:$0xff]  ;;  %v11454_v51 = vadd.f32 %v10878_v55, %v1896_v35  ;;  %v1900_v55 = vld [vmem:[%s15541_s4 + $0x180] sm:$0xff]  ;;  %v1898_v35 = vld [vmem:[%s15541_s4 + $0x170] sm:$0xff] }
 0x4b8   :  { %v11442_v26 = vadd.f32 %v3191_v24, %v1891_v62  ;;  %7304 = vmatprep.mubr.msk.f32.mxu1 %vm488_vm0, %v16382_v14  ;;  %v11457_v24 = vadd.f32 %v10882_v53, %v1897_v17  ;;  %v3568_v62 = vmax.f32 %v11426_v20, %v11429_v2  ;;  %v1901_v53 = vld [vmem:[%s15541_s4 + $0x188] sm:$0xff]  ;;  %v16520_v20 = vld [vmem:[#allocation32_spill] sm:$0xff] }
 0x4b9   :  { %16380 = vst [vmem:[#allocation138_spill] sm:$0xff] %v11438_v47  ;;  %v3564_v42 = vmax.f32 %v3563_v32, %v11438_v47  ;;  %3561 = vmax.xlane.f32.xlu1 %v3560_v10  ;;  %16383 = vst [vmem:[#allocation14_spill] sm:$0xff] %v11454_v51  ;;  %v2064_v47 = vld [vmem:[%s15541_s4 + $0x6a0] sm:$0xff] }
 0x4ba   :  { %16381 = vst [vmem:[#allocation139_spill] sm:$0xff] %v11442_v26  ;;  %16384 = vst [vmem:[#allocation140_spill] sm:$0xff] %v11457_v24  ;;  %v3195_v41 = vpop.f32.mrb[192].mxu1 }
 0x4bb   :  { %v3565_v25 = vmax.f32 %v3564_v42, %v11442_v26  ;;  %v11462_v60 = vadd.f32 %v3195_v41, %v1894_v7  ;;  %v3197_v32 = vpop.f32.mrb[193].mxu1  ;;  %7305 = vmatmul.mubr.msk.f32.gmra.mrb[42].mxu1 %vm488_vm0, %v16382_v14  ;;  %v1899_v14 = vld [vmem:[%s15541_s4 + $0x178] sm:$0xff]  ;;  %v3573_v7 = vmax.f32 %v11454_v51, %v11457_v24  ;;  %v11484_v41 = vadd.f32 %v10890_v0, %v1900_v55  ;;  %v1902_v0 = vld [vmem:[%s15541_s4 + $0x190] sm:$0xff] }
 0x4bc   :  { %v11472_v10 = vadd.f32 %v3197_v32, %v1895_v13  ;;  %v11487_v13 = vadd.f32 %v10894_v21, %v1901_v53  ;;  %v1904_v32 = vld [vmem:[%s15541_s4 + $0x1a0] sm:$0xff]  ;;  %v1903_v55 = vld [vmem:[%s15541_s4 + $0x198] sm:$0xff] }
 0x4bd   :  { %16385 = vst [vmem:[#allocation141_spill] sm:$0xff] %v11462_v60  ;;  %v3569_v17 = vmax.f32 %v3568_v62, %v11462_v60  ;;  %3566 = vmax.xlane.f32.xlu0 %v3565_v25  ;;  %16387 = vst [vmem:[#allocation143_spill] sm:$0xff] %v11484_v41  ;;  %v1905_v62 = vld [vmem:[%s15541_s4 + $0x1a8] sm:$0xff]  ;;  %v11508_v53 = vadd.f32 %v10902_v22, %v1904_v32 }
 0x4be   :  { %16386 = vst [vmem:[#allocation142_spill] sm:$0xff] %v11472_v10  ;;  %v3201_v42 = vpop.f32.mrb[194].mxu1  ;;  %16388 = vst [vmem:[#allocation144_spill] sm:$0xff] %v11487_v13  ;;  %v1909_v22 = vld [vmem:[%s15541_s4 + $0x1c8] sm:$0xff] }
 0x4bf   :  { %v3570_v25 = vmax.f32 %v3569_v17, %v11472_v10  ;;  %v11496_v60 = vadd.f32 %v3201_v42, %v1898_v35  ;;  %v3203_v24 = vpop.f32.mrb[195].mxu1  ;;  %16391 = vst [vmem:[#allocation147_spill] sm:$0xff] %v11508_v53  ;;  %v11511_v35 = vadd.f32 %v10906_v16, %v1905_v62  ;;  %v1906_v16 = vld [vmem:[%s15541_s4 + $0x1b0] sm:$0xff]  ;;  %v2056_v10 = vld [vmem:[%s15541_s4 + $0x660] sm:$0xff] }
 0x4c0   :  { %v11498_v51 = vadd.f32 %v3203_v24, %v1899_v14  ;;  %v3578_v24 = vmax.f32 %v11484_v41, %v11487_v13 }
 0x4c1   :  { %16389 = vst [vmem:[#allocation145_spill] sm:$0xff] %v11496_v60  ;;  %v3574_v21 = vmax.f32 %v3573_v7, %v11496_v60  ;;  %3571 = vmax.xlane.f32.xlu1 %v3570_v25  ;;  %16392 = vst [vmem:[#allocation148_spill] sm:$0xff] %v11511_v35  ;;  %v1908_v25 = vld [vmem:[%s15541_s4 + $0x1c0] sm:$0xff]  ;;  %v16496_v60 = vld [vmem:[#allocation22_spill] sm:$0xff] }
 0x4c2   :  { %16390 = vst [vmem:[#allocation146_spill] sm:$0xff] %v11498_v51  ;;  %v3207_v17 = vpop.f32.mrb[196].mxu1  ;;  %v11536_v13 = vadd.f32 %v10914_v43, %v1908_v25  ;;  %v1910_v43 = vld [vmem:[%s15541_s4 + $0x1d0] sm:$0xff]  ;;  %v1911_v25 = vld [vmem:[%s15541_s4 + $0x1d8] sm:$0xff] }
 0x4c3   :  { %v3575_v14 = vmax.f32 %v3574_v21, %v11498_v51  ;;  %v11516_v42 = vadd.f32 %v3207_v17, %v1902_v0  ;;  %v3209_v7 = vpop.f32.mrb[197].mxu1  ;;  %v1907_v0 = vld [vmem:[%s15541_s4 + $0x1b8] sm:$0xff]  ;;  %v3583_v21 = vmax.f32 %v11508_v53, %v11511_v35  ;;  %v1974_v51 = vld [vmem:[%s15541_s4 + $0x3d0] sm:$0xff] }
 0x4c4   :  { %v11524_v32 = vadd.f32 %v3209_v7, %v1903_v55  ;;  %16395 = vst [vmem:[#allocation151_spill] sm:$0xff] %v11536_v13  ;;  %v11539_v55 = vadd.f32 %v10918_v46, %v1909_v22  ;;  %v1912_v7 = vld [vmem:[%s15541_s4 + $0x1e0] sm:$0xff] }
 0x4c5   :  { %16393 = vst [vmem:[#allocation149_spill] sm:$0xff] %v11516_v42  ;;  %v3579_v62 = vmax.f32 %v3578_v24, %v11516_v42  ;;  %3576 = vmax.xlane.f32.xlu0 %v3575_v14  ;;  %v1913_v24 = vld [vmem:[%s15541_s4 + $0x1e8] sm:$0xff]  ;;  %v11560_v22 = vadd.f32 %v10926_v63, %v1912_v7 }
 0x4c6   :  { %16394 = vst [vmem:[#allocation150_spill] sm:$0xff] %v11524_v32  ;;  %v3213_v17 = vpop.f32.mrb[198].mxu1  ;;  %16396 = vst [vmem:[#allocation152_spill] sm:$0xff] %v11539_v55  ;;  %v1917_v63 = vld [vmem:[%s15541_s4 + $0x208] sm:$0xff] }
 0x4c7   :  { %v3580_v14 = vmax.f32 %v3579_v62, %v11524_v32  ;;  %v11548_v42 = vadd.f32 %v3213_v17, %v1906_v16  ;;  %v3215_v35 = vpop.f32.mrb[199].mxu1  ;;  %16399 = vst [vmem:[#allocation155_spill] sm:$0xff] %v11560_v22  ;;  %v16400_v62 = vld [vmem:[#allocation33_spill] sm:$0xff] }
 0x4c8   :  { %v11550_v53 = vadd.f32 %v3215_v35, %v1907_v0  ;;  %v11563_v16 = vadd.f32 %v16400_v62, %v1913_v24  ;;  %v3588_v35 = vmax.f32 %v11536_v13, %v11539_v55  ;;  %v1914_v24 = vld [vmem:[%s15541_s4 + $0x1f0] sm:$0xff]  ;;  %v1920_v13 = vld [vmem:[%s15541_s4 + $0x220] sm:$0xff] }
 0x4c9   :  { %16397 = vst [vmem:[#allocation153_spill] sm:$0xff] %v11548_v42  ;;  %v3584_v46 = vmax.f32 %v3583_v21, %v11548_v42  ;;  %3581 = vmax.xlane.f32.xlu1 %v3580_v14  ;;  %v1916_v14 = vld [vmem:[%s15541_s4 + $0x200] sm:$0xff] }
 0x4ca   :  { %16398 = vst [vmem:[#allocation154_spill] sm:$0xff] %v11550_v53  ;;  %16401 = vst [vmem:[#allocation33_spill] sm:$0xff] %v11563_v16  ;;  %v3219_v17 = vpop.f32.mrb[200].mxu1  ;;  %v11588_v55 = vadd.f32 %v10938_v37, %v1916_v14  ;;  %v1918_v37 = vld [vmem:[%s15541_s4 + $0x210] sm:$0xff] }
 0x4cb   :  { %v3585_v0 = vmax.f32 %v3584_v46, %v11550_v53  ;;  %v11568_v32 = vadd.f32 %v3219_v17, %v1910_v43  ;;  %v3221_v21 = vpop.f32.mrb[201].mxu1  ;;  %v1915_v43 = vld [vmem:[%s15541_s4 + $0x1f8] sm:$0xff]  ;;  %v3593_v46 = vmax.f32 %v11560_v22, %v11563_v16  ;;  %v16489_v53 = vld [vmem:[#allocation6_spill] sm:$0xff] }
 0x4cc   :  { %v11576_v7 = vadd.f32 %v3221_v21, %v1911_v25  ;;  %16404 = vst [vmem:[#allocation158_spill] sm:$0xff] %v11588_v55  ;;  %v16405_v25 = vld [vmem:[#allocation39_spill] sm:$0xff] }
 0x4cd   :  { %16402 = vst [vmem:[#allocation156_spill] sm:$0xff] %v11568_v32  ;;  %v3589_v62 = vmax.f32 %v3588_v35, %v11568_v32  ;;  %3586 = vmax.xlane.f32.xlu0 %v3585_v0  ;;  %v11591_v21 = vadd.f32 %v16405_v25, %v1917_v63  ;;  %v1921_v35 = vld [vmem:[%s15541_s4 + $0x228] sm:$0xff]  ;;  %v1919_v63 = vld [vmem:[%s15541_s4 + $0x218] sm:$0xff]  ;;  %v11612_v25 = vadd.f32 %v10950_v29, %v1920_v13 }
 0x4ce   :  { %16403 = vst [vmem:[#allocation157_spill] sm:$0xff] %v11576_v7  ;;  %v3225_v17 = vpop.f32.mrb[202].mxu1  ;;  %v1925_v29 = vld [vmem:[%s15541_s4 + $0x248] sm:$0xff] }
 0x4cf   :  { %16406 = vst [vmem:[#allocation39_spill] sm:$0xff] %v11591_v21  ;;  %v3590_v0 = vmax.f32 %v3589_v62, %v11576_v7  ;;  %v11600_v32 = vadd.f32 %v3225_v17, %v1914_v24  ;;  %v3227_v16 = vpop.f32.mrb[203].mxu1  ;;  %16409 = vst [vmem:[#allocation161_spill] sm:$0xff] %v11612_v25  ;;  %v16410_v62 = vld [vmem:[#allocation45_spill] sm:$0xff] }
 0x4d0   :  { %v11602_v22 = vadd.f32 %v3227_v16, %v1915_v43  ;;  %v11615_v24 = vadd.f32 %v16410_v62, %v1921_v35  ;;  %v3598_v16 = vmax.f32 %v11588_v55, %v11591_v21  ;;  %v1922_v35 = vld [vmem:[%s15541_s4 + $0x230] sm:$0xff]  ;;  %v1928_v55 = vld [vmem:[%s15541_s4 + $0x260] sm:$0xff] }
 0x4d1   :  { %16407 = vst [vmem:[#allocation159_spill] sm:$0xff] %v11600_v32  ;;  %v3594_v14 = vmax.f32 %v3593_v46, %v11600_v32  ;;  %3591 = vmax.xlane.f32.xlu1 %v3590_v0  ;;  %v1924_v0 = vld [vmem:[%s15541_s4 + $0x240] sm:$0xff] }
 0x4d2   :  { %16408 = vst [vmem:[#allocation160_spill] sm:$0xff] %v11602_v22  ;;  %16411 = vst [vmem:[#allocation45_spill] sm:$0xff] %v11615_v24  ;;  %v3231_v17 = vpop.f32.mrb[204].mxu1  ;;  %v11640_v21 = vadd.f32 %v10962_v18, %v1924_v0  ;;  %v1926_v18 = vld [vmem:[%s15541_s4 + $0x250] sm:$0xff] }
 0x4d3   :  { %v3595_v43 = vmax.f32 %v3594_v14, %v11602_v22  ;;  %v11620_v7 = vadd.f32 %v3231_v17, %v1918_v37  ;;  %v3233_v46 = vpop.f32.mrb[205].mxu1  ;;  %v1923_v37 = vld [vmem:[%s15541_s4 + $0x238] sm:$0xff]  ;;  %v3603_v14 = vmax.f32 %v11612_v25, %v11615_v24  ;;  %v1977_v22 = vld [vmem:[%s15541_s4 + $0x3e8] sm:$0xff] }
 0x4d4   :  { %v11628_v13 = vadd.f32 %v3233_v46, %v1919_v63  ;;  %16414 = vst [vmem:[#allocation164_spill] sm:$0xff] %v11640_v21  ;;  %v16415_v63 = vld [vmem:[#allocation51_spill] sm:$0xff] }
 0x4d5   :  { %16412 = vst [vmem:[#allocation162_spill] sm:$0xff] %v11620_v7  ;;  %v3599_v62 = vmax.f32 %v3598_v16, %v11620_v7  ;;  %3596 = vmax.xlane.f32.xlu0 %v3595_v43  ;;  %v11643_v46 = vadd.f32 %v16415_v63, %v1925_v29  ;;  %v1929_v16 = vld [vmem:[%s15541_s4 + $0x268] sm:$0xff]  ;;  %v1927_v29 = vld [vmem:[%s15541_s4 + $0x258] sm:$0xff]  ;;  %v11664_v63 = vadd.f32 %v10974_v28, %v1928_v55 }
 0x4d6   :  { %16413 = vst [vmem:[#allocation163_spill] sm:$0xff] %v11628_v13  ;;  %v3237_v17 = vpop.f32.mrb[206].mxu1  ;;  %v1933_v28 = vld [vmem:[%s15541_s4 + $0x288] sm:$0xff] }
 0x4d7   :  { %16416 = vst [vmem:[#allocation51_spill] sm:$0xff] %v11643_v46  ;;  %v3600_v43 = vmax.f32 %v3599_v62, %v11628_v13  ;;  %v11652_v7 = vadd.f32 %v3237_v17, %v1922_v35  ;;  %v3239_v24 = vpop.f32.mrb[207].mxu1  ;;  %16419 = vst [vmem:[#allocation167_spill] sm:$0xff] %v11664_v63  ;;  %v16420_v62 = vld [vmem:[#allocation82_spill] sm:$0xff] }
 0x4d8   :  { %v11654_v25 = vadd.f32 %v3239_v24, %v1923_v37  ;;  %v11667_v35 = vadd.f32 %v16420_v62, %v1929_v16  ;;  %v3608_v24 = vmax.f32 %v11640_v21, %v11643_v46  ;;  %v1930_v16 = vld [vmem:[%s15541_s4 + $0x270] sm:$0xff] }
 0x4d9   :  { %16417 = vst [vmem:[#allocation165_spill] sm:$0xff] %v11652_v7  ;;  %v3604_v0 = vmax.f32 %v3603_v14, %v11652_v7  ;;  %3601 = vmax.xlane.f32.xlu1 %v3600_v43  ;;  %v1932_v43 = vld [vmem:[%s15541_s4 + $0x280] sm:$0xff] }
 0x4da   :  { %16418 = vst [vmem:[#allocation166_spill] sm:$0xff] %v11654_v25  ;;  %16421 = vst [vmem:[#allocation82_spill] sm:$0xff] %v11667_v35  ;;  %v3243_v17 = vpop.f32.mrb[208].mxu1  ;;  %v11692_v46 = vadd.f32 %v10986_v39, %v1932_v43  ;;  %v1934_v39 = vld [vmem:[%s15541_s4 + $0x290] sm:$0xff]  ;;  %v1935_v43 = vld [vmem:[%s15541_s4 + $0x298] sm:$0xff] }
 0x4db   :  { %v3605_v37 = vmax.f32 %v3604_v0, %v11654_v25  ;;  %v11672_v13 = vadd.f32 %v3243_v17, %v1926_v18  ;;  %v3245_v14 = vpop.f32.mrb[209].mxu1  ;;  %v1931_v18 = vld [vmem:[%s15541_s4 + $0x278] sm:$0xff]  ;;  %v3613_v0 = vmax.f32 %v11664_v63, %v11667_v35  ;;  %v2036_v25 = vld [vmem:[%s15541_s4 + $0x5c0] sm:$0xff] }
 0x4dc   :  { %v11680_v55 = vadd.f32 %v3245_v14, %v1927_v29  ;;  %16424 = vst [vmem:[#allocation170_spill] sm:$0xff] %v11692_v46  ;;  %v11695_v29 = vadd.f32 %v10990_v48, %v1933_v28  ;;  %v1936_v14 = vld [vmem:[%s15541_s4 + $0x2a0] sm:$0xff] }
 0x4dd   :  { %16422 = vst [vmem:[#allocation168_spill] sm:$0xff] %v11672_v13  ;;  %v3609_v62 = vmax.f32 %v3608_v24, %v11672_v13  ;;  %3606 = vmax.xlane.f32.xlu0 %v3605_v37  ;;  %v1937_v24 = vld [vmem:[%s15541_s4 + $0x2a8] sm:$0xff]  ;;  %v11716_v28 = vadd.f32 %v10998_v11, %v1936_v14  ;;  %v1976_v7 = vld [vmem:[%s15541_s4 + $0x3e0] sm:$0xff] }
 0x4de   :  { %16423 = vst [vmem:[#allocation169_spill] sm:$0xff] %v11680_v55  ;;  %v3249_v17 = vpop.f32.mrb[210].mxu1  ;;  %16425 = vst [vmem:[#allocation171_spill] sm:$0xff] %v11695_v29  ;;  %v1941_v11 = vld [vmem:[%s15541_s4 + $0x2c8] sm:$0xff] }
 0x4df   :  { %v3610_v37 = vmax.f32 %v3609_v62, %v11680_v55  ;;  %v11704_v13 = vadd.f32 %v3249_v17, %v1930_v16  ;;  %v3251_v35 = vpop.f32.mrb[211].mxu1  ;;  %16428 = vst [vmem:[#allocation174_spill] sm:$0xff] %v11716_v28  ;;  %v11719_v16 = vadd.f32 %v11002_v27, %v1937_v24  ;;  %v1938_v27 = vld [vmem:[%s15541_s4 + $0x2b0] sm:$0xff]  ;;  %v16482_v55 = vld [vmem:[#allocation18_spill] sm:$0xff] }
 0x4e0   :  { %v11706_v63 = vadd.f32 %v3251_v35, %v1931_v18  ;;  %v3618_v35 = vmax.f32 %v11692_v46, %v11695_v29 }
 0x4e1   :  { %16426 = vst [vmem:[#allocation172_spill] sm:$0xff] %v11704_v13  ;;  %v3614_v48 = vmax.f32 %v3613_v0, %v11704_v13  ;;  %3611 = vmax.xlane.f32.xlu1 %v3610_v37  ;;  %16429 = vst [vmem:[#allocation175_spill] sm:$0xff] %v11719_v16  ;;  %v1940_v37 = vld [vmem:[%s15541_s4 + $0x2c0] sm:$0xff]  ;;  %v1970_v13 = vld [vmem:[%s15541_s4 + $0x3b0] sm:$0xff] }
 0x4e2   :  { %16427 = vst [vmem:[#allocation173_spill] sm:$0xff] %v11706_v63  ;;  %v3255_v62 = vpop.f32.mrb[212].mxu1  ;;  %v11744_v29 = vadd.f32 %v11010_v38, %v1940_v37  ;;  %v1942_v38 = vld [vmem:[%s15541_s4 + $0x2d0] sm:$0xff]  ;;  %v1943_v37 = vld [vmem:[%s15541_s4 + $0x2d8] sm:$0xff] }
 0x4e3   :  { %v3615_v18 = vmax.f32 %v3614_v48, %v11706_v63  ;;  %v11724_v17 = vadd.f32 %v3255_v62, %v1934_v39  ;;  %v3257_v0 = vpop.f32.mrb[213].mxu1  ;;  %v1939_v39 = vld [vmem:[%s15541_s4 + $0x2b8] sm:$0xff]  ;;  %v3623_v48 = vmax.f32 %v11716_v28, %v11719_v16 }
 0x4e4   :  { %v11732_v14 = vadd.f32 %v3257_v0, %v1935_v43  ;;  %16432 = vst [vmem:[#allocation178_spill] sm:$0xff] %v11744_v29  ;;  %v11747_v43 = vadd.f32 %v11012_v23, %v1941_v11  ;;  %v1944_v0 = vld [vmem:[%s15541_s4 + $0x2e0] sm:$0xff]  ;;  %v16436_v11 = vld [vmem:[#allocation88_spill] sm:$0xff] }
 0x4e5   :  { %16430 = vst [vmem:[#allocation176_spill] sm:$0xff] %v11724_v17  ;;  %v3619_v24 = vmax.f32 %v3618_v35, %v11724_v17  ;;  %3616 = vmax.xlane.f32.xlu0 %v3615_v18  ;;  %v1945_v35 = vld [vmem:[%s15541_s4 + $0x2e8] sm:$0xff]  ;;  %v11768_v46 = vadd.f32 %v16436_v11, %v1944_v0 }
 0x4e6   :  { %16431 = vst [vmem:[#allocation177_spill] sm:$0xff] %v11732_v14  ;;  %v3261_v62 = vpop.f32.mrb[214].mxu1  ;;  %16433 = vst [vmem:[#allocation179_spill] sm:$0xff] %v11747_v43  ;;  %v1949_v0 = vld [vmem:[%s15541_s4 + $0x308] sm:$0xff] }
 0x4e7   :  { %v3620_v18 = vmax.f32 %v3619_v24, %v11732_v14  ;;  %v11756_v17 = vadd.f32 %v3261_v62, %v1938_v27  ;;  %v3263_v16 = vpop.f32.mrb[215].mxu1  ;;  %16437 = vst [vmem:[#allocation88_spill] sm:$0xff] %v11768_v46  ;;  %v11771_v27 = vadd.f32 %v11020_v15, %v1945_v35  ;;  %v1946_v15 = vld [vmem:[%s15541_s4 + $0x2f0] sm:$0xff]  ;;  %v1973_v14 = vld [vmem:[%s15541_s4 + $0x3c8] sm:$0xff] }
 0x4e8   :  { %v11758_v28 = vadd.f32 %v3263_v16, %v1939_v39  ;;  %v3628_v16 = vmax.f32 %v11744_v29, %v11747_v43  ;;  %v16441_v43 = vld [vmem:[#allocation89_spill] sm:$0xff] }
 0x4e9   :  { %16434 = vst [vmem:[#allocation180_spill] sm:$0xff] %v11756_v17  ;;  %v3624_v23 = vmax.f32 %v3623_v48, %v11756_v17  ;;  %3621 = vmax.xlane.f32.xlu1 %v3620_v18  ;;  %16438 = vst [vmem:[#allocation182_spill] sm:$0xff] %v11771_v27  ;;  %v1948_v18 = vld [vmem:[%s15541_s4 + $0x300] sm:$0xff] }
 0x4ea   :  { %16435 = vst [vmem:[#allocation181_spill] sm:$0xff] %v11758_v28  ;;  %v3267_v24 = vpop.f32.mrb[216].mxu1  ;;  %v11796_v29 = vadd.f32 %v16441_v43, %v1948_v18  ;;  %v1951_v18 = vld [vmem:[%s15541_s4 + $0x318] sm:$0xff]  ;;  %v1972_v17 = vld [vmem:[%s15541_s4 + $0x3c0] sm:$0xff] }
 0x4eb   :  { %v3625_v39 = vmax.f32 %v3624_v23, %v11758_v28  ;;  %v11776_v62 = vadd.f32 %v3267_v24, %v1942_v38  ;;  %v3269_v48 = vpop.f32.mrb[217].mxu1  ;;  %v1947_v38 = vld [vmem:[%s15541_s4 + $0x2f8] sm:$0xff]  ;;  %v3633_v23 = vmax.f32 %v11768_v46, %v11771_v27 }
 0x4ec   :  { %v11784_v11 = vadd.f32 %v3269_v48, %v1943_v37  ;;  %16442 = vst [vmem:[#allocation89_spill] sm:$0xff] %v11796_v29  ;;  %v11799_v37 = vadd.f32 %v11028_v52, %v1949_v0  ;;  %v1952_v48 = vld [vmem:[%s15541_s4 + $0x320] sm:$0xff]  ;;  %v1950_v52 = vld [vmem:[%s15541_s4 + $0x310] sm:$0xff]  ;;  %v16446_v0 = vld [vmem:[#allocation90_spill] sm:$0xff] }
 0x4ed   :  { %16439 = vst [vmem:[#allocation183_spill] sm:$0xff] %v11776_v62  ;;  %v3629_v35 = vmax.f32 %v3628_v16, %v11776_v62  ;;  %3626 = vmax.xlane.f32.xlu0 %v3625_v39  ;;  %v1953_v16 = vld [vmem:[%s15541_s4 + $0x328] sm:$0xff]  ;;  %v11820_v28 = vadd.f32 %v16446_v0, %v1952_v48 }
 0x4ee   :  { %16440 = vst [vmem:[#allocation184_spill] sm:$0xff] %v11784_v11  ;;  %v3273_v24 = vpop.f32.mrb[218].mxu1  ;;  %16443 = vst [vmem:[#allocation185_spill] sm:$0xff] %v11799_v37  ;;  %v1957_v48 = vld [vmem:[%s15541_s4 + $0x348] sm:$0xff] }
 0x4ef   :  { %v3630_v39 = vmax.f32 %v3629_v35, %v11784_v11  ;;  %v11808_v62 = vadd.f32 %v3273_v24, %v1946_v15  ;;  %v3275_v27 = vpop.f32.mrb[219].mxu1  ;;  %16447 = vst [vmem:[#allocation90_spill] sm:$0xff] %v11820_v28  ;;  %v16448_v35 = vld [vmem:[#allocation91_spill] sm:$0xff] }
 0x4f0   :  { %v11810_v46 = vadd.f32 %v3275_v27, %v1947_v38  ;;  %v11823_v15 = vadd.f32 %v16448_v35, %v1953_v16  ;;  %v3638_v27 = vmax.f32 %v11796_v29, %v11799_v37  ;;  %v1954_v16 = vld [vmem:[%s15541_s4 + $0x330] sm:$0xff]  ;;  %v16452_v37 = vld [vmem:[#allocation92_spill] sm:$0xff] }
 0x4f1   :  { %16444 = vst [vmem:[#allocation186_spill] sm:$0xff] %v11808_v62  ;;  %v3634_v43 = vmax.f32 %v3633_v23, %v11808_v62  ;;  %3631 = vmax.xlane.f32.xlu1 %v3630_v39  ;;  %v1956_v39 = vld [vmem:[%s15541_s4 + $0x340] sm:$0xff] }
 0x4f2   :  { %16445 = vst [vmem:[#allocation187_spill] sm:$0xff] %v11810_v46  ;;  %16449 = vst [vmem:[#allocation91_spill] sm:$0xff] %v11823_v15  ;;  %v3279_v24 = vpop.f32.mrb[220].mxu1  ;;  %v11848_v29 = vadd.f32 %v16452_v37, %v1956_v39  ;;  %v1958_v37 = vld [vmem:[%s15541_s4 + $0x350] sm:$0xff] }
 0x4f3   :  { %v3635_v38 = vmax.f32 %v3634_v43, %v11810_v46  ;;  %v11828_v11 = vadd.f32 %v3279_v24, %v1950_v52  ;;  %v3281_v23 = vpop.f32.mrb[221].mxu1  ;;  %v1955_v52 = vld [vmem:[%s15541_s4 + $0x338] sm:$0xff]  ;;  %v3643_v43 = vmax.f32 %v11820_v28, %v11823_v15  ;;  %v1960_v46 = vld [vmem:[%s15541_s4 + $0x360] sm:$0xff] }
 0x4f4   :  { %v11836_v0 = vadd.f32 %v3281_v23, %v1951_v18  ;;  %16453 = vst [vmem:[#allocation92_spill] sm:$0xff] %v11848_v29  ;;  %v16454_v18 = vld [vmem:[#allocation93_spill] sm:$0xff] }
 0x4f5   :  { %16450 = vst [vmem:[#allocation188_spill] sm:$0xff] %v11828_v11  ;;  %v3639_v35 = vmax.f32 %v3638_v27, %v11828_v11  ;;  %3636 = vmax.xlane.f32.xlu0 %v3635_v38  ;;  %v11851_v23 = vadd.f32 %v16454_v18, %v1957_v48  ;;  %v1961_v27 = vld [vmem:[%s15541_s4 + $0x368] sm:$0xff]  ;;  %v1959_v48 = vld [vmem:[%s15541_s4 + $0x358] sm:$0xff] }
 0x4f6   :  { %16451 = vst [vmem:[#allocation189_spill] sm:$0xff] %v11836_v0  ;;  %v3285_v24 = vpop.f32.mrb[222].mxu1  ;;  %v16458_v18 = vld [vmem:[#allocation94_spill] sm:$0xff] }
 0x4f7   :  { %16455 = vst [vmem:[#allocation93_spill] sm:$0xff] %v11851_v23  ;;  %v3640_v38 = vmax.f32 %v3639_v35, %v11836_v0  ;;  %v11860_v11 = vadd.f32 %v3285_v24, %v1954_v16  ;;  %v3287_v15 = vpop.f32.mrb[223].mxu1  ;;  %v11872_v62 = vadd.f32 %v16458_v18, %v1960_v46  ;;  %v16460_v35 = vld [vmem:[#allocation95_spill] sm:$0xff]  ;;  %v1965_v46 = vld [vmem:[%s15541_s4 + $0x388] sm:$0xff] }
 0x4f8   :  { %v11862_v28 = vadd.f32 %v3287_v15, %v1955_v52  ;;  %v11875_v16 = vadd.f32 %v16460_v35, %v1961_v27  ;;  %v3648_v15 = vmax.f32 %v11848_v29, %v11851_v23  ;;  %v1962_v27 = vld [vmem:[%s15541_s4 + $0x370] sm:$0xff]  ;;  %v16464_v23 = vld [vmem:[#allocation96_spill] sm:$0xff] }
 0x4f9   :  { %16456 = vst [vmem:[#allocation190_spill] sm:$0xff] %v11860_v11  ;;  %v3644_v39 = vmax.f32 %v3643_v43, %v11860_v11  ;;  %3641 = vmax.xlane.f32.xlu0 %v3640_v38  ;;  %16459 = vst [vmem:[#allocation94_spill] sm:$0xff] %v11872_v62  ;;  %v1964_v38 = vld [vmem:[%s15541_s4 + $0x380] sm:$0xff]  ;;  %v2029_v11 = vld [vmem:[%s15541_s4 + $0x588] sm:$0xff] }
 0x4fa   :  { %16457 = vst [vmem:[#allocation191_spill] sm:$0xff] %v11862_v28  ;;  %16461 = vst [vmem:[#allocation95_spill] sm:$0xff] %v11875_v16  ;;  %v3291_v24 = vpop.f32.mrb[224].mxu1  ;;  %v11900_v29 = vadd.f32 %v16464_v23, %v1964_v38  ;;  %v1966_v23 = vld [vmem:[%s15541_s4 + $0x390] sm:$0xff] }
 0x4fb   :  { %v3645_v52 = vmax.f32 %v3644_v39, %v11862_v28  ;;  %v11880_v0 = vadd.f32 %v3291_v24, %v1958_v37  ;;  %v3293_v43 = vpop.f32.mrb[225].mxu1  ;;  %v1963_v37 = vld [vmem:[%s15541_s4 + $0x378] sm:$0xff]  ;;  %v3653_v39 = vmax.f32 %v11872_v62, %v11875_v16  ;;  %v1968_v28 = vld [vmem:[%s15541_s4 + $0x3a0] sm:$0xff] }
 0x4fc   :  { %v11888_v18 = vadd.f32 %v3293_v43, %v1959_v48  ;;  %16465 = vst [vmem:[#allocation96_spill] sm:$0xff] %v11900_v29  ;;  %v16466_v48 = vld [vmem:[#allocation97_spill] sm:$0xff] }
 0x4fd   :  { %16462 = vst [vmem:[#allocation192_spill] sm:$0xff] %v11880_v0  ;;  %v3649_v35 = vmax.f32 %v3648_v15, %v11880_v0  ;;  %3646 = vmax.xlane.f32.xlu0 %v3645_v52  ;;  %v11903_v43 = vadd.f32 %v16466_v48, %v1965_v46  ;;  %v1969_v15 = vld [vmem:[%s15541_s4 + $0x3a8] sm:$0xff]  ;;  %v1967_v46 = vld [vmem:[%s15541_s4 + $0x398] sm:$0xff] }
 0x4fe   :  { %16463 = vst [vmem:[#allocation193_spill] sm:$0xff] %v11888_v18  ;;  %v3297_v24 = vpop.f32.mrb[226].mxu1 }
 0x4ff   :  { %16467 = vst [vmem:[#allocation97_spill] sm:$0xff] %v11903_v43  ;;  %v3650_v52 = vmax.f32 %v3649_v35, %v11888_v18  ;;  %v11912_v0 = vadd.f32 %v3297_v24, %v1962_v27  ;;  %v3299_v16 = vpop.f32.mrb[227].mxu1  ;;  %v2020_v35 = vld [vmem:[%s15541_s4 + $0x540] sm:$0xff] }
 0x500   :  { %v11914_v62 = vadd.f32 %v3299_v16, %v1963_v37  ;;  %v2021_v16 = vld [vmem:[%s15541_s4 + $0x548] sm:$0xff]  ;;  %v2024_v27 = vld [vmem:[%s15541_s4 + $0x560] sm:$0xff] }
 0x501   :  { %16468 = vst [vmem:[#allocation194_spill] sm:$0xff] %v11912_v0  ;;  %v3654_v38 = vmax.f32 %v3653_v39, %v11912_v0  ;;  %3651 = vmax.xlane.f32.xlu0 %v3650_v52  ;;  %v16470_v37 = vld [vmem:[#allocation98_spill] sm:$0xff]  ;;  %v16472_v39 = vld [vmem:[#allocation99_spill] sm:$0xff]  ;;  %v2028_v18 = vld [vmem:[%s15541_s4 + $0x580] sm:$0xff] }
 0x502   :  { %16469 = vst [vmem:[#allocation195_spill] sm:$0xff] %v11914_v62  ;;  %v11933_v24 = vadd.f32 %v16470_v37, %v1968_v28  ;;  %v11936_v48 = vadd.f32 %v16472_v39, %v1969_v15  ;;  %v3303_v52 = vpop.f32.mrb[228].mxu1  ;;  %v2025_v0 = vld [vmem:[%s15541_s4 + $0x568] sm:$0xff]  ;;  %v3658_v28 = vmax.f32 %v11900_v29, %v11903_v43  ;;  %v16476_v43 = vld [vmem:[#allocation5_spill] sm:$0xff]  ;;  %v12015_v42 = vadd.f32 %v16489_v53, %v2028_v18  ;;  %v16500_v53 = vld [vmem:[#allocation72_spill] sm:$0xff] }
 0x503   :  { %v3655_v37 = vmax.f32 %v3654_v38, %v11914_v62  ;;  %v11950_v15 = vadd.f32 %v3303_v52, %v1966_v23  ;;  %v3305_v39 = vpop.f32.mrb[229].mxu1  ;;  %v11964_v29 = vadd.f32 %v16476_v43, %v2020_v35  ;;  %v2032_v23 = vld [vmem:[%s15541_s4 + $0x5a0] sm:$0xff]  ;;  %v2033_v38 = vld [vmem:[%s15541_s4 + $0x5a8] sm:$0xff]  ;;  %v16480_v43 = vld [vmem:[#allocation20_spill] sm:$0xff]  ;;  %v11983_v21 = vadd.f32 %v16482_v55, %v2025_v0 }
 0x504   :  { %16471 = vst [vmem:[#allocation98_spill] sm:$0xff] %v11933_v24  ;;  %16473 = vst [vmem:[#allocation99_spill] sm:$0xff] %v11936_v48  ;;  %v11958_v63 = vadd.f32 %v3305_v39, %v1967_v46  ;;  %v1971_v46 = vld [vmem:[%s15541_s4 + $0x3b8] sm:$0xff]  ;;  %v11980_v35 = vadd.f32 %v16480_v43, %v2024_v27  ;;  %v2041_v55 = vld [vmem:[%s15541_s4 + $0x5e8] sm:$0xff] }
 0x505   :  { %16474 = vst [vmem:[#allocation196_spill] sm:$0xff] %v11950_v15  ;;  %16477 = vst [vmem:[#allocation5_spill] sm:$0xff] %v11964_v29  ;;  %v3659_v52 = vmax.f32 %v3658_v28, %v11950_v15  ;;  %3656 = vmax.xlane.f32.xlu0 %v3655_v37  ;;  %v16478_v39 = vld [vmem:[#allocation68_spill] sm:$0xff]  ;;  %v2037_v28 = vld [vmem:[%s15541_s4 + $0x5c8] sm:$0xff] }
 0x506   :  { %16475 = vst [vmem:[#allocation197_spill] sm:$0xff] %v11958_v63  ;;  %v11977_v62 = vadd.f32 %v16478_v39, %v2021_v16  ;;  %16481 = vst [vmem:[#allocation20_spill] sm:$0xff] %v11980_v35  ;;  %v2040_v37 = vld [vmem:[%s15541_s4 + $0x5e0] sm:$0xff]  ;;  %v3663_v16 = vmax.f32 %v11933_v24, %v11936_v48  ;;  %v3309_v27 = vpop.f32.mrb[230].mxu1  ;;  %v16484_v0 = vld [vmem:[#allocation100_spill] sm:$0xff]  ;;  %v12035_v18 = vadd.f32 %v16500_v53, %v2037_v28 }
 0x507   :  { %16483 = vst [vmem:[#allocation18_spill] sm:$0xff] %v11983_v21  ;;  %v12000_v39 = vadd.f32 %v16484_v0, %v1972_v17  ;;  %v16486_v43 = vld [vmem:[#allocation101_spill] sm:$0xff]  ;;  %v3660_v48 = vmax.f32 %v3659_v52, %v11958_v63  ;;  %v12012_v24 = vadd.f32 %v3309_v27, %v1970_v13  ;;  %v3311_v32 = vpop.f32.mrb[231].mxu1  ;;  %16490 = vst [vmem:[#allocation6_spill] sm:$0xff] %v12015_v42  ;;  %v16491_v17 = vld [vmem:[#allocation70_spill] sm:$0xff] }
 0x508   :  { %16479 = vst [vmem:[#allocation68_spill] sm:$0xff] %v11977_v62  ;;  %v12003_v15 = vadd.f32 %v16486_v43, %v1973_v14  ;;  %v12018_v0 = vadd.f32 %v16491_v17, %v2029_v11  ;;  %v16493_v14 = vld [vmem:[#allocation24_spill] sm:$0xff]  ;;  %v12023_v41 = vadd.f32 %v3311_v32, %v1971_v46  ;;  %v12029_v52 = vadd.f32 %v16496_v60, %v2033_v38  ;;  %v16498_v13 = vld [vmem:[#allocation7_spill] sm:$0xff]  ;;  %v16504_v17 = vld [vmem:[#allocation26_spill] sm:$0xff] }
 0x509   :  { %16485 = vst [vmem:[#allocation100_spill] sm:$0xff] %v12000_v39  ;;  %16488 = vst [vmem:[#allocation198_spill] sm:$0xff] %v12012_v24  ;;  %v12021_v43 = vadd.f32 %v16493_v14, %v2032_v23  ;;  %v12032_v27 = vadd.f32 %v16498_v13, %v2036_v25  ;;  %v3664_v11 = vmax.f32 %v3663_v16, %v12012_v24  ;;  %3661 = vmax.xlane.f32.xlu0 %v3660_v48  ;;  %v1975_v32 = vld [vmem:[%s15541_s4 + $0x3d8] sm:$0xff]  ;;  %v2044_v60 = vld [vmem:[%s15541_s4 + $0x600] sm:$0xff] }
 0x50a   :  { %16487 = vst [vmem:[#allocation101_spill] sm:$0xff] %v12003_v15  ;;  %16492 = vst [vmem:[#allocation70_spill] sm:$0xff] %v12018_v0  ;;  %v16502_v23 = vld [vmem:[#allocation28_spill] sm:$0xff]  ;;  %v12045_v14 = vadd.f32 %v16504_v17, %v2041_v55  ;;  %v16506_v25 = vld [vmem:[#allocation102_spill] sm:$0xff]  ;;  %v3315_v48 = vpop.f32.mrb[232].mxu1 }
 0x50b   :  { %16494 = vst [vmem:[#allocation24_spill] sm:$0xff] %v12021_v43  ;;  %16495 = vst [vmem:[#allocation199_spill] sm:$0xff] %v12023_v41  ;;  %v12042_v46 = vadd.f32 %v16502_v23, %v2040_v37  ;;  %v12051_v38 = vadd.f32 %v16506_v25, %v1976_v7  ;;  %v16508_v28 = vld [vmem:[#allocation103_spill] sm:$0xff]  ;;  %v2045_v13 = vld [vmem:[%s15541_s4 + $0x608] sm:$0xff]  ;;  %v3668_v7 = vmax.f32 %v12000_v39, %v12003_v15  ;;  %v3317_v23 = vpop.f32.mrb[233].mxu1 }
 0x50c   :  { %16497 = vst [vmem:[#allocation22_spill] sm:$0xff] %v12029_v52  ;;  %16499 = vst [vmem:[#allocation7_spill] sm:$0xff] %v12032_v27  ;;  %v12054_v16 = vadd.f32 %v16508_v28, %v1977_v22  ;;  %v2048_v37 = vld [vmem:[%s15541_s4 + $0x620] sm:$0xff]  ;;  %v2049_v55 = vld [vmem:[%s15541_s4 + $0x628] sm:$0xff]  ;;  %v3665_v53 = vmax.f32 %v3664_v11, %v12023_v41  ;;  %v12068_v22 = vadd.f32 %v3315_v48, %v1974_v51 }
 0x50d   :  { %16501 = vst [vmem:[#allocation72_spill] sm:$0xff] %v12035_v18  ;;  %16503 = vst [vmem:[#allocation28_spill] sm:$0xff] %v12042_v46  ;;  %v1980_v28 = vld [vmem:[%s15541_s4 + $0x400] sm:$0xff]  ;;  %v1981_v24 = vld [vmem:[%s15541_s4 + $0x408] sm:$0xff]  ;;  %v12080_v15 = vadd.f32 %v3317_v23, %v1975_v32  ;;  %v12139_v26 = vadd.f32 %v16520_v20, %v2048_v37 }
 0x50e   :  { %16505 = vst [vmem:[#allocation26_spill] sm:$0xff] %v12045_v14  ;;  %16507 = vst [vmem:[#allocation102_spill] sm:$0xff] %v12051_v38  ;;  %v1978_v51 = vld [vmem:[%s15541_s4 + $0x3f0] sm:$0xff]  ;;  %v2052_v17 = vld [vmem:[%s15541_s4 + $0x640] sm:$0xff]  ;;  %v3669_v23 = vmax.f32 %v3668_v7, %v12068_v22  ;;  %3666 = vmax.xlane.f32.xlu0 %v3665_v53  ;;  %v3673_v48 = vmax.f32 %v12051_v38, %v12054_v16 }
 0x50f   :  { %16509 = vst [vmem:[#allocation103_spill] sm:$0xff] %v12054_v16  ;;  %16510 = vst [vmem:[#allocation200_spill] sm:$0xff] %v12068_v22  ;;  %v2053_v32 = vld [vmem:[%s15541_s4 + $0x648] sm:$0xff]  ;;  %v1979_v11 = vld [vmem:[%s15541_s4 + $0x3f8] sm:$0xff] }
 0x510   :  { %16511 = vst [vmem:[#allocation201_spill] sm:$0xff] %v12080_v15  ;;  %v16512_v39 = vld [vmem:[#allocation8_spill] sm:$0xff]  ;;  %v16514_v41 = vld [vmem:[#allocation74_spill] sm:$0xff]  ;;  %v2060_v53 = vld [vmem:[%s15541_s4 + $0x680] sm:$0xff]  ;;  %v3670_v16 = vmax.f32 %v3669_v23, %v12080_v15 }
 0x511   :  { %v12104_v25 = vadd.f32 %v16512_v39, %v2044_v60  ;;  %v12107_v63 = vadd.f32 %v16514_v41, %v2045_v13  ;;  %v2057_v7 = vld [vmem:[%s15541_s4 + $0x668] sm:$0xff]  ;;  %v3321_v39 = vpop.f32.mrb[234].mxu1  ;;  %v12124_v60 = vadd.f32 %v11111_v5, %v1980_v28  ;;  %v16517_v13 = vld [vmem:[#allocation108_spill] sm:$0xff]  ;;  %v1984_v14 = vld [vmem:[%s15541_s4 + $0x420] sm:$0xff]  ;;  %16521 = vst [vmem:[#allocation32_spill] sm:$0xff] %v12139_v26 }
 0x512   :  { %v2061_v41 = vld [vmem:[%s15541_s4 + $0x688] sm:$0xff]  ;;  %v12127_v22 = vadd.f32 %v16517_v13, %v1981_v24  ;;  %v12136_v38 = vadd.f32 %v3321_v39, %v1978_v51  ;;  %v3323_v2 = vpop.f32.mrb[235].mxu1  ;;  %v16524_v24 = vld [vmem:[#allocation9_spill] sm:$0xff]  ;;  %v1982_v20 = vld [vmem:[%s15541_s4 + $0x410] sm:$0xff]  ;;  %3671 = vmax.xlane.f32.xlu0 %v3670_v16 }
 0x513   :  { %16513 = vst [vmem:[#allocation8_spill] sm:$0xff] %v12104_v25  ;;  %16515 = vst [vmem:[#allocation74_spill] sm:$0xff] %v12107_v63  ;;  %v1985_v46 = vld [vmem:[%s15541_s4 + $0x428] sm:$0xff]  ;;  %v12145_v13 = vadd.f32 %v16524_v24, %v2052_v17  ;;  %v12153_v51 = vadd.f32 %v3323_v2, %v1979_v11  ;;  %v16527_v37 = vld [vmem:[#allocation76_spill] sm:$0xff]  ;;  %v3327_v27 = vpop.f32.mrb[236].mxu1 }
 0x514   :  { %16516 = vst [vmem:[#allocation202_spill] sm:$0xff] %v12124_v60  ;;  %16518 = vst [vmem:[#allocation108_spill] sm:$0xff] %v12127_v22  ;;  %v16522_v5 = vld [vmem:[#allocation30_spill] sm:$0xff]  ;;  %v2068_v15 = vld [vmem:[%s15541_s4 + $0x6c0] sm:$0xff]  ;;  %v3674_v11 = vmax.f32 %v3673_v48, %v12136_v38  ;;  %v12201_v52 = vadd.f32 %v3327_v27, %v1982_v20  ;;  %v3329_v43 = vpop.f32.mrb[237].mxu1 }
 0x515   :  { %16519 = vst [vmem:[#allocation203_spill] sm:$0xff] %v12136_v38  ;;  %v12142_v28 = vadd.f32 %v16522_v5, %v2049_v55  ;;  %16525 = vst [vmem:[#allocation9_spill] sm:$0xff] %v12145_v13  ;;  %v2065_v23 = vld [vmem:[%s15541_s4 + $0x6a8] sm:$0xff]  ;;  %v12159_v55 = vadd.f32 %v16527_v37, %v2053_v32  ;;  %v16531_v5 = vld [vmem:[#allocation11_spill] sm:$0xff]  ;;  %v12193_v38 = vadd.f32 %v11151_v56, %v1985_v46 }
 0x516   :  { %16526 = vst [vmem:[#allocation204_spill] sm:$0xff] %v12153_v51  ;;  %v16529_v39 = vld [vmem:[#allocation10_spill] sm:$0xff]  ;;  %v12165_v24 = vadd.f32 %v16531_v5, %v2057_v7  ;;  %v1983_v32 = vld [vmem:[%s15541_s4 + $0x418] sm:$0xff]  ;;  %v16535_v7 = vld [vmem:[#allocation13_spill] sm:$0xff] }
 0x517   :  { %16523 = vst [vmem:[#allocation30_spill] sm:$0xff] %v12142_v28  ;;  %16528 = vst [vmem:[#allocation76_spill] sm:$0xff] %v12159_v55  ;;  %v12162_v17 = vadd.f32 %v16529_v39, %v2056_v10  ;;  %v2069_v2 = vld [vmem:[%s15541_s4 + $0x6c8] sm:$0xff]  ;;  %v16533_v10 = vld [vmem:[#allocation12_spill] sm:$0xff]  ;;  %v12181_v39 = vadd.f32 %v16535_v7, %v2061_v41  ;;  %v3678_v41 = vmax.f32 %v12124_v60, %v12127_v22 }
 0x518   :  { %16532 = vst [vmem:[#allocation11_spill] sm:$0xff] %v12165_v24  ;;  %v12178_v37 = vadd.f32 %v16533_v10, %v2060_v53  ;;  %v2072_v5 = vld [vmem:[%s15541_s4 + $0x6e0] sm:$0xff]  ;;  %v2073_v18 = vld [vmem:[%s15541_s4 + $0x6e8] sm:$0xff]  ;;  %16539 = vst [vmem:[#allocation205_spill] sm:$0xff] %v12193_v38  ;;  %v3675_v7 = vmax.f32 %v3674_v11, %v12153_v51  ;;  %v12218_v27 = vadd.f32 %v3329_v43, %v1983_v32 }
 0x519   :  { %16530 = vst [vmem:[#allocation10_spill] sm:$0xff] %v12162_v17  ;;  %16536 = vst [vmem:[#allocation13_spill] sm:$0xff] %v12181_v39  ;;  %v16537_v48 = vld [vmem:[#allocation110_spill] sm:$0xff]  ;;  %v16540_v53 = vld [vmem:[#allocation15_spill] sm:$0xff] }
 0x51a   :  { %16534 = vst [vmem:[#allocation12_spill] sm:$0xff] %v12178_v37  ;;  %v12190_v16 = vadd.f32 %v16537_v48, %v1984_v14  ;;  %v12196_v10 = vadd.f32 %v16540_v53, %v2064_v47  ;;  %16542 = vst [vmem:[#allocation206_spill] sm:$0xff] %v12201_v52  ;;  %v16543_v0 = vld [vmem:[#allocation17_spill] sm:$0xff]  ;;  %v16545_v14 = vld [vmem:[#allocation19_spill] sm:$0xff]  ;;  %3676 = vmax.xlane.f32.xlu0 %v3675_v7 }
 0x51b   :  { %v12204_v42 = vadd.f32 %v16543_v0, %v2065_v23  ;;  %v12207_v48 = vadd.f32 %v16545_v14, %v2068_v15  ;;  %v16547_v56 = vld [vmem:[#allocation21_spill] sm:$0xff]  ;;  %v1989_v11 = vld [vmem:[%s15541_s4 + $0x448] sm:$0xff]  ;;  %16549 = vst [vmem:[#allocation207_spill] sm:$0xff] %v12218_v27  ;;  %v1986_v0 = vld [vmem:[%s15541_s4 + $0x430] sm:$0xff]  ;;  %v3679_v14 = vmax.f32 %v3678_v41, %v12201_v52 }
 0x51c   :  { %16538 = vst [vmem:[#allocation110_spill] sm:$0xff] %v12190_v16  ;;  %16541 = vst [vmem:[#allocation15_spill] sm:$0xff] %v12196_v10  ;;  %v12210_v46 = vadd.f32 %v16547_v56, %v2069_v2  ;;  %v1988_v47 = vld [vmem:[%s15541_s4 + $0x440] sm:$0xff]  ;;  %v16550_v23 = vld [vmem:[#allocation23_spill] sm:$0xff]  ;;  %v12259_v32 = vadd.f32 %v11189_v6, %v1989_v11 }
 0x51d   :  { %16544 = vst [vmem:[#allocation17_spill] sm:$0xff] %v12204_v42  ;;  %16546 = vst [vmem:[#allocation19_spill] sm:$0xff] %v12207_v48  ;;  %v12226_v20 = vadd.f32 %v16550_v23, %v2072_v5  ;;  %v16552_v2 = vld [vmem:[#allocation25_spill] sm:$0xff]  ;;  %v1987_v43 = vld [vmem:[%s15541_s4 + $0x438] sm:$0xff]  ;;  %v3683_v23 = vmax.f32 %v12190_v16, %v12193_v38  ;;  %v12256_v56 = vadd.f32 %v11178_v4, %v1988_v47 }
 0x51e   :  { %16548 = vst [vmem:[#allocation21_spill] sm:$0xff] %v12210_v46  ;;  %v12229_v53 = vadd.f32 %v16552_v2, %v2073_v18  ;;  %v2076_v18 = vld [vmem:[%s15541_s4 + $0x700] sm:$0xff]  ;;  %v2077_v41 = vld [vmem:[%s15541_s4 + $0x708] sm:$0xff]  ;;  %v3333_v2 = vpop.f32.mrb[238].mxu1  ;;  %16555 = vst [vmem:[#allocation209_spill] sm:$0xff] %v12259_v32  ;;  %v3680_v38 = vmax.f32 %v3679_v14, %v12218_v27 }
 0x51f   :  { %16551 = vst [vmem:[#allocation23_spill] sm:$0xff] %v12226_v20  ;;  %v2080_v7 = vld [vmem:[%s15541_s4 + $0x720] sm:$0xff]  ;;  %v2081_v5 = vld [vmem:[%s15541_s4 + $0x728] sm:$0xff]  ;;  %16554 = vst [vmem:[#allocation208_spill] sm:$0xff] %v12256_v56  ;;  %v12268_v16 = vadd.f32 %v3333_v2, %v1986_v0  ;;  %v3335_v22 = vpop.f32.mrb[239].mxu1 }
 0x520   :  { %16553 = vst [vmem:[#allocation25_spill] sm:$0xff] %v12229_v53  ;;  %v1992_v15 = vld [vmem:[%s15541_s4 + $0x460] sm:$0xff]  ;;  %v1993_v52 = vld [vmem:[%s15541_s4 + $0x468] sm:$0xff]  ;;  %v12282_v0 = vadd.f32 %v3335_v22, %v1987_v43  ;;  %v1990_v2 = vld [vmem:[%s15541_s4 + $0x450] sm:$0xff]  ;;  %3681 = vmax.xlane.f32.xlu0 %v3680_v38 }
 0x521   :  { %16556 = vst [vmem:[#allocation210_spill] sm:$0xff] %v12268_v16  ;;  %v2084_v11 = vld [vmem:[%s15541_s4 + $0x740] sm:$0xff]  ;;  %v2085_v14 = vld [vmem:[%s15541_s4 + $0x748] sm:$0xff]  ;;  %v16558_v4 = vld [vmem:[#allocation27_spill] sm:$0xff]  ;;  %v3684_v43 = vmax.f32 %v3683_v23, %v12268_v16  ;;  %v12321_v23 = vadd.f32 %v11212_v49, %v1992_v15 }
 0x522   :  { %16557 = vst [vmem:[#allocation211_spill] sm:$0xff] %v12282_v0  ;;  %v12290_v27 = vadd.f32 %v16558_v4, %v2076_v18  ;;  %v16560_v47 = vld [vmem:[#allocation29_spill] sm:$0xff]  ;;  %v2089_v22 = vld [vmem:[%s15541_s4 + $0x768] sm:$0xff]  ;;  %v1991_v6 = vld [vmem:[%s15541_s4 + $0x458] sm:$0xff] }
 0x523   :  { %v12293_v60 = vadd.f32 %v16560_v47, %v2077_v41  ;;  %v2088_v51 = vld [vmem:[%s15541_s4 + $0x760] sm:$0xff]  ;;  %v16562_v18 = vld [vmem:[#allocation31_spill] sm:$0xff]  ;;  %v2093_v20 = vld [vmem:[%s15541_s4 + $0x788] sm:$0xff] }
 0x524   :  { %16559 = vst [vmem:[#allocation27_spill] sm:$0xff] %v12290_v27  ;;  %v12306_v4 = vadd.f32 %v16562_v18, %v2080_v7  ;;  %v16563_v41 = vld [vmem:[#allocation35_spill] sm:$0xff]  ;;  %v2092_v53 = vld [vmem:[%s15541_s4 + $0x780] sm:$0xff]  ;;  %16564 = vst [vmem:[#allocation31_spill] sm:$0xff] %v12321_v23  ;;  %v12324_v7 = vadd.f32 %v11219_v61, %v1993_v52  ;;  %v3688_v61 = vmax.f32 %v12256_v56, %v12259_v32 }
 0x525   :  { %16561 = vst [vmem:[#allocation29_spill] sm:$0xff] %v12293_v60  ;;  %v12309_v47 = vadd.f32 %v16563_v41, %v2081_v5  ;;  %v2096_v38 = vld [vmem:[%s15541_s4 + $0x7a0] sm:$0xff]  ;;  %v3339_v5 = vpop.f32.mrb[240].mxu1  ;;  %v2097_v16 = vld [vmem:[%s15541_s4 + $0x7a8] sm:$0xff]  ;;  %v3685_v52 = vmax.f32 %v3684_v43, %v12282_v0  ;;  %v16571_v42 = vld [vmem:[#allocation43_spill] sm:$0xff] }
 0x526   :  { %16565 = vst [vmem:[#allocation35_spill] sm:$0xff] %v12324_v7  ;;  %v16566_v18 = vld [vmem:[#allocation37_spill] sm:$0xff]  ;;  %v2101_v49 = vld [vmem:[%s15541_s4 + $0x7c8] sm:$0xff]  ;;  %v12341_v15 = vadd.f32 %v3339_v5, %v1990_v2  ;;  %v12347_v10 = vadd.f32 %v16571_v42, %v2088_v51  ;;  %v16572_v39 = vld [vmem:[#allocation47_spill] sm:$0xff]  ;;  %v3693_v0 = vmax.f32 %v12321_v23, %v12324_v7 }
 0x527   :  { %v12327_v41 = vadd.f32 %v16566_v18, %v2084_v11  ;;  %v2100_v46 = vld [vmem:[%s15541_s4 + $0x7c0] sm:$0xff]  ;;  %v3341_v11 = vpop.f32.mrb[241].mxu1  ;;  %v12350_v37 = vadd.f32 %v16572_v39, %v2089_v22  ;;  %v1997_v43 = vld [vmem:[%s15541_s4 + $0x488] sm:$0xff]  ;;  %3686 = vmax.xlane.f32.xlu0 %v3685_v52  ;;  %v16585_v17 = vld [vmem:[#allocation87_spill] sm:$0xff] }
 0x528   :  { %16568 = vst [vmem:[#allocation212_spill] sm:$0xff] %v12341_v15  ;;  %v16569_v18 = vld [vmem:[#allocation41_spill] sm:$0xff]  ;;  %v12358_v2 = vadd.f32 %v3341_v11, %v1991_v6  ;;  %v2105_v6 = vld [vmem:[%s15541_s4 + $0x7e8] sm:$0xff]  ;;  %v3689_v11 = vmax.f32 %v3688_v61, %v12341_v15  ;;  %v3345_v15 = vpop.f32.mrb[242].mxu1 }
 0x529   :  { %16567 = vst [vmem:[#allocation37_spill] sm:$0xff] %v12327_v41  ;;  %v12344_v48 = vadd.f32 %v16569_v18, %v2085_v14  ;;  %16573 = vst [vmem:[#allocation43_spill] sm:$0xff] %v12350_v37  ;;  %v1996_v24 = vld [vmem:[%s15541_s4 + $0x480] sm:$0xff]  ;;  %v1994_v14 = vld [vmem:[%s15541_s4 + $0x470] sm:$0xff]  ;;  %v12414_v55 = vadd.f32 %v16585_v17, %v2105_v6 }
 0x52a   :  { %v16574_v5 = vld [vmem:[#allocation49_spill] sm:$0xff]  ;;  %v2001_v52 = vld [vmem:[%s15541_s4 + $0x4a8] sm:$0xff] }
 0x52b   :  { %16570 = vst [vmem:[#allocation41_spill] sm:$0xff] %v12344_v48  ;;  %v12364_v42 = vadd.f32 %v16574_v5, %v2092_v53  ;;  %v16575_v51 = vld [vmem:[#allocation53_spill] sm:$0xff]  ;;  %v1995_v53 = vld [vmem:[%s15541_s4 + $0x478] sm:$0xff]  ;;  %v16584_v7 = vld [vmem:[#allocation86_spill] sm:$0xff] }
 0x52c   :  { %v12367_v39 = vadd.f32 %v16575_v51, %v2093_v20  ;;  %v16576_v22 = vld [vmem:[#allocation81_spill] sm:$0xff]  ;;  %v16577_v20 = vld [vmem:[#allocation83_spill] sm:$0xff] }
 0x52d   :  { %v12370_v18 = vadd.f32 %v16576_v22, %v2096_v38  ;;  %v2104_v32 = vld [vmem:[%s15541_s4 + $0x7e0] sm:$0xff]  ;;  %v12383_v5 = vadd.f32 %v16577_v20, %v2097_v16  ;;  %v16579_v38 = vld [vmem:[#allocation84_spill] sm:$0xff]  ;;  %v12400_v16 = vadd.f32 %v11246_v30, %v1996_v24  ;;  %v12406_v20 = vadd.f32 %v3345_v15, %v1994_v14  ;;  %v1998_v30 = vld [vmem:[%s15541_s4 + $0x490] sm:$0xff] }
 0x52e   :  { %v12386_v51 = vadd.f32 %v16579_v38, %v2100_v46  ;;  %v16580_v22 = vld [vmem:[#allocation85_spill] sm:$0xff]  ;;  %v12403_v46 = vadd.f32 %v11257_v50, %v1997_v43  ;;  %v3347_v38 = vpop.f32.mrb[243].mxu1  ;;  %v12411_v23 = vadd.f32 %v16584_v7, %v2104_v32  ;;  %v12427_v15 = vadd.f32 %v11287_v40, %v2001_v52  ;;  %v2005_v32 = vld [vmem:[%s15541_s4 + $0x4c8] sm:$0xff]  ;;  %v1999_v43 = vld [vmem:[%s15541_s4 + $0x498] sm:$0xff] }
 0x52f   :  { %16578 = vst [vmem:[#allocation47_spill] sm:$0xff] %v12383_v5  ;;  %v12389_v56 = vadd.f32 %v16580_v22, %v2101_v49  ;;  %v2000_v61 = vld [vmem:[%s15541_s4 + $0x4a0] sm:$0xff]  ;;  %16581 = vst [vmem:[#allocation49_spill] sm:$0xff] %v12400_v16  ;;  %v3690_v49 = vmax.f32 %v3689_v11, %v12358_v2  ;;  %v12416_v13 = vadd.f32 %v3347_v38, %v1995_v53  ;;  %v2009_v11 = vld [vmem:[%s15541_s4 + $0x4e8] sm:$0xff] }
 0x530   :  { %16582 = vst [vmem:[#allocation53_spill] sm:$0xff] %v12403_v46  ;;  %16583 = vst [vmem:[#allocation81_spill] sm:$0xff] %v12406_v20  ;;  %v12424_v24 = vadd.f32 %v11280_v3, %v2000_v61  ;;  %v2004_v17 = vld [vmem:[%s15541_s4 + $0x4c0] sm:$0xff]  ;;  %v3694_v7 = vmax.f32 %v3693_v0, %v12406_v20  ;;  %v3351_v61 = vpop.f32.mrb[244].mxu1  ;;  %v2013_v38 = vld [vmem:[%s15541_s4 + $0x508] sm:$0xff] }
 0x531   :  { %16586 = vst [vmem:[#allocation83_spill] sm:$0xff] %v12427_v15  ;;  %3691 = vmax.xlane.f32.xlu0 %v3690_v49  ;;  %v2008_v0 = vld [vmem:[%s15541_s4 + $0x4e0] sm:$0xff]  ;;  %v3698_v49 = vmax.f32 %v12400_v16, %v12403_v46  ;;  %v2017_v14 = vld [vmem:[%s15541_s4 + $0x528] sm:$0xff]  ;;  %v12470_v3 = vadd.f32 %v3351_v61, %v1998_v30  ;;  %v3353_v52 = vpop.f32.mrb[245].mxu1  ;;  %v12475_v22 = vadd.f32 %v11314_v54, %v2004_v17  ;;  %v2002_v20 = vld [vmem:[%s15541_s4 + $0x4b0] sm:$0xff] }
 0x532   :  { %v2012_v53 = vld [vmem:[%s15541_s4 + $0x500] sm:$0xff]  ;;  %v3695_v40 = vmax.f32 %v3694_v7, %v12416_v13  ;;  %v12478_v46 = vadd.f32 %v11325_v9, %v2005_v32  ;;  %v12480_v16 = vadd.f32 %v3353_v52, %v1999_v43  ;;  %v3703_v30 = vmax.f32 %v12424_v24, %v12427_v15  ;;  %v2003_v9 = vld [vmem:[%s15541_s4 + $0x4b8] sm:$0xff] }
 0x533   :  { %v2016_v6 = vld [vmem:[%s15541_s4 + $0x520] sm:$0xff]  ;;  %16587 = vst [vmem:[#allocation84_spill] sm:$0xff] %v12475_v22  ;;  %v12488_v7 = vadd.f32 %v11348_v8, %v2008_v0  ;;  %v12491_v61 = vadd.f32 %v11355_v58, %v2009_v11  ;;  %v3699_v54 = vmax.f32 %v3698_v49, %v12470_v3  ;;  %v12498_v17 = vadd.f32 %v11382_v19, %v2012_v53  ;;  %v3357_v58 = vpop.f32.mrb[246].mxu1  ;;  %v3522_v0 = vpop.xlane.xlu0 %3521  ;;  %v16596_v52 = vld [vmem:[#allocation104_spill] sm:$0xff] }
 0x534   :  { %16588 = vst [vmem:[#allocation85_spill] sm:$0xff] %v12478_v46  ;;  %v12501_v32 = vadd.f32 %v11393_v45, %v2013_v38  ;;  %v12504_v43 = vadd.f32 %v11416_v1, %v2016_v6  ;;  %v12507_v8 = vadd.f32 %v11423_v59, %v2017_v14  ;;  %v12510_v11 = vadd.f32 %v3357_v58, %v2002_v20  ;;  %v16597_v50 = vld [vmem:[#allocation105_spill] sm:$0xff]  ;;  %v3359_v53 = vpop.f32.mrb[247].mxu1  ;;  %v2006_v14 = vld [vmem:[%s15541_s4 + $0x4d0] sm:$0xff] }
 0x535   :  { %16589 = vst [vmem:[#allocation86_spill] sm:$0xff] %v12488_v7  ;;  %16590 = vst [vmem:[#allocation87_spill] sm:$0xff] %v12491_v61  ;;  %3696 = vmax.xlane.f32.xlu0 %v3695_v40  ;;  %v3700_v40 = vmax.f32 %v3699_v54, %v12480_v16  ;;  %v3838_v49 = vsub.f32 %v16596_v52, %v3522_v0  ;;  %v3839_v19 = vsub.f32 %v16597_v50, %v3522_v0  ;;  %v16598_v38 = vld [vmem:[#allocation109_spill] sm:$0xff]  ;;  %v16601_v52 = vld [vmem:[#allocation107_spill] sm:$0xff] }
 0x536   :  { %16591 = vst [vmem:[#allocation213_spill] sm:$0xff] %v12498_v17  ;;  %16592 = vst [vmem:[#allocation214_spill] sm:$0xff] %v12501_v32  ;;  %v3708_v45 = vmax.f32 %v12475_v22, %v12478_v46  ;;  %v3840_v1 = vsub.f32 %v16598_v38, %v3522_v0  ;;  %v3841_v6 = vsub.f32 %v11136_v36, %v3522_v0  ;;  %v3527_v38 = vpop.xlane.xlu1 %3526  ;;  %v2007_v46 = vld [vmem:[%s15541_s4 + $0x4d8] sm:$0xff]  ;;  %v16602_v36 = vld [vmem:[#allocation113_spill] sm:$0xff] }
 0x537   :  { %16593 = vst [vmem:[#allocation215_spill] sm:$0xff] %v12504_v43  ;;  %16594 = vst [vmem:[#allocation216_spill] sm:$0xff] %v12507_v8  ;;  %v12518_v59 = vadd.f32 %v3359_v53, %v2003_v9  ;;  %v3713_v20 = vmax.f32 %v12488_v7, %v12491_v61  ;;  %v3704_v54 = vmax.f32 %v3703_v30, %v12510_v11  ;;  %v4094_v50 = vmul.f32 1.442695, %v3838_v49  ;;  %v3363_v53 = vpop.f32.mrb[248].mxu1 }
 0x538   :  { %16595 = vst [vmem:[#allocation217_spill] sm:$0xff] %v12510_v11  ;;  %v4096_v58 = vmul.f32 1.442695, %v3839_v19  ;;  %v4098_v9 = vmul.f32 1.442695, %v3840_v1  ;;  %v12534_v49 = vadd.f32 %v3363_v53, %v2006_v14  ;;  %v3365_v61 = vpop.f32.mrb[249].mxu1  ;;  %v3843_v7 = vsub.f32 %v16601_v52, %v3527_v38 }
 0x539   :  { %3701 = vmax.xlane.f32.xlu0 %v3700_v40  ;;  %v4100_v0 = vmul.f32 1.442695, %v3841_v6  ;;  %8177 = vpow2.f32 %v4094_v50  ;;  %v3705_v30 = vmax.f32 %v3704_v54, %v12518_v59  ;;  %v16600_v40 = vld [vmem:[#allocation106_spill] sm:$0xff]  ;;  %v3844_v1 = vsub.f32 %v16602_v36, %v3527_v38  ;;  %v2010_v14 = vld [vmem:[%s15541_s4 + $0x4f0] sm:$0xff]  ;;  %v2011_v54 = vld [vmem:[%s15541_s4 + $0x4f8] sm:$0xff]  ;;  %v3369_v36 = vpop.f32.mrb[250].mxu1 }
 0x53a   :  { %16599 = vst [vmem:[#allocation104_spill] sm:$0xff] %v12534_v49  ;;  %v3842_v19 = vsub.f32 %v16600_v40, %v3527_v38  ;;  %8179 = vpow2.f32 %v4096_v58  ;;  %v3845_v6 = vsub.f32 %v11170_v33, %v3527_v38  ;;  %v3709_v22 = vmax.f32 %v3708_v45, %v12534_v49  ;;  %v3532_v33 = vpop.xlane.xlu0 %3531 }
 0x53b   :  { %8181 = vpow2.f32 %v4098_v9  ;;  %v12541_v15 = vadd.f32 %v3365_v61, %v2007_v46  ;;  %v4104_v50 = vmul.f32 1.442695, %v3843_v7  ;;  %v4106_v58 = vmul.f32 1.442695, %v3844_v1  ;;  %v16604_v46 = vld [vmem:[#allocation111_spill] sm:$0xff]  ;;  %v16605_v9 = vld [vmem:[#allocation112_spill] sm:$0xff] }
 0x53c   :  { %v4102_v11 = vmul.f32 1.442695, %v3842_v19  ;;  %8183 = vpow2.f32 %v4100_v0  ;;  %v4108_v52 = vmul.f32 1.442695, %v3845_v6  ;;  %v3846_v61 = vsub.f32 %v16604_v46, %v3532_v33  ;;  %v3371_v0 = vpop.f32.mrb[251].mxu1  ;;  %v2014_v7 = vld [vmem:[%s15541_s4 + $0x510] sm:$0xff] }
 0x53d   :  { %16603 = vst [vmem:[#allocation105_spill] sm:$0xff] %v12541_v15  ;;  %3706 = vmax.xlane.f32.xlu0 %v3705_v30  ;;  %v3710_v45 = vmax.f32 %v3709_v22, %v12541_v15  ;;  %v3847_v53 = vsub.f32 %v16605_v9, %v3532_v33  ;;  %v12552_v38 = vadd.f32 %v3369_v36, %v2010_v14  ;;  %v16607_v30 = vld [vmem:[#allocation116_spill] sm:$0xff]  ;;  %v3375_v36 = vpop.f32.mrb[252].mxu1 }
 0x53e   :  { %8185 = vpow2.f32 %v4102_v11  ;;  %v3848_v40 = vsub.f32 %v16607_v30, %v3532_v33  ;;  %v3849_v19 = vsub.f32 %v11204_v34, %v3532_v33  ;;  %v4110_v11 = vmul.f32 1.442695, %v3846_v61  ;;  %v3537_v46 = vpop.xlane.xlu0 %3536  ;;  %v16610_v33 = vld [vmem:[#allocation114_spill] sm:$0xff]  ;;  %v16611_v30 = vld [vmem:[#allocation115_spill] sm:$0xff] }
 0x53f   :  { %8187 = vpow2.f32 %v4104_v50  ;;  %16606 = vst [vmem:[#allocation109_spill] sm:$0xff] %v12552_v38  ;;  %v4112_v22 = vmul.f32 1.442695, %v3847_v53  ;;  %v12559_v1 = vadd.f32 %v3371_v0, %v2011_v54  ;;  %v3714_v6 = vmax.f32 %v3713_v20, %v12552_v38  ;;  %v2015_v54 = vld [vmem:[%s15541_s4 + $0x518] sm:$0xff]  ;;  %v16612_v20 = vld [vmem:[#allocation119_spill] sm:$0xff] }
 0x540   :  { %8189 = vpow2.f32 %v4106_v58  ;;  %v4114_v14 = vmul.f32 1.442695, %v3848_v40  ;;  %v4116_v50 = vmul.f32 1.442695, %v3849_v19  ;;  %v12562_v34 = vadd.f32 %v3375_v36, %v2014_v7  ;;  %v3377_v58 = vpop.f32.mrb[253].mxu1  ;;  %v2018_v53 = vld [vmem:[%s15541_s4 + $0x530] sm:$0xff] }
 0x541   :  { %16608 = vst [vmem:[#allocation106_spill] sm:$0xff] %v12559_v1  ;;  %3711 = vmax.xlane.f32.xlu0 %v3710_v45  ;;  %8191 = vpow2.f32 %v4108_v52  ;;  %v3850_v9 = vsub.f32 %v16610_v33, %v3537_v46  ;;  %v3851_v15 = vsub.f32 %v16611_v30, %v3537_v46  ;;  %v3715_v52 = vmax.f32 %v3714_v6, %v12559_v1  ;;  %v3542_v33 = vpop.xlane.xlu1 %3541  ;;  %v16629_v1 = vld [vmem:[#allocation120_spill] sm:$0xff] }
 0x542   :  { %8193 = vpow2.f32 %v4110_v11  ;;  %16609 = vst [vmem:[#allocation107_spill] sm:$0xff] %v12562_v34  ;;  %v3852_v45 = vsub.f32 %v16612_v20, %v3537_v46  ;;  %v3853_v61 = vsub.f32 %v11238_v44, %v3537_v46  ;;  %v16614_v19 = vmax.f32 %v12498_v17, %v12501_v32  ;;  %v3381_v46 = vpop.f32.mrb[254].mxu1  ;;  %v16619_v20 = vld [vmem:[#allocation117_spill] sm:$0xff] }
 0x543   :  { %8195 = vpow2.f32 %v4112_v22  ;;  %v12575_v40 = vpop.eup %8177  ;;  %v4118_v7 = vmul.f32 1.442695, %v3850_v9  ;;  %v4120_v11 = vmul.f32 1.442695, %v3851_v15  ;;  %v12583_v44 = vadd.f32 %v3377_v58, %v2015_v54  ;;  %v2019_v15 = vld [vmem:[%s15541_s4 + $0x538] sm:$0xff]  ;;  %v16622_v58 = vld [vmem:[#allocation122_spill] sm:$0xff] }
 0x544   :  { %16613 = vst [vmem:[#allocation113_spill] sm:$0xff] %v12575_v40  ;;  %8197 = vpow2.f32 %v4114_v14  ;;  %v3719_v0 = vmax.f32 %v16614_v19, %v12562_v34  ;;  %v12581_v22 = vpop.eup %8179  ;;  %v4122_v6 = vmul.f32 1.442695, %v3852_v45  ;;  %v4124_v36 = vmul.f32 1.442695, %v3853_v61  ;;  %v16620_v19 = vld [vmem:[#allocation118_spill] sm:$0xff] }
 0x545   :  { %16615 = vst [vmem:[#allocation111_spill] sm:$0xff] %v12581_v22  ;;  %8199 = vpow2.f32 %v4116_v50  ;;  %16616 = vst [vmem:[#allocation112_spill] sm:$0xff] %v12583_v44  ;;  %3716 = vmax.xlane.f32.xlu0 %v3715_v52  ;;  %v12585_v30 = vpop.eup %8181  ;;  %v12587_v14 = vadd.f32 %v3381_v46, %v2018_v53  ;;  %v3854_v32 = vsub.f32 %v16619_v20, %v3542_v33  ;;  %v3383_v50 = vpop.f32.mrb[255].mxu1  ;;  %v2022_v53 = vld [vmem:[%s15541_s4 + $0x550] sm:$0xff] }
 0x546   :  { %16617 = vst [vmem:[#allocation116_spill] sm:$0xff] %v12585_v30  ;;  %8201 = vpow2.f32 %v4118_v7  ;;  %v3855_v9 = vsub.f32 %v16620_v19, %v3542_v33  ;;  %v12594_v45 = vpop.eup %8183  ;;  %v3720_v54 = vmax.f32 %v3719_v0, %v12583_v44  ;;  %v3856_v52 = vsub.f32 %v16622_v58, %v3542_v33  ;;  %v3547_v44 = vpop.xlane.xlu0 %3546 }
 0x547   :  { %16618 = vst [vmem:[#allocation114_spill] sm:$0xff] %v12587_v14  ;;  %16621 = vst [vmem:[#allocation115_spill] sm:$0xff] %v12594_v45  ;;  %8203 = vpow2.f32 %v4120_v11  ;;  %v3857_v61 = vsub.f32 %v11272_v12, %v3542_v33  ;;  %v16624_v46 = vmax.f32 %v12504_v43, %v12507_v8  ;;  %v4126_v19 = vmul.f32 1.442695, %v3854_v32  ;;  %v3387_v33 = vpop.f32.mrb[0].mxu1 }
 0x548   :  { %v12602_v7 = vpop.eup %8185  ;;  %8205 = vpow2.f32 %v4122_v6  ;;  %v4128_v11 = vmul.f32 1.442695, %v3855_v9  ;;  %v4130_v0 = vmul.f32 1.442695, %v3856_v52  ;;  %v12610_v12 = vadd.f32 %v3383_v50, %v2019_v15  ;;  %v3389_v9 = vpop.f32.mrb[1].mxu1  ;;  %v16632_v50 = vld [vmem:[#allocation125_spill] sm:$0xff] }
 0x549   :  { %16623 = vst [vmem:[#allocation119_spill] sm:$0xff] %v12602_v7  ;;  %v3724_v20 = vmax.f32 %v16624_v46, %v12587_v14  ;;  %v12608_v34 = vpop.eup %8187  ;;  %8207 = vpow2.f32 %v4124_v36  ;;  %v4132_v58 = vmul.f32 1.442695, %v3857_v61  ;;  %3721 = vmax.xlane.f32.xlu0 %v3720_v54  ;;  %v12614_v6 = vadd.f32 %v3387_v33, %v2022_v53  ;;  %v16630_v46 = vld [vmem:[#allocation121_spill] sm:$0xff]  ;;  %v2023_v36 = vld [vmem:[%s15541_s4 + $0x558] sm:$0xff] }
 0x54a   :  { %16625 = vst [vmem:[#allocation117_spill] sm:$0xff] %v12608_v34  ;;  %16626 = vst [vmem:[#allocation118_spill] sm:$0xff] %v12610_v12  ;;  %v12612_v17 = vpop.eup %8189  ;;  %8209 = vpow2.f32 %v4126_v19  ;;  %v3858_v8 = vsub.f32 %v16629_v1, %v3547_v44  ;;  %v3859_v32 = vsub.f32 %v16630_v46, %v3547_v44  ;;  %v3860_v54 = vsub.f32 %v16632_v50, %v3547_v44  ;;  %v2026_v1 = vld [vmem:[%s15541_s4 + $0x570] sm:$0xff] }
 0x54b   :  { %16627 = vst [vmem:[#allocation122_spill] sm:$0xff] %v12612_v17  ;;  %16628 = vst [vmem:[#allocation218_spill] sm:$0xff] %v12614_v6  ;;  %v12621_v52 = vpop.eup %8191  ;;  %8211 = vpow2.f32 %v4128_v11  ;;  %v3725_v15 = vmax.f32 %v3724_v20, %v12610_v12  ;;  %v3861_v61 = vsub.f32 %v11306_v57, %v3547_v44  ;;  %v16634_v19 = vmax.f32 %v11964_v29, %v11977_v62  ;;  %v3393_v44 = vpop.f32.mrb[2].mxu1 }
 0x54c   :  { %16631 = vst [vmem:[#allocation120_spill] sm:$0xff] %v12621_v52  ;;  %v12629_v53 = vpop.eup %8193  ;;  %8213 = vpow2.f32 %v4130_v0  ;;  %v4134_v46 = vmul.f32 1.442695, %v3858_v8  ;;  %v4136_v11 = vmul.f32 1.442695, %v3859_v32  ;;  %v12637_v57 = vadd.f32 %v3389_v9, %v2023_v36  ;;  %v3552_v12 = vpop.xlane.xlu1 %3551  ;;  %v16639_v8 = vld [vmem:[#allocation123_spill] sm:$0xff] }
 0x54d   :  { %16633 = vst [vmem:[#allocation121_spill] sm:$0xff] %v12629_v53  ;;  %v3729_v33 = vmax.f32 %v16634_v19, %v12614_v6  ;;  %v12635_v14 = vpop.eup %8195  ;;  %8215 = vpow2.f32 %v4132_v58  ;;  %v4138_v20 = vmul.f32 1.442695, %v3860_v54  ;;  %v4140_v50 = vmul.f32 1.442695, %v3861_v61  ;;  %3726 = vmax.xlane.f32.xlu0 %v3725_v15  ;;  %v3395_v19 = vpop.f32.mrb[3].mxu1 }
 0x54e   :  { %16635 = vst [vmem:[#allocation125_spill] sm:$0xff] %v12635_v14  ;;  %16636 = vst [vmem:[#allocation219_spill] sm:$0xff] %v12637_v57  ;;  %v12639_v43 = vpop.eup %8197  ;;  %8217 = vpow2.f32 %v4134_v46  ;;  %v4606_v0 = vadd.f32 %v12581_v22, %v12575_v40  ;;  %v12643_v62 = vadd.f32 %v3393_v44, %v2026_v1  ;;  %v3862_v32 = vsub.f32 %v16639_v8, %v3552_v12  ;;  %v16641_v36 = vld [vmem:[#allocation124_spill] sm:$0xff]  ;;  %v2030_v8 = vld [vmem:[%s15541_s4 + $0x590] sm:$0xff] }
 0x54f   :  { %16637 = vst [vmem:[#allocation220_spill] sm:$0xff] %v12639_v43  ;;  %v12646_v6 = vpop.eup %8199  ;;  %8219 = vpow2.f32 %v4136_v11  ;;  %v3730_v58 = vmax.f32 %v3729_v33, %v12637_v57  ;;  %v3863_v9 = vsub.f32 %v16641_v36, %v3552_v12  ;;  %v16642_v15 = vld [vmem:[#allocation128_spill] sm:$0xff]  ;;  %v16644_v44 = vmax.f32 %v11980_v35, %v11983_v21 }
 0x550   :  { %16638 = vst [vmem:[#allocation221_spill] sm:$0xff] %v12643_v62  ;;  %16640 = vst [vmem:[#allocation123_spill] sm:$0xff] %v12646_v6  ;;  %v3864_v54 = vsub.f32 %v16642_v15, %v3552_v12  ;;  %v2027_v61 = vld [vmem:[%s15541_s4 + $0x578] sm:$0xff]  ;;  %v12654_v46 = vpop.eup %8201  ;;  %8221 = vpow2.f32 %v4138_v20  ;;  %v4607_v1 = vadd.f32 %v12585_v30, %v4606_v0  ;;  %v3865_v33 = vsub.f32 %v11340_v31, %v3552_v12  ;;  %v3557_v20 = vpop.xlane.xlu0 %3556 }
 0x551   :  { %16643 = vst [vmem:[#allocation124_spill] sm:$0xff] %v12654_v46  ;;  %v3734_v11 = vmax.f32 %v16644_v44, %v12643_v62  ;;  %v12665_v36 = vpop.eup %8203  ;;  %8223 = vpow2.f32 %v4140_v50  ;;  %v4142_v15 = vmul.f32 1.442695, %v3862_v32  ;;  %v4144_v40 = vmul.f32 1.442695, %v3863_v9  ;;  %3731 = vmax.xlane.f32.xlu0 %v3730_v58  ;;  %v3399_v12 = vpop.f32.mrb[4].mxu1 }
 0x552   :  { %16645 = vst [vmem:[#allocation128_spill] sm:$0xff] %v12665_v36  ;;  %v4146_v22 = vmul.f32 1.442695, %v3864_v54  ;;  %v12667_v0 = vpop.eup %8205  ;;  %v4608_v30 = vadd.f32 %v12594_v45, %v4607_v1  ;;  %v4148_v21 = vmul.f32 1.442695, %v3865_v33  ;;  %v12670_v44 = vadd.f32 %v3395_v19, %v2027_v61  ;;  %v16650_v32 = vld [vmem:[#allocation126_spill] sm:$0xff] }
 0x553   :  { %16646 = vst [vmem:[#allocation222_spill] sm:$0xff] %v12667_v0  ;;  %v4611_v31 = vadd.f32 %v12608_v34, %v12602_v7  ;;  %v12674_v62 = vpop.eup %8207  ;;  %8225 = vpow2.f32 %v4142_v15  ;;  %v12676_v50 = vadd.f32 %v3399_v12, %v2030_v8  ;;  %v3866_v9 = vsub.f32 %v16650_v32, %v3557_v20  ;;  %v16651_v58 = vld [vmem:[#allocation127_spill] sm:$0xff]  ;;  %v3401_v35 = vpop.f32.mrb[5].mxu1  ;;  %v2031_v8 = vld [vmem:[%s15541_s4 + $0x598] sm:$0xff]  ;;  %v16655_v12 = vld [vmem:[#allocation6_spill] sm:$0xff] }
 0x554   :  { %16647 = vst [vmem:[#allocation223_spill] sm:$0xff] %v12670_v44  ;;  %16648 = vst [vmem:[#allocation224_spill] sm:$0xff] %v12674_v62  ;;  %v3867_v54 = vsub.f32 %v16651_v58, %v3557_v20  ;;  %v12680_v57 = vpop.eup %8209  ;;  %4609 = vadd.xlane.f32.xlu1 %v4608_v30  ;;  %8227 = vpow2.f32 %v4144_v40  ;;  %v3735_v19 = vmax.f32 %v3734_v11, %v12670_v44  ;;  %v16653_v1 = vld [vmem:[#allocation131_spill] sm:$0xff]  ;;  %v16656_v32 = vld [vmem:[#allocation70_spill] sm:$0xff] }
 0x555   :  { %16649 = vst [vmem:[#allocation225_spill] sm:$0xff] %v12676_v50  ;;  %16652 = vst [vmem:[#allocation126_spill] sm:$0xff] %v12680_v57  ;;  %v4612_v61 = vadd.f32 %v12612_v17, %v4611_v31  ;;  %v3868_v33 = vsub.f32 %v16653_v1, %v3557_v20  ;;  %v12688_v15 = vpop.eup %8211  ;;  %8229 = vpow2.f32 %v4146_v22  ;;  %v16657_v58 = vmax.f32 %v16655_v12, %v16656_v32  ;;  %v16658_v30 = vld [vmem:[#allocation132_spill] sm:$0xff]  ;;  %v2034_v11 = vld [vmem:[%s15541_s4 + $0x5b0] sm:$0xff]  ;;  %v3405_v31 = vpop.f32.mrb[6].mxu1 }
 0x556   :  { %16654 = vst [vmem:[#allocation127_spill] sm:$0xff] %v12688_v15  ;;  %v3869_v40 = vsub.f32 %v16658_v30, %v3557_v20  ;;  %v4150_v7 = vmul.f32 1.442695, %v3866_v9  ;;  %v3562_v1 = vpop.xlane.xlu1 %3561  ;;  %v12698_v17 = vpop.eup %8213  ;;  %8231 = vpow2.f32 %v4148_v21  ;;  %v4152_v22 = vmul.f32 1.442695, %v3867_v54  ;;  %3736 = vmax.xlane.f32.xlu0 %v3735_v19 }
 0x557   :  { %v3739_v45 = vmax.f32 %v16657_v58, %v12676_v50  ;;  %16659 = vst [vmem:[#allocation131_spill] sm:$0xff] %v12698_v17  ;;  %v4613_v34 = vadd.f32 %v12621_v52, %v4612_v61  ;;  %v4154_v44 = vmul.f32 1.442695, %v3868_v33  ;;  %v3407_v29 = vpop.f32.mrb[7].mxu1  ;;  %v12701_v32 = vpop.eup %8215  ;;  %v12703_v9 = vadd.f32 %v3401_v35, %v2031_v8  ;;  %v16664_v61 = vld [vmem:[#allocation129_spill] sm:$0xff]  ;;  %v16665_v33 = vld [vmem:[#allocation130_spill] sm:$0xff] }
 0x558   :  { %16660 = vst [vmem:[#allocation132_spill] sm:$0xff] %v12701_v32  ;;  %8233 = vpow2.f32 %v4150_v7  ;;  %v4156_v20 = vmul.f32 1.442695, %v3869_v40  ;;  %v4616_v58 = vadd.f32 %v12635_v14, %v12629_v53  ;;  %v12707_v30 = vpop.eup %8217  ;;  %v12709_v21 = vadd.f32 %v3405_v31, %v2034_v11  ;;  %v2035_v7 = vld [vmem:[%s15541_s4 + $0x5b8] sm:$0xff]  ;;  %v16667_v52 = vld [vmem:[#allocation135_spill] sm:$0xff]  ;;  %v3411_v31 = vpop.f32.mrb[8].mxu1 }
 0x559   :  { %16661 = vst [vmem:[#allocation226_spill] sm:$0xff] %v12703_v9  ;;  %16662 = vst [vmem:[#allocation227_spill] sm:$0xff] %v12707_v30  ;;  %4614 = vadd.xlane.f32.xlu1 %v4613_v34  ;;  %8235 = vpow2.f32 %v4152_v22  ;;  %v3870_v54 = vsub.f32 %v16664_v61, %v3562_v1  ;;  %v3871_v19 = vsub.f32 %v16665_v33, %v3562_v1  ;;  %v12716_v40 = vpop.eup %8219  ;;  %v2038_v11 = vld [vmem:[%s15541_s4 + $0x5d0] sm:$0xff]  ;;  %v16669_v61 = vld [vmem:[#allocation24_spill] sm:$0xff] }
 0x55a   :  { %16663 = vst [vmem:[#allocation228_spill] sm:$0xff] %v12709_v21  ;;  %16666 = vst [vmem:[#allocation129_spill] sm:$0xff] %v12716_v40  ;;  %8237 = vpow2.f32 %v4154_v44  ;;  %v3740_v35 = vmax.f32 %v3739_v45, %v12703_v9  ;;  %v4617_v8 = vadd.f32 %v12639_v43, %v4616_v58  ;;  %v3872_v34 = vsub.f32 %v16667_v52, %v3562_v1  ;;  %v12724_v22 = vpop.eup %8221  ;;  %v16670_v33 = vld [vmem:[#allocation22_spill] sm:$0xff]  ;;  %v16672_v44 = vld [vmem:[#allocation136_spill] sm:$0xff]  ;;  %v3567_v9 = vpop.xlane.xlu0 %3566 }
 0x55b   :  { %16668 = vst [vmem:[#allocation130_spill] sm:$0xff] %v12724_v22  ;;  %8239 = vpow2.f32 %v4156_v20  ;;  %v16671_v53 = vmax.f32 %v16669_v61, %v16670_v33  ;;  %v3873_v50 = vsub.f32 %v16672_v44, %v3562_v1  ;;  %v4158_v45 = vmul.f32 1.442695, %v3870_v54  ;;  %v3413_v58 = vpop.f32.mrb[9].mxu1  ;;  %v12731_v43 = vpop.eup %8223  ;;  %v16677_v44 = vld [vmem:[#allocation133_spill] sm:$0xff] }
 0x55c   :  { %16673 = vst [vmem:[#allocation135_spill] sm:$0xff] %v12731_v43  ;;  %v4618_v52 = vadd.f32 %v12646_v6, %v4617_v8  ;;  %v4160_v12 = vmul.f32 1.442695, %v3871_v19  ;;  %v4162_v38 = vmul.f32 1.442695, %v3872_v34  ;;  %v12734_v49 = vadd.f32 %v3407_v29, %v2035_v7  ;;  %3741 = vmax.xlane.f32.xlu0 %v3740_v35  ;;  %v16678_v19 = vld [vmem:[#allocation134_spill] sm:$0xff] }
 0x55d   :  { %v3744_v14 = vmax.f32 %v16671_v53, %v12709_v21  ;;  %8241 = vpow2.f32 %v4158_v45  ;;  %v4164_v20 = vmul.f32 1.442695, %v3873_v50  ;;  %v4621_v33 = vadd.f32 %v12665_v36, %v12654_v46  ;;  %v12740_v1 = vpop.eup %8225  ;;  %v2039_v29 = vld [vmem:[%s15541_s4 + $0x5d8] sm:$0xff]  ;;  %v3417_v50 = vpop.f32.mrb[10].mxu1  ;;  %v16685_v36 = vld [vmem:[#allocation139_spill] sm:$0xff] }
 0x55e   :  { %16674 = vst [vmem:[#allocation136_spill] sm:$0xff] %v12734_v49  ;;  %v12738_v53 = vadd.f32 %v3411_v31, %v2038_v11  ;;  %16676 = vst [vmem:[#allocation230_spill] sm:$0xff] %v12740_v1  ;;  %4619 = vadd.xlane.f32.xlu1 %v4618_v52  ;;  %8243 = vpow2.f32 %v4160_v12  ;;  %v3874_v8 = vsub.f32 %v16677_v44, %v3567_v9  ;;  %v12748_v7 = vpop.eup %8227  ;;  %v16680_v11 = vld [vmem:[#allocation7_spill] sm:$0xff]  ;;  %v16681_v31 = vld [vmem:[#allocation72_spill] sm:$0xff]  ;;  %v3419_v6 = vpop.f32.mrb[11].mxu1 }
 0x55f   :  { %v3745_v54 = vmax.f32 %v3744_v14, %v12734_v49  ;;  %v3875_v34 = vsub.f32 %v16678_v19, %v3567_v9  ;;  %16679 = vst [vmem:[#allocation133_spill] sm:$0xff] %v12748_v7  ;;  %8245 = vpow2.f32 %v4162_v38  ;;  %v4622_v35 = vadd.f32 %v12667_v0, %v4621_v33  ;;  %v16683_v14 = vld [vmem:[#allocation138_spill] sm:$0xff]  ;;  %v2042_v44 = vld [vmem:[%s15541_s4 + $0x5f0] sm:$0xff]  ;;  %v3572_v19 = vpop.xlane.xlu1 %3571  ;;  %v12759_v46 = vpop.eup %8229 }
 0x560   :  { %16675 = vst [vmem:[#allocation229_spill] sm:$0xff] %v12738_v53  ;;  %v16682_v12 = vmax.f32 %v16680_v11, %v16681_v31  ;;  %v3876_v52 = vsub.f32 %v16683_v14, %v3567_v9  ;;  %16684 = vst [vmem:[#allocation134_spill] sm:$0xff] %v12759_v46  ;;  %8247 = vpow2.f32 %v4164_v20  ;;  %v3877_v38 = vsub.f32 %v16685_v36, %v3567_v9  ;;  %v12762_v0 = vpop.eup %8231  ;;  %v16690_v36 = vld [vmem:[#allocation16_spill] sm:$0xff] }
 0x561   :  { %v4166_v49 = vmul.f32 1.442695, %v3874_v8  ;;  %v4168_v33 = vmul.f32 1.442695, %v3875_v34  ;;  %3746 = vmax.xlane.f32.xlu0 %v3745_v54  ;;  %16686 = vst [vmem:[#allocation138_spill] sm:$0xff] %v12762_v0  ;;  %v12765_v14 = vadd.f32 %v3413_v58, %v2039_v29  ;;  %v4626_v31 = vadd.f32 %v12688_v15, %v12680_v57  ;;  %v3423_v8 = vpop.f32.mrb[12].mxu1 }
 0x562   :  { %v3749_v45 = vmax.f32 %v16682_v12, %v12738_v53  ;;  %v4623_v12 = vadd.f32 %v12674_v62, %v4622_v35  ;;  %v4170_v53 = vmul.f32 1.442695, %v3876_v52  ;;  %v12769_v11 = vpop.eup %8233  ;;  %v4172_v21 = vmul.f32 1.442695, %v3877_v38  ;;  %v16692_v29 = vld [vmem:[#allocation137_spill] sm:$0xff]  ;;  %v3425_v52 = vpop.f32.mrb[13].mxu1 }
 0x563   :  { %16687 = vst [vmem:[#allocation139_spill] sm:$0xff] %v12765_v14  ;;  %16688 = vst [vmem:[#allocation231_spill] sm:$0xff] %v12769_v11  ;;  %8249 = vpow2.f32 %v4166_v49  ;;  %v12771_v20 = vadd.f32 %v3417_v50, %v2042_v44  ;;  %v3878_v9 = vsub.f32 %v16690_v36, %v3572_v19  ;;  %v12774_v54 = vpop.eup %8235  ;;  %v4627_v58 = vadd.f32 %v12698_v17, %v4626_v31  ;;  %v2043_v49 = vld [vmem:[%s15541_s4 + $0x5f8] sm:$0xff]  ;;  %v16695_v38 = vld [vmem:[#allocation26_spill] sm:$0xff] }
 0x564   :  { %16691 = vst [vmem:[#allocation16_spill] sm:$0xff] %v12774_v54  ;;  %4624 = vadd.xlane.f32.xlu1 %v4623_v12  ;;  %8251 = vpow2.f32 %v4168_v33  ;;  %v3750_v34 = vmax.f32 %v3749_v45, %v12765_v14  ;;  %v3879_v35 = vsub.f32 %v16692_v29, %v3572_v19  ;;  %v12782_v50 = vpop.eup %8237  ;;  %v16694_v44 = vld [vmem:[#allocation28_spill] sm:$0xff]  ;;  %v16697_v33 = vld [vmem:[#allocation141_spill] sm:$0xff]  ;;  %v16698_v45 = vld [vmem:[#allocation142_spill] sm:$0xff]  ;;  %v3577_v29 = vpop.xlane.xlu0 %3576 }
 0x565   :  { %16689 = vst [vmem:[#allocation232_spill] sm:$0xff] %v12771_v20  ;;  %16693 = vst [vmem:[#allocation137_spill] sm:$0xff] %v12782_v50  ;;  %8253 = vpow2.f32 %v4170_v53  ;;  %v16696_v36 = vmax.f32 %v16694_v44, %v16695_v38  ;;  %v3880_v62 = vsub.f32 %v16697_v33, %v3572_v19  ;;  %v3881_v57 = vsub.f32 %v16698_v45, %v3572_v19  ;;  %v2046_v31 = vld [vmem:[%s15541_s4 + $0x610] sm:$0xff]  ;;  %v12793_v17 = vpop.eup %8239  ;;  %v3429_v33 = vpop.f32.mrb[14].mxu1 }
 0x566   :  { %16699 = vst [vmem:[#allocation141_spill] sm:$0xff] %v12793_v17  ;;  %8255 = vpow2.f32 %v4172_v21  ;;  %v4628_v15 = vadd.f32 %v12701_v32, %v4627_v58  ;;  %v4174_v53 = vmul.f32 1.442695, %v3878_v9  ;;  %v4176_v14 = vmul.f32 1.442695, %v3879_v35  ;;  %3751 = vmax.xlane.f32.xlu0 %v3750_v34  ;;  %v16702_v21 = vld [vmem:[#allocation14_spill] sm:$0xff] }
 0x567   :  { %v3754_v12 = vmax.f32 %v16696_v36, %v12771_v20  ;;  %v4178_v61 = vmul.f32 1.442695, %v3880_v62  ;;  %v4180_v38 = vmul.f32 1.442695, %v3881_v57  ;;  %v12796_v36 = vadd.f32 %v3419_v6, %v2043_v49  ;;  %v12800_v45 = vpop.eup %8241  ;;  %v16703_v58 = vld [vmem:[#allocation140_spill] sm:$0xff]  ;;  %v3431_v35 = vpop.f32.mrb[15].mxu1 }
 0x568   :  { %v4631_v19 = vadd.f32 %v12716_v40, %v12707_v30  ;;  %16700 = vst [vmem:[#allocation142_spill] sm:$0xff] %v12800_v45  ;;  %4629 = vadd.xlane.f32.xlu1 %v4628_v15  ;;  %8257 = vpow2.f32 %v4174_v53  ;;  %v12802_v20 = vadd.f32 %v3423_v8, %v2046_v31  ;;  %v3882_v44 = vsub.f32 %v16702_v21, %v3577_v29  ;;  %v12806_v34 = vpop.eup %8243  ;;  %v16705_v57 = vld [vmem:[#allocation145_spill] sm:$0xff]  ;;  %v2047_v15 = vld [vmem:[%s15541_s4 + $0x618] sm:$0xff]  ;;  %v16708_v21 = vld [vmem:[#allocation146_spill] sm:$0xff]  ;;  %v3435_v30 = vpop.f32.mrb[16].mxu1 }
 0x569   :  { %v3883_v9 = vsub.f32 %v16703_v58, %v3577_v29  ;;  %16704 = vst [vmem:[#allocation14_spill] sm:$0xff] %v12806_v34  ;;  %8259 = vpow2.f32 %v4176_v14  ;;  %v3755_v62 = vmax.f32 %v3754_v12, %v12796_v36  ;;  %v3884_v49 = vsub.f32 %v16705_v57, %v3577_v29  ;;  %v12814_v8 = vpop.eup %8245  ;;  %v2050_v12 = vld [vmem:[%s15541_s4 + $0x630] sm:$0xff] }
 0x56a   :  { %16701 = vst [vmem:[#allocation233_spill] sm:$0xff] %v12802_v20  ;;  %v4632_v6 = vadd.f32 %v12724_v22, %v4631_v19  ;;  %16706 = vst [vmem:[#allocation140_spill] sm:$0xff] %v12814_v8  ;;  %8261 = vpow2.f32 %v4178_v61  ;;  %v16707_v31 = vmax.f32 %v12104_v25, %v12107_v63  ;;  %v3885_v14 = vsub.f32 %v16708_v21, %v3577_v29  ;;  %v3582_v19 = vpop.xlane.xlu1 %3581  ;;  %v12824_v57 = vpop.eup %8247 }
 0x56b   :  { %v4182_v58 = vmul.f32 1.442695, %v3882_v44  ;;  %16709 = vst [vmem:[#allocation145_spill] sm:$0xff] %v12824_v57  ;;  %8263 = vpow2.f32 %v4180_v38  ;;  %v4184_v32 = vmul.f32 1.442695, %v3883_v9  ;;  %3756 = vmax.xlane.f32.xlu0 %v3755_v62  ;;  %v4636_v44 = vadd.f32 %v12748_v7, %v12740_v1  ;;  %v3437_v29 = vpop.f32.mrb[17].mxu1 }
 0x56c   :  { %v3759_v53 = vmax.f32 %v16707_v31, %v12802_v20  ;;  %v4633_v22 = vadd.f32 %v12731_v43, %v4632_v6  ;;  %v4186_v61 = vmul.f32 1.442695, %v3884_v49  ;;  %v4188_v40 = vmul.f32 1.442695, %v3885_v14  ;;  %v16713_v38 = vld [vmem:[#allocation143_spill] sm:$0xff]  ;;  %v16714_v9 = vld [vmem:[#allocation144_spill] sm:$0xff] }
 0x56d   :  { %8265 = vpow2.f32 %v4182_v58  ;;  %v12827_v31 = vadd.f32 %v3425_v52, %v2047_v15  ;;  %v12831_v21 = vpop.eup %8249  ;;  %v12833_v20 = vadd.f32 %v3429_v33, %v2050_v12  ;;  %v3886_v6 = vsub.f32 %v16713_v38, %v3582_v19  ;;  %v2051_v62 = vld [vmem:[%s15541_s4 + $0x638] sm:$0xff]  ;;  %v16716_v58 = vld [vmem:[#allocation149_spill] sm:$0xff]  ;;  %v3441_v1 = vpop.f32.mrb[18].mxu1 }
 0x56e   :  { %16711 = vst [vmem:[#allocation234_spill] sm:$0xff] %v12831_v21  ;;  %4634 = vadd.xlane.f32.xlu1 %v4633_v22  ;;  %8267 = vpow2.f32 %v4184_v32  ;;  %v3887_v49 = vsub.f32 %v16714_v9, %v3582_v19  ;;  %v12840_v52 = vpop.eup %8251  ;;  %v4637_v14 = vadd.f32 %v12759_v46, %v4636_v44  ;;  %v3888_v22 = vsub.f32 %v16716_v58, %v3582_v19  ;;  %v2054_v32 = vld [vmem:[%s15541_s4 + $0x650] sm:$0xff]  ;;  %v16719_v9 = vld [vmem:[#allocation150_spill] sm:$0xff] }
 0x56f   :  { %16710 = vst [vmem:[#allocation146_spill] sm:$0xff] %v12827_v31  ;;  %16712 = vst [vmem:[#allocation235_spill] sm:$0xff] %v12833_v20  ;;  %8269 = vpow2.f32 %v4186_v61  ;;  %v3760_v15 = vmax.f32 %v3759_v53, %v12827_v31  ;;  %v12848_v33 = vpop.eup %8253  ;;  %v16718_v12 = vmax.f32 %v12139_v26, %v12142_v28  ;;  %v3889_v61 = vsub.f32 %v16719_v9, %v3582_v19  ;;  %v3587_v53 = vpop.xlane.xlu0 %3586  ;;  %v16751_v26 = vld [vmem:[#allocation33_spill] sm:$0xff] }
 0x570   :  { %16715 = vst [vmem:[#allocation143_spill] sm:$0xff] %v12840_v52  ;;  %16717 = vst [vmem:[#allocation144_spill] sm:$0xff] %v12848_v33  ;;  %8271 = vpow2.f32 %v4188_v40  ;;  %v4190_v43 = vmul.f32 1.442695, %v3886_v6  ;;  %v12855_v44 = vpop.eup %8255  ;;  %v4638_v58 = vadd.f32 %v12762_v0, %v4637_v14  ;;  %v4192_v46 = vmul.f32 1.442695, %v3887_v49 }
 0x571   :  { %v3764_v38 = vmax.f32 %v16718_v12, %v12833_v20  ;;  %16720 = vst [vmem:[#allocation149_spill] sm:$0xff] %v12855_v44  ;;  %v4194_v7 = vmul.f32 1.442695, %v3888_v22  ;;  %v12858_v31 = vadd.f32 %v3431_v35, %v2051_v62  ;;  %3761 = vmax.xlane.f32.xlu0 %v3760_v15  ;;  %v3443_v40 = vpop.f32.mrb[19].mxu1  ;;  %v4196_v63 = vmul.f32 1.442695, %v3889_v61 }
 0x572   :  { %8273 = vpow2.f32 %v4190_v43  ;;  %v4641_v12 = vadd.f32 %v12774_v54, %v12769_v11  ;;  %v12862_v20 = vadd.f32 %v3435_v30, %v2054_v32  ;;  %v12864_v19 = vpop.eup %8257  ;;  %4639 = vadd.xlane.f32.xlu1 %v4638_v58  ;;  %v16724_v14 = vld [vmem:[#allocation147_spill] sm:$0xff]  ;;  %v16725_v22 = vld [vmem:[#allocation148_spill] sm:$0xff]  ;;  %v16727_v15 = vld [vmem:[#allocation9_spill] sm:$0xff] }
 0x573   :  { %16721 = vst [vmem:[#allocation150_spill] sm:$0xff] %v12858_v31  ;;  %16723 = vst [vmem:[#allocation237_spill] sm:$0xff] %v12864_v19  ;;  %8275 = vpow2.f32 %v4192_v46  ;;  %v3765_v6 = vmax.f32 %v3764_v38, %v12858_v31  ;;  %v3890_v49 = vsub.f32 %v16724_v14, %v3587_v53  ;;  %v3891_v35 = vsub.f32 %v16725_v22, %v3587_v53  ;;  %v2055_v43 = vld [vmem:[%s15541_s4 + $0x658] sm:$0xff]  ;;  %v12872_v62 = vpop.eup %8259  ;;  %v16730_v61 = vld [vmem:[#allocation153_spill] sm:$0xff]  ;;  %v3592_v14 = vpop.xlane.xlu1 %3591 }
 0x574   :  { %16722 = vst [vmem:[#allocation236_spill] sm:$0xff] %v12862_v20  ;;  %16726 = vst [vmem:[#allocation147_spill] sm:$0xff] %v12872_v62  ;;  %8277 = vpow2.f32 %v4194_v7  ;;  %v4642_v30 = vadd.f32 %v12782_v50, %v4641_v12  ;;  %v16728_v32 = vld [vmem:[#allocation76_spill] sm:$0xff]  ;;  %v3892_v38 = vsub.f32 %v16730_v61, %v3587_v53  ;;  %v2058_v58 = vld [vmem:[%s15541_s4 + $0x670] sm:$0xff]  ;;  %v3447_v22 = vpop.f32.mrb[20].mxu1  ;;  %v12883_v0 = vpop.eup %8261 }
 0x575   :  { %v16729_v9 = vmax.f32 %v16727_v15, %v16728_v32  ;;  %16731 = vst [vmem:[#allocation148_spill] sm:$0xff] %v12883_v0  ;;  %8279 = vpow2.f32 %v4196_v63  ;;  %v16732_v11 = vld [vmem:[#allocation154_spill] sm:$0xff]  ;;  %v4198_v54 = vmul.f32 1.442695, %v3890_v49  ;;  %v4200_v12 = vmul.f32 1.442695, %v3891_v35  ;;  %3766 = vmax.xlane.f32.xlu0 %v3765_v6  ;;  %v12888_v32 = vpop.eup %8263 }
 0x576   :  { %v3893_v7 = vsub.f32 %v16732_v11, %v3587_v53  ;;  %v12886_v50 = vpop.f32.mrb[21].mxu1  ;;  %16733 = vst [vmem:[#allocation153_spill] sm:$0xff] %v12888_v32  ;;  %v4202_v61 = vmul.f32 1.442695, %v3892_v38  ;;  %v4646_v15 = vadd.f32 %v12806_v34, %v12800_v45  ;;  %v12897_v11 = vadd.f32 %v3441_v1, %v2058_v58  ;;  %v16737_v53 = vld [vmem:[#allocation151_spill] sm:$0xff]  ;;  %v2059_v38 = vld [vmem:[%s15541_s4 + $0x678] sm:$0xff] }
 0x577   :  { %v3769_v46 = vmax.f32 %v16729_v9, %v12862_v20  ;;  %v4643_v9 = vadd.f32 %v12793_v17, %v4642_v30  ;;  %v12891_v20 = vadd.f32 %v3437_v29, %v2055_v43  ;;  %v12895_v31 = vpop.eup %8265  ;;  %8281 = vpow2.f32 %v4198_v54  ;;  %v16739_v43 = vld [vmem:[#allocation152_spill] sm:$0xff]  ;;  %v3453_v54 = vpop.f32.mrb[22].mxu1  ;;  %v16741_v1 = vld [vmem:[#allocation10_spill] sm:$0xff]  ;;  %v16742_v58 = vld [vmem:[#allocation11_spill] sm:$0xff] }
 0x578   :  { %16735 = vst [vmem:[#allocation238_spill] sm:$0xff] %v12895_v31  ;;  %v4204_v63 = vmul.f32 1.442695, %v3893_v7  ;;  %16736 = vst [vmem:[#allocation239_spill] sm:$0xff] %v12897_v11  ;;  %v3894_v6 = vsub.f32 %v16737_v53, %v3592_v14  ;;  %v12900_v49 = vpop.eup %8267  ;;  %8283 = vpow2.f32 %v4200_v12  ;;  %v4647_v29 = vadd.f32 %v12814_v8, %v4646_v15  ;;  %v16744_v12 = vld [vmem:[#allocation156_spill] sm:$0xff]  ;;  %v2062_v15 = vld [vmem:[%s15541_s4 + $0x690] sm:$0xff] }
 0x579   :  { %16734 = vst [vmem:[#allocation154_spill] sm:$0xff] %v12891_v20  ;;  %16738 = vst [vmem:[#allocation151_spill] sm:$0xff] %v12900_v49  ;;  %4644 = vadd.xlane.f32.xlu1 %v4643_v9  ;;  %v3770_v35 = vmax.f32 %v3769_v46, %v12891_v20  ;;  %v3895_v30 = vsub.f32 %v16739_v43, %v3592_v14  ;;  %v12908_v7 = vpop.eup %8269  ;;  %8285 = vpow2.f32 %v4202_v61  ;;  %v16745_v46 = vld [vmem:[#allocation157_spill] sm:$0xff]  ;;  %v3597_v43 = vpop.xlane.xlu0 %3596 }
 0x57a   :  { %16740 = vst [vmem:[#allocation152_spill] sm:$0xff] %v12908_v7  ;;  %v16743_v53 = vmax.f32 %v16741_v1, %v16742_v58  ;;  %v3896_v17 = vsub.f32 %v16744_v12, %v3592_v14  ;;  %v3897_v45 = vsub.f32 %v16745_v46, %v3592_v14  ;;  %v12919_v8 = vpop.f32.mrb[23].mxu1  ;;  %v12921_v34 = vpop.eup %8271  ;;  %8287 = vpow2.f32 %v4204_v63  ;;  %v16750_v1 = vld [vmem:[#allocation155_spill] sm:$0xff] }
 0x57b   :  { %16746 = vst [vmem:[#allocation156_spill] sm:$0xff] %v12921_v34  ;;  %v4648_v61 = vadd.f32 %v12824_v57, %v4647_v29  ;;  %v4206_v20 = vmul.f32 1.442695, %v3894_v6  ;;  %v4208_v28 = vmul.f32 1.442695, %v3895_v30  ;;  %3771 = vmax.xlane.f32.xlu0 %v3770_v35  ;;  %v12924_v12 = vadd.f32 %v3443_v40, %v2059_v38  ;;  %v3459_v6 = vpop.f32.mrb[24].mxu1 }
 0x57c   :  { %v3774_v9 = vmax.f32 %v16743_v53, %v12897_v11  ;;  %v4210_v53 = vmul.f32 1.442695, %v3896_v17  ;;  %v4212_v11 = vmul.f32 1.442695, %v3897_v45  ;;  %v4651_v14 = vadd.f32 %v12840_v52, %v12831_v21  ;;  %v12928_v46 = vpop.eup %8273  ;;  %v16753_v40 = vld [vmem:[#allocation159_spill] sm:$0xff] }
 0x57d   :  { %16747 = vst [vmem:[#allocation157_spill] sm:$0xff] %v12924_v12  ;;  %16748 = vst [vmem:[#allocation240_spill] sm:$0xff] %v12928_v46  ;;  %4649 = vadd.xlane.f32.xlu1 %v4648_v61  ;;  %8289 = vpow2.f32 %v4206_v20  ;;  %v12930_v58 = vadd.f32 %v3447_v22, %v2062_v15  ;;  %v3898_v63 = vsub.f32 %v16750_v1, %v3597_v43  ;;  %v12934_v30 = vpop.eup %8275  ;;  %v2063_v20 = vld [vmem:[%s15541_s4 + $0x698] sm:$0xff]  ;;  %v12942_v22 = vpop.f32.mrb[25].mxu1  ;;  %v16756_v1 = vld [vmem:[#allocation13_spill] sm:$0xff] }
 0x57e   :  { %v3899_v29 = vsub.f32 %v16751_v26, %v3597_v43  ;;  %16752 = vst [vmem:[#allocation155_spill] sm:$0xff] %v12934_v30  ;;  %8291 = vpow2.f32 %v4208_v28  ;;  %v3775_v17 = vmax.f32 %v3774_v9, %v12924_v12  ;;  %v4652_v45 = vadd.f32 %v12848_v33, %v4651_v14  ;;  %v12944_v38 = vpop.eup %8277  ;;  %v16755_v26 = vld [vmem:[#allocation12_spill] sm:$0xff]  ;;  %v2066_v14 = vld [vmem:[%s15541_s4 + $0x6b0] sm:$0xff] }
 0x57f   :  { %16749 = vst [vmem:[#allocation241_spill] sm:$0xff] %v12930_v58  ;;  %v3900_v35 = vsub.f32 %v16753_v40, %v3597_v43  ;;  %16754 = vst [vmem:[#allocation33_spill] sm:$0xff] %v12944_v38  ;;  %8293 = vpow2.f32 %v4210_v53  ;;  %v16757_v15 = vmax.f32 %v16755_v26, %v16756_v1  ;;  %v16758_v61 = vld [vmem:[#allocation160_spill] sm:$0xff]  ;;  %v4214_v57 = vmul.f32 1.442695, %v3898_v63  ;;  %v3602_v40 = vpop.xlane.xlu1 %3601  ;;  %v12954_v33 = vpop.eup %8279 }
 0x580   :  { %v3901_v9 = vsub.f32 %v16758_v61, %v3597_v43  ;;  %16759 = vst [vmem:[#allocation159_spill] sm:$0xff] %v12954_v33  ;;  %8295 = vpow2.f32 %v4212_v11  ;;  %v4653_v21 = vadd.f32 %v12855_v44, %v4652_v45  ;;  %v4216_v52 = vmul.f32 1.442695, %v3899_v29  ;;  %3776 = vmax.xlane.f32.xlu0 %v3775_v17  ;;  %v12962_v63 = vpop.f32.mrb[26].mxu1  ;;  %v16763_v45 = vld [vmem:[#allocation158_spill] sm:$0xff]  ;;  %v16769_v44 = vld [vmem:[#allocation17_spill] sm:$0xff] }
 0x581   :  { %v3779_v28 = vmax.f32 %v16757_v15, %v12930_v58  ;;  %v4218_v53 = vmul.f32 1.442695, %v3900_v35  ;;  %8297 = vpow2.f32 %v4214_v57  ;;  %v12958_v15 = vadd.f32 %v12886_v50, %v2063_v20  ;;  %v12964_v61 = vpop.eup %8281  ;;  %v16764_v35 = vld [vmem:[#allocation39_spill] sm:$0xff]  ;;  %v2067_v50 = vld [vmem:[%s15541_s4 + $0x6b8] sm:$0xff]  ;;  %v12973_v57 = vpop.f32.mrb[27].mxu1 }
 0x582   :  { %v4220_v12 = vmul.f32 1.442695, %v3901_v9  ;;  %v4656_v43 = vadd.f32 %v12872_v62, %v12864_v19  ;;  %16761 = vst [vmem:[#allocation242_spill] sm:$0xff] %v12964_v61  ;;  %4654 = vadd.xlane.f32.xlu1 %v4653_v21  ;;  %8299 = vpow2.f32 %v4216_v52  ;;  %v12966_v11 = vadd.f32 %v3453_v54, %v2066_v14  ;;  %v12975_v20 = vpop.eup %8283  ;;  %v16766_v52 = vld [vmem:[#allocation162_spill] sm:$0xff]  ;;  %v2070_v14 = vld [vmem:[%s15541_s4 + $0x6d0] sm:$0xff] }
 0x583   :  { %16760 = vst [vmem:[#allocation160_spill] sm:$0xff] %v12958_v15  ;;  %v3902_v29 = vsub.f32 %v16763_v45, %v3602_v40  ;;  %v3903_v17 = vsub.f32 %v16764_v35, %v3602_v40  ;;  %16765 = vst [vmem:[#allocation158_spill] sm:$0xff] %v12975_v20  ;;  %8301 = vpow2.f32 %v4218_v53  ;;  %v3780_v9 = vmax.f32 %v3779_v28, %v12958_v15  ;;  %v12983_v45 = vpop.eup %8285  ;;  %v16768_v35 = vld [vmem:[#allocation15_spill] sm:$0xff]  ;;  %v3607_v28 = vpop.xlane.xlu0 %3606 }
 0x584   :  { %16762 = vst [vmem:[#allocation243_spill] sm:$0xff] %v12966_v11  ;;  %v4657_v21 = vadd.f32 %v12883_v0, %v4656_v43  ;;  %v3904_v54 = vsub.f32 %v16766_v52, %v3602_v40  ;;  %16767 = vst [vmem:[#allocation39_spill] sm:$0xff] %v12983_v45  ;;  %8303 = vpow2.f32 %v4220_v12  ;;  %v16770_v19 = vmax.f32 %v16768_v35, %v16769_v44  ;;  %v16771_v58 = vld [vmem:[#allocation163_spill] sm:$0xff]  ;;  %v12990_v15 = vpop.eup %8287  ;;  %v12996_v12 = vpop.f32.mrb[28].mxu1 }
 0x585   :  { %v3905_v53 = vsub.f32 %v16771_v58, %v3602_v40  ;;  %v4222_v1 = vmul.f32 1.442695, %v3902_v29  ;;  %16772 = vst [vmem:[#allocation162_spill] sm:$0xff] %v12990_v15  ;;  %v4224_v52 = vmul.f32 1.442695, %v3903_v17  ;;  %v12994_v26 = vadd.f32 %v12919_v8, %v2067_v50  ;;  %3781 = vmax.xlane.f32.xlu0 %v3780_v9  ;;  %v13002_v40 = vpop.f32.mrb[29].mxu1 }
 0x586   :  { %v3784_v62 = vmax.f32 %v16770_v19, %v12966_v11  ;;  %v4658_v43 = vadd.f32 %v12888_v32, %v4657_v21  ;;  %v4226_v0 = vmul.f32 1.442695, %v3904_v54  ;;  %v4661_v19 = vadd.f32 %v12900_v49, %v12895_v31  ;;  %v16776_v8 = vld [vmem:[#allocation161_spill] sm:$0xff]  ;;  %v16784_v49 = vld [vmem:[#allocation166_spill] sm:$0xff] }
 0x587   :  { %16773 = vst [vmem:[#allocation15_spill] sm:$0xff] %v12994_v26  ;;  %8305 = vpow2.f32 %v4222_v1  ;;  %v4228_v25 = vmul.f32 1.442695, %v3905_v53  ;;  %v13000_v58 = vadd.f32 %v3459_v6, %v2070_v14  ;;  %v13004_v29 = vpop.eup %8289  ;;  %v3906_v50 = vsub.f32 %v16776_v8, %v3607_v28  ;;  %v16777_v9 = vld [vmem:[#allocation45_spill] sm:$0xff]  ;;  %v2071_v1 = vld [vmem:[%s15541_s4 + $0x6d8] sm:$0xff]  ;;  %v16779_v14 = vld [vmem:[#allocation19_spill] sm:$0xff] }
 0x588   :  { %16775 = vst [vmem:[#allocation244_spill] sm:$0xff] %v13004_v29  ;;  %4659 = vadd.xlane.f32.xlu1 %v4658_v43  ;;  %8307 = vpow2.f32 %v4224_v52  ;;  %v3785_v17 = vmax.f32 %v3784_v62, %v12994_v26  ;;  %v3907_v21 = vsub.f32 %v16777_v9, %v3607_v28  ;;  %v13012_v54 = vpop.eup %8291  ;;  %v4662_v6 = vadd.f32 %v12908_v7, %v4661_v19  ;;  %v16780_v53 = vld [vmem:[#allocation21_spill] sm:$0xff]  ;;  %v2074_v8 = vld [vmem:[%s15541_s4 + $0x6f0] sm:$0xff]  ;;  %v3612_v9 = vpop.xlane.xlu1 %3611 }
 0x589   :  { %16774 = vst [vmem:[#allocation163_spill] sm:$0xff] %v13000_v58  ;;  %16778 = vst [vmem:[#allocation161_spill] sm:$0xff] %v13012_v54  ;;  %8309 = vpow2.f32 %v4226_v0  ;;  %v16781_v43 = vmax.f32 %v16779_v14, %v16780_v53  ;;  %v16782_v32 = vld [vmem:[#allocation165_spill] sm:$0xff]  ;;  %v13023_v31 = vpop.eup %8293  ;;  %v3909_v26 = vsub.f32 %v16784_v49, %v3607_v28  ;;  %v4230_v0 = vmul.f32 1.442695, %v3906_v50  ;;  %v13026_v19 = vpop.f32.mrb[30].mxu1 }
 0x58a   :  { %v3908_v62 = vsub.f32 %v16782_v32, %v3607_v28  ;;  %16783 = vst [vmem:[#allocation45_spill] sm:$0xff] %v13023_v31  ;;  %8311 = vpow2.f32 %v4228_v25  ;;  %v4232_v11 = vmul.f32 1.442695, %v3907_v21  ;;  %3786 = vmax.xlane.f32.xlu0 %v3785_v17  ;;  %v13028_v7 = vpop.eup %8295  ;;  %v4666_v53 = vadd.f32 %v12934_v30, %v12928_v46  ;;  %v13036_v14 = vpop.f32.mrb[31].mxu1  ;;  %v16789_v17 = vld [vmem:[#allocation164_spill] sm:$0xff]  ;;  %v16797_v46 = vld [vmem:[#allocation169_spill] sm:$0xff] }
 0x58b   :  { %v3789_v52 = vmax.f32 %v16781_v43, %v13000_v58  ;;  %16785 = vst [vmem:[#allocation165_spill] sm:$0xff] %v13028_v7  ;;  %v4663_v43 = vadd.f32 %v12921_v34, %v4662_v6  ;;  %v13032_v58 = vadd.f32 %v12942_v22, %v2071_v1  ;;  %v13038_v25 = vpop.eup %8297  ;;  %8313 = vpow2.f32 %v4230_v0  ;;  %v16791_v6 = vld [vmem:[#allocation51_spill] sm:$0xff]  ;;  %v2075_v0 = vld [vmem:[%s15541_s4 + $0x6f8] sm:$0xff] }
 0x58c   :  { %v4234_v32 = vmul.f32 1.442695, %v3908_v62  ;;  %16787 = vst [vmem:[#allocation245_spill] sm:$0xff] %v13038_v25  ;;  %v4236_v49 = vmul.f32 1.442695, %v3909_v26  ;;  %v13041_v28 = vadd.f32 %v12962_v63, %v2074_v8  ;;  %v3910_v50 = vsub.f32 %v16789_v17, %v3612_v9  ;;  %v13044_v21 = vpop.eup %8299  ;;  %v16793_v63 = vld [vmem:[#allocation23_spill] sm:$0xff] }
 0x58d   :  { %16786 = vst [vmem:[#allocation166_spill] sm:$0xff] %v13032_v58  ;;  %16790 = vst [vmem:[#allocation164_spill] sm:$0xff] %v13044_v21  ;;  %4664 = vadd.xlane.f32.xlu1 %v4663_v43  ;;  %8315 = vpow2.f32 %v4232_v11  ;;  %v3790_v22 = vmax.f32 %v3789_v52, %v13032_v58  ;;  %v4667_v1 = vadd.f32 %v12944_v38, %v4666_v53  ;;  %v13052_v26 = vpop.eup %8301  ;;  %v16794_v8 = vld [vmem:[#allocation25_spill] sm:$0xff]  ;;  %v16796_v43 = vld [vmem:[#allocation168_spill] sm:$0xff]  ;;  %v13063_v38 = vpop.f32.mrb[32].mxu1 }
 0x58e   :  { %16788 = vst [vmem:[#allocation246_spill] sm:$0xff] %v13041_v28  ;;  %v3911_v62 = vsub.f32 %v16791_v6, %v3612_v9  ;;  %16792 = vst [vmem:[#allocation51_spill] sm:$0xff] %v13052_v26  ;;  %8317 = vpow2.f32 %v4234_v32  ;;  %v16795_v17 = vmax.f32 %v16793_v63, %v16794_v8  ;;  %v3912_v11 = vsub.f32 %v16796_v43, %v3612_v9  ;;  %v2078_v53 = vld [vmem:[%s15541_s4 + $0x710] sm:$0xff]  ;;  %v3617_v6 = vpop.xlane.xlu0 %3616  ;;  %v13065_v30 = vpop.eup %8303 }
 0x58f   :  { %v3913_v52 = vsub.f32 %v16797_v46, %v3612_v9  ;;  %16798 = vst [vmem:[#allocation168_spill] sm:$0xff] %v13065_v30  ;;  %8319 = vpow2.f32 %v4236_v49  ;;  %v4668_v32 = vadd.f32 %v12954_v33, %v4667_v1  ;;  %v4238_v58 = vmul.f32 1.442695, %v3910_v50  ;;  %3791 = vmax.xlane.f32.xlu0 %v3790_v22  ;;  %v16802_v50 = vld [vmem:[#allocation167_spill] sm:$0xff]  ;;  %v16803_v22 = vld [vmem:[#allocation82_spill] sm:$0xff] }
 0x590   :  { %v3794_v34 = vmax.f32 %v16795_v17, %v13041_v28  ;;  %v4240_v44 = vmul.f32 1.442695, %v3911_v62  ;;  %v13068_v17 = vpop.f32.mrb[33].mxu1  ;;  %v4242_v43 = vmul.f32 1.442695, %v3912_v11  ;;  %v13071_v46 = vadd.f32 %v12973_v57, %v2075_v0  ;;  %v16805_v11 = vld [vmem:[#allocation172_spill] sm:$0xff] }
 0x591   :  { %v4244_v28 = vmul.f32 1.442695, %v3913_v52  ;;  %v4671_v9 = vadd.f32 %v12975_v20, %v12964_v61  ;;  %v13075_v8 = vpop.eup %8305  ;;  %4669 = vadd.xlane.f32.xlu1 %v4668_v32  ;;  %8321 = vpow2.f32 %v4238_v58  ;;  %v13078_v49 = vadd.f32 %v12996_v12, %v2078_v53  ;;  %v2079_v58 = vld [vmem:[%s15541_s4 + $0x718] sm:$0xff]  ;;  %v13092_v12 = vpop.f32.mrb[34].mxu1 }
 0x592   :  { %16799 = vst [vmem:[#allocation169_spill] sm:$0xff] %v13071_v46  ;;  %16800 = vst [vmem:[#allocation247_spill] sm:$0xff] %v13075_v8  ;;  %v3914_v1 = vsub.f32 %v16802_v50, %v3617_v6  ;;  %v3915_v62 = vsub.f32 %v16803_v22, %v3617_v6  ;;  %v13082_v33 = vpop.eup %8307  ;;  %8323 = vpow2.f32 %v4240_v44  ;;  %v3795_v57 = vmax.f32 %v3794_v34, %v13071_v46  ;;  %v13090_v32 = vpop.xlane.xlu0 %3626  ;;  %v16808_v50 = vld [vmem:[#allocation173_spill] sm:$0xff] }
 0x593   :  { %16801 = vst [vmem:[#allocation248_spill] sm:$0xff] %v13078_v49  ;;  %16804 = vst [vmem:[#allocation167_spill] sm:$0xff] %v13082_v33  ;;  %v4672_v0 = vadd.f32 %v12983_v45, %v4671_v9  ;;  %v3916_v52 = vsub.f32 %v16805_v11, %v3617_v6  ;;  %v13094_v53 = vpop.eup %8309  ;;  %8325 = vpow2.f32 %v4242_v43  ;;  %v16807_v44 = vmax.f32 %v12290_v27, %v12293_v60  ;;  %v2082_v11 = vld [vmem:[%s15541_s4 + $0x730] sm:$0xff]  ;;  %v3622_v45 = vpop.xlane.xlu1 %3621 }
 0x594   :  { %16806 = vst [vmem:[#allocation82_spill] sm:$0xff] %v13094_v53  ;;  %v3917_v9 = vsub.f32 %v16808_v50, %v3617_v6  ;;  %v4246_v22 = vmul.f32 1.442695, %v3914_v1  ;;  %v13104_v61 = vpop.f32.mrb[35].mxu1  ;;  %v13106_v20 = vpop.eup %8311  ;;  %8327 = vpow2.f32 %v4244_v28  ;;  %v4248_v46 = vmul.f32 1.442695, %v3915_v62  ;;  %3796 = vmax.xlane.f32.xlu0 %v3795_v57 }
 0x595   :  { %v3799_v34 = vmax.f32 %v16807_v44, %v13078_v49  ;;  %16809 = vst [vmem:[#allocation172_spill] sm:$0xff] %v13106_v20  ;;  %v4673_v43 = vadd.f32 %v12990_v15, %v4672_v0  ;;  %v4250_v63 = vmul.f32 1.442695, %v3916_v52  ;;  %v13110_v6 = vadd.f32 %v13002_v40, %v2079_v58  ;;  %v13114_v50 = vpop.eup %8313  ;;  %v16812_v28 = vld [vmem:[#allocation170_spill] sm:$0xff]  ;;  %v16813_v62 = vld [vmem:[#allocation171_spill] sm:$0xff]  ;;  %v2083_v57 = vld [vmem:[%s15541_s4 + $0x738] sm:$0xff] }
 0x596   :  { %8329 = vpow2.f32 %v4246_v22  ;;  %v4252_v44 = vmul.f32 1.442695, %v3917_v9  ;;  %v4676_v1 = vadd.f32 %v13012_v54, %v13004_v29  ;;  %16811 = vst [vmem:[#allocation249_spill] sm:$0xff] %v13114_v50  ;;  %v13117_v49 = vadd.f32 %v13026_v19, %v2082_v11  ;;  %v13124_v40 = vpop.f32.mrb[36].mxu1  ;;  %v13126_v58 = vpop.xlane.xlu0 %3636  ;;  %v16815_v22 = vld [vmem:[#allocation176_spill] sm:$0xff]  ;;  %v16818_v29 = vld [vmem:[#allocation177_spill] sm:$0xff] }
 0x597   :  { %16810 = vst [vmem:[#allocation173_spill] sm:$0xff] %v13110_v6  ;;  %4674 = vadd.xlane.f32.xlu1 %v4673_v43  ;;  %8331 = vpow2.f32 %v4248_v46  ;;  %v3918_v0 = vsub.f32 %v16812_v28, %v3622_v45  ;;  %v3919_v52 = vsub.f32 %v16813_v62, %v3622_v45  ;;  %v13128_v9 = vpop.eup %8315  ;;  %v3800_v46 = vmax.f32 %v3799_v34, %v13110_v6  ;;  %v2086_v43 = vld [vmem:[%s15541_s4 + $0x750] sm:$0xff]  ;;  %v13136_v28 = vpop.f32.mrb[37].mxu1 }
 0x598   :  { %16814 = vst [vmem:[#allocation170_spill] sm:$0xff] %v13128_v9  ;;  %8333 = vpow2.f32 %v4250_v63  ;;  %v4677_v19 = vadd.f32 %v13023_v31, %v4676_v1  ;;  %v3920_v11 = vsub.f32 %v16815_v22, %v3622_v45  ;;  %v13138_v62 = vpop.eup %8317  ;;  %v16817_v15 = vmax.f32 %v12306_v4, %v12309_v47 }
 0x599   :  { %16816 = vst [vmem:[#allocation171_spill] sm:$0xff] %v13138_v62  ;;  %8335 = vpow2.f32 %v4252_v44  ;;  %v3921_v34 = vsub.f32 %v16818_v29, %v3622_v45  ;;  %v4254_v54 = vmul.f32 1.442695, %v3918_v0  ;;  %v13145_v1 = vpop.eup %8319  ;;  %v4256_v31 = vmul.f32 1.442695, %v3919_v52  ;;  %3801 = vmax.xlane.f32.xlu0 %v3800_v46  ;;  %v13156_v45 = vpop.f32.mrb[38].mxu1 }
 0x59a   :  { %v3804_v63 = vmax.f32 %v16817_v15, %v13117_v49  ;;  %16819 = vst [vmem:[#allocation176_spill] sm:$0xff] %v13145_v1  ;;  %v4678_v22 = vadd.f32 %v13028_v7, %v4677_v19  ;;  %v4258_v6 = vmul.f32 1.442695, %v3920_v11  ;;  %v13149_v60 = vadd.f32 %v13036_v14, %v2083_v57  ;;  %v13158_v29 = vpop.xlane.xlu0 %3641  ;;  %v16823_v52 = vld [vmem:[#allocation174_spill] sm:$0xff]  ;;  %v16824_v57 = vld [vmem:[#allocation175_spill] sm:$0xff]  ;;  %v13170_v19 = vpop.f32.mrb[39].mxu1 }
 0x59b   :  { %8337 = vpow2.f32 %v4254_v54  ;;  %v4260_v44 = vmul.f32 1.442695, %v3921_v34  ;;  %v4681_v27 = vadd.f32 %v13044_v21, %v13038_v25  ;;  %v13154_v15 = vadd.f32 %v13063_v38, %v2086_v43  ;;  %v13160_v0 = vpop.eup %8321  ;;  %v2087_v38 = vld [vmem:[%s15541_s4 + $0x758] sm:$0xff] }
 0x59c   :  { %16820 = vst [vmem:[#allocation177_spill] sm:$0xff] %v13149_v60  ;;  %16822 = vst [vmem:[#allocation251_spill] sm:$0xff] %v13160_v0  ;;  %4679 = vadd.xlane.f32.xlu1 %v4678_v22  ;;  %8339 = vpow2.f32 %v4256_v31  ;;  %v3805_v14 = vmax.f32 %v3804_v63, %v13149_v60  ;;  %v3922_v54 = vsub.f32 %v16823_v52, %v13090_v32  ;;  %v13172_v11 = vpop.eup %8323  ;;  %v16827_v34 = vld [vmem:[#allocation180_spill] sm:$0xff]  ;;  %v2090_v52 = vld [vmem:[%s15541_s4 + $0x770] sm:$0xff] }
 0x59d   :  { %16821 = vst [vmem:[#allocation250_spill] sm:$0xff] %v13154_v15  ;;  %v3923_v46 = vsub.f32 %v16824_v57, %v13090_v32  ;;  %16825 = vst [vmem:[#allocation174_spill] sm:$0xff] %v13172_v11  ;;  %8341 = vpow2.f32 %v4258_v6  ;;  %v4682_v43 = vadd.f32 %v13052_v26, %v4681_v27  ;;  %v16826_v31 = vmax.f32 %v12327_v41, %v12344_v48  ;;  %v3632_v57 = vpop.xlane.xlu1 %3631  ;;  %v13184_v7 = vpop.eup %8325  ;;  %v16829_v6 = vld [vmem:[#allocation181_spill] sm:$0xff] }
 0x59e   :  { %v3924_v22 = vsub.f32 %v16827_v34, %v13090_v32  ;;  %16828 = vst [vmem:[#allocation175_spill] sm:$0xff] %v13184_v7  ;;  %8343 = vpow2.f32 %v4260_v44  ;;  %v3925_v25 = vsub.f32 %v16829_v6, %v13090_v32  ;;  %v4262_v27 = vmul.f32 1.442695, %v3922_v54  ;;  %3806 = vmax.xlane.f32.xlu0 %v3805_v14  ;;  %v13188_v21 = vpop.eup %8327  ;;  %v13196_v41 = vpop.f32.mrb[40].mxu1  ;;  %v16833_v54 = vld [vmem:[#allocation178_spill] sm:$0xff]  ;;  %v16835_v6 = vld [vmem:[#allocation179_spill] sm:$0xff] }
 0x59f   :  { %v3809_v63 = vmax.f32 %v16826_v31, %v13154_v15  ;;  %v4264_v26 = vmul.f32 1.442695, %v3923_v46  ;;  %16830 = vst [vmem:[#allocation180_spill] sm:$0xff] %v13188_v21  ;;  %v4683_v31 = vadd.f32 %v13065_v30, %v4682_v43  ;;  %v13192_v34 = vadd.f32 %v13068_v17, %v2087_v38  ;;  %v13198_v44 = vpop.xlane.xlu0 %3646  ;;  %v13206_v43 = vpop.f32.mrb[41].mxu1 }
 0x5a0   :  { %v4266_v15 = vmul.f32 1.442695, %v3924_v22  ;;  %v4686_v48 = vadd.f32 %v13082_v33, %v13075_v8  ;;  %v13200_v60 = vpop.eup %8329  ;;  %8345 = vpow2.f32 %v4262_v27  ;;  %v4268_v32 = vmul.f32 1.442695, %v3925_v25  ;;  %v2091_v25 = vld [vmem:[%s15541_s4 + $0x778] sm:$0xff]  ;;  %v13230_v33 = vpop.f32.mrb[42].mxu1 }
 0x5a1   :  { %16831 = vst [vmem:[#allocation181_spill] sm:$0xff] %v13200_v60  ;;  %v13203_v14 = vadd.f32 %v13092_v12, %v2090_v52  ;;  %v3926_v46 = vsub.f32 %v16833_v54, %v3632_v57  ;;  %v13208_v17 = vpop.eup %8331  ;;  %4684 = vadd.xlane.f32.xlu1 %v4683_v31  ;;  %8347 = vpow2.f32 %v4264_v26  ;;  %v3810_v38 = vmax.f32 %v3809_v63, %v13192_v34  ;;  %v16838_v31 = vld [vmem:[#allocation183_spill] sm:$0xff]  ;;  %v16839_v54 = vld [vmem:[#allocation184_spill] sm:$0xff] }
 0x5a2   :  { %16834 = vst [vmem:[#allocation178_spill] sm:$0xff] %v13208_v17  ;;  %v4687_v22 = vadd.f32 %v13094_v53, %v4686_v48  ;;  %v3927_v30 = vsub.f32 %v16835_v6, %v3632_v57  ;;  %v13216_v12 = vpop.eup %8333  ;;  %8349 = vpow2.f32 %v4266_v15  ;;  %v16837_v52 = vmax.f32 %v12347_v10, %v12350_v37  ;;  %v2094_v48 = vld [vmem:[%s15541_s4 + $0x790] sm:$0xff] }
 0x5a3   :  { %16832 = vst [vmem:[#allocation252_spill] sm:$0xff] %v13203_v14  ;;  %16836 = vst [vmem:[#allocation179_spill] sm:$0xff] %v13216_v12  ;;  %v3928_v26 = vsub.f32 %v16838_v31, %v3632_v57  ;;  %v3929_v63 = vsub.f32 %v16839_v54, %v3632_v57  ;;  %v13227_v6 = vpop.eup %8335  ;;  %8351 = vpow2.f32 %v4268_v32  ;;  %v4270_v8 = vmul.f32 1.442695, %v3926_v46  ;;  %3811 = vmax.xlane.f32.xlu0 %v3810_v38  ;;  %v13232_v37 = vpop.xlane.xlu0 %3651  ;;  %v16843_v46 = vld [vmem:[#allocation88_spill] sm:$0xff] }
 0x5a4   :  { %v3814_v27 = vmax.f32 %v16837_v52, %v13203_v14  ;;  %16840 = vst [vmem:[#allocation183_spill] sm:$0xff] %v13227_v6  ;;  %v4688_v53 = vadd.f32 %v13106_v20, %v4687_v22  ;;  %v4272_v15 = vmul.f32 1.442695, %v3927_v30  ;;  %v13235_v57 = vadd.f32 %v13104_v61, %v2091_v25  ;;  %v13239_v14 = vpop.f32.mrb[43].mxu1  ;;  %v16844_v22 = vld [vmem:[#allocation182_spill] sm:$0xff] }
 0x5a5   :  { %v4274_v52 = vmul.f32 1.442695, %v3928_v26  ;;  %v4276_v31 = vmul.f32 1.442695, %v3929_v63  ;;  %v4691_v54 = vadd.f32 %v13128_v9, %v13114_v50  ;;  %v13241_v32 = vpop.eup %8337  ;;  %8353 = vpow2.f32 %v4270_v8  ;;  %v16846_v20 = vld [vmem:[#allocation186_spill] sm:$0xff]  ;;  %v2095_v8 = vld [vmem:[%s15541_s4 + $0x798] sm:$0xff] }
 0x5a6   :  { %16841 = vst [vmem:[#allocation184_spill] sm:$0xff] %v13241_v32  ;;  %4689 = vadd.xlane.f32.xlu1 %v4688_v53  ;;  %v13244_v30 = vadd.f32 %v13124_v40, %v2094_v48  ;;  %v3930_v38 = vsub.f32 %v16843_v46, %v13126_v58  ;;  %v3931_v26 = vsub.f32 %v16844_v22, %v13126_v58  ;;  %v13250_v61 = vpop.eup %8339  ;;  %8355 = vpow2.f32 %v4272_v15  ;;  %v16849_v15 = vld [vmem:[#allocation187_spill] sm:$0xff] }
 0x5a7   :  { %16845 = vst [vmem:[#allocation88_spill] sm:$0xff] %v13250_v61  ;;  %v3815_v25 = vmax.f32 %v3814_v27, %v13235_v57  ;;  %v4692_v63 = vadd.f32 %v13138_v62, %v4691_v54  ;;  %v3932_v53 = vsub.f32 %v16846_v20, %v13126_v58  ;;  %v13259_v40 = vpop.eup %8341  ;;  %8357 = vpow2.f32 %v4274_v52  ;;  %v2098_v20 = vld [vmem:[%s15541_s4 + $0x7b0] sm:$0xff]  ;;  %v13270_v54 = vpop.xlane.xlu0 %3656 }
 0x5a8   :  { %16842 = vst [vmem:[#allocation253_spill] sm:$0xff] %v13244_v30  ;;  %16847 = vst [vmem:[#allocation182_spill] sm:$0xff] %v13259_v40  ;;  %v16848_v48 = vmax.f32 %v12364_v42, %v12367_v39  ;;  %v3933_v27 = vsub.f32 %v16849_v15, %v13126_v58  ;;  %v4278_v22 = vmul.f32 1.442695, %v3930_v38  ;;  %v13272_v62 = vpop.eup %8343  ;;  %8359 = vpow2.f32 %v4276_v31  ;;  %v16852_v31 = vld [vmem:[#allocation89_spill] sm:$0xff] }
 0x5a9   :  { %16850 = vst [vmem:[#allocation186_spill] sm:$0xff] %v13272_v62  ;;  %v4693_v52 = vadd.f32 %v13145_v1, %v4692_v63  ;;  %v4280_v50 = vmul.f32 1.442695, %v3931_v26  ;;  %v4282_v9 = vmul.f32 1.442695, %v3932_v53  ;;  %3816 = vmax.xlane.f32.xlu0 %v3815_v25  ;;  %v4696_v58 = vadd.f32 %v13172_v11, %v13160_v0  ;;  %v16853_v25 = vld [vmem:[#allocation185_spill] sm:$0xff] }
 0x5aa   :  { %v3819_v46 = vmax.f32 %v16848_v48, %v13244_v30  ;;  %8361 = vpow2.f32 %v4278_v22  ;;  %v4284_v48 = vmul.f32 1.442695, %v3933_v27  ;;  %v13276_v30 = vadd.f32 %v13136_v28, %v2095_v8  ;;  %v13280_v38 = vpop.eup %8345  ;;  %v2099_v28 = vld [vmem:[%s15541_s4 + $0x7b8] sm:$0xff]  ;;  %v2102_v22 = vld [vmem:[%s15541_s4 + $0x7d0] sm:$0xff] }
 0x5ab   :  { %16851 = vst [vmem:[#allocation187_spill] sm:$0xff] %v13280_v38  ;;  %4694 = vadd.xlane.f32.xlu1 %v4693_v52  ;;  %8363 = vpow2.f32 %v4280_v50  ;;  %v13283_v15 = vadd.f32 %v13156_v45, %v2098_v20  ;;  %v3934_v26 = vsub.f32 %v16852_v31, %v13158_v29  ;;  %v3935_v63 = vsub.f32 %v16853_v25, %v13158_v29  ;;  %v13292_v53 = vpop.eup %8347  ;;  %v16854_v45 = vld [vmem:[#allocation188_spill] sm:$0xff]  ;;  %v13301_v20 = vpop.xlane.xlu0 %3661 }
 0x5ac   :  { %8365 = vpow2.f32 %v4282_v9  ;;  %v3820_v8 = vmax.f32 %v3819_v46, %v13276_v30  ;;  %v4697_v50 = vadd.f32 %v13184_v7, %v4696_v58  ;;  %v3936_v27 = vsub.f32 %v16854_v45, %v13158_v29  ;;  %v13303_v52 = vpop.eup %8349  ;;  %v16857_v46 = vld [vmem:[#allocation189_spill] sm:$0xff] }
 0x5ad   :  { %16855 = vst [vmem:[#allocation89_spill] sm:$0xff] %v13303_v52  ;;  %8367 = vpow2.f32 %v4284_v48  ;;  %v16856_v9 = vmax.f32 %v12370_v18, %v12383_v5  ;;  %v3937_v58 = vsub.f32 %v16857_v46, %v13158_v29  ;;  %v4286_v25 = vmul.f32 1.442695, %v3934_v26  ;;  %v13311_v7 = vpop.eup %8351  ;;  %v16862_v46 = vld [vmem:[#allocation190_spill] sm:$0xff] }
 0x5ae   :  { %16858 = vst [vmem:[#allocation185_spill] sm:$0xff] %v13311_v7  ;;  %v4698_v45 = vadd.f32 %v13188_v21, %v4697_v50  ;;  %v4288_v1 = vmul.f32 1.442695, %v3935_v63  ;;  %v4290_v0 = vmul.f32 1.442695, %v3936_v27  ;;  %v13315_v11 = vadd.f32 %v13170_v19, %v2099_v28  ;;  %3821 = vmax.xlane.f32.xlu0 %v3820_v8  ;;  %v16859_v63 = vld [vmem:[#allocation90_spill] sm:$0xff] }
 0x5af   :  { %v3824_v31 = vmax.f32 %v16856_v9, %v13283_v15  ;;  %8369 = vpow2.f32 %v4286_v25  ;;  %v4292_v48 = vmul.f32 1.442695, %v3937_v58  ;;  %v4701_v5 = vadd.f32 %v13208_v17, %v13200_v60  ;;  %v13322_v29 = vpop.eup %8353  ;;  %v16860_v19 = vld [vmem:[#allocation91_spill] sm:$0xff]  ;;  %v2103_v8 = vld [vmem:[%s15541_s4 + $0x7d8] sm:$0xff]  ;;  %v13332_v27 = vpop.xlane.xlu0 %3666 }
 0x5b0   :  { %v13320_v9 = vadd.f32 %v13196_v41, %v2102_v22  ;;  %4699 = vadd.xlane.f32.xlu1 %v4698_v45  ;;  %8371 = vpow2.f32 %v4288_v1  ;;  %v3938_v50 = vsub.f32 %v16859_v63, %v13198_v44  ;;  %v3939_v28 = vsub.f32 %v16860_v19, %v13198_v44  ;;  %v13334_v41 = vpop.eup %8355  ;;  %v2106_v25 = vld [vmem:[%s15541_s4 + $0x7f0] sm:$0xff] }
 0x5b1   :  { %v3825_v26 = vmax.f32 %v3824_v31, %v13315_v11  ;;  %8373 = vpow2.f32 %v4290_v0  ;;  %v4702_v22 = vadd.f32 %v13216_v12, %v4701_v5  ;;  %v16861_v1 = vmax.f32 %v12386_v51, %v12389_v56  ;;  %v13346_v45 = vpop.eup %8357  ;;  %v16864_v63 = vld [vmem:[#allocation191_spill] sm:$0xff] }
 0x5b2   :  { %v3940_v58 = vsub.f32 %v16862_v46, %v13198_v44  ;;  %16863 = vst [vmem:[#allocation188_spill] sm:$0xff] %v13346_v45  ;;  %8375 = vpow2.f32 %v4292_v48  ;;  %v3941_v0 = vsub.f32 %v16864_v63, %v13198_v44  ;;  %v4294_v19 = vmul.f32 1.442695, %v3938_v50  ;;  %v13350_v12 = vpop.eup %8359 }
 0x5b3   :  { %v3829_v31 = vmax.f32 %v16861_v1, %v13320_v9  ;;  %v4296_v5 = vmul.f32 1.442695, %v3939_v28  ;;  %3826 = vmax.xlane.f32.xlu0 %v3825_v26  ;;  %16865 = vst [vmem:[#allocation189_spill] sm:$0xff] %v13350_v12  ;;  %v4703_v1 = vadd.f32 %v13227_v6, %v4702_v22  ;;  %v13354_v46 = vadd.f32 %v13206_v43, %v2103_v8  ;;  %v16868_v26 = vld [vmem:[#allocation92_spill] sm:$0xff]  ;;  %v13365_v28 = vpop.xlane.xlu0 %3671 }
 0x5b4   :  { %v4298_v21 = vmul.f32 1.442695, %v3940_v58  ;;  %v4706_v60 = vadd.f32 %v13250_v61, %v13241_v32  ;;  %v13358_v17 = vpop.eup %8361  ;;  %8377 = vpow2.f32 %v4294_v19  ;;  %v4300_v48 = vmul.f32 1.442695, %v3941_v0  ;;  %v16869_v58 = vld [vmem:[#allocation93_spill] sm:$0xff] }
 0x5b5   :  { %16866 = vst [vmem:[#allocation90_spill] sm:$0xff] %v13358_v17  ;;  %v13361_v44 = vadd.f32 %v13230_v33, %v2106_v25  ;;  %v3942_v50 = vsub.f32 %v16868_v26, %v13232_v37  ;;  %v13367_v22 = vpop.eup %8363  ;;  %4704 = vadd.xlane.f32.xlu1 %v4703_v1  ;;  %8379 = vpow2.f32 %v4296_v5  ;;  %v3830_v43 = vmax.f32 %v3829_v31, %v13354_v46  ;;  %v2107_v33 = vld [vmem:[%s15541_s4 + $0x7f8] sm:$0xff] }
 0x5b6   :  { %v4707_v8 = vadd.f32 %v13259_v40, %v4706_v60  ;;  %v3943_v63 = vsub.f32 %v16869_v58, %v13232_v37  ;;  %v13376_v25 = vpop.eup %8365  ;;  %8381 = vpow2.f32 %v4298_v21  ;;  %v16871_v0 = vmax.f32 %v12411_v23, %v12414_v55  ;;  %v16872_v5 = vld [vmem:[#allocation192_spill] sm:$0xff]  ;;  %v16873_v60 = vld [vmem:[#allocation193_spill] sm:$0xff] }
 0x5b7   :  { %16867 = vst [vmem:[#allocation91_spill] sm:$0xff] %v13361_v44  ;;  %16870 = vst [vmem:[#allocation190_spill] sm:$0xff] %v13376_v25  ;;  %v3944_v31 = vsub.f32 %v16872_v5, %v13232_v37  ;;  %v3945_v1 = vsub.f32 %v16873_v60, %v13232_v37  ;;  %v13386_v26 = vpop.eup %8367  ;;  %8383 = vpow2.f32 %v4300_v48  ;;  %v4302_v40 = vmul.f32 1.442695, %v3942_v50  ;;  %3831 = vmax.xlane.f32.xlu0 %v3830_v43  ;;  %v13394_v5 = vpop.xlane.xlu0 %3676  ;;  %v16876_v37 = vld [vmem:[#allocation94_spill] sm:$0xff]  ;;  %v16877_v50 = vld [vmem:[#allocation95_spill] sm:$0xff] }
 0x5b8   :  { %v3834_v19 = vmax.f32 %v16871_v0, %v13361_v44  ;;  %16874 = vst [vmem:[#allocation191_spill] sm:$0xff] %v13386_v26  ;;  %v4708_v58 = vadd.f32 %v13272_v62, %v4707_v8  ;;  %v4304_v6 = vmul.f32 1.442695, %v3943_v63  ;;  %v13390_v61 = vadd.f32 %v13239_v14, %v2107_v33  ;;  %v16878_v8 = vld [vmem:[#allocation194_spill] sm:$0xff]  ;;  %v16880_v60 = vld [vmem:[#allocation195_spill] sm:$0xff] }
 0x5b9   :  { %v4306_v21 = vmul.f32 1.442695, %v3944_v31  ;;  %v4308_v32 = vmul.f32 1.442695, %v3945_v1  ;;  %v4711_v0 = vadd.f32 %v13292_v53, %v13280_v38  ;;  %v13396_v44 = vpop.eup %8369  ;;  %8385 = vpow2.f32 %v4302_v40 }
 0x5ba   :  { %16875 = vst [vmem:[#allocation92_spill] sm:$0xff] %v13396_v44  ;;  %4709 = vadd.xlane.f32.xlu1 %v4708_v58  ;;  %v3946_v48 = vsub.f32 %v16876_v37, %v13270_v54  ;;  %v3947_v43 = vsub.f32 %v16877_v50, %v13270_v54  ;;  %v3948_v63 = vsub.f32 %v16878_v8, %v13270_v54  ;;  %v13404_v14 = vpop.eup %8371  ;;  %8387 = vpow2.f32 %v4304_v6 }
 0x5bb   :  { %16879 = vst [vmem:[#allocation93_spill] sm:$0xff] %v13404_v14  ;;  %v3835_v33 = vmax.f32 %v3834_v19, %v13390_v61  ;;  %v4712_v31 = vadd.f32 %v13303_v52, %v4711_v0  ;;  %v3949_v1 = vsub.f32 %v16880_v60, %v13270_v54  ;;  %v13410_v40 = vpop.eup %8373  ;;  %8389 = vpow2.f32 %v4306_v21  ;;  %v13417_v19 = vpop.xlane.xlu0 %3681  ;;  %v16883_v54 = vld [vmem:[#allocation96_spill] sm:$0xff]  ;;  %v16884_v21 = vld [vmem:[#allocation97_spill] sm:$0xff] }
 0x5bc   :  { %16881 = vst [vmem:[#allocation192_spill] sm:$0xff] %v13410_v40  ;;  %v4310_v58 = vmul.f32 1.442695, %v3946_v48  ;;  %v4312_v37 = vmul.f32 1.442695, %v3947_v43  ;;  %v13412_v50 = vpop.eup %8375  ;;  %8391 = vpow2.f32 %v4308_v32  ;;  %v4716_v6 = vadd.f32 %v13334_v41, %v13322_v29  ;;  %v16885_v43 = vld [vmem:[#allocation196_spill] sm:$0xff] }
 0x5bd   :  { %v4314_v62 = vmul.f32 1.442695, %v3948_v63  ;;  %16882 = vst [vmem:[#allocation193_spill] sm:$0xff] %v13412_v50  ;;  %v4713_v8 = vadd.f32 %v13311_v7, %v4712_v31  ;;  %v4316_v38 = vmul.f32 1.442695, %v3949_v1  ;;  %3836 = vmax.xlane.f32.xlu0 %v3835_v33  ;;  %v3950_v0 = vsub.f32 %v16883_v54, %v13301_v20  ;;  %v16887_v33 = vld [vmem:[#allocation197_spill] sm:$0xff] }
 0x5be   :  { %8393 = vpow2.f32 %v4310_v58  ;;  %v3951_v48 = vsub.f32 %v16884_v21, %v13301_v20  ;;  %v3952_v63 = vsub.f32 %v16885_v43, %v13301_v20  ;;  %v13425_v32 = vpop.eup %8377  ;;  %v4717_v31 = vadd.f32 %v13346_v45, %v4716_v6 }
 0x5bf   :  { %16886 = vst [vmem:[#allocation94_spill] sm:$0xff] %v13425_v32  ;;  %4714 = vadd.xlane.f32.xlu1 %v4713_v8  ;;  %8395 = vpow2.f32 %v4312_v37  ;;  %v3953_v60 = vsub.f32 %v16887_v33, %v13301_v20  ;;  %v4721_v1 = vadd.f32 %v13367_v22, %v13358_v17  ;;  %v13432_v58 = vpop.eup %8379  ;;  %v4318_v54 = vmul.f32 1.442695, %v3950_v0  ;;  %v13438_v43 = vpop.xlane.xlu0 %3686  ;;  %v16891_v33 = vld [vmem:[#allocation98_spill] sm:$0xff] }
 0x5c0   :  { %16888 = vst [vmem:[#allocation95_spill] sm:$0xff] %v13432_v58  ;;  %8397 = vpow2.f32 %v4314_v62  ;;  %v4320_v21 = vmul.f32 1.442695, %v3951_v48  ;;  %v4322_v52 = vmul.f32 1.442695, %v3952_v63  ;;  %v13434_v7 = vpop.eup %8381  ;;  %v4718_v8 = vadd.f32 %v13350_v12, %v4717_v31  ;;  %v16892_v62 = vld [vmem:[#allocation99_spill] sm:$0xff] }
 0x5c1   :  { %16889 = vst [vmem:[#allocation194_spill] sm:$0xff] %v13434_v7  ;;  %8399 = vpow2.f32 %v4316_v38  ;;  %v4324_v37 = vmul.f32 1.442695, %v3953_v60  ;;  %v4722_v6 = vadd.f32 %v13376_v25, %v4721_v1  ;;  %v13440_v20 = vpop.eup %8383  ;;  %v3954_v45 = vsub.f32 %v16891_v33, %v13332_v27  ;;  %v16893_v48 = vld [vmem:[#allocation198_spill] sm:$0xff]  ;;  %v16894_v31 = vld [vmem:[#allocation199_spill] sm:$0xff] }
 0x5c2   :  { %16890 = vst [vmem:[#allocation195_spill] sm:$0xff] %v13440_v20  ;;  %8401 = vpow2.f32 %v4318_v54  ;;  %v3955_v0 = vsub.f32 %v16892_v62, %v13332_v27  ;;  %v3956_v63 = vsub.f32 %v16893_v48, %v13332_v27  ;;  %v3957_v60 = vsub.f32 %v16894_v31, %v13332_v27  ;;  %v16898_v31 = vld [vmem:[#allocation101_spill] sm:$0xff] }
 0x5c3   :  { %4719 = vadd.xlane.f32.xlu1 %v4718_v8  ;;  %8403 = vpow2.f32 %v4320_v21  ;;  %v4723_v38 = vadd.f32 %v13386_v26, %v4722_v6  ;;  %v4726_v1 = vadd.f32 %v13404_v14, %v13396_v44  ;;  %v13453_v54 = vpop.eup %8385  ;;  %v4326_v33 = vmul.f32 1.442695, %v3954_v45  ;;  %v16896_v8 = vld [vmem:[#allocation100_spill] sm:$0xff]  ;;  %v13460_v26 = vpop.xlane.xlu0 %3691 }
 0x5c4   :  { %16895 = vst [vmem:[#allocation96_spill] sm:$0xff] %v13453_v54  ;;  %8405 = vpow2.f32 %v4322_v52  ;;  %v4328_v25 = vmul.f32 1.442695, %v3955_v0  ;;  %v4330_v12 = vmul.f32 1.442695, %v3956_v63  ;;  %v13455_v62 = vpop.eup %8387  ;;  %v3958_v6 = vsub.f32 %v16896_v8, %v13365_v28  ;;  %v16899_v45 = vld [vmem:[#allocation200_spill] sm:$0xff] }
 0x5c5   :  { %8407 = vpow2.f32 %v4324_v37  ;;  %v4332_v48 = vmul.f32 1.442695, %v3957_v60  ;;  %v4727_v21 = vadd.f32 %v13410_v40, %v4726_v1  ;;  %v13462_v27 = vpop.eup %8389  ;;  %v3959_v52 = vsub.f32 %v16898_v31, %v13365_v28  ;;  %v16900_v63 = vld [vmem:[#allocation201_spill] sm:$0xff] }
 0x5c6   :  { %16897 = vst [vmem:[#allocation97_spill] sm:$0xff] %v13462_v27  ;;  %8409 = vpow2.f32 %v4326_v33  ;;  %v3960_v0 = vsub.f32 %v16899_v45, %v13365_v28  ;;  %v3961_v37 = vsub.f32 %v16900_v63, %v13365_v28  ;;  %v13470_v60 = vpop.eup %8391  ;;  %v4334_v8 = vmul.f32 1.442695, %v3958_v6 }
 0x5c7   :  { %16901 = vst [vmem:[#allocation196_spill] sm:$0xff] %v13470_v60  ;;  %4724 = vadd.xlane.f32.xlu1 %v4723_v38  ;;  %8411 = vpow2.f32 %v4328_v25  ;;  %v4728_v1 = vadd.f32 %v13412_v50, %v4727_v21  ;;  %v4731_v40 = vadd.f32 %v13432_v58, %v13425_v32  ;;  %v4336_v31 = vmul.f32 1.442695, %v3959_v52  ;;  %v16904_v38 = vld [vmem:[#allocation102_spill] sm:$0xff]  ;;  %v16905_v21 = vld [vmem:[#allocation103_spill] sm:$0xff]  ;;  %v13484_v63 = vpop.xlane.xlu0 %3696 }
 0x5c8   :  { %v13475_v33 = vpop.eup %8393  ;;  %8413 = vpow2.f32 %v4330_v12  ;;  %v4338_v44 = vmul.f32 1.442695, %v3960_v0  ;;  %v4340_v14 = vmul.f32 1.442695, %v3961_v37  ;;  %v3962_v25 = vsub.f32 %v16904_v38, %v13394_v5  ;;  %v16907_v12 = vld [vmem:[#allocation203_spill] sm:$0xff]  ;;  %v16908_v0 = vld [vmem:[#allocation204_spill] sm:$0xff] }
 0x5c9   :  { %16902 = vst [vmem:[#allocation197_spill] sm:$0xff] %v13475_v33  ;;  %v13477_v45 = vpop.eup %8395  ;;  %8415 = vpow2.f32 %v4332_v48  ;;  %v4732_v28 = vadd.f32 %v13434_v7, %v4731_v40  ;;  %v3963_v6 = vsub.f32 %v16905_v21, %v13394_v5  ;;  %v3964_v52 = vsub.f32 %v16907_v12, %v13394_v5 }
 0x5ca   :  { %16903 = vst [vmem:[#allocation98_spill] sm:$0xff] %v13477_v45  ;;  %v13486_v50 = vpop.eup %8397  ;;  %8417 = vpow2.f32 %v4334_v8  ;;  %v3965_v37 = vsub.f32 %v16908_v0, %v13394_v5  ;;  %v4736_v40 = vadd.f32 %v13455_v62, %v13453_v54  ;;  %v4342_v21 = vmul.f32 1.442695, %v3962_v25  ;;  %v16910_v5 = vld [vmem:[#allocation202_spill] sm:$0xff] }
 0x5cb   :  { %16906 = vst [vmem:[#allocation99_spill] sm:$0xff] %v13486_v50  ;;  %v13494_v48 = vpop.eup %8399  ;;  %4729 = vadd.xlane.f32.xlu1 %v4728_v1  ;;  %8419 = vpow2.f32 %v4336_v31  ;;  %v4733_v38 = vadd.f32 %v13440_v20, %v4732_v28  ;;  %v4344_v7 = vmul.f32 1.442695, %v3963_v6  ;;  %v4346_v8 = vmul.f32 1.442695, %v3964_v52  ;;  %v16911_v1 = vld [vmem:[#allocation108_spill] sm:$0xff]  ;;  %v13508_v6 = vpop.xlane.xlu0 %3701 }
 0x5cc   :  { %16909 = vst [vmem:[#allocation198_spill] sm:$0xff] %v13494_v48  ;;  %v13497_v32 = vpop.eup %8401  ;;  %8421 = vpow2.f32 %v4338_v44  ;;  %v4348_v58 = vmul.f32 1.442695, %v3965_v37  ;;  %v4737_v12 = vadd.f32 %v13462_v27, %v4736_v40  ;;  %v3966_v0 = vsub.f32 %v16910_v5, %v13417_v19  ;;  %v16912_v28 = vld [vmem:[#allocation206_spill] sm:$0xff]  ;;  %v16914_v52 = vld [vmem:[#allocation207_spill] sm:$0xff] }
 0x5cd   :  { %v13500_v17 = vpop.eup %8403  ;;  %8423 = vpow2.f32 %v4340_v14  ;;  %v3967_v31 = vsub.f32 %v16911_v1, %v13417_v19  ;;  %v3968_v25 = vsub.f32 %v16912_v28, %v13417_v19  ;;  %v3969_v37 = vsub.f32 %v16914_v52, %v13417_v19  ;;  %v16919_v52 = vld [vmem:[#allocation205_spill] sm:$0xff] }
 0x5ce   :  { %v13510_v20 = vpop.eup %8405  ;;  %8425 = vpow2.f32 %v4342_v21  ;;  %v4738_v44 = vadd.f32 %v13470_v60, %v4737_v12  ;;  %v4741_v14 = vadd.f32 %v13477_v45, %v13475_v33  ;;  %v4350_v5 = vmul.f32 1.442695, %v3966_v0  ;;  %v16917_v12 = vld [vmem:[#allocation110_spill] sm:$0xff]  ;;  %v16921_v0 = vld [vmem:[#allocation211_spill] sm:$0xff] }
 0x5cf   :  { %16913 = vst [vmem:[#allocation199_spill] sm:$0xff] %v13510_v20  ;;  %v13517_v40 = vpop.eup %8407  ;;  %4734 = vadd.xlane.f32.xlu1 %v4733_v38  ;;  %8427 = vpow2.f32 %v4344_v7  ;;  %v4352_v1 = vmul.f32 1.442695, %v3967_v31  ;;  %v4354_v28 = vmul.f32 1.442695, %v3968_v25  ;;  %v3970_v60 = vsub.f32 %v16917_v12, %v13438_v43  ;;  %v16920_v7 = vld [vmem:[#allocation210_spill] sm:$0xff]  ;;  %v13532_v25 = vpop.xlane.xlu0 %3706 }
 0x5d0   :  { %16915 = vst [vmem:[#allocation100_spill] sm:$0xff] %v13517_v40  ;;  %v13519_v27 = vpop.eup %8409  ;;  %8429 = vpow2.f32 %v4346_v8  ;;  %v4356_v54 = vmul.f32 1.442695, %v3969_v37  ;;  %v4742_v21 = vadd.f32 %v13486_v50, %v4741_v14  ;;  %v3971_v33 = vsub.f32 %v16919_v52, %v13438_v43 }
 0x5d1   :  { %16916 = vst [vmem:[#allocation101_spill] sm:$0xff] %v13519_v27  ;;  %v13524_v19 = vpop.eup %8411  ;;  %8431 = vpow2.f32 %v4348_v58  ;;  %v3972_v38 = vsub.f32 %v16920_v7, %v13438_v43  ;;  %v3973_v31 = vsub.f32 %v16921_v0, %v13438_v43  ;;  %v4358_v14 = vmul.f32 1.442695, %v3970_v60  ;;  %v16925_v60 = vld [vmem:[#allocation209_spill] sm:$0xff] }
 0x5d2   :  { %16918 = vst [vmem:[#allocation200_spill] sm:$0xff] %v13524_v19  ;;  %v13534_v8 = vpop.eup %8413  ;;  %8433 = vpow2.f32 %v4350_v5  ;;  %v4743_v37 = vadd.f32 %v13494_v48, %v4742_v21  ;;  %v4746_v58 = vadd.f32 %v13500_v17, %v13497_v32  ;;  %v4360_v52 = vmul.f32 1.442695, %v3971_v33  ;;  %v16924_v5 = vld [vmem:[#allocation208_spill] sm:$0xff] }
 0x5d3   :  { %16922 = vst [vmem:[#allocation201_spill] sm:$0xff] %v13534_v8  ;;  %v13539_v12 = vpop.eup %8415  ;;  %4739 = vadd.xlane.f32.xlu1 %v4738_v44  ;;  %8435 = vpow2.f32 %v4352_v1  ;;  %v4362_v7 = vmul.f32 1.442695, %v3972_v38  ;;  %v4364_v50 = vmul.f32 1.442695, %v3973_v31  ;;  %v3974_v0 = vsub.f32 %v16924_v5, %v13460_v26  ;;  %v16926_v44 = vld [vmem:[#allocation212_spill] sm:$0xff]  ;;  %v13556_v38 = vpop.xlane.xlu0 %3711 }
 0x5d4   :  { %16923 = vst [vmem:[#allocation102_spill] sm:$0xff] %v13539_v12  ;;  %v13541_v45 = vpop.eup %8417  ;;  %8437 = vpow2.f32 %v4354_v28  ;;  %v4747_v43 = vadd.f32 %v13510_v20, %v4746_v58  ;;  %v3975_v21 = vsub.f32 %v16925_v60, %v13460_v26  ;;  %v3976_v1 = vsub.f32 %v16926_v44, %v13460_v26 }
 0x5d5   :  { %v13548_v48 = vpop.eup %8419  ;;  %8439 = vpow2.f32 %v4356_v54  ;;  %v3977_v33 = vsub.f32 %v12358_v2, %v13460_v26  ;;  %v4751_v28 = vadd.f32 %v13524_v19, %v13519_v27  ;;  %v4366_v5 = vmul.f32 1.442695, %v3974_v0  ;;  %v16930_v26 = vld [vmem:[#allocation31_spill] sm:$0xff] }
 0x5d6   :  { %v13558_v31 = vpop.eup %8421  ;;  %8441 = vpow2.f32 %v4358_v14  ;;  %v4748_v58 = vadd.f32 %v13517_v40, %v4747_v43  ;;  %v4368_v54 = vmul.f32 1.442695, %v3975_v21  ;;  %v4370_v44 = vmul.f32 1.442695, %v3976_v1  ;;  %v16931_v19 = vld [vmem:[#allocation35_spill] sm:$0xff]  ;;  %v16932_v43 = vld [vmem:[#allocation81_spill] sm:$0xff] }
 0x5d7   :  { %16927 = vst [vmem:[#allocation103_spill] sm:$0xff] %v13558_v31  ;;  %v13561_v60 = vpop.eup %8423  ;;  %4744 = vadd.xlane.f32.xlu1 %v4743_v37  ;;  %8443 = vpow2.f32 %v4360_v52  ;;  %v4752_v20 = vadd.f32 %v13534_v8, %v4751_v28  ;;  %v3978_v27 = vsub.f32 %v16930_v26, %v13484_v63  ;;  %v3979_v14 = vsub.f32 %v16931_v19, %v13484_v63  ;;  %v13581_v19 = vpop.xlane.xlu0 %3716 }
 0x5d8   :  { %16928 = vst [vmem:[#allocation203_spill] sm:$0xff] %v13561_v60  ;;  %v13564_v2 = vpop.eup %8425  ;;  %8445 = vpow2.f32 %v4362_v7  ;;  %v3980_v0 = vsub.f32 %v16932_v43, %v13484_v63  ;;  %v4372_v37 = vmul.f32 1.442695, %v3977_v33  ;;  %v3981_v52 = vsub.f32 %v12416_v13, %v13484_v63  ;;  %v16936_v13 = vld [vmem:[#allocation49_spill] sm:$0xff] }
 0x5d9   :  { %16929 = vst [vmem:[#allocation204_spill] sm:$0xff] %v13564_v2  ;;  %v13572_v40 = vpop.eup %8427  ;;  %8447 = vpow2.f32 %v4364_v50  ;;  %v4756_v21 = vadd.f32 %v13548_v48, %v13541_v45  ;;  %v4753_v1 = vadd.f32 %v13539_v12, %v4752_v20  ;;  %v4374_v28 = vmul.f32 1.442695, %v3978_v27 }
 0x5da   :  { %16933 = vst [vmem:[#allocation202_spill] sm:$0xff] %v13572_v40  ;;  %v13578_v7 = vpop.eup %8429  ;;  %8449 = vpow2.f32 %v4366_v5  ;;  %v4376_v50 = vmul.f32 1.442695, %v3979_v14  ;;  %v3982_v63 = vsub.f32 %v16936_v13, %v13508_v6  ;;  %v4378_v8 = vmul.f32 1.442695, %v3980_v0  ;;  %v16938_v5 = vld [vmem:[#allocation53_spill] sm:$0xff] }
 0x5db   :  { %16934 = vst [vmem:[#allocation108_spill] sm:$0xff] %v13578_v7  ;;  %v13583_v26 = vpop.eup %8431  ;;  %4749 = vadd.xlane.f32.xlu1 %v4748_v58  ;;  %8451 = vpow2.f32 %v4368_v54  ;;  %v4757_v33 = vadd.f32 %v13558_v31, %v4756_v21  ;;  %v3983_v20 = vsub.f32 %v16938_v5, %v13508_v6  ;;  %v3984_v27 = vsub.f32 %v12470_v3, %v13508_v6  ;;  %v13603_v5 = vpop.xlane.xlu0 %3721 }
 0x5dc   :  { %16935 = vst [vmem:[#allocation206_spill] sm:$0xff] %v13583_v26  ;;  %v13588_v43 = vpop.eup %8433  ;;  %8453 = vpow2.f32 %v4370_v44  ;;  %v4380_v58 = vmul.f32 1.442695, %v3981_v52  ;;  %v3985_v54 = vsub.f32 %v12480_v16, %v13508_v6  ;;  %v4761_v14 = vadd.f32 %v13572_v40, %v13564_v2  ;;  %v16942_v6 = vld [vmem:[#allocation83_spill] sm:$0xff] }
 0x5dd   :  { %16937 = vst [vmem:[#allocation207_spill] sm:$0xff] %v13588_v43  ;;  %v13594_v12 = vpop.eup %8435  ;;  %8455 = vpow2.f32 %v4372_v37  ;;  %v4758_v44 = vadd.f32 %v13561_v60, %v4757_v33  ;;  %v4382_v0 = vmul.f32 1.442695, %v3982_v63  ;;  %v4384_v13 = vmul.f32 1.442695, %v3983_v20  ;;  %v16944_v33 = vld [vmem:[#allocation217_spill] sm:$0xff] }
 0x5de   :  { %16939 = vst [vmem:[#allocation110_spill] sm:$0xff] %v13594_v12  ;;  %v13600_v21 = vpop.eup %8437  ;;  %8457 = vpow2.f32 %v4374_v28  ;;  %v4762_v37 = vadd.f32 %v13578_v7, %v4761_v14  ;;  %v3986_v16 = vsub.f32 %v12424_v24, %v13532_v25  ;;  %v3987_v52 = vsub.f32 %v16942_v6, %v13532_v25 }
 0x5df   :  { %16940 = vst [vmem:[#allocation205_spill] sm:$0xff] %v13600_v21  ;;  %v13605_v3 = vpop.eup %8439  ;;  %4754 = vadd.xlane.f32.xlu1 %v4753_v1  ;;  %8459 = vpow2.f32 %v4376_v50  ;;  %v4386_v28 = vmul.f32 1.442695, %v3984_v27  ;;  %v3988_v63 = vsub.f32 %v16944_v33, %v13532_v25  ;;  %v4766_v20 = vadd.f32 %v13594_v12, %v13588_v43  ;;  %v13625_v7 = vpop.xlane.xlu0 %3726 }
 0x5e0   :  { %16941 = vst [vmem:[#allocation210_spill] sm:$0xff] %v13605_v3  ;;  %v13612_v31 = vpop.eup %8441  ;;  %8461 = vpow2.f32 %v4378_v8  ;;  %v4388_v50 = vmul.f32 1.442695, %v3985_v54  ;;  %v3989_v24 = vsub.f32 %v12518_v59, %v13532_v25  ;;  %v4763_v6 = vadd.f32 %v13583_v26, %v4762_v37  ;;  %v16949_v59 = vld [vmem:[#allocation85_spill] sm:$0xff]  ;;  %v16951_v37 = vld [vmem:[#allocation104_spill] sm:$0xff] }
 0x5e1   :  { %16943 = vst [vmem:[#allocation211_spill] sm:$0xff] %v13612_v31  ;;  %v13618_v1 = vpop.eup %8443  ;;  %8463 = vpow2.f32 %v4380_v58  ;;  %v4390_v8 = vmul.f32 1.442695, %v3986_v16  ;;  %v4392_v27 = vmul.f32 1.442695, %v3987_v52  ;;  %v4767_v60 = vadd.f32 %v13600_v21, %v4766_v20  ;;  %v16948_v58 = vld [vmem:[#allocation84_spill] sm:$0xff] }
 0x5e2   :  { %16945 = vst [vmem:[#allocation208_spill] sm:$0xff] %v13618_v1  ;;  %v13622_v14 = vpop.eup %8445  ;;  %8465 = vpow2.f32 %v4382_v0  ;;  %v3990_v54 = vsub.f32 %v16948_v58, %v13556_v38  ;;  %v3991_v25 = vsub.f32 %v16949_v59, %v13556_v38  ;;  %v4394_v0 = vmul.f32 1.442695, %v3988_v63  ;;  %v16953_v20 = vld [vmem:[#allocation105_spill] sm:$0xff]  ;;  %v16955_v63 = vld [vmem:[#allocation86_spill] sm:$0xff] }
 0x5e3   :  { %16946 = vst [vmem:[#allocation209_spill] sm:$0xff] %v13622_v14  ;;  %v13627_v33 = vpop.eup %8447  ;;  %4759 = vadd.xlane.f32.xlu1 %v4758_v44  ;;  %8467 = vpow2.f32 %v4384_v13  ;;  %v3992_v16 = vsub.f32 %v16951_v37, %v13556_v38  ;;  %v4771_v52 = vadd.f32 %v13618_v1, %v13612_v31  ;;  %v4396_v13 = vmul.f32 1.442695, %v3989_v24  ;;  %v13649_v37 = vpop.xlane.xlu0 %3731 }
 0x5e4   :  { %16947 = vst [vmem:[#allocation212_spill] sm:$0xff] %v13627_v33  ;;  %v13634_v43 = vpop.eup %8449  ;;  %8469 = vpow2.f32 %v4386_v28  ;;  %v3993_v58 = vsub.f32 %v16953_v20, %v13556_v38  ;;  %v4398_v59 = vmul.f32 1.442695, %v3990_v54  ;;  %v3994_v26 = vsub.f32 %v16955_v63, %v13581_v19  ;;  %v16957_v38 = vld [vmem:[#allocation87_spill] sm:$0xff]  ;;  %v16959_v54 = vld [vmem:[#allocation109_spill] sm:$0xff] }
 0x5e5   :  { %16950 = vst [vmem:[#allocation31_spill] sm:$0xff] %v13634_v43  ;;  %v13640_v44 = vpop.eup %8451  ;;  %8471 = vpow2.f32 %v4388_v50  ;;  %v4772_v28 = vadd.f32 %v13622_v14, %v4771_v52  ;;  %v4768_v50 = vadd.f32 %v13605_v3, %v4767_v60  ;;  %v4400_v24 = vmul.f32 1.442695, %v3991_v25 }
 0x5e6   :  { %16952 = vst [vmem:[#allocation35_spill] sm:$0xff] %v13640_v44  ;;  %v13644_v21 = vpop.eup %8453  ;;  %8473 = vpow2.f32 %v4390_v8  ;;  %v3995_v20 = vsub.f32 %v16957_v38, %v13581_v19  ;;  %v4402_v8 = vmul.f32 1.442695, %v3992_v16  ;;  %v3996_v52 = vsub.f32 %v16959_v54, %v13581_v19  ;;  %v4610_v38 = vpop.xlane.xlu1 %4609  ;;  %v16963_v54 = vld [vmem:[#allocation213_spill] sm:$0xff] }
 0x5e7   :  { %16954 = vst [vmem:[#allocation81_spill] sm:$0xff] %v13644_v21  ;;  %v13651_v12 = vpop.eup %8455  ;;  %4764 = vadd.xlane.f32.xlu1 %v4763_v6  ;;  %8475 = vpow2.f32 %v4392_v27  ;;  %v4776_v63 = vadd.f32 %v13640_v44, %v13634_v43  ;;  %v4404_v6 = vmul.f32 1.442695, %v3993_v58  ;;  %v4773_v60 = vadd.f32 %v13627_v33, %v4772_v28  ;;  %v16961_v27 = vld [vmem:[#allocation106_spill] sm:$0xff] }
 0x5e8   :  { %16956 = vst [vmem:[#allocation49_spill] sm:$0xff] %v13651_v12  ;;  %v13656_v31 = vpop.eup %8457  ;;  %8477 = vpow2.f32 %v4394_v0  ;;  %v3997_v25 = vsub.f32 %v16961_v27, %v13581_v19  ;;  %v4406_v0 = vmul.f32 1.442695, %v3994_v26  ;;  %v3998_v1 = vsub.f32 %v16963_v54, %v13603_v5  ;;  %v16965_v58 = vld [vmem:[#allocation214_spill] sm:$0xff]  ;;  %v13678_v27 = vpop.xlane.xlu0 %3736 }
 0x5e9   :  { %16958 = vst [vmem:[#allocation53_spill] sm:$0xff] %v13656_v31  ;;  %v13662_v14 = vpop.eup %8459  ;;  %8479 = vpow2.f32 %v4396_v13  ;;  %v4777_v16 = vadd.f32 %v13644_v21, %v4776_v63  ;;  %v4408_v13 = vmul.f32 1.442695, %v3995_v20  ;;  %v3999_v28 = vsub.f32 %v16965_v58, %v13603_v5  ;;  %v16967_v63 = vld [vmem:[#allocation107_spill] sm:$0xff] }
 0x5ea   :  { %16960 = vst [vmem:[#allocation83_spill] sm:$0xff] %v13662_v14  ;;  %v13667_v3 = vpop.eup %8461  ;;  %8481 = vpow2.f32 %v4398_v59  ;;  %v4781_v19 = vadd.f32 %v13662_v14, %v13656_v31  ;;  %v4410_v26 = vmul.f32 1.442695, %v3996_v52  ;;  %v4000_v54 = vsub.f32 %v16967_v63, %v13603_v5  ;;  %v13688_v58 = vpop.xlane.xlu1 %4614 }
 0x5eb   :  { %16962 = vst [vmem:[#allocation217_spill] sm:$0xff] %v13667_v3  ;;  %v13672_v43 = vpop.eup %8463  ;;  %4769 = vadd.xlane.f32.xlu1 %v4768_v50  ;;  %8483 = vpow2.f32 %v4400_v24  ;;  %v4412_v50 = vmul.f32 1.442695, %v3997_v25  ;;  %v16969_v24 = vld [vmem:[#allocation112_spill] sm:$0xff]  ;;  %v4778_v31 = vadd.f32 %v13651_v12, %v4777_v16  ;;  %v4414_v14 = vmul.f32 1.442695, %v3998_v1 }
 0x5ec   :  { %16964 = vst [vmem:[#allocation84_spill] sm:$0xff] %v13672_v43  ;;  %v13680_v59 = vpop.eup %8465  ;;  %8485 = vpow2.f32 %v4402_v8  ;;  %v4001_v20 = vsub.f32 %v16969_v24, %v13603_v5  ;;  %v4782_v8 = vadd.f32 %v13667_v3, %v4781_v19  ;;  %v4416_v63 = vmul.f32 1.442695, %v3999_v28  ;;  %v16974_v16 = vld [vmem:[#allocation216_spill] sm:$0xff]  ;;  %v13704_v12 = vpop.xlane.xlu0 %3741 }
 0x5ed   :  { %16966 = vst [vmem:[#allocation85_spill] sm:$0xff] %v13680_v59  ;;  %v13684_v21 = vpop.eup %8467  ;;  %8487 = vpow2.f32 %v4404_v6  ;;  %v16972_v6 = vld [vmem:[#allocation215_spill] sm:$0xff]  ;;  %v4003_v1 = vsub.f32 %v16974_v16, %v13625_v7 }
 0x5ee   :  { %16968 = vst [vmem:[#allocation104_spill] sm:$0xff] %v13684_v21  ;;  %v13690_v33 = vpop.eup %8469  ;;  %8489 = vpow2.f32 %v4406_v0  ;;  %v4002_v25 = vsub.f32 %v16972_v6, %v13625_v7  ;;  %v4786_v5 = vadd.f32 %v13684_v21, %v13680_v59  ;;  %v4418_v0 = vmul.f32 1.442695, %v4000_v54  ;;  %v13715_v59 = vpop.xlane.xlu1 %4619 }
 0x5ef   :  { %16970 = vst [vmem:[#allocation105_spill] sm:$0xff] %v13690_v33  ;;  %v13694_v52 = vpop.eup %8471  ;;  %4774 = vadd.xlane.f32.xlu1 %v4773_v60  ;;  %8491 = vpow2.f32 %v4408_v13  ;;  %v4420_v60 = vmul.f32 1.442695, %v4001_v20  ;;  %v16976_v13 = vld [vmem:[#allocation114_spill] sm:$0xff]  ;;  %v4783_v3 = vadd.f32 %v13672_v43, %v4782_v8  ;;  %v16981_v8 = vld [vmem:[#allocation5_spill] sm:$0xff] }
 0x5f0   :  { %16971 = vst [vmem:[#allocation86_spill] sm:$0xff] %v13694_v52  ;;  %v13700_v24 = vpop.eup %8473  ;;  %8493 = vpow2.f32 %v4410_v26  ;;  %v4004_v28 = vsub.f32 %v16976_v13, %v13625_v7  ;;  %v16978_v26 = vld [vmem:[#allocation118_spill] sm:$0xff]  ;;  %v4422_v21 = vmul.f32 1.442695, %v4002_v25  ;;  %v4006_v43 = vsub.f32 %v16981_v8, %v13649_v37 }
 0x5f1   :  { %16973 = vst [vmem:[#allocation87_spill] sm:$0xff] %v13700_v24  ;;  %v13706_v19 = vpop.eup %8475  ;;  %8495 = vpow2.f32 %v4412_v50  ;;  %v4005_v54 = vsub.f32 %v16978_v26, %v13625_v7  ;;  %v4787_v50 = vadd.f32 %v13690_v33, %v4786_v5  ;;  %v13726_v7 = vpop.xlane.xlu0 %3746 }
 0x5f2   :  { %16975 = vst [vmem:[#allocation109_spill] sm:$0xff] %v13706_v19  ;;  %v13710_v6 = vpop.eup %8477  ;;  %8497 = vpow2.f32 %v4414_v14  ;;  %v4791_v20 = vadd.f32 %v13706_v19, %v13700_v24  ;;  %v4424_v14 = vmul.f32 1.442695, %v4003_v1  ;;  %v16985_v24 = vld [vmem:[#allocation218_spill] sm:$0xff]  ;;  %v16986_v1 = vld [vmem:[#allocation219_spill] sm:$0xff]  ;;  %v13744_v44 = vpop.xlane.xlu1 %4624 }
 0x5f3   :  { %16977 = vst [vmem:[#allocation106_spill] sm:$0xff] %v13710_v6  ;;  %v13717_v16 = vpop.eup %8479  ;;  %4779 = vadd.xlane.f32.xlu1 %v4778_v31  ;;  %8499 = vpow2.f32 %v4416_v63  ;;  %v4426_v31 = vmul.f32 1.442695, %v4004_v28  ;;  %v16983_v63 = vld [vmem:[#allocation68_spill] sm:$0xff]  ;;  %v4428_v33 = vmul.f32 1.442695, %v4005_v54  ;;  %v4009_v19 = vsub.f32 %v16986_v1, %v13649_v37 }
 0x5f4   :  { %16979 = vst [vmem:[#allocation213_spill] sm:$0xff] %v13717_v16  ;;  %v13722_v13 = vpop.eup %8481  ;;  %8501 = vpow2.f32 %v4418_v0  ;;  %v4007_v25 = vsub.f32 %v16983_v63, %v13649_v37  ;;  %v4008_v0 = vsub.f32 %v16985_v24, %v13649_v37  ;;  %v4792_v28 = vadd.f32 %v13710_v6, %v4791_v20 }
 0x5f5   :  { %16980 = vst [vmem:[#allocation214_spill] sm:$0xff] %v13722_v13  ;;  %v13728_v26 = vpop.eup %8483  ;;  %8503 = vpow2.f32 %v4420_v60  ;;  %v4788_v60 = vadd.f32 %v13694_v52, %v4787_v50  ;;  %v4430_v24 = vmul.f32 1.442695, %v4006_v43  ;;  %v16991_v50 = vld [vmem:[#allocation18_spill] sm:$0xff]  ;;  %v13754_v20 = vpop.xlane.xlu0 %3751 }
 0x5f6   :  { %16982 = vst [vmem:[#allocation107_spill] sm:$0xff] %v13728_v26  ;;  %v13732_v5 = vpop.eup %8485  ;;  %8505 = vrcp.f32 %v4610_v38  ;;  %v4796_v63 = vadd.f32 %v13728_v26, %v13722_v13  ;;  %v4432_v37 = vmul.f32 1.442695, %v4007_v25  ;;  %v4011_v1 = vsub.f32 %v16991_v50, %v13678_v27  ;;  %v13767_v50 = vpop.xlane.xlu1 %4629 }
 0x5f7   :  { %16984 = vst [vmem:[#allocation112_spill] sm:$0xff] %v13732_v5  ;;  %v13738_v8 = vpop.eup %8487  ;;  %4784 = vadd.xlane.f32.xlu1 %v4783_v3  ;;  %8507 = vpow2.f32 %v4422_v21  ;;  %v16990_v3 = vld [vmem:[#allocation20_spill] sm:$0xff]  ;;  %v4434_v52 = vmul.f32 1.442695, %v4008_v0  ;;  %v4436_v13 = vmul.f32 1.442695, %v4009_v19 }
 0x5f8   :  { %16987 = vst [vmem:[#allocation215_spill] sm:$0xff] %v13738_v8  ;;  %v13746_v38 = vpop.eup %8489  ;;  %8509 = vpow2.f32 %v4424_v14  ;;  %v4010_v21 = vsub.f32 %v16990_v3, %v13678_v27  ;;  %v16993_v14 = vld [vmem:[#allocation221_spill] sm:$0xff]  ;;  %v4797_v25 = vadd.f32 %v13732_v5, %v4796_v63  ;;  %v16996_v19 = vld [vmem:[#allocation223_spill] sm:$0xff]  ;;  %v16999_v63 = vld [vmem:[#allocation6_spill] sm:$0xff] }
 0x5f9   :  { %16988 = vst [vmem:[#allocation216_spill] sm:$0xff] %v13746_v38  ;;  %v13748_v54 = vpop.eup %8491  ;;  %8511 = vpow2.f32 %v4426_v31  ;;  %v4012_v43 = vsub.f32 %v16993_v14, %v13678_v27  ;;  %v4793_v31 = vadd.f32 %v13717_v16, %v4792_v28  ;;  %v4013_v0 = vsub.f32 %v16996_v19, %v13678_v27  ;;  %v17000_v16 = vld [vmem:[#allocation70_spill] sm:$0xff] }
 0x5fa   :  { %16989 = vst [vmem:[#allocation114_spill] sm:$0xff] %v13748_v54  ;;  %v13756_v6 = vpop.eup %8493  ;;  %8513 = vpow2.f32 %v4428_v33  ;;  %v4801_v3 = vadd.f32 %v13748_v54, %v13746_v38  ;;  %v4014_v5 = vsub.f32 %v16999_v63, %v13704_v12  ;;  %v4015_v38 = vsub.f32 %v17000_v16, %v13704_v12  ;;  %v13781_v54 = vpop.xlane.xlu0 %3756  ;;  %v17003_v16 = vld [vmem:[#allocation225_spill] sm:$0xff] }
 0x5fb   :  { %16992 = vst [vmem:[#allocation118_spill] sm:$0xff] %v13756_v6  ;;  %v13760_v26 = vpop.eup %8495  ;;  %4789 = vadd.xlane.f32.xlu1 %v4788_v60  ;;  %8515 = vrcp.f32 %v13688_v58  ;;  %v4438_v60 = vmul.f32 1.442695, %v4010_v21  ;;  %v4440_v58 = vmul.f32 1.442695, %v4011_v1  ;;  %v4798_v27 = vadd.f32 %v13738_v8, %v4797_v25  ;;  %v13794_v19 = vpop.xlane.xlu1 %4634  ;;  %v17006_v25 = vld [vmem:[#allocation111_spill] sm:$0xff] }
 0x5fc   :  { %16994 = vst [vmem:[#allocation5_spill] sm:$0xff] %v13760_v26  ;;  %v13769_v33 = vpop.eup %8497  ;;  %8517 = vpow2.f32 %v4430_v24  ;;  %v4442_v28 = vmul.f32 1.442695, %v4012_v43  ;;  %v4444_v1 = vmul.f32 1.442695, %v4013_v0  ;;  %v4016_v43 = vsub.f32 %v17003_v16, %v13704_v12  ;;  %v17008_v16 = vld [vmem:[#allocation24_spill] sm:$0xff] }
 0x5fd   :  { %16995 = vst [vmem:[#allocation68_spill] sm:$0xff] %v13769_v33  ;;  %v13773_v14 = vpop.eup %8499  ;;  %8519 = vpow2.f32 %v4432_v37  ;;  %v4802_v37 = vadd.f32 %v13756_v6, %v4801_v3  ;;  %v17007_v6 = vld [vmem:[#allocation113_spill] sm:$0xff]  ;;  %v4448_v0 = vmul.f32 1.442695, %v4015_v38  ;;  %v17011_v38 = vld [vmem:[#allocation22_spill] sm:$0xff] }
 0x5fe   :  { %16997 = vst [vmem:[#allocation218_spill] sm:$0xff] %v13773_v14  ;;  %v13775_v2 = vpop.eup %8501  ;;  %8521 = vpow2.f32 %v4434_v52  ;;  %v4806_v52 = vadd.f32 %v13773_v14, %v13769_v33  ;;  %v4018_v14 = vsub.f32 %v17008_v16, %v13726_v7  ;;  %v17016_v16 = vld [vmem:[#allocation228_spill] sm:$0xff] }
 0x5ff   :  { %16998 = vst [vmem:[#allocation219_spill] sm:$0xff] %v13775_v2  ;;  %v13783_v24 = vpop.eup %8503  ;;  %8523 = vpow2.f32 %v4436_v13  ;;  %4794 = vadd.xlane.f32.xlu1 %v4793_v31  ;;  %v17005_v13 = vld [vmem:[#allocation226_spill] sm:$0xff] }
 0x600   :  { %17001 = vst [vmem:[#allocation20_spill] sm:$0xff] %v13783_v24  ;;  %v13789_v21 = vpop.eup %8505  ;;  %8525 = vrcp.f32 %v13715_v59  ;;  %v4017_v31 = vsub.f32 %v17005_v13, %v13704_v12  ;;  %v4446_v59 = vmul.f32 1.442695, %v4014_v5  ;;  %v4803_v12 = vadd.f32 %v13760_v26, %v4802_v37  ;;  %v13814_v13 = vpop.xlane.xlu0 %3761  ;;  %v17013_v37 = vld [vmem:[#allocation36_spill] sm:$0xff] }
 0x601   :  { %17002 = vst [vmem:[#allocation18_spill] sm:$0xff] %v13789_v21  ;;  %v13796_v63 = vpop.eup %8507  ;;  %8527 = vpow2.f32 %v4438_v60  ;;  %v4991_v3 = vmul.f32 %v13789_v21, %v17006_v25  ;;  %v4990_v8 = vmul.f32 %v13789_v21, %v17007_v6  ;;  %v4807_v60 = vadd.f32 %v13775_v2, %v4806_v52  ;;  %v17014_v52 = vld [vmem:[#allocation34_spill] sm:$0xff]  ;;  %v17018_v21 = vld [vmem:[#allocation117_spill] sm:$0xff] }
 0x602   :  { %17004 = vst [vmem:[#allocation221_spill] sm:$0xff] %v13796_v63  ;;  %v13804_v33 = vpop.eup %8509  ;;  %8529 = vpow2.f32 %v4440_v58  ;;  %v4450_v5 = vmul.f32 1.442695, %v4016_v43  ;;  %v4019_v25 = vsub.f32 %v17011_v38, %v13726_v7  ;;  %v4020_v2 = vsub.f32 %v17016_v16, %v13726_v7  ;;  %v17017_v43 = vld [vmem:[#allocation136_spill] sm:$0xff] }
 0x603   :  { %v13808_v40 = vpop.eup %8511  ;;  %8531 = vpow2.f32 %v4442_v28  ;;  %4799 = vadd.xlane.f32.xlu1 %v4798_v27  ;;  %5310 = vmatprep.mubr.f32.mxu0 %v4991_v3  ;;  %v4811_v6 = vadd.f32 %v13804_v33, %v13796_v63  ;;  %v4452_v27 = vmul.f32 1.442695, %v4017_v31  ;;  %v17015_v3 = vpack.c.bf16 %v17013_v37, %v17014_v52  ;;  %v17020_v37 = vld [vmem:[#allocation119_spill] sm:$0xff] }
 0x604   :  { %17009 = vst [vmem:[#allocation223_spill] sm:$0xff] %v13808_v40  ;;  %v13816_v58 = vpop.eup %8513  ;;  %8533 = vpow2.f32 %v4444_v1  ;;  %5311 = vmatmul.mubr.f32.vlgmr.msra.gmra.mrb[148].mxu0 %v4990_v8  ;;  %v13829_v1 = vpop.xlane.xlu1 %4639  ;;  %v4021_v38 = vsub.f32 %v17017_v43, %v13726_v7  ;;  %v17019_v31 = vmov 0.0|0.0   ;;  %v4808_v16 = vadd.f32 %v13783_v24, %v4807_v60  ;;  %v17022_v43 = vld [vmem:[#allocation7_spill] sm:$0xff] }
 0x605   :  { %17010 = vst [vmem:[#allocation6_spill] sm:$0xff] %v13816_v58  ;;  %v13820_v28 = vpop.eup %8515  ;;  %8535 = vrcp.f32 %v13744_v44  ;;  %7756 = vmatpush1.bf16.msra.mxu0 %v17015_v3  ;;  %v4812_v26 = vadd.f32 %v13808_v40, %v4811_v6  ;;  %v4454_v6 = vmul.f32 1.442695, %v4018_v14  ;;  %v13844_v40 = vpop.xlane.xlu0 %3766  ;;  %v4022_v63 = vsub.f32 %v17022_v43, %v13754_v20 }
 0x606   :  { %17012 = vst [vmem:[#allocation70_spill] sm:$0xff] %v13820_v28  ;;  %v13831_v8 = vpop.eup %8517  ;;  %8537 = vpow2.f32 %v4446_v59  ;;  %v4995_v44 = vmul.f32 %v13820_v28, %v17018_v21  ;;  %7757 = vmatprep.subr.bf16.mxu0 %v17019_v31  ;;  %v4994_v52 = vmul.f32 %v13820_v28, %v17020_v37  ;;  %v4456_v21 = vmul.f32 1.442695, %v4019_v25  ;;  %v17026_v25 = vld [vmem:[#allocation40_spill] sm:$0xff] }
 0x607   :  { %v13840_v3 = vpop.eup %8519  ;;  %8539 = vpow2.f32 %v4448_v0  ;;  %4804 = vadd.xlane.f32.xlu1 %v4803_v12  ;;  %v4813_v59 = vadd.f32 %v13816_v58, %v4812_v26  ;;  %v4458_v14 = vmul.f32 1.442695, %v4020_v2  ;;  %v17024_v26 = vld [vmem:[#allocation72_spill] sm:$0xff]  ;;  %v17029_v58 = vld [vmem:[#allocation229_spill] sm:$0xff] }
 0x608   :  { %v13846_v7 = vpop.eup %8521  ;;  %8541 = vpow2.f32 %v4450_v5  ;;  %5315 = vmatprep.mubr.f32.mxu0 %v4995_v44  ;;  %v4816_v37 = vadd.f32 %v13840_v3, %v13831_v8  ;;  %v4023_v12 = vsub.f32 %v17024_v26, %v13754_v20  ;;  %v4460_v5 = vmul.f32 1.442695, %v4021_v38  ;;  %v17027_v44 = vld [vmem:[#allocation38_spill] sm:$0xff]  ;;  %v13865_v2 = vpop.xlane.xlu1 %4644  ;;  %v17042_v28 = vld [vmem:[#allocation232_spill] sm:$0xff] }
 0x609   :  { %17021 = vst [vmem:[#allocation225_spill] sm:$0xff] %v13846_v7  ;;  %v13852_v0 = vpop.eup %8523  ;;  %8543 = vpow2.f32 %v4452_v27  ;;  %5316 = vmatmul.mubr.f32.gmra.mrb[150].mxu0 %v4994_v52  ;;  %4814 = vadd.xlane.f32.xlu0 %v4813_v59  ;;  %v17028_v43 = vpack.c.bf16 %v17026_v25, %v17027_v44  ;;  %v4024_v24 = vsub.f32 %v17029_v58, %v13754_v20  ;;  %v17031_v59 = vld [vmem:[#allocation139_spill] sm:$0xff]  ;;  %v17033_v25 = vld [vmem:[#allocation121_spill] sm:$0xff] }
 0x60a   :  { %17023 = vst [vmem:[#allocation226_spill] sm:$0xff] %v13852_v0  ;;  %v13856_v60 = vpop.eup %8525  ;;  %8545 = vrcp.f32 %v13767_v50  ;;  %v4817_v27 = vadd.f32 %v13846_v7, %v4816_v37  ;;  %v4025_v26 = vsub.f32 %v17031_v59, %v13754_v20  ;;  %v17032_v50 = vld [vmem:[#allocation125_spill] sm:$0xff]  ;;  %v4462_v37 = vmul.f32 1.442695, %v4022_v63  ;;  %v13879_v7 = vpop.xlane.xlu0 %3771  ;;  %v17037_v63 = vld [vmem:[#allocation26_spill] sm:$0xff] }
 0x60b   :  { %17025 = vst [vmem:[#allocation111_spill] sm:$0xff] %v13856_v60  ;;  %7759 = vmatpush1.bf16.msra.mxu0 %v17028_v43  ;;  %v13867_v52 = vpop.eup %8527  ;;  %8547 = vpow2.f32 %v4454_v6  ;;  %4809 = vadd.xlane.f32.xlu1 %v4808_v16  ;;  %v4999_v38 = vmul.f32 %v13856_v60, %v17032_v50  ;;  %v4998_v44 = vmul.f32 %v13856_v60, %v17033_v25  ;;  %v4464_v20 = vmul.f32 1.442695, %v4023_v12  ;;  %v17035_v16 = vld [vmem:[#allocation28_spill] sm:$0xff] }
 0x60c   :  { %17030 = vst [vmem:[#allocation113_spill] sm:$0xff] %v13867_v52  ;;  %7760 = vmatprep.subr.bf16.mxu0 %v17019_v31  ;;  %v13876_v58 = vpop.eup %8529  ;;  %8549 = vpow2.f32 %v4456_v21  ;;  %v4818_v43 = vadd.f32 %v13852_v0, %v4817_v27  ;;  %v4026_v59 = vsub.f32 %v17035_v16, %v13781_v54  ;;  %v4466_v21 = vmul.f32 1.442695, %v4024_v24  ;;  %v13891_v0 = vpop.xlane.xlu1 %4649  ;;  %v17039_v12 = vld [vmem:[#allocation44_spill] sm:$0xff] }
 0x60d   :  { %v13881_v6 = vpop.eup %8531  ;;  %8551 = vpow2.f32 %v4458_v14  ;;  %5320 = vmatprep.mubr.f32.mxu0 %v4999_v38  ;;  %v4821_v50 = vadd.f32 %v13876_v58, %v13867_v52  ;;  %v4027_v27 = vsub.f32 %v17037_v63, %v13781_v54  ;;  %v4468_v14 = vmul.f32 1.442695, %v4025_v26  ;;  %v17040_v38 = vld [vmem:[#allocation42_spill] sm:$0xff]  ;;  %v17044_v63 = vld [vmem:[#allocation128_spill] sm:$0xff] }
 0x60e   :  { %17034 = vst [vmem:[#allocation24_spill] sm:$0xff] %v13881_v6  ;;  %v13887_v25 = vpop.eup %8533  ;;  %8553 = vpow2.f32 %v4460_v5  ;;  %5321 = vmatmul.mubr.f32.gmra.mrb[152].mxu0 %v4998_v44  ;;  %v17041_v16 = vpack.c.bf16 %v17039_v12, %v17040_v38  ;;  %v4028_v52 = vsub.f32 %v17042_v28, %v13781_v54  ;;  %v4029_v44 = vsub.f32 %v12796_v36, %v13781_v54  ;;  %v17045_v26 = vld [vmem:[#allocation124_spill] sm:$0xff] }
 0x60f   :  { %17036 = vst [vmem:[#allocation22_spill] sm:$0xff] %v13887_v25  ;;  %v13893_v60 = vpop.eup %8535  ;;  %8555 = vrcp.f32 %v13794_v19  ;;  %4819 = vadd.xlane.f32.xlu1 %v4818_v43  ;;  %v4822_v24 = vadd.f32 %v13881_v6, %v4821_v50  ;;  %v4470_v28 = vmul.f32 1.442695, %v4026_v59  ;;  %v17048_v36 = vld [vmem:[#allocation8_spill] sm:$0xff]  ;;  %v17050_v59 = vld [vmem:[#allocation74_spill] sm:$0xff] }
 0x610   :  { %17038 = vst [vmem:[#allocation36_spill] sm:$0xff] %v13893_v60  ;;  %7762 = vmatpush1.bf16.msra.mxu0 %v17041_v16  ;;  %v13902_v5 = vpop.eup %8537  ;;  %8557 = vpow2.f32 %v4462_v37  ;;  %v5003_v19 = vmul.f32 %v13893_v60, %v17044_v63  ;;  %v5002_v12 = vmul.f32 %v13893_v60, %v17045_v26  ;;  %v4472_v37 = vmul.f32 1.442695, %v4027_v27  ;;  %v13920_v63 = vpop.xlane.xlu0 %3776  ;;  %v17053_v6 = vld [vmem:[#allocation46_spill] sm:$0xff]  ;;  %v17055_v60 = vld [vmem:[#allocation233_spill] sm:$0xff] }
 0x611   :  { %17043 = vst [vmem:[#allocation34_spill] sm:$0xff] %v13902_v5  ;;  %7763 = vmatprep.subr.bf16.mxu0 %v17019_v31  ;;  %v13911_v38 = vpop.eup %8539  ;;  %8559 = vpow2.f32 %v4464_v20  ;;  %v4823_v43 = vadd.f32 %v13887_v25, %v4822_v24  ;;  %v4030_v54 = vsub.f32 %v17048_v36, %v13814_v13  ;;  %v4474_v20 = vmul.f32 1.442695, %v4028_v52  ;;  %v17052_v36 = vld [vmem:[#allocation48_spill] sm:$0xff] }
 0x612   :  { %17046 = vst [vmem:[#allocation228_spill] sm:$0xff] %v13911_v38  ;;  %v13914_v50 = vpop.eup %8541  ;;  %8561 = vpow2.f32 %v4466_v21  ;;  %5325 = vmatprep.mubr.f32.mxu0 %v5003_v19  ;;  %v4826_v16 = vadd.f32 %v13911_v38, %v13902_v5  ;;  %v4031_v24 = vsub.f32 %v17050_v59, %v13814_v13  ;;  %v13926_v21 = vpop.xlane.xlu1 %4654  ;;  %v4476_v19 = vmul.f32 1.442695, %v4029_v44  ;;  %v17058_v5 = vld [vmem:[#allocation127_spill] sm:$0xff] }
 0x613   :  { %17047 = vst [vmem:[#allocation136_spill] sm:$0xff] %v13914_v50  ;;  %v13922_v26 = vpop.eup %8543  ;;  %8563 = vpow2.f32 %v4468_v14  ;;  %5326 = vmatmul.mubr.f32.gmra.mrb[154].mxu0 %v5002_v12  ;;  %4824 = vadd.xlane.f32.xlu0 %v4823_v43  ;;  %v17054_v25 = vpack.c.bf16 %v17052_v36, %v17053_v6  ;;  %v4032_v14 = vsub.f32 %v17055_v60, %v13814_v13  ;;  %v17057_v43 = vld [vmem:[#allocation146_spill] sm:$0xff]  ;;  %v4478_v60 = vmul.f32 1.442695, %v4030_v54 }
 0x614   :  { %17049 = vst [vmem:[#allocation117_spill] sm:$0xff] %v13922_v26  ;;  %v13928_v27 = vpop.eup %8545  ;;  %8565 = vrcp.f32 %v13829_v1  ;;  %v4827_v52 = vadd.f32 %v13914_v50, %v4826_v16  ;;  %v4033_v59 = vsub.f32 %v17057_v43, %v13814_v13  ;;  %v17059_v1 = vld [vmem:[#allocation126_spill] sm:$0xff]  ;;  %v17062_v13 = vld [vmem:[#allocation32_spill] sm:$0xff] }
 0x615   :  { %17051 = vst [vmem:[#allocation119_spill] sm:$0xff] %v13928_v27  ;;  %7765 = vmatpush1.bf16.msra.mxu0 %v17054_v25  ;;  %v13937_v12 = vpop.eup %8547  ;;  %8567 = vpow2.f32 %v4470_v28  ;;  %v5007_v38 = vmul.f32 %v13928_v27, %v17058_v5  ;;  %v5006_v6 = vmul.f32 %v13928_v27, %v17059_v1  ;;  %v4480_v28 = vmul.f32 1.442695, %v4031_v24  ;;  %v17067_v50 = vld [vmem:[#allocation50_spill] sm:$0xff] }
 0x616   :  { %17056 = vst [vmem:[#allocation7_spill] sm:$0xff] %v13937_v12  ;;  %7766 = vmatprep.subr.bf16.mxu0 %v17019_v31  ;;  %v13946_v25 = vpop.eup %8549  ;;  %8569 = vpow2.f32 %v4472_v37  ;;  %v4828_v44 = vadd.f32 %v13922_v26, %v4827_v52  ;;  %v4034_v36 = vsub.f32 %v17062_v13, %v13844_v40  ;;  %v4482_v1 = vmul.f32 1.442695, %v4032_v14  ;;  %v17064_v37 = vld [vmem:[#allocation30_spill] sm:$0xff]  ;;  %v13959_v52 = vpop.xlane.xlu1 %4659  ;;  %v17066_v13 = vld [vmem:[#allocation52_spill] sm:$0xff] }
 0x617   :  { %17060 = vst [vmem:[#allocation72_spill] sm:$0xff] %v13946_v25  ;;  %v13949_v16 = vpop.eup %8551  ;;  %8571 = vpow2.f32 %v4474_v20  ;;  %5330 = vmatprep.mubr.f32.mxu0 %v5007_v38  ;;  %v4831_v5 = vadd.f32 %v13946_v25, %v13937_v12  ;;  %v4035_v54 = vsub.f32 %v17064_v37, %v13844_v40  ;;  %v13961_v20 = vpop.xlane.xlu0 %3781  ;;  %v4484_v24 = vmul.f32 1.442695, %v4033_v59  ;;  %v17072_v12 = vld [vmem:[#allocation129_spill] sm:$0xff] }
 0x618   :  { %17061 = vst [vmem:[#allocation40_spill] sm:$0xff] %v13949_v16  ;;  %v13955_v43 = vpop.eup %8553  ;;  %8573 = vpow2.f32 %v4476_v19  ;;  %5331 = vmatmul.mubr.f32.gmra.mrb[156].mxu0 %v5006_v6  ;;  %4829 = vadd.xlane.f32.xlu1 %v4828_v44  ;;  %v17068_v26 = vpack.c.bf16 %v17066_v13, %v17067_v50  ;;  %v17069_v19 = vld [vmem:[#allocation235_spill] sm:$0xff]  ;;  %v17071_v44 = vld [vmem:[#allocation150_spill] sm:$0xff]  ;;  %v4486_v59 = vmul.f32 1.442695, %v4034_v36 }
 0x619   :  { %17063 = vst [vmem:[#allocation38_spill] sm:$0xff] %v13955_v43  ;;  %v13963_v38 = vpop.eup %8555  ;;  %8575 = vrcp.f32 %v13865_v2  ;;  %v4036_v14 = vsub.f32 %v17069_v19, %v13844_v40  ;;  %v4832_v6 = vadd.f32 %v13949_v16, %v4831_v5  ;;  %v4037_v27 = vsub.f32 %v17071_v44, %v13844_v40  ;;  %v17073_v2 = vld [vmem:[#allocation227_spill] sm:$0xff]  ;;  %v17075_v40 = vld [vmem:[#allocation9_spill] sm:$0xff] }
 0x61a   :  { %17065 = vst [vmem:[#allocation229_spill] sm:$0xff] %v13963_v38  ;;  %7768 = vmatpush1.bf16.msra.mxu0 %v17068_v26  ;;  %v13972_v37 = vpop.eup %8557  ;;  %8577 = vpow2.f32 %v4478_v60  ;;  %v5011_v25 = vmul.f32 %v13963_v38, %v17072_v12  ;;  %v5010_v50 = vmul.f32 %v13963_v38, %v17073_v2  ;;  %v4488_v60 = vmul.f32 1.442695, %v4035_v54  ;;  %v17079_v54 = vld [vmem:[#allocation55_spill] sm:$0xff] }
 0x61b   :  { %17070 = vst [vmem:[#allocation139_spill] sm:$0xff] %v13972_v37  ;;  %7769 = vmatprep.subr.bf16.mxu0 %v17019_v31  ;;  %v13981_v26 = vpop.eup %8559  ;;  %8579 = vpow2.f32 %v4480_v28  ;;  %v4833_v5 = vadd.f32 %v13955_v43, %v4832_v6  ;;  %v4038_v19 = vsub.f32 %v17075_v40, %v13879_v7  ;;  %v4490_v2 = vmul.f32 1.442695, %v4036_v14  ;;  %v17077_v28 = vld [vmem:[#allocation76_spill] sm:$0xff]  ;;  %v13994_v6 = vpop.xlane.xlu1 %4664  ;;  %v17080_v40 = vld [vmem:[#allocation54_spill] sm:$0xff] }
 0x61c   :  { %v13984_v13 = vpop.eup %8561  ;;  %8581 = vpow2.f32 %v4482_v1  ;;  %5335 = vmatprep.mubr.f32.mxu0 %v5011_v25  ;;  %v4836_v12 = vadd.f32 %v13981_v26, %v13972_v37  ;;  %v4039_v36 = vsub.f32 %v17077_v28, %v13879_v7  ;;  %v4492_v25 = vmul.f32 1.442695, %v4037_v27  ;;  %v17082_v43 = vld [vmem:[#allocation236_spill] sm:$0xff]  ;;  %v17085_v37 = vld [vmem:[#allocation133_spill] sm:$0xff]  ;;  %v17086_v27 = vld [vmem:[#allocation230_spill] sm:$0xff] }
 0x61d   :  { %17074 = vst [vmem:[#allocation125_spill] sm:$0xff] %v13984_v13  ;;  %v13990_v44 = vpop.eup %8563  ;;  %8583 = vpow2.f32 %v4484_v24  ;;  %5336 = vmatmul.mubr.f32.gmra.mrb[158].mxu0 %v5010_v50  ;;  %4834 = vadd.xlane.f32.xlu0 %v4833_v5  ;;  %v17081_v16 = vpack.c.bf16 %v17079_v54, %v17080_v40  ;;  %v4040_v24 = vsub.f32 %v17082_v43, %v13879_v7  ;;  %v14005_v50 = vpop.xlane.xlu0 %3786  ;;  %v17084_v5 = vld [vmem:[#allocation154_spill] sm:$0xff]  ;;  %v4494_v43 = vmul.f32 1.442695, %v4038_v19  ;;  %v17091_v19 = vld [vmem:[#allocation11_spill] sm:$0xff] }
 0x61e   :  { %17076 = vst [vmem:[#allocation121_spill] sm:$0xff] %v13990_v44  ;;  %v13996_v1 = vpop.eup %8565  ;;  %8585 = vrcp.f32 %v13891_v0  ;;  %v4837_v14 = vadd.f32 %v13984_v13, %v4836_v12  ;;  %v4041_v38 = vsub.f32 %v17084_v5, %v13879_v7  ;;  %v17089_v7 = vld [vmem:[#allocation10_spill] sm:$0xff] }
 0x61f   :  { %17078 = vst [vmem:[#allocation28_spill] sm:$0xff] %v13996_v1  ;;  %7771 = vmatpush1.bf16.msra.mxu0 %v17081_v16  ;;  %v14007_v28 = vpop.eup %8567  ;;  %8587 = vpow2.f32 %v4486_v59  ;;  %v5015_v0 = vmul.f32 %v13996_v1, %v17085_v37  ;;  %v5014_v16 = vmul.f32 %v13996_v1, %v17086_v27  ;;  %v4496_v59 = vmul.f32 1.442695, %v4039_v36  ;;  %v14025_v13 = vpop.xlane.xlu1 %4669  ;;  %v17096_v1 = vld [vmem:[#allocation239_spill] sm:$0xff] }
 0x620   :  { %17083 = vst [vmem:[#allocation26_spill] sm:$0xff] %v14007_v28  ;;  %7772 = vmatprep.subr.bf16.mxu0 %v17019_v31  ;;  %v14016_v54 = vpop.eup %8569  ;;  %8589 = vpow2.f32 %v4488_v60  ;;  %v4838_v12 = vadd.f32 %v13990_v44, %v4837_v14  ;;  %v4042_v5 = vsub.f32 %v17089_v7, %v13920_v63  ;;  %v4498_v60 = vmul.f32 1.442695, %v4040_v24  ;;  %v17094_v7 = vld [vmem:[#allocation56_spill] sm:$0xff] }
 0x621   :  { %17087 = vst [vmem:[#allocation44_spill] sm:$0xff] %v14016_v54  ;;  %v14019_v40 = vpop.eup %8571  ;;  %8591 = vpow2.f32 %v4490_v2  ;;  %5340 = vmatprep.mubr.f32.mxu0 %v5015_v0  ;;  %v4841_v37 = vadd.f32 %v14016_v54, %v14007_v28  ;;  %v4043_v14 = vsub.f32 %v17091_v19, %v13920_v63  ;;  %v4500_v36 = vmul.f32 1.442695, %v4041_v38  ;;  %v17093_v0 = vld [vmem:[#allocation57_spill] sm:$0xff]  ;;  %v17099_v19 = vld [vmem:[#allocation16_spill] sm:$0xff] }
 0x622   :  { %17088 = vst [vmem:[#allocation42_spill] sm:$0xff] %v14019_v40  ;;  %v14027_v27 = vpop.eup %8573  ;;  %8593 = vpow2.f32 %v4492_v25  ;;  %5341 = vmatmul.mubr.f32.gmra.mrb[160].mxu0 %v5014_v16  ;;  %4839 = vadd.xlane.f32.xlu1 %v4838_v12  ;;  %v17095_v44 = vpack.c.bf16 %v17093_v0, %v17094_v7  ;;  %v4044_v28 = vsub.f32 %v17096_v1, %v13920_v63  ;;  %v17098_v16 = vld [vmem:[#allocation157_spill] sm:$0xff]  ;;  %v4502_v1 = vmul.f32 1.442695, %v4042_v5  ;;  %v17103_v7 = vld [vmem:[#allocation12_spill] sm:$0xff] }
 0x623   :  { %17090 = vst [vmem:[#allocation232_spill] sm:$0xff] %v14027_v27  ;;  %v14031_v2 = vpop.eup %8575  ;;  %8595 = vrcp.f32 %v13926_v21  ;;  %v4842_v25 = vadd.f32 %v14019_v40, %v4841_v37  ;;  %v4045_v12 = vsub.f32 %v17098_v16, %v13920_v63  ;;  %v17100_v21 = vld [vmem:[#allocation231_spill] sm:$0xff]  ;;  %v4504_v63 = vmul.f32 1.442695, %v4043_v14  ;;  %v17105_v5 = vld [vmem:[#allocation13_spill] sm:$0xff] }
 0x624   :  { %17092 = vst [vmem:[#allocation128_spill] sm:$0xff] %v14031_v2  ;;  %7774 = vmatpush1.bf16.msra.mxu0 %v17095_v44  ;;  %v14040_v24 = vpop.eup %8577  ;;  %8597 = vpow2.f32 %v4494_v43  ;;  %v5019_v54 = vmul.f32 %v14031_v2, %v17099_v19  ;;  %v5018_v38 = vmul.f32 %v14031_v2, %v17100_v21  ;;  %v14049_v44 = vpop.xlane.xlu0 %3791  ;;  %v4046_v16 = vsub.f32 %v17103_v7, %v13961_v20  ;;  %v17107_v14 = vld [vmem:[#allocation59_spill] sm:$0xff]  ;;  %v17108_v7 = vld [vmem:[#allocation58_spill] sm:$0xff]  ;;  %v17110_v2 = vld [vmem:[#allocation241_spill] sm:$0xff] }
 0x625   :  { %17097 = vst [vmem:[#allocation124_spill] sm:$0xff] %v14040_v24  ;;  %7775 = vmatprep.subr.bf16.mxu0 %v17019_v31  ;;  %v14051_v0 = vpop.eup %8579  ;;  %8599 = vpow2.f32 %v4496_v59  ;;  %v4843_v37 = vadd.f32 %v14027_v27, %v4842_v25  ;;  %v14060_v21 = vpop.xlane.xlu1 %4674  ;;  %v4506_v59 = vmul.f32 1.442695, %v4044_v28  ;;  %v4047_v25 = vsub.f32 %v17105_v5, %v13961_v20  ;;  %v17113_v5 = vld [vmem:[#allocation14_spill] sm:$0xff] }
 0x626   :  { %17101 = vst [vmem:[#allocation8_spill] sm:$0xff] %v14051_v0  ;;  %v14054_v43 = vpop.eup %8581  ;;  %8601 = vpow2.f32 %v4498_v60  ;;  %5345 = vmatprep.mubr.f32.mxu0 %v5019_v54  ;;  %v4846_v19 = vadd.f32 %v14051_v0, %v14040_v24  ;;  %v4508_v54 = vmul.f32 1.442695, %v4045_v12  ;;  %v17109_v27 = vpack.c.bf16 %v17107_v14, %v17108_v7 }
 0x627   :  { %17102 = vst [vmem:[#allocation74_spill] sm:$0xff] %v14054_v43  ;;  %v14062_v40 = vpop.eup %8583  ;;  %8603 = vpow2.f32 %v4500_v36  ;;  %5346 = vmatmul.mubr.f32.gmra.mrb[162].mxu0 %v5018_v38  ;;  %4844 = vadd.xlane.f32.xlu0 %v4843_v37  ;;  %v4048_v24 = vsub.f32 %v17110_v2, %v13961_v20  ;;  %v17112_v38 = vld [vmem:[#allocation160_spill] sm:$0xff]  ;;  %v4510_v2 = vmul.f32 1.442695, %v4046_v16  ;;  %v4050_v7 = vsub.f32 %v16768_v35, %v14005_v50  ;;  %v17117_v16 = vld [vmem:[#allocation17_spill] sm:$0xff] }
 0x628   :  { %17104 = vst [vmem:[#allocation48_spill] sm:$0xff] %v14062_v40  ;;  %v14066_v60 = vpop.eup %8585  ;;  %8605 = vrcp.f32 %v13959_v52  ;;  %7777 = vmatpush1.bf16.msra.mxu0 %v17109_v27  ;;  %v4847_v36 = vadd.f32 %v14054_v43, %v4846_v19  ;;  %v4049_v37 = vsub.f32 %v17112_v38, %v13961_v20  ;;  %v17114_v52 = vld [vmem:[#allocation142_spill] sm:$0xff]  ;;  %v14087_v14 = vpop.xlane.xlu0 %3796  ;;  %v4512_v20 = vmul.f32 1.442695, %v4047_v25  ;;  %v17119_v35 = vld [vmem:[#allocation61_spill] sm:$0xff]  ;;  %v17120_v25 = vld [vmem:[#allocation60_spill] sm:$0xff] }
 0x629   :  { %17106 = vst [vmem:[#allocation46_spill] sm:$0xff] %v14066_v60  ;;  %v14075_v28 = vpop.eup %8587  ;;  %8607 = vpow2.f32 %v4502_v1  ;;  %v5023_v0 = vmul.f32 %v14066_v60, %v17113_v5  ;;  %7778 = vmatprep.subr.bf16.mxu0 %v17019_v31  ;;  %v5022_v12 = vmul.f32 %v14066_v60, %v17114_v52  ;;  %v14095_v5 = vpop.xlane.xlu1 %4679  ;;  %v17121_v43 = vpack.c.bf16 %v17119_v35, %v17120_v25 }
 0x62a   :  { %17111 = vst [vmem:[#allocation233_spill] sm:$0xff] %v14075_v28  ;;  %v14084_v27 = vpop.eup %8589  ;;  %8609 = vpow2.f32 %v4504_v63  ;;  %v4848_v19 = vadd.f32 %v14062_v40, %v4847_v36  ;;  %v4514_v63 = vmul.f32 1.442695, %v4048_v24  ;;  %v4051_v36 = vsub.f32 %v17117_v16, %v14005_v50  ;;  %v17122_v40 = vld [vmem:[#allocation243_spill] sm:$0xff] }
 0x62b   :  { %v14089_v1 = vpop.eup %8591  ;;  %8611 = vpow2.f32 %v4506_v59  ;;  %5350 = vmatprep.mubr.f32.mxu0 %v5023_v0  ;;  %v4851_v38 = vadd.f32 %v14084_v27, %v14075_v28  ;;  %v4516_v0 = vmul.f32 1.442695, %v4049_v37  ;;  %v4052_v60 = vsub.f32 %v17122_v40, %v14005_v50  ;;  %v17125_v16 = vld [vmem:[#allocation143_spill] sm:$0xff] }
 0x62c   :  { %17115 = vst [vmem:[#allocation146_spill] sm:$0xff] %v14089_v1  ;;  %v14097_v52 = vpop.eup %8593  ;;  %8613 = vpow2.f32 %v4508_v54  ;;  %5351 = vmatmul.mubr.f32.gmra.mrb[164].mxu0 %v5022_v12  ;;  %4849 = vadd.xlane.f32.xlu1 %v4848_v19  ;;  %v17124_v12 = vld [vmem:[#allocation15_spill] sm:$0xff]  ;;  %v4518_v40 = vmul.f32 1.442695, %v4050_v7  ;;  %v17131_v7 = vld [vmem:[#allocation21_spill] sm:$0xff] }
 0x62d   :  { %17116 = vst [vmem:[#allocation127_spill] sm:$0xff] %v14097_v52  ;;  %v14101_v59 = vpop.eup %8595  ;;  %8615 = vrcp.f32 %v13994_v6  ;;  %7780 = vmatpush1.bf16.msra.mxu0 %v17121_v43  ;;  %v4852_v54 = vadd.f32 %v14089_v1, %v4851_v38  ;;  %v4053_v19 = vsub.f32 %v17124_v12, %v14005_v50  ;;  %v17126_v6 = vld [vmem:[#allocation234_spill] sm:$0xff]  ;;  %v17129_v50 = vld [vmem:[#allocation19_spill] sm:$0xff] }
 0x62e   :  { %17118 = vst [vmem:[#allocation126_spill] sm:$0xff] %v14101_v59  ;;  %v14110_v24 = vpop.eup %8597  ;;  %8617 = vpow2.f32 %v4510_v2  ;;  %v5027_v28 = vmul.f32 %v14101_v59, %v17125_v16  ;;  %7781 = vmatprep.subr.bf16.mxu0 %v17019_v31  ;;  %v5026_v37 = vmul.f32 %v14101_v59, %v17126_v6  ;;  %v4520_v2 = vmul.f32 1.442695, %v4051_v36  ;;  %v14128_v16 = vpop.xlane.xlu1 %4684  ;;  %v17136_v59 = vld [vmem:[#allocation163_spill] sm:$0xff] }
 0x62f   :  { %17123 = vst [vmem:[#allocation32_spill] sm:$0xff] %v14110_v24  ;;  %v14119_v43 = vpop.eup %8599  ;;  %8619 = vpow2.f32 %v4512_v20  ;;  %v4853_v38 = vadd.f32 %v14097_v52, %v4852_v54  ;;  %v4054_v25 = vsub.f32 %v17129_v50, %v14049_v44  ;;  %v14130_v6 = vpop.xlane.xlu0 %3801  ;;  %v4522_v20 = vmul.f32 1.442695, %v4052_v60  ;;  %v17133_v54 = vld [vmem:[#allocation63_spill] sm:$0xff]  ;;  %v17134_v50 = vld [vmem:[#allocation62_spill] sm:$0xff] }
 0x630   :  { %17127 = vst [vmem:[#allocation30_spill] sm:$0xff] %v14119_v43  ;;  %v14122_v35 = vpop.eup %8601  ;;  %8621 = vpow2.f32 %v4514_v63  ;;  %5355 = vmatprep.mubr.f32.mxu0 %v5027_v28  ;;  %v4856_v12 = vadd.f32 %v14119_v43, %v14110_v24  ;;  %v4055_v63 = vsub.f32 %v17131_v7, %v14049_v44  ;;  %v4524_v36 = vmul.f32 1.442695, %v4053_v19  ;;  %v17139_v7 = vld [vmem:[#allocation147_spill] sm:$0xff] }
 0x631   :  { %17128 = vst [vmem:[#allocation52_spill] sm:$0xff] %v14122_v35  ;;  %v14132_v1 = vpop.eup %8603  ;;  %8623 = vpow2.f32 %v4516_v0  ;;  %5356 = vmatmul.mubr.f32.gmra.mrb[166].mxu0 %v5026_v37  ;;  %4854 = vadd.xlane.f32.xlu0 %v4853_v38  ;;  %v17135_v52 = vpack.c.bf16 %v17133_v54, %v17134_v50  ;;  %v4056_v24 = vsub.f32 %v17136_v59, %v14049_v44  ;;  %v17138_v37 = vld [vmem:[#allocation166_spill] sm:$0xff]  ;;  %v4526_v59 = vmul.f32 1.442695, %v4054_v25  ;;  %v17143_v50 = vld [vmem:[#allocation23_spill] sm:$0xff]  ;;  %v17145_v25 = vld [vmem:[#allocation25_spill] sm:$0xff] }
 0x632   :  { %17130 = vst [vmem:[#allocation50_spill] sm:$0xff] %v14132_v1  ;;  %v14136_v28 = vpop.eup %8605  ;;  %8625 = vrcp.f32 %v14025_v13  ;;  %v4857_v0 = vadd.f32 %v14122_v35, %v4856_v12  ;;  %v4057_v38 = vsub.f32 %v17138_v37, %v14049_v44  ;;  %v17140_v13 = vld [vmem:[#allocation237_spill] sm:$0xff]  ;;  %v4528_v44 = vmul.f32 1.442695, %v4055_v63 }
 0x633   :  { %17132 = vst [vmem:[#allocation235_spill] sm:$0xff] %v14136_v28  ;;  %7783 = vmatpush1.bf16.msra.mxu0 %v17135_v52  ;;  %v14145_v60 = vpop.eup %8607  ;;  %8627 = vpow2.f32 %v4518_v40  ;;  %v5031_v43 = vmul.f32 %v14136_v28, %v17139_v7  ;;  %v5030_v19 = vmul.f32 %v14136_v28, %v17140_v13  ;;  %v14157_v54 = vpop.xlane.xlu1 %4689  ;;  %v4058_v37 = vsub.f32 %v17143_v50, %v14087_v14  ;;  %v17147_v63 = vld [vmem:[#allocation65_spill] sm:$0xff]  ;;  %v17148_v50 = vld [vmem:[#allocation64_spill] sm:$0xff]  ;;  %v17150_v28 = vld [vmem:[#allocation246_spill] sm:$0xff] }
 0x634   :  { %17137 = vst [vmem:[#allocation150_spill] sm:$0xff] %v14145_v60  ;;  %7784 = vmatprep.subr.bf16.mxu0 %v17019_v31  ;;  %v14154_v52 = vpop.eup %8609  ;;  %8629 = vpow2.f32 %v4520_v2  ;;  %v4858_v12 = vadd.f32 %v14132_v1, %v4857_v0  ;;  %v4530_v2 = vmul.f32 1.442695, %v4056_v24  ;;  %v4059_v0 = vsub.f32 %v17145_v25, %v14087_v14  ;;  %v14169_v35 = vpop.xlane.xlu0 %3806 }
 0x635   :  { %17141 = vst [vmem:[#allocation129_spill] sm:$0xff] %v14154_v52  ;;  %v14159_v40 = vpop.eup %8611  ;;  %8631 = vpow2.f32 %v4522_v20  ;;  %5360 = vmatprep.mubr.f32.mxu0 %v5031_v43  ;;  %v4861_v7 = vadd.f32 %v14154_v52, %v14145_v60  ;;  %v4532_v43 = vmul.f32 1.442695, %v4057_v38  ;;  %v17149_v1 = vpack.c.bf16 %v17147_v63, %v17148_v50  ;;  %v17153_v60 = vld [vmem:[#allocation151_spill] sm:$0xff] }
 0x636   :  { %17142 = vst [vmem:[#allocation227_spill] sm:$0xff] %v14159_v40  ;;  %v14165_v13 = vpop.eup %8613  ;;  %8633 = vpow2.f32 %v4524_v36  ;;  %5361 = vmatmul.mubr.f32.gmra.mrb[168].mxu0 %v5030_v19  ;;  %4859 = vadd.xlane.f32.xlu1 %v4858_v12  ;;  %v4060_v36 = vsub.f32 %v17150_v28, %v14087_v14  ;;  %v17152_v12 = vld [vmem:[#allocation169_spill] sm:$0xff]  ;;  %v4534_v28 = vmul.f32 1.442695, %v4058_v37 }
 0x637   :  { %17144 = vst [vmem:[#allocation9_spill] sm:$0xff] %v14165_v13  ;;  %v14171_v20 = vpop.eup %8615  ;;  %8635 = vrcp.f32 %v14060_v21  ;;  %7786 = vmatpush1.bf16.msra.mxu0 %v17149_v1  ;;  %v4862_v24 = vadd.f32 %v14159_v40, %v4861_v7  ;;  %v4061_v25 = vsub.f32 %v17152_v12, %v14087_v14  ;;  %v17154_v21 = vld [vmem:[#allocation238_spill] sm:$0xff]  ;;  %v4536_v14 = vmul.f32 1.442695, %v4059_v0  ;;  %v17158_v37 = vld [vmem:[#allocation29_spill] sm:$0xff] }
 0x638   :  { %17146 = vst [vmem:[#allocation76_spill] sm:$0xff] %v14171_v20  ;;  %v14180_v19 = vpop.eup %8617  ;;  %8637 = vpow2.f32 %v4526_v59  ;;  %v5035_v52 = vmul.f32 %v14171_v20, %v17153_v60  ;;  %7787 = vmatprep.subr.bf16.mxu0 %v17019_v31  ;;  %v5034_v38 = vmul.f32 %v14171_v20, %v17154_v21  ;;  %v14192_v63 = vpop.xlane.xlu1 %4694  ;;  %v17156_v60 = vld [vmem:[#allocation27_spill] sm:$0xff]  ;;  %v17161_v0 = vld [vmem:[#allocation66_spill] sm:$0xff] }
 0x639   :  { %17151 = vst [vmem:[#allocation55_spill] sm:$0xff] %v14180_v19  ;;  %v14189_v1 = vpop.eup %8619  ;;  %8639 = vpow2.f32 %v4528_v44  ;;  %v4863_v7 = vadd.f32 %v14165_v13, %v4862_v24  ;;  %v4062_v50 = vsub.f32 %v17156_v60, %v14130_v6  ;;  %v4538_v44 = vmul.f32 1.442695, %v4060_v36  ;;  %v17163_v13 = vld [vmem:[#allocation248_spill] sm:$0xff]  ;;  %v14213_v36 = vpop.xlane.xlu0 %3811 }
 0x63a   :  { %v14194_v59 = vpop.eup %8621  ;;  %8641 = vpow2.f32 %v4530_v2  ;;  %5365 = vmatprep.mubr.f32.mxu0 %v5035_v52  ;;  %v4866_v12 = vadd.f32 %v14189_v1, %v14180_v19  ;;  %v4063_v24 = vsub.f32 %v17158_v37, %v14130_v6  ;;  %v4540_v52 = vmul.f32 1.442695, %v4061_v25  ;;  %v17160_v2 = vld [vmem:[#allocation67_spill] sm:$0xff]  ;;  %v17166_v25 = vld [vmem:[#allocation240_spill] sm:$0xff] }
 0x63b   :  { %17155 = vst [vmem:[#allocation54_spill] sm:$0xff] %v14194_v59  ;;  %v14200_v21 = vpop.eup %8623  ;;  %8643 = vpow2.f32 %v4532_v43  ;;  %5366 = vmatmul.mubr.f32.gmra.mrb[170].mxu0 %v5034_v38  ;;  %4864 = vadd.xlane.f32.xlu0 %v4863_v7  ;;  %v17162_v60 = vpack.c.bf16 %v17160_v2, %v17161_v0  ;;  %v4064_v20 = vsub.f32 %v17163_v13, %v14130_v6  ;;  %v17164_v7 = vld [vmem:[#allocation173_spill] sm:$0xff]  ;;  %v17165_v19 = vld [vmem:[#allocation155_spill] sm:$0xff]  ;;  %v4542_v13 = vmul.f32 1.442695, %v4062_v50 }
 0x63c   :  { %17157 = vst [vmem:[#allocation236_spill] sm:$0xff] %v14200_v21  ;;  %v14204_v40 = vpop.eup %8625  ;;  %8645 = vrcp.f32 %v14095_v5  ;;  %v4867_v43 = vadd.f32 %v14194_v59, %v4866_v12  ;;  %v4065_v37 = vsub.f32 %v17164_v7, %v14130_v6  ;;  %v4544_v6 = vmul.f32 1.442695, %v4063_v24  ;;  %v17170_v24 = vld [vmem:[#allocation71_spill] sm:$0xff] }
 0x63d   :  { %17159 = vst [vmem:[#allocation154_spill] sm:$0xff] %v14204_v40  ;;  %7789 = vmatpush1.bf16.msra.mxu0 %v17162_v60  ;;  %v14215_v38 = vpop.eup %8627  ;;  %8647 = vpow2.f32 %v4534_v28  ;;  %v5039_v5 = vmul.f32 %v14204_v40, %v17165_v19  ;;  %v5038_v2 = vmul.f32 %v14204_v40, %v17166_v25  ;;  %v14227_v60 = vpop.xlane.xlu1 %4699  ;;  %v4066_v19 = vsub.f32 %v12306_v4, %v14169_v35 }
 0x63e   :  { %7790 = vmatprep.subr.bf16.mxu0 %v17019_v31  ;;  %v14224_v0 = vpop.eup %8629  ;;  %8649 = vpow2.f32 %v4536_v14  ;;  %v4868_v12 = vadd.f32 %v14200_v21, %v4867_v43  ;;  %v4546_v14 = vmul.f32 1.442695, %v4064_v20  ;;  %v4067_v50 = vsub.f32 %v12309_v47, %v14169_v35  ;;  %v17173_v47 = vld [vmem:[#allocation177_spill] sm:$0xff] }
 0x63f   :  { %v14229_v28 = vpop.eup %8631  ;;  %8651 = vpow2.f32 %v4538_v44  ;;  %5370 = vmatprep.mubr.f32.mxu0 %v5039_v5  ;;  %v4871_v7 = vadd.f32 %v14224_v0, %v14215_v38  ;;  %v4548_v44 = vmul.f32 1.442695, %v4065_v37  ;;  %v17171_v5 = vld [vmem:[#allocation69_spill] sm:$0xff]  ;;  %v4068_v59 = vsub.f32 %v13117_v49, %v14169_v35 }
 0x640   :  { %17167 = vst [vmem:[#allocation133_spill] sm:$0xff] %v14229_v28  ;;  %v14235_v25 = vpop.eup %8633  ;;  %8653 = vpow2.f32 %v4540_v52  ;;  %5371 = vmatmul.mubr.f32.gmra.mrb[172].mxu0 %v5038_v2  ;;  %4869 = vadd.xlane.f32.xlu1 %v4868_v12  ;;  %v17172_v4 = vpack.c.bf16 %v17170_v24, %v17171_v5  ;;  %v4069_v2 = vsub.f32 %v17173_v47, %v14169_v35  ;;  %v17174_v12 = vld [vmem:[#allocation158_spill] sm:$0xff]  ;;  %v14257_v24 = vpop.xlane.xlu0 %3816  ;;  %v4550_v49 = vmul.f32 1.442695, %v4066_v19  ;;  %v17177_v47 = vld [vmem:[#allocation37_spill] sm:$0xff] }
 0x641   :  { %17168 = vst [vmem:[#allocation230_spill] sm:$0xff] %v14235_v25  ;;  %v14239_v43 = vpop.eup %8635  ;;  %8655 = vrcp.f32 %v14128_v16  ;;  %v4872_v52 = vadd.f32 %v14229_v28, %v4871_v7  ;;  %v17175_v16 = vld [vmem:[#allocation242_spill] sm:$0xff]  ;;  %v4552_v35 = vmul.f32 1.442695, %v4067_v50  ;;  %v17179_v19 = vld [vmem:[#allocation41_spill] sm:$0xff] }
 0x642   :  { %17169 = vst [vmem:[#allocation10_spill] sm:$0xff] %v14239_v43  ;;  %7792 = vmatpush1.bf16.msra.mxu0 %v17172_v4  ;;  %v14248_v20 = vpop.eup %8637  ;;  %8657 = vpow2.f32 %v4542_v13  ;;  %v5043_v21 = vmul.f32 %v14239_v43, %v17174_v12  ;;  %v5042_v37 = vmul.f32 %v14239_v43, %v17175_v16  ;;  %v14262_v13 = vpop.xlane.xlu1 %4704  ;;  %v4070_v12 = vsub.f32 %v17177_v47, %v14213_v36  ;;  %v17182_v50 = vld [vmem:[#allocation73_spill] sm:$0xff]  ;;  %v17184_v43 = vld [vmem:[#allocation250_spill] sm:$0xff] }
 0x643   :  { %7793 = vmatprep.subr.bf16.mxu0 %v17019_v31  ;;  %v14259_v5 = vpop.eup %8639  ;;  %8659 = vpow2.f32 %v4544_v6  ;;  %v4873_v7 = vadd.f32 %v14235_v25, %v4872_v52  ;;  %v4554_v6 = vmul.f32 1.442695, %v4068_v59  ;;  %v4071_v52 = vsub.f32 %v17179_v19, %v14213_v36 }
 0x644   :  { %v14264_v4 = vpop.eup %8641  ;;  %8661 = vpow2.f32 %v4546_v14  ;;  %5375 = vmatprep.mubr.f32.mxu0 %v5043_v21  ;;  %v4876_v16 = vadd.f32 %v14259_v5, %v14248_v20  ;;  %v4556_v21 = vmul.f32 1.442695, %v4069_v2  ;;  %v17181_v14 = vld [vmem:[#allocation75_spill] sm:$0xff]  ;;  %v4072_v40 = vsub.f32 %v17184_v43, %v14213_v36 }
 0x645   :  { %17176 = vst [vmem:[#allocation11_spill] sm:$0xff] %v14264_v4  ;;  %v14270_v28 = vpop.eup %8643  ;;  %8663 = vpow2.f32 %v4548_v44  ;;  %5376 = vmatmul.mubr.f32.gmra.mrb[174].mxu0 %v5042_v37  ;;  %4874 = vadd.xlane.f32.xlu0 %v4873_v7  ;;  %v17183_v47 = vpack.c.bf16 %v17181_v14, %v17182_v50  ;;  %v4073_v37 = vsub.f32 %v13192_v34, %v14213_v36  ;;  %v17185_v7 = vld [vmem:[#allocation161_spill] sm:$0xff]  ;;  %v4558_v43 = vmul.f32 1.442695, %v4070_v12  ;;  %v17189_v12 = vld [vmem:[#allocation43_spill] sm:$0xff] }
 0x646   :  { %17178 = vst [vmem:[#allocation57_spill] sm:$0xff] %v14270_v28  ;;  %v14274_v25 = vpop.eup %8645  ;;  %8665 = vrcp.f32 %v14157_v54  ;;  %v4877_v44 = vadd.f32 %v14264_v4, %v4876_v16  ;;  %v17186_v54 = vld [vmem:[#allocation244_spill] sm:$0xff]  ;;  %v4560_v34 = vmul.f32 1.442695, %v4071_v52  ;;  %v4074_v36 = vsub.f32 %v12347_v10, %v14257_v24  ;;  %v17190_v52 = vld [vmem:[#allocation78_spill] sm:$0xff] }
 0x647   :  { %17180 = vst [vmem:[#allocation56_spill] sm:$0xff] %v14274_v25  ;;  %7795 = vmatpush1.bf16.msra.mxu0 %v17183_v47  ;;  %v14283_v59 = vpop.eup %8647  ;;  %8667 = vpow2.f32 %v4550_v49  ;;  %v5047_v19 = vmul.f32 %v14274_v25, %v17185_v7  ;;  %v5046_v2 = vmul.f32 %v14274_v25, %v17186_v54  ;;  %v14292_v14 = vpop.xlane.xlu1 %4709 }
 0x648   :  { %7796 = vmatprep.subr.bf16.mxu0 %v17019_v31  ;;  %v14294_v50 = vpop.eup %8649  ;;  %8669 = vpow2.f32 %v4552_v35  ;;  %v4878_v16 = vadd.f32 %v14270_v28, %v4877_v44  ;;  %v14297_v49 = vpop.xlane.xlu0 %3821  ;;  %v4562_v35 = vmul.f32 1.442695, %v4072_v40  ;;  %v4075_v44 = vsub.f32 %v17189_v12, %v14257_v24  ;;  %v17193_v28 = vld [vmem:[#allocation252_spill] sm:$0xff] }
 0x649   :  { %v14299_v47 = vpop.eup %8651  ;;  %8671 = vpow2.f32 %v4554_v6  ;;  %5380 = vmatprep.mubr.f32.mxu0 %v5047_v19  ;;  %v4881_v7 = vadd.f32 %v14294_v50, %v14283_v59  ;;  %v4564_v6 = vmul.f32 1.442695, %v4073_v37  ;;  %v17191_v19 = vld [vmem:[#allocation77_spill] sm:$0xff]  ;;  %v4076_v25 = vsub.f32 %v17193_v28, %v14257_v24 }
 0x64a   :  { %17187 = vst [vmem:[#allocation239_spill] sm:$0xff] %v14299_v47  ;;  %v14305_v54 = vpop.eup %8653  ;;  %8673 = vpow2.f32 %v4556_v21  ;;  %5381 = vmatmul.mubr.f32.gmra.mrb[176].mxu0 %v5046_v2  ;;  %4879 = vadd.xlane.f32.xlu1 %v4878_v16  ;;  %v17192_v10 = vpack.c.bf16 %v17190_v52, %v17191_v19  ;;  %v4077_v2 = vsub.f32 %v13235_v57, %v14257_v24  ;;  %v17194_v16 = vld [vmem:[#allocation164_spill] sm:$0xff]  ;;  %v4566_v28 = vmul.f32 1.442695, %v4074_v36 }
 0x64b   :  { %17188 = vst [vmem:[#allocation157_spill] sm:$0xff] %v14305_v54  ;;  %v14309_v4 = vpop.eup %8655  ;;  %8675 = vrcp.f32 %v14192_v63  ;;  %v4882_v21 = vadd.f32 %v14299_v47, %v4881_v7  ;;  %v17195_v63 = vld [vmem:[#allocation245_spill] sm:$0xff]  ;;  %v4568_v57 = vmul.f32 1.442695, %v4075_v44  ;;  %v4078_v24 = vsub.f32 %v12364_v42, %v14297_v49  ;;  %v17198_v42 = vld [vmem:[#allocation80_spill] sm:$0xff] }
 0x64c   :  { %7798 = vmatpush1.bf16.msra.mxu0 %v17192_v10  ;;  %v14318_v40 = vpop.eup %8657  ;;  %8677 = vpow2.f32 %v4558_v43  ;;  %v5051_v12 = vmul.f32 %v14309_v4, %v17194_v16  ;;  %v5050_v37 = vmul.f32 %v14309_v4, %v17195_v63  ;;  %v14327_v52 = vpop.xlane.xlu1 %4714  ;;  %v4079_v36 = vsub.f32 %v12367_v39, %v14297_v49  ;;  %v17201_v63 = vld [vmem:[#allocation253_spill] sm:$0xff] }
 0x64d   :  { %7799 = vmatprep.subr.bf16.mxu0 %v17019_v31  ;;  %v14329_v19 = vpop.eup %8659  ;;  %8679 = vpow2.f32 %v4560_v34  ;;  %v4883_v7 = vadd.f32 %v14305_v54, %v4882_v21  ;;  %v14336_v31 = vpop.xlane.xlu0 %3826  ;;  %v4570_v34 = vmul.f32 1.442695, %v4076_v25  ;;  %v4572_v44 = vmul.f32 1.442695, %v4077_v2  ;;  %v17199_v21 = vld [vmem:[#allocation79_spill] sm:$0xff] }
 0x64e   :  { %v14332_v43 = vpop.eup %8661  ;;  %8681 = vpow2.f32 %v4562_v35  ;;  %5385 = vmatprep.mubr.f32.mxu0 %v5051_v12  ;;  %v4886_v10 = vadd.f32 %v14329_v19, %v14318_v40  ;;  %v17200_v12 = vpack.c.bf16 %v17198_v42, %v17199_v21  ;;  %v4080_v47 = vsub.f32 %v17201_v63, %v14297_v49  ;;  %v17203_v2 = vld [vmem:[#allocation247_spill] sm:$0xff] }
 0x64f   :  { %17196 = vst [vmem:[#allocation16_spill] sm:$0xff] %v14332_v43  ;;  %v14340_v16 = vpop.eup %8663  ;;  %8683 = vpow2.f32 %v4564_v6  ;;  %5386 = vmatmul.mubr.f32.gmra.mrb[178].mxu0 %v5050_v37  ;;  %4884 = vadd.xlane.f32.xlu0 %v4883_v7  ;;  %v4081_v39 = vsub.f32 %v13276_v30, %v14297_v49  ;;  %v17202_v7 = vld [vmem:[#allocation167_spill] sm:$0xff]  ;;  %v4082_v30 = vsub.f32 %v12370_v18, %v14336_v31 }
 0x650   :  { %17197 = vst [vmem:[#allocation231_spill] sm:$0xff] %v14340_v16  ;;  %v14344_v35 = vpop.eup %8665  ;;  %8685 = vrcp.f32 %v14227_v60  ;;  %7801 = vmatpush1.bf16.msra.mxu0 %v17200_v12  ;;  %v4887_v6 = vadd.f32 %v14332_v43, %v4886_v10  ;;  %v14353_v25 = vpop.xlane.xlu1 %4719  ;;  %v4574_v12 = vmul.f32 1.442695, %v4078_v24  ;;  %v4576_v43 = vmul.f32 1.442695, %v4079_v36 }
 0x651   :  { %v14355_v37 = vpop.eup %8667  ;;  %8687 = vpow2.f32 %v4566_v28  ;;  %v5055_v60 = vmul.f32 %v14344_v35, %v17202_v7  ;;  %v5054_v42 = vmul.f32 %v14344_v35, %v17203_v2  ;;  %v4578_v7 = vmul.f32 1.442695, %v4080_v47 }
 0x652   :  { %v14363_v21 = vpop.eup %8669  ;;  %8689 = vpow2.f32 %v4568_v57  ;;  %v4888_v10 = vadd.f32 %v14340_v16, %v4887_v6  ;;  %v17206_v57 = vld [vmem:[#allocation47_spill] sm:$0xff]  ;;  %v3832_v6 = vpop.xlane.xlu0 %3831  ;;  %v4580_v18 = vmul.f32 1.442695, %v4081_v39  ;;  %v4084_v36 = vsub.f32 %v13283_v15, %v14336_v31 }
 0x653   :  { %v14366_v63 = vpop.eup %8671  ;;  %8691 = vpow2.f32 %v4570_v34  ;;  %5390 = vmatprep.mubr.f32.mxu0 %v5055_v60  ;;  %v4891_v49 = vadd.f32 %v14363_v21, %v14355_v37  ;;  %v4083_v24 = vsub.f32 %v17206_v57, %v14336_v31  ;;  %v4085_v47 = vsub.f32 %v13315_v11, %v14336_v31  ;;  %v17208_v57 = vld [vmem:[#allocation249_spill] sm:$0xff] }
 0x654   :  { %17204 = vst [vmem:[#allocation12_spill] sm:$0xff] %v14366_v63  ;;  %v14372_v28 = vpop.eup %8673  ;;  %8693 = vpow2.f32 %v4572_v44  ;;  %5391 = vmatmul.mubr.f32.gmra.mrb[180].mxu0 %v5054_v42  ;;  %4889 = vadd.xlane.f32.xlu1 %v4888_v10  ;;  %v14376_v2 = vpop.xlane.xlu1 %4724  ;;  %v17207_v42 = vld [vmem:[#allocation170_spill] sm:$0xff] }
 0x655   :  { %17205 = vst [vmem:[#allocation13_spill] sm:$0xff] %v14372_v28  ;;  %v14378_v34 = vpop.eup %8675  ;;  %8695 = vrcp.f32 %v14262_v13  ;;  %v4892_v60 = vadd.f32 %v14366_v63, %v4891_v49  ;;  %v4582_v13 = vmul.f32 1.442695, %v4082_v30  ;;  %v4584_v49 = vmul.f32 1.442695, %v4083_v24 }
 0x656   :  { %v14384_v44 = vpop.eup %8677  ;;  %8697 = vpow2.f32 %v4574_v12  ;;  %v5059_v10 = vmul.f32 %v14378_v34, %v17207_v42  ;;  %v5058_v16 = vmul.f32 %v14378_v34, %v17208_v57  ;;  %v4086_v12 = vsub.f32 %v12386_v51, %v3832_v6  ;;  %v3837_v24 = vpop.xlane.xlu0 %3836 }
 0x657   :  { %v14392_v54 = vpop.eup %8679  ;;  %8699 = vpow2.f32 %v4576_v43  ;;  %v4893_v15 = vadd.f32 %v14372_v28, %v4892_v60  ;;  %v4586_v57 = vmul.f32 1.442695, %v4084_v36  ;;  %v4087_v43 = vsub.f32 %v12389_v56, %v3832_v6  ;;  %v17211_v36 = vld [vmem:[#allocation174_spill] sm:$0xff]  ;;  %v17212_v56 = vld [vmem:[#allocation251_spill] sm:$0xff] }
 0x658   :  { %v14395_v39 = vpop.eup %8681  ;;  %8701 = vpow2.f32 %v4578_v7  ;;  %5395 = vmatprep.mubr.f32.mxu0 %v5059_v10  ;;  %v4896_v11 = vadd.f32 %v14392_v54, %v14384_v44  ;;  %v14400_v31 = vpop.xlane.xlu1 %4729  ;;  %v4588_v7 = vmul.f32 1.442695, %v4085_v47  ;;  %v4088_v51 = vsub.f32 %v13320_v9, %v3832_v6 }
 0x659   :  { %17209 = vst [vmem:[#allocation59_spill] sm:$0xff] %v14395_v39  ;;  %v14402_v42 = vpop.eup %8683  ;;  %8703 = vpow2.f32 %v4580_v18  ;;  %5396 = vmatmul.mubr.f32.gmra.mrb[182].mxu0 %v5058_v16  ;;  %4894 = vadd.xlane.f32.xlu0 %v4893_v15  ;;  %v4089_v18 = vsub.f32 %v13354_v46, %v3832_v6  ;;  %v4090_v46 = vsub.f32 %v12411_v23, %v3837_v24 }
 0x65a   :  { %17210 = vst [vmem:[#allocation58_spill] sm:$0xff] %v14402_v42  ;;  %v14405_v30 = vpop.eup %8685  ;;  %8705 = vrcp.f32 %v14292_v14  ;;  %v4897_v60 = vadd.f32 %v14395_v39, %v4896_v11  ;;  %v4590_v14 = vmul.f32 1.442695, %v4086_v12  ;;  %v4093_v39 = vsub.f32 %v13390_v61, %v3837_v24 }
 0x65b   :  { %v14410_v10 = vpop.eup %8687  ;;  %8707 = vpow2.f32 %v4582_v13  ;;  %v5063_v16 = vmul.f32 %v14405_v30, %v17211_v36  ;;  %v5062_v15 = vmul.f32 %v14405_v30, %v17212_v56  ;;  %v4592_v13 = vmul.f32 1.442695, %v4087_v43  ;;  %v17215_v43 = vld [vmem:[#allocation91_spill] sm:$0xff] }
 0x65c   :  { %v14417_v63 = vpop.eup %8689  ;;  %8709 = vpow2.f32 %v4584_v49  ;;  %v4898_v9 = vadd.f32 %v14402_v42, %v4897_v60  ;;  %v14420_v47 = vpop.xlane.xlu1 %4734  ;;  %v4594_v56 = vmul.f32 1.442695, %v4088_v51  ;;  %v4091_v49 = vsub.f32 %v12414_v55, %v3837_v24 }
 0x65d   :  { %v14422_v11 = vpop.eup %8691  ;;  %8711 = vpow2.f32 %v4586_v57  ;;  %5400 = vmatprep.mubr.f32.mxu0 %v5063_v16  ;;  %v4901_v6 = vadd.f32 %v14417_v63, %v14410_v10  ;;  %v4596_v57 = vmul.f32 1.442695, %v4089_v18  ;;  %v4092_v60 = vsub.f32 %v17215_v43, %v3837_v24 }
 0x65e   :  { %17213 = vst [vmem:[#allocation241_spill] sm:$0xff] %v14422_v11  ;;  %v14427_v36 = vpop.eup %8693  ;;  %8713 = vpow2.f32 %v4588_v7  ;;  %5401 = vmatmul.mubr.f32.gmra.mrb[184].mxu0 %v5062_v15  ;;  %4899 = vadd.xlane.f32.xlu1 %v4898_v9  ;;  %v17216_v7 = vld [vmem:[#allocation178_spill] sm:$0xff]  ;;  %v17217_v15 = vld [vmem:[#allocation181_spill] sm:$0xff] }
 0x65f   :  { %17214 = vst [vmem:[#allocation160_spill] sm:$0xff] %v14427_v36  ;;  %v14430_v12 = vpop.eup %8695  ;;  %8715 = vrcp.f32 %v14327_v52  ;;  %v4902_v23 = vadd.f32 %v14422_v11, %v4901_v6  ;;  %v4598_v52 = vmul.f32 1.442695, %v4090_v46  ;;  %v4600_v6 = vmul.f32 1.442695, %v4091_v49  ;;  %v17220_v49 = vld [vmem:[#allocation88_spill] sm:$0xff] }
 0x660   :  { %v14435_v16 = vpop.eup %8697  ;;  %8717 = vpow2.f32 %v4590_v14  ;;  %v5067_v51 = vmul.f32 %v14430_v12, %v17216_v7  ;;  %v5066_v55 = vmul.f32 %v14430_v12, %v17217_v15  ;;  %v4740_v9 = vpop.xlane.xlu1 %4739  ;;  %v4602_v14 = vmul.f32 1.442695, %v4092_v60  ;;  %v17221_v15 = vld [vmem:[#allocation184_spill] sm:$0xff] }
 0x661   :  { %v14442_v42 = vpop.eup %8699  ;;  %8719 = vpow2.f32 %v4592_v13  ;;  %v4903_v18 = vadd.f32 %v14427_v36, %v4902_v23  ;;  %v4604_v13 = vmul.f32 1.442695, %v4093_v39  ;;  %v17233_v36 = vld [vmem:[#allocation94_spill] sm:$0xff] }
 0x662   :  { %v14445_v43 = vpop.eup %8701  ;;  %8721 = vpow2.f32 %v4594_v56  ;;  %5405 = vmatprep.mubr.f32.mxu0 %v5067_v51  ;;  %v4906_v61 = vadd.f32 %v14442_v42, %v14435_v16 }
 0x663   :  { %17218 = vst [vmem:[#allocation14_spill] sm:$0xff] %v14445_v43  ;;  %v14449_v24 = vpop.eup %8703  ;;  %8723 = vpow2.f32 %v4596_v57  ;;  %5406 = vmatmul.mubr.f32.gmra.mrb[186].mxu0 %v5066_v55  ;;  %4904 = vadd.xlane.f32.xlu0 %v4903_v18 }
 0x664   :  { %17219 = vst [vmem:[#allocation142_spill] sm:$0xff] %v14449_v24  ;;  %v14451_v7 = vpop.eup %8705  ;;  %8725 = vrcp.f32 %v14353_v25  ;;  %v4907_v46 = vadd.f32 %v14445_v43, %v4906_v61  ;;  %v4745_v23 = vpop.xlane.xlu1 %4744 }
 0x665   :  { %v14455_v56 = vpop.eup %8707  ;;  %8727 = vpow2.f32 %v4598_v52  ;;  %v5071_v51 = vmul.f32 %v14451_v7, %v17220_v49  ;;  %v5070_v57 = vmul.f32 %v14451_v7, %v17221_v15  ;;  %v17224_v49 = vld [vmem:[#allocation187_spill] sm:$0xff] }
 0x666   :  { %v14461_v60 = vpop.eup %8709  ;;  %8729 = vpow2.f32 %v4600_v6  ;;  %v4908_v55 = vadd.f32 %v14449_v24, %v4907_v46  ;;  %v17230_v24 = vld [vmem:[#allocation93_spill] sm:$0xff] }
 0x667   :  { %v14464_v18 = vpop.eup %8711  ;;  %8731 = vpow2.f32 %v4602_v14  ;;  %5410 = vmatprep.mubr.f32.mxu0 %v5071_v51  ;;  %v4911_v25 = vadd.f32 %v14461_v60, %v14455_v56 }
 0x668   :  { %17222 = vst [vmem:[#allocation17_spill] sm:$0xff] %v14464_v18  ;;  %v14468_v39 = vpop.eup %8713  ;;  %8733 = vpow2.f32 %v4604_v13  ;;  %5411 = vmatmul.mubr.f32.gmra.mrb[188].mxu0 %v5070_v57  ;;  %4909 = vadd.xlane.f32.xlu1 %v4908_v55  ;;  %v4750_v52 = vpop.xlane.xlu1 %4749 }
 0x669   :  { %17223 = vst [vmem:[#allocation61_spill] sm:$0xff] %v14468_v39  ;;  %v14470_v61 = vpop.eup %8715  ;;  %8735 = vrcp.f32 %v14376_v2  ;;  %v4912_v6 = vadd.f32 %v14464_v18, %v4911_v25 }
 0x66a   :  { %v14474_v46 = vpop.eup %8717  ;;  %8737 = vrcp.f32 %v14400_v31  ;;  %v5075_v14 = vmul.f32 %v14470_v61, %v13292_v53  ;;  %v5074_v51 = vmul.f32 %v14470_v61, %v17224_v49 }
 0x66b   :  { %v14481_v13 = vpop.eup %8719  ;;  %8739 = vrcp.f32 %v14420_v47  ;;  %v4913_v15 = vadd.f32 %v14468_v39, %v4912_v6 }
 0x66c   :  { %v14485_v57 = vpop.eup %8721  ;;  %5415 = vmatprep.mubr.f32.mxu0 %v5075_v14  ;;  %v4916_v2 = vadd.f32 %v14481_v13, %v14474_v46  ;;  %v4755_v55 = vpop.xlane.xlu1 %4754  ;;  %8741 = vrcp.f32 %v4740_v9 }
 0x66d   :  { %17225 = vst [vmem:[#allocation60_spill] sm:$0xff] %v14485_v57  ;;  %v14489_v31 = vpop.eup %8723  ;;  %5416 = vmatmul.mubr.f32.gmra.mrb[190].mxu0 %v5074_v51  ;;  %4914 = vadd.xlane.f32.xlu0 %v4913_v15  ;;  %8743 = vrcp.f32 %v4745_v23  ;;  %v17231_v23 = vld [vmem:[#allocation92_spill] sm:$0xff] }
 0x66e   :  { %17226 = vst [vmem:[#allocation243_spill] sm:$0xff] %v14489_v31  ;;  %v14491_v53 = vpop.eup %8725  ;;  %v4917_v25 = vadd.f32 %v14485_v57, %v4916_v2  ;;  %v17229_v57 = vld [vmem:[#allocation90_spill] sm:$0xff]  ;;  %8745 = vrcp.f32 %v4750_v52  ;;  %v17234_v52 = vld [vmem:[#allocation96_spill] sm:$0xff] }
 0x66f   :  { %v14494_v49 = vpop.eup %8727  ;;  %v5079_v47 = vmul.f32 %v14491_v53, %v13334_v41  ;;  %v5078_v6 = vmul.f32 %v14491_v53, %v13322_v29  ;;  %8747 = vrcp.f32 %v4755_v55 }
 0x670   :  { %v14500_v14 = vpop.eup %8729  ;;  %v4918_v18 = vadd.f32 %v14489_v31, %v4917_v25  ;;  %v4760_v39 = vpop.xlane.xlu1 %4759 }
 0x671   :  { %v14503_v51 = vpop.eup %8731  ;;  %5420 = vmatprep.mubr.f32.mxu0 %v5079_v47  ;;  %v4921_v15 = vadd.f32 %v14500_v14, %v14494_v49  ;;  %8749 = vrcp.f32 %v4760_v39 }
 0x672   :  { %17227 = vst [vmem:[#allocation15_spill] sm:$0xff] %v14503_v51  ;;  %v14507_v2 = vpop.eup %8733  ;;  %5421 = vmatmul.mubr.f32.gmra.mrb[192].mxu0 %v5078_v6  ;;  %4919 = vadd.xlane.f32.xlu1 %v4918_v18 }
 0x673   :  { %17228 = vst [vmem:[#allocation143_spill] sm:$0xff] %v14507_v2  ;;  %v14509_v41 = vpop.eup %8735  ;;  %v4922_v29 = vadd.f32 %v14503_v51, %v4921_v15 }
 0x674   :  { %v14512_v9 = vpop.eup %8737  ;;  %v5083_v25 = vmul.f32 %v14509_v41, %v13367_v22  ;;  %v5082_v47 = vmul.f32 %v14509_v41, %v17229_v57  ;;  %v4765_v31 = vpop.xlane.xlu1 %4764  ;;  %v17232_v22 = vld [vmem:[#allocation95_spill] sm:$0xff] }
 0x675   :  { %v14518_v43 = vpop.eup %8739  ;;  %v5087_v6 = vmul.f32 %v14512_v9, %v17230_v24  ;;  %v4923_v18 = vadd.f32 %v14507_v2, %v4922_v29  ;;  %v5086_v15 = vmul.f32 %v14512_v9, %v17231_v23  ;;  %8751 = vrcp.f32 %v4765_v31  ;;  %v17238_v31 = vld [vmem:[#allocation101_spill] sm:$0xff] }
 0x676   :  { %5425 = vmatprep.mubr.f32.mxu0 %v5083_v25  ;;  %v5091_v51 = vmul.f32 %v14518_v43, %v17232_v22  ;;  %v14527_v11 = vpop.eup %8741  ;;  %v5090_v24 = vmul.f32 %v14518_v43, %v17233_v36  ;;  %v17236_v36 = vld [vmem:[#allocation197_spill] sm:$0xff] }
 0x677   :  { %5426 = vmatmul.mubr.f32.gmra.mrb[194].mxu0 %v5082_v47  ;;  %4924 = vadd.xlane.f32.xlu0 %v4923_v18  ;;  %v5095_v29 = vmul.f32 %v14527_v11, %v13455_v62  ;;  %v14533_v47 = vpop.eup %8743  ;;  %v17235_v18 = vld [vmem:[#allocation98_spill] sm:$0xff] }
 0x678   :  { %5430 = vmatprep.mubr.f32.mxu0 %v5087_v6  ;;  %v4770_v57 = vpop.xlane.xlu1 %4769  ;;  %v5094_v6 = vmul.f32 %v14527_v11, %v17234_v52  ;;  %v5099_v23 = vmul.f32 %v14533_v47, %v17235_v18  ;;  %v14539_v22 = vpop.eup %8745  ;;  %v5098_v55 = vmul.f32 %v14533_v47, %v17236_v36 }
 0x679   :  { %v5103_v62 = vmul.f32 %v14539_v22, %v13500_v17  ;;  %v5102_v39 = vmul.f32 %v14539_v22, %v13497_v32  ;;  %8753 = vrcp.f32 %v4770_v57  ;;  %v17239_v57 = vld [vmem:[#allocation202_spill] sm:$0xff] }
 0x67b   :  { %5431 = vmatmul.mubr.f32.gmra.mrb[196].mxu0 %v5086_v15 }
 0x67c   :  { %5435 = vmatprep.mubr.f32.mxu0 %v5091_v51  ;;  %v4775_v25 = vpop.xlane.xlu1 %4774  ;;  %v14545_v51 = vpop.eup %8747 }
 0x67d   :  { %v5106_v18 = vmul.f32 %v14545_v51, %v17238_v31  ;;  %8755 = vrcp.f32 %v4775_v25  ;;  %v17240_v25 = vld [vmem:[#allocation204_spill] sm:$0xff] }
 0x67f   :  { %5436 = vmatmul.mubr.f32.gmra.mrb[198].mxu0 %v5090_v24 }
 0x680   :  { %5440 = vmatprep.mubr.f32.mxu0 %v5095_v29  ;;  %v4780_v15 = vpop.xlane.xlu1 %4779  ;;  %v17237_v29 = vld [vmem:[#allocation200_spill] sm:$0xff] }
 0x681   :  { %v5107_v52 = vmul.f32 %v14545_v51, %v17237_v29  ;;  %8757 = vrcp.f32 %v4780_v15 }
 0x683   :  { %5441 = vmatmul.mubr.f32.gmra.mrb[200].mxu0 %v5094_v6  ;;  %v14551_v6 = vpop.eup %8749 }
 0x684   :  { %5445 = vmatprep.mubr.f32.mxu0 %v5099_v23  ;;  %v4785_v24 = vpop.xlane.xlu1 %4784  ;;  %v5111_v17 = vmul.f32 %v14551_v6, %v13548_v48  ;;  %v14557_v36 = vpop.eup %8751  ;;  %v5110_v32 = vmul.f32 %v14551_v6, %v13541_v45  ;;  %v17241_v48 = vld [vmem:[#allocation110_spill] sm:$0xff]  ;;  %v17242_v45 = vld [vmem:[#allocation207_spill] sm:$0xff] }
 0x685   :  { %v5114_v29 = vmul.f32 %v14557_v36, %v17240_v25  ;;  %8759 = vrcp.f32 %v4785_v24  ;;  %v17245_v24 = vld [vmem:[#allocation211_spill] sm:$0xff] }
 0x686   :  { %v17246_v25 = vld [vmem:[#allocation35_spill] sm:$0xff] }
 0x687   :  { %5446 = vmatmul.mubr.f32.gmra.mrb[202].mxu0 %v5098_v55  ;;  %v5115_v55 = vmul.f32 %v14557_v36, %v17239_v57 }
 0x688   :  { %5450 = vmatprep.mubr.f32.mxu0 %v5103_v62  ;;  %v4790_v23 = vpop.xlane.xlu1 %4789  ;;  %v14563_v62 = vpop.eup %8753 }
 0x689   :  { %v14569_v31 = vpop.eup %8755  ;;  %v5118_v15 = vmul.f32 %v14563_v62, %v17242_v45  ;;  %8761 = vrcp.f32 %v4790_v23  ;;  %v17248_v23 = vld [vmem:[#allocation31_spill] sm:$0xff] }
 0x68b   :  { %5451 = vmatmul.mubr.f32.gmra.mrb[204].mxu0 %v5102_v39  ;;  %v14575_v57 = vpop.eup %8757 }
 0x68c   :  { %5455 = vmatprep.mubr.f32.mxu0 %v5107_v52  ;;  %v4795_v39 = vpop.xlane.xlu1 %4794  ;;  %v5119_v52 = vmul.f32 %v14563_v62, %v17241_v48  ;;  %17244 = vst [vmem:[#allocation234_spill] sm:$0xff] %v14575_v57 }
 0x68d   :  { %8763 = vrcp.f32 %v4795_v39  ;;  %v17251_v39 = vld [vmem:[#allocation53_spill] sm:$0xff] }
 0x68f   :  { %5456 = vmatmul.mubr.f32.gmra.mrb[206].mxu0 %v5106_v18  ;;  %v17243_v18 = vld [vmem:[#allocation208_spill] sm:$0xff]  ;;  %v14581_v48 = vpop.eup %8759 }
 0x690   :  { %5460 = vmatprep.mubr.f32.mxu0 %v5111_v17  ;;  %v5123_v17 = vmul.f32 %v14569_v31, %v17243_v18  ;;  %17247 = vst [vmem:[#allocation19_spill] sm:$0xff] %v14581_v48  ;;  %v17249_v18 = vld [vmem:[#allocation83_spill] sm:$0xff] }
 0x693   :  { %5461 = vmatmul.mubr.f32.gmra.mrb[208].mxu0 %v5110_v32  ;;  %v4800_v32 = vpop.xlane.xlu1 %4799  ;;  %v14587_v2 = vpop.eup %8761 }
 0x694   :  { %5465 = vmatprep.mubr.f32.mxu0 %v5115_v55  ;;  %v5122_v55 = vmul.f32 %v14569_v31, %v17245_v24  ;;  %8765 = vrcp.f32 %v4800_v32  ;;  %17250 = vst [vmem:[#allocation21_spill] sm:$0xff] %v14587_v2  ;;  %v17252_v24 = vld [vmem:[#allocation104_spill] sm:$0xff]  ;;  %v17254_v32 = vld [vmem:[#allocation85_spill] sm:$0xff] }
 0x697   :  { %5466 = vmatmul.mubr.f32.gmra.mrb[210].mxu0 %v5114_v29  ;;  %v5127_v29 = vmul.f32 %v14575_v57, %v17246_v25  ;;  %v4805_v45 = vpop.xlane.xlu1 %4804  ;;  %v5135_v25 = vmul.f32 %v14587_v2, %v17252_v24  ;;  %v14593_v28 = vpop.eup %8763 }
 0x698   :  { %5470 = vmatprep.mubr.f32.mxu0 %v5119_v52  ;;  %v5126_v52 = vmul.f32 %v14575_v57, %v17248_v23  ;;  %8767 = vrcp.f32 %v4805_v45  ;;  %17253 = vst [vmem:[#allocation63_spill] sm:$0xff] %v14593_v28  ;;  %v17255_v23 = vld [vmem:[#allocation109_spill] sm:$0xff]  ;;  %v17256_v45 = vld [vmem:[#allocation87_spill] sm:$0xff] }
 0x69b   :  { %5471 = vmatmul.mubr.f32.gmra.mrb[212].mxu0 %v5118_v15  ;;  %v5131_v15 = vmul.f32 %v14581_v48, %v17249_v18  ;;  %v4815_v18 = vpop.xlane.xlu0 %4814 }
 0x69c   :  { %5475 = vmatprep.mubr.f32.mxu0 %v5123_v17  ;;  %v5130_v17 = vmul.f32 %v14581_v48, %v17251_v39  ;;  %v17257_v39 = vld [vmem:[#allocation107_spill] sm:$0xff] }
 0x69e   :  { %v14599_v57 = vpop.eup %8765 }
 0x69f   :  { %5476 = vmatmul.mubr.f32.gmra.mrb[214].mxu0 %v5122_v55  ;;  %v4810_v55 = vpop.xlane.xlu1 %4809 }
 0x6a0   :  { %5480 = vmatprep.mubr.f32.mxu0 %v5127_v29  ;;  %v5134_v29 = vmul.f32 %v14587_v2, %v17254_v32  ;;  %8769 = vrcp.f32 %v4810_v55  ;;  %v17259_v32 = vld [vmem:[#allocation114_spill] sm:$0xff] }
 0x6a1   :  { %8771 = vrcp.f32 %v4815_v18 }
 0x6a2   :  { %v14605_v48 = vpop.eup %8767 }
 0x6a3   :  { %5481 = vmatmul.mubr.f32.gmra.mrb[216].mxu0 %v5126_v52  ;;  %v5139_v52 = vmul.f32 %v14593_v28, %v17255_v23  ;;  %v4820_v24 = vpop.xlane.xlu1 %4819  ;;  %v4825_v23 = vpop.xlane.xlu0 %4824 }
 0x6a4   :  { %5485 = vmatprep.mubr.f32.mxu0 %v5131_v15  ;;  %v5138_v15 = vmul.f32 %v14593_v28, %v17256_v45  ;;  %8773 = vrcp.f32 %v4820_v24  ;;  %v17261_v45 = vld [vmem:[#allocation218_spill] sm:$0xff] }
 0x6a5   :  { %8775 = vrcp.f32 %v4825_v23 }
 0x6a7   :  { %5486 = vmatmul.mubr.f32.gmra.mrb[218].mxu0 %v5130_v17  ;;  %v5143_v17 = vmul.f32 %v14599_v57, %v17257_v39  ;;  %v4830_v39 = vpop.xlane.xlu1 %4829 }
 0x6a8   :  { %5490 = vmatprep.mubr.f32.mxu0 %v5135_v25  ;;  %v17258_v25 = vld [vmem:[#allocation214_spill] sm:$0xff]  ;;  %8777 = vrcp.f32 %v4830_v39 }
 0x6a9   :  { %v5142_v55 = vmul.f32 %v14599_v57, %v17258_v25 }
 0x6aa   :  { %v14611_v2 = vpop.eup %8769 }
 0x6ab   :  { %5491 = vmatmul.mubr.f32.gmra.mrb[220].mxu0 %v5134_v29  ;;  %v5147_v29 = vmul.f32 %v14605_v48, %v17259_v32  ;;  %v14617_v28 = vpop.eup %8771 }
 0x6ac   :  { %5495 = vmatprep.mubr.f32.mxu0 %v5139_v52  ;;  %v17260_v52 = vld [vmem:[#allocation216_spill] sm:$0xff]  ;;  %v5155_v25 = vmul.f32 %v14617_v28, %v13804_v33 }
 0x6ad   :  { %v5146_v18 = vmul.f32 %v14605_v48, %v17260_v52 }
 0x6ae   :  { %v14623_v32 = vpop.eup %8773 }
 0x6af   :  { %5496 = vmatmul.mubr.f32.gmra.mrb[222].mxu0 %v5138_v15  ;;  %v5151_v15 = vmul.f32 %v14611_v2, %v17261_v45  ;;  %17263 = vst [vmem:[#allocation62_spill] sm:$0xff] %v14623_v32  ;;  %v5159_v52 = vmul.f32 %v14623_v32, %v13840_v3  ;;  %v14629_v45 = vpop.eup %8775  ;;  %v17267_v3 = vld [vmem:[#allocation228_spill] sm:$0xff] }
 0x6b0   :  { %5500 = vmatprep.mubr.f32.mxu0 %v5143_v17  ;;  %v17262_v17 = vld [vmem:[#allocation68_spill] sm:$0xff]  ;;  %v5163_v33 = vmul.f32 %v14629_v45, %v13876_v58 }
 0x6b1   :  { %v5150_v24 = vmul.f32 %v14611_v2, %v17262_v17  ;;  %v17270_v58 = vld [vmem:[#allocation72_spill] sm:$0xff] }
 0x6b2   :  { %v14635_v17 = vpop.eup %8777 }
 0x6b3   :  { %5501 = vmatmul.mubr.f32.gmra.mrb[224].mxu0 %v5142_v55  ;;  %v4835_v55 = vpop.xlane.xlu0 %4834  ;;  %17265 = vst [vmem:[#allocation163_spill] sm:$0xff] %v14635_v17 }
 0x6b4   :  { %5505 = vmatprep.mubr.f32.mxu0 %v5147_v29  ;;  %v17264_v29 = vld [vmem:[#allocation221_spill] sm:$0xff]  ;;  %8779 = vrcp.f32 %v4835_v55  ;;  %v5167_v55 = vmul.f32 %v14635_v17, %v17267_v3 }
 0x6b5   :  { %v5154_v23 = vmul.f32 %v14617_v28, %v17264_v29 }
 0x6b7   :  { %5506 = vmatmul.mubr.f32.gmra.mrb[226].mxu0 %v5146_v18  ;;  %v4840_v18 = vpop.xlane.xlu1 %4839  ;;  %v4845_v39 = vpop.xlane.xlu0 %4844 }
 0x6b8   :  { %5510 = vmatprep.mubr.f32.mxu0 %v5151_v15  ;;  %v5158_v15 = vmul.f32 %v14623_v32, %v13831_v8  ;;  %8781 = vrcp.f32 %v4840_v18  ;;  %v17269_v8 = vld [vmem:[#allocation34_spill] sm:$0xff] }
 0x6b9   :  { %8783 = vrcp.f32 %v4845_v39 }
 0x6bb   :  { %5511 = vmatmul.mubr.f32.gmra.mrb[228].mxu0 %v5150_v24  ;;  %v17266_v24 = vld [vmem:[#allocation113_spill] sm:$0xff]  ;;  %v4850_v29 = vpop.xlane.xlu1 %4849 }
 0x6bc   :  { %5515 = vmatprep.mubr.f32.mxu0 %v5155_v25  ;;  %v5162_v25 = vmul.f32 %v14629_v45, %v17266_v24  ;;  %8785 = vrcp.f32 %v4850_v29 }
 0x6bf   :  { %5516 = vmatmul.mubr.f32.gmra.mrb[230].mxu0 %v5154_v23  ;;  %v14641_v23 = vpop.eup %8779 }
 0x6c0   :  { %5520 = vmatprep.mubr.f32.mxu0 %v5159_v52  ;;  %17268 = vst [vmem:[#allocation166_spill] sm:$0xff] %v14641_v23  ;;  %v5166_v52 = vmul.f32 %v14635_v17, %v17269_v8  ;;  %v5171_v18 = vmul.f32 %v14641_v23, %v17270_v58  ;;  %v17274_v8 = vld [vmem:[#allocation44_spill] sm:$0xff] }
 0x6c2   :  { %v14647_v32 = vpop.eup %8781 }
 0x6c3   :  { %5521 = vmatmul.mubr.f32.gmra.mrb[232].mxu0 %v5158_v15  ;;  %v4855_v15 = vpop.xlane.xlu0 %4854  ;;  %v5175_v24 = vmul.f32 %v14647_v32, %v13981_v26  ;;  %v14653_v3 = vpop.eup %8783  ;;  %v17277_v26 = vld [vmem:[#allocation8_spill] sm:$0xff] }
 0x6c4   :  { %5525 = vmatprep.mubr.f32.mxu0 %v5163_v33  ;;  %v17271_v33 = vld [vmem:[#allocation7_spill] sm:$0xff]  ;;  %8787 = vrcp.f32 %v4855_v15  ;;  %17272 = vst [vmem:[#allocation147_spill] sm:$0xff] %v14653_v3 }
 0x6c5   :  { %v5170_v39 = vmul.f32 %v14641_v23, %v17271_v33 }
 0x6c6   :  { %v14659_v17 = vpop.eup %8785 }
 0x6c7   :  { %5526 = vmatmul.mubr.f32.gmra.mrb[234].mxu0 %v5162_v25  ;;  %v4860_v25 = vpop.xlane.xlu1 %4859  ;;  %17275 = vst [vmem:[#allocation237_spill] sm:$0xff] %v14659_v17  ;;  %v5183_v33 = vmul.f32 %v14659_v17, %v17277_v26 }
 0x6c8   :  { %5530 = vmatprep.mubr.f32.mxu0 %v5167_v55  ;;  %v17273_v55 = vld [vmem:[#allocation139_spill] sm:$0xff]  ;;  %8789 = vrcp.f32 %v4860_v25  ;;  %v4865_v58 = vpop.xlane.xlu0 %4864 }
 0x6c9   :  { %v5174_v29 = vmul.f32 %v14647_v32, %v17273_v55  ;;  %8791 = vrcp.f32 %v4865_v58 }
 0x6cb   :  { %5531 = vmatmul.mubr.f32.gmra.mrb[236].mxu0 %v5166_v52  ;;  %v5179_v52 = vmul.f32 %v14653_v3, %v17274_v8 }
 0x6cc   :  { %5535 = vmatprep.mubr.f32.mxu0 %v5171_v18  ;;  %v17276_v18 = vld [vmem:[#allocation26_spill] sm:$0xff] }
 0x6cd   :  { %v5178_v15 = vmul.f32 %v14653_v3, %v17276_v18  ;;  %v17280_v18 = vld [vmem:[#allocation30_spill] sm:$0xff] }
 0x6ce   :  { %v14665_v23 = vpop.eup %8787 }
 0x6cf   :  { %5536 = vmatmul.mubr.f32.gmra.mrb[238].mxu0 %v5170_v39  ;;  %v4870_v39 = vpop.xlane.xlu1 %4869  ;;  %v5187_v55 = vmul.f32 %v14665_v23, %v14084_v27  ;;  %v17282_v27 = vld [vmem:[#allocation129_spill] sm:$0xff] }
 0x6d0   :  { %5540 = vmatprep.mubr.f32.mxu0 %v5175_v24  ;;  %v17278_v24 = vld [vmem:[#allocation124_spill] sm:$0xff]  ;;  %8793 = vrcp.f32 %v4870_v39 }
 0x6d1   :  { %v5182_v25 = vmul.f32 %v14659_v17, %v17278_v24 }
 0x6d2   :  { %v14671_v8 = vpop.eup %8789 }
 0x6d3   :  { %5541 = vmatmul.mubr.f32.gmra.mrb[240].mxu0 %v5174_v29  ;;  %v4875_v29 = vpop.xlane.xlu0 %4874  ;;  %v14677_v3 = vpop.eup %8791 }
 0x6d4   :  { %5545 = vmatprep.mubr.f32.mxu0 %v5179_v52  ;;  %v17279_v52 = vld [vmem:[#allocation233_spill] sm:$0xff]  ;;  %8795 = vrcp.f32 %v4875_v29  ;;  %v5195_v24 = vmul.f32 %v14677_v3, %v17282_v27 }
 0x6d5   :  { %v5186_v58 = vmul.f32 %v14665_v23, %v17279_v52 }
 0x6d7   :  { %5546 = vmatmul.mubr.f32.gmra.mrb[242].mxu0 %v5178_v15  ;;  %v5191_v15 = vmul.f32 %v14671_v8, %v17280_v18  ;;  %v4880_v26 = vpop.xlane.xlu1 %4879 }
 0x6d8   :  { %5550 = vmatprep.mubr.f32.mxu0 %v5183_v33  ;;  %v17281_v33 = vld [vmem:[#allocation32_spill] sm:$0xff]  ;;  %8797 = vrcp.f32 %v4880_v26 }
 0x6d9   :  { %v5190_v39 = vmul.f32 %v14671_v8, %v17281_v33 }
 0x6da   :  { %v14683_v17 = vpop.eup %8793 }
 0x6db   :  { %5551 = vmatmul.mubr.f32.gmra.mrb[244].mxu0 %v5182_v25  ;;  %v5199_v52 = vmul.f32 %v14683_v17, %v14189_v1 }
 0x6dc   :  { %5555 = vmatprep.mubr.f32.mxu0 %v5187_v55  ;;  %v4885_v25 = vpop.xlane.xlu0 %4884  ;;  %v17283_v55 = vld [vmem:[#allocation150_spill] sm:$0xff] }
 0x6dd   :  { %v5194_v29 = vmul.f32 %v14677_v3, %v17283_v55  ;;  %8799 = vrcp.f32 %v4885_v25 }
 0x6de   :  { %v14689_v18 = vpop.eup %8795 }
 0x6df   :  { %5556 = vmatmul.mubr.f32.gmra.mrb[246].mxu0 %v5186_v58  ;;  %v5203_v33 = vmul.f32 %v14689_v18, %v14224_v0 }
 0x6e0   :  { %5560 = vmatprep.mubr.f32.mxu0 %v5191_v15  ;;  %v17284_v15 = vld [vmem:[#allocation55_spill] sm:$0xff] }
 0x6e1   :  { %v4890_v58 = vpop.xlane.xlu1 %4889  ;;  %v5198_v26 = vmul.f32 %v14683_v17, %v17284_v15 }
 0x6e2   :  { %8801 = vrcp.f32 %v4890_v58  ;;  %v14695_v27 = vpop.eup %8797 }
 0x6e3   :  { %5561 = vmatmul.mubr.f32.gmra.mrb[248].mxu0 %v5190_v39  ;;  %v5207_v1 = vmul.f32 %v14695_v27, %v14259_v5 }
 0x6e4   :  { %5565 = vmatprep.mubr.f32.mxu0 %v5195_v24  ;;  %v5202_v24 = vmul.f32 %v14689_v18, %v14215_v38 }
 0x6e6   :  { %v4895_v39 = vpop.xlane.xlu0 %4894 }
 0x6e7   :  { %5566 = vmatmul.mubr.f32.gmra.mrb[250].mxu0 %v5194_v29  ;;  %8803 = vrcp.f32 %v4895_v39  ;;  %v14701_v55 = vpop.eup %8799  ;;  %v5206_v29 = vmul.f32 %v14695_v27, %v14248_v20 }
 0x6e8   :  { %5570 = vmatprep.mubr.f32.mxu0 %v5199_v52  ;;  %v5211_v0 = vmul.f32 %v14701_v55, %v14294_v50  ;;  %v5210_v38 = vmul.f32 %v14701_v55, %v14283_v59 }
 0x6eb   :  { %5571 = vmatmul.mubr.f32.gmra.mrb[252].mxu0 %v5198_v26  ;;  %v4900_v25 = vpop.xlane.xlu1 %4899 }
 0x6ec   :  { %5575 = vmatprep.mubr.f32.mxu0 %v5203_v33  ;;  %8805 = vrcp.f32 %v4900_v25  ;;  %v14707_v58 = vpop.eup %8801 }
 0x6ed   :  { %v5215_v5 = vmul.f32 %v14707_v58, %v14329_v19  ;;  %v5214_v26 = vmul.f32 %v14707_v58, %v14318_v40 }
 0x6ef   :  { %5576 = vmatmul.mubr.f32.gmra.mrb[254].mxu0 %v5202_v24 }
 0x6f0   :  { %5580 = vmatprep.mubr.f32.mxu0 %v5207_v1  ;;  %v4905_v52 = vpop.xlane.xlu0 %4904 }
 0x6f1   :  { %8807 = vrcp.f32 %v4905_v52  ;;  %v14713_v15 = vpop.eup %8803 }
 0x6f2   :  { %v5219_v50 = vmul.f32 %v14713_v15, %v14363_v21  ;;  %v5218_v39 = vmul.f32 %v14713_v15, %v14355_v37 }
 0x6f3   :  { %5581 = vmatmul.mubr.f32.gmra.mrb[0].mxu0 %v5206_v29 }
 0x6f4   :  { %5585 = vmatprep.mubr.f32.mxu0 %v5211_v0 }
 0x6f5   :  { %v4910_v20 = vpop.xlane.xlu1 %4909 }
 0x6f6   :  { %8809 = vrcp.f32 %v4910_v20  ;;  %v14719_v33 = vpop.eup %8805  ;;  %v17286_v20 = vld [vmem:[#allocation18_spill] sm:$0xff] }
 0x6f7   :  { %5586 = vmatmul.mubr.f32.gmra.mrb[2].mxu0 %v5210_v38  ;;  %v5223_v19 = vmul.f32 %v14719_v33, %v14392_v54  ;;  %v5222_v40 = vmul.f32 %v14719_v33, %v14384_v44 }
 0x6f8   :  { %5590 = vmatprep.mubr.f32.mxu0 %v5215_v5 }
 0x6fa   :  { %v4915_v59 = vpop.xlane.xlu0 %4914 }
 0x6fb   :  { %5591 = vmatmul.mubr.f32.gmra.mrb[4].mxu0 %v5214_v26  ;;  %8811 = vrcp.f32 %v4915_v59  ;;  %v14725_v24 = vpop.eup %8807  ;;  %v17288_v59 = vld [vmem:[#allocation120_spill] sm:$0xff] }
 0x6fc   :  { %5595 = vmatprep.mubr.f32.mxu0 %v5219_v50  ;;  %v5227_v21 = vmul.f32 %v14725_v24, %v14417_v63  ;;  %v5226_v37 = vmul.f32 %v14725_v24, %v14410_v10 }
 0x6ff   :  { %5596 = vmatmul.mubr.f32.gmra.mrb[6].mxu0 %v5218_v39  ;;  %v4920_v1 = vpop.xlane.xlu1 %4919  ;;  %v17289_v39 = vld [vmem:[#allocation70_spill] sm:$0xff] }
 0x700   :  { %5600 = vmatprep.mubr.f32.mxu0 %v5223_v19  ;;  %8813 = vrcp.f32 %v4920_v1  ;;  %v14731_v25 = vpop.eup %8809  ;;  %v17290_v19 = vld [vmem:[#allocation122_spill] sm:$0xff]  ;;  %v17292_v1 = vld [vmem:[#allocation111_spill] sm:$0xff] }
 0x701   :  { %v5231_v29 = vmul.f32 %v14731_v25, %v14442_v42  ;;  %v5230_v44 = vmul.f32 %v14731_v25, %v14435_v16 }
 0x703   :  { %5601 = vmatmul.mubr.f32.gmra.mrb[8].mxu0 %v5222_v40  ;;  %v17291_v40 = vld [vmem:[#allocation123_spill] sm:$0xff] }
 0x704   :  { %5605 = vmatprep.mubr.f32.mxu0 %v5227_v21  ;;  %v4925_v54 = vpop.xlane.xlu0 %4924  ;;  %v17293_v21 = vld [vmem:[#allocation220_spill] sm:$0xff] }
 0x705   :  { %v14737_v0 = vpop.eup %8811  ;;  %8815 = vrcp.f32 %v4925_v54  ;;  %v17294_v54 = vld [vmem:[#allocation224_spill] sm:$0xff] }
 0x706   :  { %v5235_v63 = vmul.f32 %v14737_v0, %v14461_v60  ;;  %v5234_v10 = vmul.f32 %v14737_v0, %v14455_v56  ;;  %v17285_v56 = vld [vmem:[#allocation115_spill] sm:$0xff] }
 0x707   :  { %5606 = vmatmul.mubr.f32.gmra.mrb[10].mxu0 %v5226_v37  ;;  %v4993_v26 = vmul.f32 %v17286_v20, %v17285_v56  ;;  %v5000_v37 = vmul.f32 %v17292_v1, %v17293_v21 }
 0x708   :  { %5610 = vmatprep.mubr.f32.mxu0 %v5231_v29  ;;  %v17295_v29 = vld [vmem:[#allocation36_spill] sm:$0xff] }
 0x70a   :  { %v14743_v52 = vpop.eup %8813 }
 0x70b   :  { %5611 = vmatmul.mubr.f32.gmra.mrb[12].mxu0 %v5230_v44  ;;  %v5239_v42 = vmul.f32 %v14743_v52, %v14481_v13  ;;  %v5238_v16 = vmul.f32 %v14743_v52, %v14474_v46  ;;  %v17287_v13 = vld [vmem:[#allocation116_spill] sm:$0xff]  ;;  %v4997_v46 = vmul.f32 %v17289_v39, %v17288_v59  ;;  %v5005_v44 = vmul.f32 %v17295_v29, %v17294_v54 }
 0x70c   :  { %5615 = vmatprep.mubr.f32.mxu0 %v5235_v63  ;;  %v4992_v50 = vmul.f32 %v17286_v20, %v17287_v13  ;;  %v17296_v63 = vld [vmem:[#allocation222_spill] sm:$0xff]  ;;  %v17300_v20 = vld [vmem:[#allocation135_spill] sm:$0xff] }
 0x70f   :  { %v14749_v38 = vpop.eup %8815  ;;  %5616 = vmatmul.mubr.f32.gmra.mrb[14].mxu0 %v5234_v10  ;;  %v5004_v10 = vmul.f32 %v17295_v29, %v17296_v63  ;;  %v17309_v29 = vld [vmem:[#allocation145_spill] sm:$0xff] }
 0x710   :  { %5620 = vmatprep.mubr.f32.mxu0 %v5239_v42  ;;  %v5243_v60 = vmul.f32 %v14749_v38, %v14500_v14  ;;  %v5242_v5 = vmul.f32 %v14749_v38, %v14494_v49  ;;  %v4996_v14 = vmul.f32 %v17289_v39, %v17290_v19  ;;  %v5001_v49 = vmul.f32 %v17292_v1, %v17291_v40  ;;  %v17297_v42 = vld [vmem:[#allocation132_spill] sm:$0xff]  ;;  %v17303_v39 = vld [vmem:[#allocation138_spill] sm:$0xff]  ;;  %v17306_v1 = vld [vmem:[#allocation141_spill] sm:$0xff] }
 0x713   :  { %5621 = vmatmul.mubr.f32.gmra.mrb[16].mxu0 %v5238_v16  ;;  %v17298_v16 = vld [vmem:[#allocation119_spill] sm:$0xff] }
 0x714   :  { %5625 = vmatprep.mubr.f32.mxu0 %v5243_v60  ;;  %v5009_v60 = vmul.f32 %v17298_v16, %v17297_v42 }
 0x717   :  { %5626 = vmatmul.mubr.f32.gmra.mrb[18].mxu0 %v5242_v5  ;;  %v17299_v5 = vld [vmem:[#allocation131_spill] sm:$0xff] }
 0x718   :  { %5695 = vmatprep.mubr.f32.mxu0 %v4993_v26  ;;  %v5008_v56 = vmul.f32 %v17298_v16, %v17299_v5  ;;  %v17301_v26 = vld [vmem:[#allocation229_spill] sm:$0xff] }
 0x719   :  { %v5013_v13 = vmul.f32 %v17301_v26, %v17300_v20  ;;  %v17312_v16 = vld [vmem:[#allocation149_spill] sm:$0xff] }
 0x71b   :  { %5696 = vmatmul.mubr.f32.vlgmr.msra.gmra.mrb[148].mxu0 %v4992_v50  ;;  %v17302_v50 = vld [vmem:[#allocation130_spill] sm:$0xff] }
 0x71c   :  { %5700 = vmatprep.mubr.f32.mxu0 %v4997_v46  ;;  %v5012_v59 = vmul.f32 %v17301_v26, %v17302_v50  ;;  %v17304_v46 = vld [vmem:[#allocation28_spill] sm:$0xff]  ;;  %v17315_v26 = vld [vmem:[#allocation153_spill] sm:$0xff] }
 0x71d   :  { %v5017_v19 = vmul.f32 %v17304_v46, %v17303_v39 }
 0x71f   :  { %5701 = vmatmul.mubr.f32.gmra.mrb[150].mxu0 %v4996_v14  ;;  %v17305_v14 = vld [vmem:[#allocation134_spill] sm:$0xff] }
 0x720   :  { %5705 = vmatprep.mubr.f32.mxu0 %v5001_v49  ;;  %v5016_v40 = vmul.f32 %v17304_v46, %v17305_v14  ;;  %v17307_v49 = vld [vmem:[#allocation128_spill] sm:$0xff] }
 0x721   :  { %v5021_v21 = vmul.f32 %v17307_v49, %v17306_v1  ;;  %v17318_v46 = vld [vmem:[#allocation156_spill] sm:$0xff] }
 0x723   :  { %5706 = vmatmul.mubr.f32.gmra.mrb[152].mxu0 %v5000_v37  ;;  %v17308_v37 = vld [vmem:[#allocation137_spill] sm:$0xff] }
 0x724   :  { %5710 = vmatprep.mubr.f32.mxu0 %v5005_v44  ;;  %v5020_v54 = vmul.f32 %v17307_v49, %v17308_v37  ;;  %v17310_v44 = vld [vmem:[#allocation46_spill] sm:$0xff]  ;;  %v17321_v49 = vld [vmem:[#allocation159_spill] sm:$0xff] }
 0x725   :  { %v5025_v63 = vmul.f32 %v17310_v44, %v17309_v29 }
 0x727   :  { %5711 = vmatmul.mubr.f32.gmra.mrb[154].mxu0 %v5004_v10  ;;  %v17311_v10 = vld [vmem:[#allocation140_spill] sm:$0xff] }
 0x728   :  { %5715 = vmatprep.mubr.f32.mxu0 %v5009_v60  ;;  %v5024_v42 = vmul.f32 %v17310_v44, %v17311_v10  ;;  %v17313_v60 = vld [vmem:[#allocation126_spill] sm:$0xff] }
 0x729   :  { %v5029_v5 = vmul.f32 %v17313_v60, %v17312_v16  ;;  %v17324_v44 = vld [vmem:[#allocation162_spill] sm:$0xff] }
 0x72b   :  { %5716 = vmatmul.mubr.f32.gmra.mrb[156].mxu0 %v5008_v56  ;;  %v17314_v56 = vld [vmem:[#allocation144_spill] sm:$0xff] }
 0x72c   :  { %5720 = vmatprep.mubr.f32.mxu0 %v5013_v13  ;;  %v5028_v20 = vmul.f32 %v17313_v60, %v17314_v56  ;;  %v17316_v13 = vld [vmem:[#allocation235_spill] sm:$0xff]  ;;  %v17327_v60 = vld [vmem:[#allocation165_spill] sm:$0xff] }
 0x72d   :  { %v5033_v50 = vmul.f32 %v17316_v13, %v17315_v26 }
 0x72f   :  { %5721 = vmatmul.mubr.f32.gmra.mrb[158].mxu0 %v5012_v59  ;;  %v17317_v59 = vld [vmem:[#allocation148_spill] sm:$0xff] }
 0x730   :  { %5725 = vmatprep.mubr.f32.mxu0 %v5017_v19  ;;  %v5032_v39 = vmul.f32 %v17316_v13, %v17317_v59  ;;  %v17319_v19 = vld [vmem:[#allocation76_spill] sm:$0xff]  ;;  %v17331_v59 = vld [vmem:[#allocation51_spill] sm:$0xff] }
 0x731   :  { %v5037_v14 = vmul.f32 %v17319_v19, %v17318_v46  ;;  %v17330_v13 = vld [vmem:[#allocation168_spill] sm:$0xff] }
 0x732   :  { %v17332_v46 = vld [vmem:[#allocation172_spill] sm:$0xff] }
 0x733   :  { %5726 = vmatmul.mubr.f32.gmra.mrb[160].mxu0 %v5016_v40  ;;  %v17320_v40 = vld [vmem:[#allocation152_spill] sm:$0xff] }
 0x734   :  { %5730 = vmatprep.mubr.f32.mxu0 %v5021_v21  ;;  %v5036_v1 = vmul.f32 %v17319_v19, %v17320_v40  ;;  %v17322_v21 = vld [vmem:[#allocation154_spill] sm:$0xff]  ;;  %v5057_v19 = vmul.f32 %v14344_v35, %v17332_v46 }
 0x735   :  { %v5041_v37 = vmul.f32 %v17322_v21, %v17321_v49 }
 0x737   :  { %5731 = vmatmul.mubr.f32.gmra.mrb[162].mxu0 %v5020_v54  ;;  %v17323_v54 = vld [vmem:[#allocation33_spill] sm:$0xff] }
 0x738   :  { %5735 = vmatprep.mubr.f32.mxu0 %v5025_v63  ;;  %v5040_v29 = vmul.f32 %v17322_v21, %v17323_v54  ;;  %v17325_v63 = vld [vmem:[#allocation10_spill] sm:$0xff]  ;;  %v17335_v21 = vld [vmem:[#allocation171_spill] sm:$0xff]  ;;  %v17336_v54 = vld [vmem:[#allocation180_spill] sm:$0xff] }
 0x739   :  { %v5045_v10 = vmul.f32 %v17325_v63, %v17324_v44 }
 0x73b   :  { %5736 = vmatmul.mubr.f32.gmra.mrb[164].mxu0 %v5024_v42  ;;  %v17326_v42 = vld [vmem:[#allocation39_spill] sm:$0xff] }
 0x73c   :  { %5740 = vmatprep.mubr.f32.mxu0 %v5029_v5  ;;  %v5044_v16 = vmul.f32 %v17325_v63, %v17326_v42  ;;  %v17328_v5 = vld [vmem:[#allocation56_spill] sm:$0xff]  ;;  %v17338_v63 = vld [vmem:[#allocation183_spill] sm:$0xff] }
 0x73d   :  { %v5049_v56 = vmul.f32 %v17328_v5, %v17327_v60 }
 0x73f   :  { %5741 = vmatmul.mubr.f32.gmra.mrb[166].mxu0 %v5028_v20  ;;  %v17329_v20 = vld [vmem:[#allocation45_spill] sm:$0xff] }
 0x740   :  { %5745 = vmatprep.mubr.f32.mxu0 %v5033_v50  ;;  %v5048_v26 = vmul.f32 %v17328_v5, %v17329_v20  ;;  %v5053_v50 = vmul.f32 %v14309_v4, %v17330_v13  ;;  %v17344_v13 = vld [vmem:[#allocation189_spill] sm:$0xff] }
 0x743   :  { %5746 = vmatmul.mubr.f32.gmra.mrb[168].mxu0 %v5032_v39  ;;  %v5052_v39 = vmul.f32 %v14309_v4, %v17331_v59  ;;  %v17337_v4 = vld [vmem:[#allocation175_spill] sm:$0xff] }
 0x744   :  { %5750 = vmatprep.mubr.f32.mxu0 %v5037_v14  ;;  %v17333_v14 = vld [vmem:[#allocation82_spill] sm:$0xff]  ;;  %v5064_v44 = vmul.f32 %v14405_v30, %v17337_v4 }
 0x745   :  { %v5056_v40 = vmul.f32 %v14344_v35, %v17333_v14  ;;  %v17339_v35 = vld [vmem:[#allocation179_spill] sm:$0xff]  ;;  %v17348_v14 = vld [vmem:[#allocation193_spill] sm:$0xff] }
 0x746   :  { %v5068_v42 = vmul.f32 %v14430_v12, %v17339_v35  ;;  %v17356_v35 = vld [vmem:[#allocation100_spill] sm:$0xff] }
 0x747   :  { %5751 = vmatmul.mubr.f32.gmra.mrb[170].mxu0 %v5036_v1  ;;  %v17334_v1 = vld [vmem:[#allocation176_spill] sm:$0xff] }
 0x748   :  { %5755 = vmatprep.mubr.f32.mxu0 %v5041_v37  ;;  %v5061_v49 = vmul.f32 %v14378_v34, %v17334_v1  ;;  %v5060_v37 = vmul.f32 %v14378_v34, %v17335_v21  ;;  %v17341_v34 = vld [vmem:[#allocation182_spill] sm:$0xff] }
 0x749   :  { %v5072_v5 = vmul.f32 %v14451_v7, %v17341_v34 }
 0x74b   :  { %5756 = vmatmul.mubr.f32.gmra.mrb[172].mxu0 %v5040_v29  ;;  %v5065_v29 = vmul.f32 %v14405_v30, %v17336_v54  ;;  %v17343_v30 = vld [vmem:[#allocation89_spill] sm:$0xff]  ;;  %v17352_v54 = vld [vmem:[#allocation196_spill] sm:$0xff] }
 0x74c   :  { %5760 = vmatprep.mubr.f32.mxu0 %v5045_v10  ;;  %v5069_v10 = vmul.f32 %v14430_v12, %v17338_v63  ;;  %v17345_v12 = vld [vmem:[#allocation188_spill] sm:$0xff] }
 0x74d   :  { %v5080_v59 = vmul.f32 %v14491_v53, %v17345_v12  ;;  %v17364_v12 = vld [vmem:[#allocation210_spill] sm:$0xff] }
 0x74f   :  { %5761 = vmatmul.mubr.f32.gmra.mrb[174].mxu0 %v5044_v16  ;;  %v17340_v16 = vld [vmem:[#allocation186_spill] sm:$0xff] }
 0x750   :  { %5765 = vmatprep.mubr.f32.mxu0 %v5049_v56  ;;  %v5073_v60 = vmul.f32 %v14451_v7, %v17340_v16  ;;  %v17342_v56 = vld [vmem:[#allocation185_spill] sm:$0xff]  ;;  %v17347_v7 = vld [vmem:[#allocation190_spill] sm:$0xff] }
 0x751   :  { %v5077_v20 = vmul.f32 %v14470_v61, %v17342_v56  ;;  %v17360_v56 = vld [vmem:[#allocation203_spill] sm:$0xff] }
 0x753   :  { %5766 = vmatmul.mubr.f32.gmra.mrb[176].mxu0 %v5048_v26  ;;  %v5076_v26 = vmul.f32 %v14470_v61, %v17343_v30  ;;  %v17349_v61 = vld [vmem:[#allocation192_spill] sm:$0xff] }
 0x754   :  { %5770 = vmatprep.mubr.f32.mxu0 %v5053_v50  ;;  %v5081_v50 = vmul.f32 %v14491_v53, %v17344_v13  ;;  %v5088_v1 = vmul.f32 %v14512_v9, %v17349_v61  ;;  %v17351_v53 = vld [vmem:[#allocation194_spill] sm:$0xff] }
 0x757   :  { %5771 = vmatmul.mubr.f32.gmra.mrb[178].mxu0 %v5052_v39  ;;  %v17346_v39 = vld [vmem:[#allocation191_spill] sm:$0xff] }
 0x758   :  { %5775 = vmatprep.mubr.f32.mxu0 %v5057_v19  ;;  %v5085_v46 = vmul.f32 %v14509_v41, %v17346_v39  ;;  %v5084_v19 = vmul.f32 %v14509_v41, %v17347_v7  ;;  %v17353_v41 = vld [vmem:[#allocation97_spill] sm:$0xff] }
 0x759   :  { %v5096_v4 = vmul.f32 %v14527_v11, %v17353_v41 }
 0x75b   :  { %5776 = vmatmul.mubr.f32.gmra.mrb[180].mxu0 %v5056_v40  ;;  %v5089_v40 = vmul.f32 %v14512_v9, %v17348_v14  ;;  %v17355_v9 = vld [vmem:[#allocation99_spill] sm:$0xff]  ;;  %v17368_v14 = vld [vmem:[#allocation49_spill] sm:$0xff] }
 0x75c   :  { %5780 = vmatprep.mubr.f32.mxu0 %v5061_v49  ;;  %v17350_v49 = vld [vmem:[#allocation195_spill] sm:$0xff] }
 0x75d   :  { %v5093_v21 = vmul.f32 %v14518_v43, %v17350_v49  ;;  %v17371_v49 = vld [vmem:[#allocation84_spill] sm:$0xff] }
 0x75f   :  { %5781 = vmatmul.mubr.f32.gmra.mrb[182].mxu0 %v5060_v37  ;;  %v5092_v37 = vmul.f32 %v14518_v43, %v17351_v53  ;;  %v17357_v43 = vld [vmem:[#allocation199_spill] sm:$0xff] }
 0x760   :  { %5785 = vmatprep.mubr.f32.mxu0 %v5065_v29  ;;  %v5097_v29 = vmul.f32 %v14527_v11, %v17352_v54  ;;  %v5104_v16 = vmul.f32 %v14539_v22, %v17357_v43  ;;  %v17359_v11 = vld [vmem:[#allocation201_spill] sm:$0xff]  ;;  %v17374_v54 = vld [vmem:[#allocation86_spill] sm:$0xff] }
 0x763   :  { %5786 = vmatmul.mubr.f32.gmra.mrb[184].mxu0 %v5064_v44  ;;  %v17354_v44 = vld [vmem:[#allocation198_spill] sm:$0xff] }
 0x764   :  { %5790 = vmatprep.mubr.f32.mxu0 %v5069_v10  ;;  %v5101_v63 = vmul.f32 %v14533_v47, %v17354_v44  ;;  %v5100_v10 = vmul.f32 %v14533_v47, %v17355_v9  ;;  %v17361_v47 = vld [vmem:[#allocation103_spill] sm:$0xff]  ;;  %v17377_v44 = vld [vmem:[#allocation213_spill] sm:$0xff] }
 0x765   :  { %v5112_v30 = vmul.f32 %v14551_v6, %v17361_v47 }
 0x767   :  { %5791 = vmatmul.mubr.f32.gmra.mrb[186].mxu0 %v5068_v42  ;;  %v5105_v42 = vmul.f32 %v14539_v22, %v17356_v35  ;;  %v17363_v22 = vld [vmem:[#allocation108_spill] sm:$0xff] }
 0x768   :  { %5795 = vmatprep.mubr.f32.mxu0 %v5073_v60  ;;  %v17358_v60 = vld [vmem:[#allocation102_spill] sm:$0xff] }
 0x769   :  { %v5109_v34 = vmul.f32 %v14545_v51, %v17358_v60 }
 0x76b   :  { %5796 = vmatmul.mubr.f32.gmra.mrb[188].mxu0 %v5072_v5  ;;  %v5108_v5 = vmul.f32 %v14545_v51, %v17359_v11  ;;  %v17365_v51 = vld [vmem:[#allocation205_spill] sm:$0xff] }
 0x76c   :  { %5800 = vmatprep.mubr.f32.mxu0 %v5077_v20  ;;  %v5113_v20 = vmul.f32 %v14551_v6, %v17360_v56  ;;  %v5120_v39 = vmul.f32 %v14563_v62, %v17365_v51  ;;  %v17367_v6 = vld [vmem:[#allocation209_spill] sm:$0xff] }
 0x76f   :  { %5801 = vmatmul.mubr.f32.gmra.mrb[190].mxu0 %v5076_v26  ;;  %v17362_v26 = vld [vmem:[#allocation206_spill] sm:$0xff] }
 0x770   :  { %5805 = vmatprep.mubr.f32.mxu0 %v5081_v50  ;;  %v5117_v13 = vmul.f32 %v14557_v36, %v17362_v26  ;;  %v5116_v50 = vmul.f32 %v14557_v36, %v17363_v22  ;;  %v17370_v36 = vld [vmem:[#allocation81_spill] sm:$0xff] }
 0x773   :  { %5806 = vmatmul.mubr.f32.gmra.mrb[192].mxu0 %v5080_v59  ;;  %v5121_v59 = vmul.f32 %v14563_v62, %v17364_v12  ;;  %v17373_v62 = vld [vmem:[#allocation217_spill] sm:$0xff]  ;;  %v17388_v12 = vld [vmem:[#allocation226_spill] sm:$0xff] }
 0x774   :  { %5810 = vmatprep.mubr.f32.mxu0 %v5085_v46  ;;  %v17366_v46 = vld [vmem:[#allocation212_spill] sm:$0xff] }
 0x775   :  { %v5125_v7 = vmul.f32 %v14569_v31, %v17366_v46  ;;  %v17391_v46 = vld [vmem:[#allocation22_spill] sm:$0xff] }
 0x777   :  { %5811 = vmatmul.mubr.f32.gmra.mrb[194].mxu0 %v5084_v19  ;;  %v5124_v19 = vmul.f32 %v14569_v31, %v17367_v6  ;;  %v17376_v31 = vld [vmem:[#allocation105_spill] sm:$0xff] }
 0x778   :  { %5815 = vmatprep.mubr.f32.mxu0 %v5089_v40  ;;  %v17369_v40 = vld [vmem:[#allocation234_spill] sm:$0xff] }
 0x779   :  { %v5129_v61 = vmul.f32 %v17369_v40, %v17368_v14  ;;  %v17394_v14 = vld [vmem:[#allocation163_spill] sm:$0xff] }
 0x77b   :  { %5816 = vmatmul.mubr.f32.gmra.mrb[196].mxu0 %v5088_v1  ;;  %v5128_v1 = vmul.f32 %v17369_v40, %v17370_v36  ;;  %v17396_v36 = vld [vmem:[#allocation38_spill] sm:$0xff] }
 0x77c   :  { %5820 = vmatprep.mubr.f32.mxu0 %v5093_v21  ;;  %v17372_v21 = vld [vmem:[#allocation19_spill] sm:$0xff] }
 0x77d   :  { %v5133_v53 = vmul.f32 %v17372_v21, %v17371_v49 }
 0x77f   :  { %5821 = vmatmul.mubr.f32.gmra.mrb[198].mxu0 %v5092_v37  ;;  %v5132_v37 = vmul.f32 %v17372_v21, %v17373_v62  ;;  %v17398_v21 = vld [vmem:[#allocation40_spill] sm:$0xff]  ;;  %v17399_v62 = vld [vmem:[#allocation121_spill] sm:$0xff] }
 0x780   :  { %5825 = vmatprep.mubr.f32.mxu0 %v5097_v29  ;;  %v17375_v29 = vld [vmem:[#allocation21_spill] sm:$0xff] }
 0x781   :  { %v5137_v41 = vmul.f32 %v17375_v29, %v17374_v54 }
 0x783   :  { %5826 = vmatmul.mubr.f32.gmra.mrb[200].mxu0 %v5096_v4  ;;  %v5136_v4 = vmul.f32 %v17375_v29, %v17376_v31  ;;  %v17401_v29 = vld [vmem:[#allocation232_spill] sm:$0xff] }
 0x784   :  { %5830 = vmatprep.mubr.f32.mxu0 %v5101_v63  ;;  %v17378_v63 = vld [vmem:[#allocation63_spill] sm:$0xff] }
 0x785   :  { %v5141_v9 = vmul.f32 %v17378_v63, %v17377_v44 }
 0x787   :  { %5831 = vmatmul.mubr.f32.gmra.mrb[202].mxu0 %v5100_v10  ;;  %v17379_v10 = vld [vmem:[#allocation106_spill] sm:$0xff] }
 0x788   :  { %5835 = vmatprep.mubr.f32.mxu0 %v5105_v42  ;;  %v5140_v35 = vmul.f32 %v17378_v63, %v17379_v10  ;;  %v17380_v42 = vld [vmem:[#allocation215_spill] sm:$0xff]  ;;  %v17404_v63 = vld [vmem:[#allocation48_spill] sm:$0xff] }
 0x789   :  { %v5145_v43 = vmul.f32 %v14599_v57, %v17380_v42 }
 0x78b   :  { %5836 = vmatmul.mubr.f32.gmra.mrb[204].mxu0 %v5104_v16  ;;  %v17381_v16 = vld [vmem:[#allocation112_spill] sm:$0xff] }
 0x78c   :  { %5840 = vmatprep.mubr.f32.mxu0 %v5109_v34  ;;  %v5144_v60 = vmul.f32 %v14599_v57, %v17381_v16  ;;  %v17382_v34 = vld [vmem:[#allocation5_spill] sm:$0xff]  ;;  %v17387_v57 = vld [vmem:[#allocation223_spill] sm:$0xff] }
 0x78d   :  { %v5149_v11 = vmul.f32 %v14605_v48, %v17382_v34  ;;  %v17409_v34 = vld [vmem:[#allocation50_spill] sm:$0xff] }
 0x78f   :  { %5841 = vmatmul.mubr.f32.gmra.mrb[206].mxu0 %v5108_v5  ;;  %v17383_v5 = vld [vmem:[#allocation118_spill] sm:$0xff] }
 0x790   :  { %5845 = vmatprep.mubr.f32.mxu0 %v5113_v20  ;;  %v5148_v56 = vmul.f32 %v14605_v48, %v17383_v5  ;;  %v17384_v20 = vld [vmem:[#allocation20_spill] sm:$0xff]  ;;  %v17390_v48 = vld [vmem:[#allocation225_spill] sm:$0xff] }
 0x791   :  { %v5153_v47 = vmul.f32 %v14611_v2, %v17384_v20  ;;  %v17410_v5 = vld [vmem:[#allocation52_spill] sm:$0xff]  ;;  %v17411_v20 = vld [vmem:[#allocation9_spill] sm:$0xff] }
 0x793   :  { %5846 = vmatmul.mubr.f32.gmra.mrb[208].mxu0 %v5112_v30  ;;  %v17385_v30 = vld [vmem:[#allocation219_spill] sm:$0xff] }
 0x794   :  { %5850 = vmatprep.mubr.f32.mxu0 %v5117_v13  ;;  %v5152_v26 = vmul.f32 %v14611_v2, %v17385_v30  ;;  %v17386_v13 = vld [vmem:[#allocation6_spill] sm:$0xff]  ;;  %v17392_v2 = vld [vmem:[#allocation24_spill] sm:$0xff]  ;;  %v17412_v30 = vld [vmem:[#allocation227_spill] sm:$0xff] }
 0x795   :  { %v5157_v22 = vmul.f32 %v14617_v28, %v17386_v13  ;;  %v5164_v6 = vmul.f32 %v14629_v45, %v17392_v2  ;;  %v17413_v13 = vld [vmem:[#allocation236_spill] sm:$0xff]  ;;  %v17419_v2 = vld [vmem:[#allocation157_spill] sm:$0xff] }
 0x797   :  { %5851 = vmatmul.mubr.f32.gmra.mrb[210].mxu0 %v5116_v50  ;;  %v5156_v50 = vmul.f32 %v14617_v28, %v17387_v57  ;;  %v17395_v28 = vld [vmem:[#allocation136_spill] sm:$0xff] }
 0x798   :  { %5855 = vmatprep.mubr.f32.mxu0 %v5121_v59  ;;  %v17389_v59 = vld [vmem:[#allocation62_spill] sm:$0xff] }
 0x799   :  { %v5161_v51 = vmul.f32 %v17389_v59, %v17388_v12 }
 0x79b   :  { %5856 = vmatmul.mubr.f32.gmra.mrb[212].mxu0 %v5120_v39  ;;  %v5160_v39 = vmul.f32 %v17389_v59, %v17390_v48  ;;  %v17417_v48 = vld [vmem:[#allocation57_spill] sm:$0xff] }
 0x79c   :  { %5860 = vmatprep.mubr.f32.mxu0 %v5125_v7  ;;  %v5165_v7 = vmul.f32 %v14629_v45, %v17391_v46  ;;  %v17400_v45 = vld [vmem:[#allocation125_spill] sm:$0xff]  ;;  %v17418_v46 = vld [vmem:[#allocation11_spill] sm:$0xff] }
 0x79d   :  { %v5176_v54 = vmul.f32 %v14647_v32, %v17400_v45  ;;  %v17424_v45 = vld [vmem:[#allocation12_spill] sm:$0xff] }
 0x79f   :  { %5861 = vmatmul.mubr.f32.gmra.mrb[214].mxu0 %v5124_v19  ;;  %v17393_v19 = vld [vmem:[#allocation117_spill] sm:$0xff] }
 0x7a0   :  { %5865 = vmatprep.mubr.f32.mxu0 %v5129_v61  ;;  %v5169_v40 = vmul.f32 %v17394_v14, %v17393_v19  ;;  %v5168_v61 = vmul.f32 %v17394_v14, %v17395_v28  ;;  %v17420_v14 = vld [vmem:[#allocation239_spill] sm:$0xff] }
 0x7a3   :  { %5866 = vmatmul.mubr.f32.gmra.mrb[216].mxu0 %v5128_v1  ;;  %v17397_v1 = vld [vmem:[#allocation166_spill] sm:$0xff] }
 0x7a4   :  { %5870 = vmatprep.mubr.f32.mxu0 %v5133_v53  ;;  %v5173_v49 = vmul.f32 %v17397_v1, %v17396_v36  ;;  %v5172_v53 = vmul.f32 %v17397_v1, %v17398_v21  ;;  %v17422_v1 = vld [vmem:[#allocation16_spill] sm:$0xff] }
 0x7a7   :  { %5871 = vmatmul.mubr.f32.gmra.mrb[218].mxu0 %v5132_v37  ;;  %v5177_v37 = vmul.f32 %v14647_v32, %v17399_v62  ;;  %v17408_v32 = vld [vmem:[#allocation146_spill] sm:$0xff] }
 0x7a8   :  { %5875 = vmatprep.mubr.f32.mxu0 %v5137_v41  ;;  %v17402_v41 = vld [vmem:[#allocation147_spill] sm:$0xff] }
 0x7a9   :  { %v5181_v31 = vmul.f32 %v17402_v41, %v17401_v29 }
 0x7ab   :  { %5876 = vmatmul.mubr.f32.gmra.mrb[220].mxu0 %v5136_v4  ;;  %v17403_v4 = vld [vmem:[#allocation42_spill] sm:$0xff] }
 0x7ac   :  { %5880 = vmatprep.mubr.f32.mxu0 %v5141_v9  ;;  %v5180_v44 = vmul.f32 %v17402_v41, %v17403_v4  ;;  %v17405_v9 = vld [vmem:[#allocation237_spill] sm:$0xff]  ;;  %v17425_v41 = vld [vmem:[#allocation58_spill] sm:$0xff]  ;;  %v17426_v4 = vld [vmem:[#allocation59_spill] sm:$0xff] }
 0x7ad   :  { %v5185_v10 = vmul.f32 %v17405_v9, %v17404_v63 }
 0x7af   :  { %5881 = vmatmul.mubr.f32.gmra.mrb[222].mxu0 %v5140_v35  ;;  %v17406_v35 = vld [vmem:[#allocation74_spill] sm:$0xff] }
 0x7b0   :  { %5885 = vmatprep.mubr.f32.mxu0 %v5145_v43  ;;  %v5184_v42 = vmul.f32 %v17405_v9, %v17406_v35  ;;  %v17407_v43 = vld [vmem:[#allocation127_spill] sm:$0xff]  ;;  %v17427_v9 = vld [vmem:[#allocation160_spill] sm:$0xff] }
 0x7b1   :  { %v5189_v16 = vmul.f32 %v14665_v23, %v17407_v43 }
 0x7b3   :  { %5886 = vmatmul.mubr.f32.gmra.mrb[224].mxu0 %v5144_v60  ;;  %v5188_v60 = vmul.f32 %v14665_v23, %v17408_v32  ;;  %v17414_v23 = vld [vmem:[#allocation54_spill] sm:$0xff] }
 0x7b4   :  { %5890 = vmatprep.mubr.f32.mxu0 %v5149_v11  ;;  %v5193_v11 = vmul.f32 %v14671_v8, %v17409_v34  ;;  %v5200_v57 = vmul.f32 %v14683_v17, %v17414_v23  ;;  %v17429_v32 = vld [vmem:[#allocation142_spill] sm:$0xff] }
 0x7b5   :  { %v17430_v34 = vld [vmem:[#allocation14_spill] sm:$0xff] }
 0x7b7   :  { %5891 = vmatmul.mubr.f32.gmra.mrb[226].mxu0 %v5148_v56  ;;  %v5192_v56 = vmul.f32 %v14671_v8, %v17410_v5  ;;  %v17416_v8 = vld [vmem:[#allocation133_spill] sm:$0xff] }
 0x7b8   :  { %5895 = vmatprep.mubr.f32.mxu0 %v5153_v47  ;;  %v5197_v47 = vmul.f32 %v14677_v3, %v17411_v20  ;;  %v5204_v59 = vmul.f32 %v14689_v18, %v17416_v8  ;;  %v17435_v8 = vld [vmem:[#allocation143_spill] sm:$0xff] }
 0x7bb   :  { %5896 = vmatmul.mubr.f32.gmra.mrb[228].mxu0 %v5152_v26  ;;  %v5196_v26 = vmul.f32 %v14677_v3, %v17412_v30  ;;  %v5209_v3 = vmul.f32 %v14695_v27, %v17417_v48  ;;  %v17432_v30 = vld [vmem:[#allocation17_spill] sm:$0xff] }
 0x7bc   :  { %5900 = vmatprep.mubr.f32.mxu0 %v5157_v22  ;;  %v5201_v22 = vmul.f32 %v14683_v17, %v17413_v13 }
 0x7bf   :  { %5901 = vmatmul.mubr.f32.gmra.mrb[230].mxu0 %v5156_v50  ;;  %v17415_v50 = vld [vmem:[#allocation230_spill] sm:$0xff] }
 0x7c0   :  { %5905 = vmatprep.mubr.f32.mxu0 %v5161_v51  ;;  %v5205_v12 = vmul.f32 %v14689_v18, %v17415_v50 }
 0x7c3   :  { %5906 = vmatmul.mubr.f32.gmra.mrb[232].mxu0 %v5160_v39 }
 0x7c4   :  { %5910 = vmatprep.mubr.f32.mxu0 %v5165_v7  ;;  %v5208_v7 = vmul.f32 %v14695_v27, %v17418_v46 }
 0x7c7   :  { %5911 = vmatmul.mubr.f32.gmra.mrb[234].mxu0 %v5164_v6  ;;  %v5213_v6 = vmul.f32 %v14701_v55, %v17419_v2 }
 0x7c8   :  { %5915 = vmatprep.mubr.f32.mxu0 %v5169_v40  ;;  %v5212_v40 = vmul.f32 %v14701_v55, %v17420_v14 }
 0x7cb   :  { %5916 = vmatmul.mubr.f32.gmra.mrb[236].mxu0 %v5168_v61  ;;  %v17421_v61 = vld [vmem:[#allocation231_spill] sm:$0xff] }
 0x7cc   :  { %5920 = vmatprep.mubr.f32.mxu0 %v5173_v49  ;;  %v5217_v36 = vmul.f32 %v14707_v58, %v17421_v61  ;;  %v5216_v49 = vmul.f32 %v14707_v58, %v17422_v1 }
 0x7cf   :  { %5921 = vmatmul.mubr.f32.gmra.mrb[238].mxu0 %v5172_v53  ;;  %v17423_v53 = vld [vmem:[#allocation13_spill] sm:$0xff] }
 0x7d0   :  { %5925 = vmatprep.mubr.f32.mxu0 %v5177_v37  ;;  %v5221_v62 = vmul.f32 %v14713_v15, %v17423_v53 }
 0x7d3   :  { %5926 = vmatmul.mubr.f32.gmra.mrb[240].mxu0 %v5176_v54  ;;  %v5220_v54 = vmul.f32 %v14713_v15, %v17424_v45 }
 0x7d4   :  { %5930 = vmatprep.mubr.f32.mxu0 %v5181_v31  ;;  %v5225_v31 = vmul.f32 %v14719_v33, %v17425_v41 }
 0x7d7   :  { %5931 = vmatmul.mubr.f32.gmra.mrb[242].mxu0 %v5180_v44  ;;  %v5224_v44 = vmul.f32 %v14719_v33, %v17426_v4 }
 0x7d8   :  { %5935 = vmatprep.mubr.f32.mxu0 %v5185_v10  ;;  %v5229_v10 = vmul.f32 %v14725_v24, %v17427_v9 }
 0x7db   :  { %5936 = vmatmul.mubr.f32.gmra.mrb[244].mxu0 %v5184_v42  ;;  %v17428_v42 = vld [vmem:[#allocation241_spill] sm:$0xff] }
 0x7dc   :  { %5940 = vmatprep.mubr.f32.mxu0 %v5189_v16  ;;  %v5228_v43 = vmul.f32 %v14725_v24, %v17428_v42 }
 0x7df   :  { %5941 = vmatmul.mubr.f32.gmra.mrb[246].mxu0 %v5188_v60  ;;  %v5233_v60 = vmul.f32 %v14731_v25, %v17429_v32 }
 0x7e0   :  { %5945 = vmatprep.mubr.f32.mxu0 %v5193_v11  ;;  %v5232_v11 = vmul.f32 %v14731_v25, %v17430_v34 }
 0x7e3   :  { %5946 = vmatmul.mubr.f32.gmra.mrb[248].mxu0 %v5192_v56  ;;  %v17431_v56 = vld [vmem:[#allocation61_spill] sm:$0xff] }
 0x7e4   :  { %5950 = vmatprep.mubr.f32.mxu0 %v5197_v47  ;;  %v5237_v20 = vmul.f32 %v14737_v0, %v17431_v56 }
 0x7e7   :  { %5951 = vmatmul.mubr.f32.gmra.mrb[250].mxu0 %v5196_v26  ;;  %v5236_v26 = vmul.f32 %v14737_v0, %v17432_v30  ;;  %v17436_v0 = vld [vmem:[#allocation15_spill] sm:$0xff] }
 0x7e8   :  { %5955 = vmatprep.mubr.f32.mxu0 %v5201_v22  ;;  %v17433_v22 = vld [vmem:[#allocation243_spill] sm:$0xff] }
 0x7e9   :  { %v5241_v23 = vmul.f32 %v14743_v52, %v17433_v22 }
 0x7eb   :  { %5956 = vmatmul.mubr.f32.gmra.mrb[252].mxu0 %v5200_v57  ;;  %v17434_v57 = vld [vmem:[#allocation60_spill] sm:$0xff] }
 0x7ec   :  { %5960 = vmatprep.mubr.f32.mxu0 %v5205_v12  ;;  %v5240_v50 = vmul.f32 %v14743_v52, %v17434_v57 }
 0x7ee   :  { %v14973_v51 = vpop.f32.mrb[148].mxu0 }
 0x7ef   :  { %v5699_v39 = vpop.f32.mrb[149].mxu0  ;;  %5961 = vmatmul.mubr.f32.gmra.mrb[254].mxu0 %v5204_v59  ;;  %v5245_v59 = vmul.f32 %v14749_v38, %v17435_v8 }
 0x7f0   :  { %5965 = vmatprep.mubr.f32.mxu0 %v5209_v3  ;;  %v5244_v39 = vmul.f32 %v14749_v38, %v17436_v0 }
 0x7f2   :  { %v14979_v17 = vpop.f32.mrb[150].mxu0 }
 0x7f3   :  { %v7804_v19 = vpack.c.bf16 %v14979_v17, %v14973_v51  ;;  %v5704_v18 = vpop.f32.mrb[151].mxu0  ;;  %5966 = vmatmul.mubr.f32.gmra.mrb[0].mxu0 %v5208_v7 }
 0x7f4   :  { %5970 = vmatprep.mubr.f32.mxu0 %v5213_v6 }
 0x7f6   :  { %v14987_v28 = vpop.f32.mrb[152].mxu0 }
 0x7f7   :  { %v5709_v27 = vpop.f32.mrb[153].mxu0  ;;  %5971 = vmatmul.mubr.f32.gmra.mrb[2].mxu0 %v5212_v40 }
 0x7f8   :  { %5975 = vmatprep.mubr.f32.mxu0 %v5217_v36 }
 0x7fa   :  { %v14993_v21 = vpop.f32.mrb[154].mxu0 }
 0x7fb   :  { %v7808_v37 = vpack.c.bf16 %v14993_v21, %v14987_v28  ;;  %v5714_v55 = vpop.f32.mrb[155].mxu0  ;;  %5976 = vmatmul.mubr.f32.gmra.mrb[4].mxu0 %v5216_v49 }
 0x7fc   :  { %5980 = vmatprep.mubr.f32.mxu0 %v5221_v62 }
 0x7fe   :  { %v15001_v29 = vpop.f32.mrb[156].mxu0 }
 0x7ff   :  { %v5719_v58 = vpop.f32.mrb[157].mxu0  ;;  %5981 = vmatmul.mubr.f32.gmra.mrb[6].mxu0 %v5220_v54 }
 0x800   :  { %5985 = vmatprep.mubr.f32.mxu0 %v5225_v31  ;;  %v6017_v31 = vld [vmem:[%s15540_s3 + $0x8] sm:$0xff] }
 0x801   :  { %6144 = vmatprep.mubr.f32.mxu1 %v6017_v31  ;;  %v6040_v31 = vld [vmem:[%s15540_s3 + $0xc0] sm:$0xff] }
 0x802   :  { %v15007_v63 = vpop.f32.mrb[158].mxu0 }
 0x803   :  { %v7812_v35 = vpack.c.bf16 %v15007_v63, %v15001_v29  ;;  %v5724_v15 = vpop.f32.mrb[159].mxu0  ;;  %5986 = vmatmul.mubr.f32.gmra.mrb[8].mxu0 %v5224_v44 }
 0x804   :  { %5990 = vmatprep.mubr.f32.mxu0 %v5229_v10 }
 0x806   :  { %v15015_v16 = vpop.f32.mrb[160].mxu0 }
 0x807   :  { %v5729_v33 = vpop.f32.mrb[161].mxu0  ;;  %5991 = vmatmul.mubr.f32.gmra.mrb[10].mxu0 %v5228_v43 }
 0x808   :  { %5995 = vmatprep.mubr.f32.mxu0 %v5233_v60 }
 0x80a   :  { %v15021_v5 = vpop.f32.mrb[162].mxu0 }
 0x80b   :  { %v7816_v47 = vpack.c.bf16 %v15021_v5, %v15015_v16  ;;  %v5734_v24 = vpop.f32.mrb[163].mxu0  ;;  %5996 = vmatmul.mubr.f32.gmra.mrb[12].mxu0 %v5232_v11 }
 0x80c   :  { %6000 = vmatprep.mubr.f32.mxu0 %v5237_v20 }
 0x80e   :  { %v15029_v13 = vpop.f32.mrb[164].mxu0 }
 0x80f   :  { %v5739_v25 = vpop.f32.mrb[165].mxu0  ;;  %6001 = vmatmul.mubr.f32.gmra.mrb[14].mxu0 %v5236_v26 }
 0x810   :  { %6005 = vmatprep.mubr.f32.mxu0 %v5241_v23 }
 0x812   :  { %v5742_v12 = vpop.f32.mrb[166].mxu0 }
 0x813   :  { %v7820_v48 = vpack.c.bf16 %v5742_v12, %v15029_v13  ;;  %v5744_v3 = vpop.f32.mrb[167].mxu0  ;;  %6006 = vmatmul.mubr.f32.gmra.mrb[16].mxu0 %v5240_v50  ;;  %v6016_v12 = vld [vmem:[%s15540_s3] sm:$0xff] }
 0x814   :  { %6010 = vmatprep.mubr.f32.mxu0 %v5245_v59  ;;  %v6021_v59 = vld [vmem:[%s15540_s3 + $0x28] sm:$0xff]  ;;  %v6020_v3 = vld [vmem:[%s15540_s3 + $0x20] sm:$0xff] }
 0x816   :  { %v5747_v46 = vpop.f32.mrb[168].mxu0 }
 0x817   :  { %v5749_v7 = vpop.f32.mrb[169].mxu0  ;;  %6011 = vmatmul.mubr.f32.gmra.mrb[18].mxu0 %v5244_v39 }
 0x81a   :  { %v5752_v2 = vpop.f32.mrb[170].mxu0 }
 0x81b   :  { %v7824_v6 = vpack.c.bf16 %v5752_v2, %v5747_v46  ;;  %v5754_v18 = vpop.f32.mrb[171].mxu0  ;;  %v6025_v46 = vld [vmem:[%s15540_s3 + $0x48] sm:$0xff]  ;;  %v6024_v2 = vld [vmem:[%s15540_s3 + $0x40] sm:$0xff] }
 0x81c   :  { %v6029_v18 = vld [vmem:[%s15540_s3 + $0x68] sm:$0xff] }
 0x81e   :  { %v5757_v14 = vpop.f32.mrb[172].mxu0 }
 0x81f   :  { %v5759_v52 = vpop.f32.mrb[173].mxu0 }
 0x820   :  { %v6028_v52 = vld [vmem:[%s15540_s3 + $0x60] sm:$0xff] }
 0x822   :  { %v5762_v40 = vpop.f32.mrb[174].mxu0 }
 0x823   :  { %v7828_v61 = vpack.c.bf16 %v5762_v40, %v5757_v14  ;;  %v5764_v36 = vpop.f32.mrb[175].mxu0 }
 0x824   :  { %v6033_v36 = vld [vmem:[%s15540_s3 + $0x88] sm:$0xff] }
 0x826   :  { %v15040_v27 = vpop.f32.mrb[176].mxu0 }
 0x827   :  { %v5769_v1 = vpop.f32.mrb[177].mxu0 }
 0x828   :  { %v6032_v1 = vld [vmem:[%s15540_s3 + $0x80] sm:$0xff] }
 0x82a   :  { %v5772_v49 = vpop.f32.mrb[178].mxu0 }
 0x82b   :  { %v7832_v53 = vpack.c.bf16 %v5772_v49, %v15040_v27  ;;  %v5774_v62 = vpop.f32.mrb[179].mxu0 }
 0x82e   :  { %v5777_v55 = vpop.f32.mrb[180].mxu0 }
 0x82f   :  { %v5779_v38 = vpop.f32.mrb[181].mxu0 }
 0x832   :  { %v5782_v45 = vpop.f32.mrb[182].mxu0 }
 0x833   :  { %v7802_v54 = vpack.c.bf16 %v5782_v45, %v5777_v55  ;;  %v5784_v41 = vpop.f32.mrb[183].mxu0  ;;  %v6036_v55 = vld [vmem:[%s15540_s3 + $0xa0] sm:$0xff] }
 0x835   :  { %7803 = vmatprep.subr.bf16.mxu1 %v7802_v54  ;;  %v6041_v54 = vld [vmem:[%s15540_s3 + $0xc8] sm:$0xff] }
 0x836   :  { %v5787_v58 = vpop.f32.mrb[184].mxu0  ;;  %7805 = vmatpush3.bf16.msra.mxu1 %v7804_v19 }
 0x837   :  { %v5789_v4 = vpop.f32.mrb[185].mxu0 }
 0x838   :  { %v6045_v4 = vld [vmem:[%s15540_s3 + $0xe8] sm:$0xff] }
 0x83a   :  { %v5792_v44 = vpop.f32.mrb[186].mxu0 }
 0x83b   :  { %v7806_v9 = vpack.c.bf16 %v5792_v44, %v5787_v58  ;;  %v5794_v10 = vpop.f32.mrb[187].mxu0 }
 0x83d   :  { %7807 = vmatprep.subr.bf16.mxu1 %v7806_v9  ;;  %v6044_v9 = vld [vmem:[%s15540_s3 + $0xe0] sm:$0xff] }
 0x83e   :  { %v5797_v15 = vpop.f32.mrb[188].mxu0  ;;  %7809 = vmatpush3.bf16.msra.mxu1 %v7808_v37 }
 0x83f   :  { %v5799_v42 = vpop.f32.mrb[189].mxu0 }
 0x840   :  { %v6049_v42 = vld [vmem:[%s15540_s3 + $0x108] sm:$0xff] }
 0x842   :  { %v5802_v43 = vpop.f32.mrb[190].mxu0 }
 0x843   :  { %v7810_v32 = vpack.c.bf16 %v5802_v43, %v5797_v15  ;;  %v5804_v60 = vpop.f32.mrb[191].mxu0 }
 0x845   :  { %7811 = vmatprep.subr.bf16.mxu1 %v7810_v32  ;;  %v6048_v32 = vld [vmem:[%s15540_s3 + $0x100] sm:$0xff] }
 0x846   :  { %v5807_v33 = vpop.f32.mrb[192].mxu0  ;;  %7813 = vmatpush3.bf16.msra.mxu1 %v7812_v35 }
 0x847   :  { %v5809_v51 = vpop.f32.mrb[193].mxu0 }
 0x84a   :  { %v5812_v17 = vpop.f32.mrb[194].mxu0 }
 0x84b   :  { %v7814_v19 = vpack.c.bf16 %v5812_v17, %v5807_v33  ;;  %v5814_v34 = vpop.f32.mrb[195].mxu0  ;;  %v6053_v33 = vld [vmem:[%s15540_s3 + $0x128] sm:$0xff]  ;;  %v6052_v17 = vld [vmem:[%s15540_s3 + $0x120] sm:$0xff] }
 0x84d   :  { %7815 = vmatprep.subr.bf16.mxu1 %v7814_v19 }
 0x84e   :  { %v5817_v11 = vpop.f32.mrb[196].mxu0  ;;  %7817 = vmatpush3.bf16.msra.mxu1 %v7816_v47 }
 0x84f   :  { %v5819_v28 = vpop.f32.mrb[197].mxu0 }
 0x852   :  { %v5822_v21 = vpop.f32.mrb[198].mxu0 }
 0x853   :  { %v7818_v37 = vpack.c.bf16 %v5822_v21, %v5817_v11  ;;  %v5824_v56 = vpop.f32.mrb[199].mxu0  ;;  %v6057_v11 = vld [vmem:[%s15540_s3 + $0x148] sm:$0xff]  ;;  %v6056_v21 = vld [vmem:[%s15540_s3 + $0x140] sm:$0xff] }
 0x854   :  { %v6061_v56 = vld [vmem:[%s15540_s3 + $0x168] sm:$0xff] }
 0x855   :  { %7819 = vmatprep.subr.bf16.mxu1 %v7818_v37 }
 0x856   :  { %v5827_v20 = vpop.f32.mrb[200].mxu0  ;;  %7821 = vmatpush3.bf16.msra.mxu1 %v7820_v48 }
 0x857   :  { %v5829_v24 = vpop.f32.mrb[201].mxu0 }
 0x858   :  { %v6060_v24 = vld [vmem:[%s15540_s3 + $0x160] sm:$0xff] }
 0x85a   :  { %v5832_v29 = vpop.f32.mrb[202].mxu0 }
 0x85b   :  { %v7822_v63 = vpack.c.bf16 %v5832_v29, %v5827_v20  ;;  %v5834_v35 = vpop.f32.mrb[203].mxu0 }
 0x85c   :  { %v6065_v35 = vld [vmem:[%s15540_s3 + $0x188] sm:$0xff] }
 0x85d   :  { %7823 = vmatprep.subr.bf16.mxu1 %v7822_v63 }
 0x85e   :  { %v5837_v30 = vpop.f32.mrb[204].mxu0  ;;  %7825 = vmatpush3.bf16.msra.mxu1 %v7824_v6 }
 0x85f   :  { %v5839_v26 = vpop.f32.mrb[205].mxu0 }
 0x860   :  { %v6064_v26 = vld [vmem:[%s15540_s3 + $0x180] sm:$0xff] }
 0x862   :  { %v5842_v13 = vpop.f32.mrb[206].mxu0 }
 0x863   :  { %v7826_v22 = vpack.c.bf16 %v5842_v13, %v5837_v30  ;;  %v5844_v23 = vpop.f32.mrb[207].mxu0 }
 0x865   :  { %7827 = vmatprep.subr.bf16.mxu1 %v7826_v22  ;;  %v6069_v22 = vld [vmem:[%s15540_s3 + $0x1a8] sm:$0xff] }
 0x866   :  { %v5847_v16 = vpop.f32.mrb[208].mxu0  ;;  %7829 = vmatpush3.bf16.msra.mxu1 %v7828_v61 }
 0x867   :  { %v5849_v5 = vpop.f32.mrb[209].mxu0 }
 0x86a   :  { %v5852_v47 = vpop.f32.mrb[210].mxu0 }
 0x86b   :  { %v7830_v25 = vpack.c.bf16 %v5852_v47, %v5847_v16  ;;  %v5854_v57 = vpop.f32.mrb[211].mxu0  ;;  %v6068_v16 = vld [vmem:[%s15540_s3 + $0x1a0] sm:$0xff] }
 0x86d   :  { %7831 = vmatprep.subr.bf16.mxu1 %v7830_v25  ;;  %v6073_v25 = vld [vmem:[%s15540_s3 + $0x1c8] sm:$0xff] }
 0x86e   :  { %v15058_v50 = vpop.f32.mrb[212].mxu0  ;;  %7833 = vmatpush3.bf16.msra.mxu1 %v7832_v53  ;;  %v6037_v53 = vld [vmem:[%s15540_s3 + $0xa8] sm:$0xff] }
 0x86f   :  { %v5859_v8 = vpop.f32.mrb[213].mxu0 }
 0x871   :  { %6145 = vmatmul.mubr.f32.vlgmr.msra.gmra.mrb[44].mxu1 %v6016_v12  ;;  %v6072_v12 = vld [vmem:[%s15540_s3 + $0x1c0] sm:$0xff] }
 0x872   :  { %v15066_v48 = vpop.f32.mrb[214].mxu0  ;;  %6149 = vmatprep.mubr.f32.mxu1 %v6021_v59  ;;  %v6077_v59 = vld [vmem:[%s15540_s3 + $0x1e8] sm:$0xff] }
 0x873   :  { %v7836_v0 = vpack.c.bf16 %v15066_v48, %v15058_v50  ;;  %v5864_v39 = vpop.f32.mrb[215].mxu0 }
 0x874   :  { %v6076_v39 = vld [vmem:[%s15540_s3 + $0x1e0] sm:$0xff] }
 0x875   :  { %6150 = vmatmul.mubr.f32.gmra.mrb[46].mxu1 %v6020_v3 }
 0x876   :  { %v15076_v7 = vpop.f32.mrb[216].mxu0  ;;  %6154 = vmatprep.mubr.f32.mxu1 %v6025_v46 }
 0x877   :  { %v5869_v6 = vpop.f32.mrb[217].mxu0 }
 0x878   :  { %v6019_v6 = vld [vmem:[%s15540_s3 + $0x18] sm:$0xff] }
 0x879   :  { %6155 = vmatmul.mubr.f32.gmra.mrb[48].mxu1 %v6024_v2 }
 0x87a   :  { %v15084_v14 = vpop.f32.mrb[218].mxu0  ;;  %6159 = vmatprep.mubr.f32.mxu1 %v6029_v18 }
 0x87b   :  { %v7840_v40 = vpack.c.bf16 %v15084_v14, %v15076_v7  ;;  %v5874_v61 = vpop.f32.mrb[219].mxu0 }
 0x87d   :  { %6160 = vmatmul.mubr.f32.gmra.mrb[50].mxu1 %v6028_v52 }
 0x87e   :  { %v15094_v27 = vpop.f32.mrb[220].mxu0  ;;  %6164 = vmatprep.mubr.f32.mxu1 %v6033_v36 }
 0x87f   :  { %v5879_v49 = vpop.f32.mrb[221].mxu0 }
 0x881   :  { %6165 = vmatmul.mubr.f32.gmra.mrb[52].mxu1 %v6032_v1 }
 0x882   :  { %v15102_v62 = vpop.f32.mrb[222].mxu0  ;;  %6169 = vmatprep.mubr.f32.mxu1 %v6037_v53 }
 0x883   :  { %v7844_v38 = vpack.c.bf16 %v15102_v62, %v15094_v27  ;;  %v5884_v45 = vpop.f32.mrb[223].mxu0 }
 0x885   :  { %6170 = vmatmul.mubr.f32.gmra.mrb[54].mxu1 %v6036_v55 }
 0x886   :  { %v15112_v41 = vpop.f32.mrb[224].mxu0  ;;  %6174 = vmatprep.mubr.f32.mxu1 %v6041_v54 }
 0x887   :  { %v5889_v58 = vpop.f32.mrb[225].mxu0 }
 0x889   :  { %6175 = vmatmul.mubr.f32.gmra.mrb[56].mxu1 %v6040_v31 }
 0x88a   :  { %v15120_v44 = vpop.f32.mrb[226].mxu0  ;;  %6179 = vmatprep.mubr.f32.mxu1 %v6045_v4 }
 0x88b   :  { %v7848_v10 = vpack.c.bf16 %v15120_v44, %v15112_v41  ;;  %v5894_v15 = vpop.f32.mrb[227].mxu0 }
 0x88d   :  { %6180 = vmatmul.mubr.f32.gmra.mrb[58].mxu1 %v6044_v9 }
 0x88e   :  { %v15130_v43 = vpop.f32.mrb[228].mxu0  ;;  %6184 = vmatprep.mubr.f32.mxu1 %v6049_v42 }
 0x88f   :  { %v5899_v60 = vpop.f32.mrb[229].mxu0 }
 0x891   :  { %6185 = vmatmul.mubr.f32.gmra.mrb[60].mxu1 %v6048_v32 }
 0x892   :  { %v15138_v51 = vpop.f32.mrb[230].mxu0  ;;  %6189 = vmatprep.mubr.f32.mxu1 %v6053_v33 }
 0x893   :  { %v7852_v19 = vpack.c.bf16 %v15138_v51, %v15130_v43  ;;  %v5904_v34 = vpop.f32.mrb[231].mxu0 }
 0x895   :  { %6190 = vmatmul.mubr.f32.gmra.mrb[62].mxu1 %v6052_v17 }
 0x896   :  { %v15148_v28 = vpop.f32.mrb[232].mxu0  ;;  %6194 = vmatprep.mubr.f32.mxu1 %v6057_v11 }
 0x897   :  { %v5909_v37 = vpop.f32.mrb[233].mxu0 }
 0x899   :  { %6195 = vmatmul.mubr.f32.gmra.mrb[64].mxu1 %v6056_v21 }
 0x89a   :  { %v15156_v20 = vpop.f32.mrb[234].mxu0  ;;  %6199 = vmatprep.mubr.f32.mxu1 %v6061_v56 }
 0x89b   :  { %v7856_v29 = vpack.c.bf16 %v15156_v20, %v15148_v28  ;;  %v5914_v63 = vpop.f32.mrb[235].mxu0  ;;  %v6018_v28 = vld [vmem:[%s15540_s3 + $0x10] sm:$0xff]  ;;  %v6023_v20 = vld [vmem:[%s15540_s3 + $0x38] sm:$0xff] }
 0x89c   :  { %v6026_v63 = vld [vmem:[%s15540_s3 + $0x50] sm:$0xff] }
 0x89d   :  { %6200 = vmatmul.mubr.f32.gmra.mrb[66].mxu1 %v6060_v24  ;;  %v6022_v24 = vld [vmem:[%s15540_s3 + $0x30] sm:$0xff] }
 0x89e   :  { %v15166_v30 = vpop.f32.mrb[236].mxu0  ;;  %6204 = vmatprep.mubr.f32.mxu1 %v6065_v35  ;;  %v6031_v35 = vld [vmem:[%s15540_s3 + $0x78] sm:$0xff] }
 0x89f   :  { %v5919_v13 = vpop.f32.mrb[237].mxu0 }
 0x8a0   :  { %v6034_v13 = vld [vmem:[%s15540_s3 + $0x90] sm:$0xff] }
 0x8a1   :  { %6205 = vmatmul.mubr.f32.gmra.mrb[68].mxu1 %v6064_v26  ;;  %v6035_v26 = vld [vmem:[%s15540_s3 + $0x98] sm:$0xff] }
 0x8a2   :  { %v15174_v23 = vpop.f32.mrb[238].mxu0  ;;  %6209 = vmatprep.mubr.f32.mxu1 %v6069_v22  ;;  %v6039_v22 = vld [vmem:[%s15540_s3 + $0xb8] sm:$0xff] }
 0x8a3   :  { %v7860_v5 = vpack.c.bf16 %v15174_v23, %v15166_v30  ;;  %v5924_v47 = vpop.f32.mrb[239].mxu0  ;;  %v6030_v30 = vld [vmem:[%s15540_s3 + $0x70] sm:$0xff] }
 0x8a4   :  { %v6038_v23 = vld [vmem:[%s15540_s3 + $0xb0] sm:$0xff]  ;;  %v6047_v47 = vld [vmem:[%s15540_s3 + $0xf8] sm:$0xff] }
 0x8a5   :  { %6210 = vmatmul.mubr.f32.gmra.mrb[70].mxu1 %v6068_v16  ;;  %v6043_v16 = vld [vmem:[%s15540_s3 + $0xd8] sm:$0xff] }
 0x8a6   :  { %v15184_v57 = vpop.f32.mrb[240].mxu0  ;;  %6214 = vmatprep.mubr.f32.mxu1 %v6073_v25  ;;  %v6046_v25 = vld [vmem:[%s15540_s3 + $0xf0] sm:$0xff] }
 0x8a7   :  { %v5929_v8 = vpop.f32.mrb[241].mxu0 }
 0x8a8   :  { %v6055_v8 = vld [vmem:[%s15540_s3 + $0x138] sm:$0xff] }
 0x8a9   :  { %6215 = vmatmul.mubr.f32.gmra.mrb[72].mxu1 %v6072_v12  ;;  %v6050_v12 = vld [vmem:[%s15540_s3 + $0x110] sm:$0xff] }
 0x8aa   :  { %v15192_v3 = vpop.f32.mrb[242].mxu0  ;;  %6219 = vmatprep.mubr.f32.mxu1 %v6077_v59  ;;  %v6054_v59 = vld [vmem:[%s15540_s3 + $0x130] sm:$0xff] }
 0x8ab   :  { %v7864_v46 = vpack.c.bf16 %v15192_v3, %v15184_v57  ;;  %v5934_v2 = vpop.f32.mrb[243].mxu0  ;;  %v6051_v57 = vld [vmem:[%s15540_s3 + $0x118] sm:$0xff] }
 0x8ac   :  { %v6059_v3 = vld [vmem:[%s15540_s3 + $0x158] sm:$0xff]  ;;  %v6062_v2 = vld [vmem:[%s15540_s3 + $0x170] sm:$0xff] }
 0x8ad   :  { %6220 = vmatmul.mubr.f32.gmra.mrb[74].mxu1 %v6076_v39  ;;  %v6058_v39 = vld [vmem:[%s15540_s3 + $0x150] sm:$0xff] }
 0x8ae   :  { %v5937_v18 = vpop.f32.mrb[244].mxu0  ;;  %6289 = vmatprep.mubr.f32.mxu1 %v6019_v6  ;;  %v6067_v6 = vld [vmem:[%s15540_s3 + $0x198] sm:$0xff] }
 0x8af   :  { %v5939_v52 = vpop.f32.mrb[245].mxu0 }
 0x8b0   :  { %v6071_v52 = vld [vmem:[%s15540_s3 + $0x1b8] sm:$0xff] }
 0x8b2   :  { %v5942_v61 = vpop.f32.mrb[246].mxu0 }
 0x8b3   :  { %v7834_v36 = vpack.c.bf16 %v5942_v61, %v5937_v18  ;;  %v5944_v1 = vpop.f32.mrb[247].mxu0  ;;  %v6066_v18 = vld [vmem:[%s15540_s3 + $0x190] sm:$0xff] }
 0x8b4   :  { %v6070_v61 = vld [vmem:[%s15540_s3 + $0x1b0] sm:$0xff] }
 0x8b5   :  { %7835 = vmatprep.subr.bf16.mxu1 %v7834_v36  ;;  %v6075_v36 = vld [vmem:[%s15540_s3 + $0x1d8] sm:$0xff]  ;;  %v6074_v1 = vld [vmem:[%s15540_s3 + $0x1d0] sm:$0xff] }
 0x8b6   :  { %v5947_v49 = vpop.f32.mrb[248].mxu0  ;;  %7837 = vmatpush3.bf16.msra.mxu1 %v7836_v0 }
 0x8b7   :  { %v5949_v53 = vpop.f32.mrb[249].mxu0 }
 0x8b8   :  { %v6078_v53 = vld [vmem:[%s15540_s3 + $0x1f0] sm:$0xff] }
 0x8ba   :  { %v5952_v55 = vpop.f32.mrb[250].mxu0 }
 0x8bb   :  { %v7838_v45 = vpack.c.bf16 %v5952_v55, %v5947_v49  ;;  %v5954_v54 = vpop.f32.mrb[251].mxu0  ;;  %v6079_v49 = vld [vmem:[%s15540_s3 + $0x1f8] sm:$0xff] }
 0x8bd   :  { %7839 = vmatprep.subr.bf16.mxu1 %v7838_v45 }
 0x8be   :  { %v5957_v31 = vpop.f32.mrb[252].mxu0  ;;  %7841 = vmatpush3.bf16.msra.mxu1 %v7840_v40 }
 0x8bf   :  { %v5959_v58 = vpop.f32.mrb[253].mxu0 }
 0x8c2   :  { %v5962_v4 = vpop.f32.mrb[254].mxu0 }
 0x8c3   :  { %v7842_v9 = vpack.c.bf16 %v5962_v4, %v5957_v31  ;;  %v5964_v15 = vpop.f32.mrb[255].mxu0 }
 0x8c5   :  { %7843 = vmatprep.subr.bf16.mxu1 %v7842_v9 }
 0x8c6   :  { %v5967_v42 = vpop.f32.mrb[0].mxu0  ;;  %7845 = vmatpush3.bf16.msra.mxu1 %v7844_v38 }
 0x8c7   :  { %v5969_v50 = vpop.f32.mrb[1].mxu0 }
 0x8ca   :  { %v5972_v48 = vpop.f32.mrb[2].mxu0 }
 0x8cb   :  { %v7846_v0 = vpack.c.bf16 %v5972_v48, %v5967_v42  ;;  %v5974_v32 = vpop.f32.mrb[3].mxu0 }
 0x8cd   :  { %7847 = vmatprep.subr.bf16.mxu1 %v7846_v0 }
 0x8ce   :  { %v5977_v60 = vpop.f32.mrb[4].mxu0  ;;  %7849 = vmatpush3.bf16.msra.mxu1 %v7848_v10 }
 0x8cf   :  { %v5979_v7 = vpop.f32.mrb[5].mxu0 }
 0x8d2   :  { %v5982_v14 = vpop.f32.mrb[6].mxu0 }
 0x8d3   :  { %v7850_v40 = vpack.c.bf16 %v5982_v14, %v5977_v60  ;;  %v5984_v33 = vpop.f32.mrb[7].mxu0 }
 0x8d5   :  { %7851 = vmatprep.subr.bf16.mxu1 %v7850_v40 }
 0x8d6   :  { %v5987_v17 = vpop.f32.mrb[8].mxu0  ;;  %7853 = vmatpush3.bf16.msra.mxu1 %v7852_v19 }
 0x8d7   :  { %v5989_v27 = vpop.f32.mrb[9].mxu0 }
 0x8da   :  { %v5992_v62 = vpop.f32.mrb[10].mxu0 }
 0x8db   :  { %v7854_v38 = vpack.c.bf16 %v5992_v62, %v5987_v17  ;;  %v5994_v34 = vpop.f32.mrb[11].mxu0 }
 0x8dd   :  { %7855 = vmatprep.subr.bf16.mxu1 %v7854_v38 }
 0x8de   :  { %v5997_v11 = vpop.f32.mrb[12].mxu0  ;;  %7857 = vmatpush3.bf16.msra.mxu1 %v7856_v29  ;;  %v6027_v29 = vld [vmem:[%s15540_s3 + $0x58] sm:$0xff] }
 0x8df   :  { %v5999_v41 = vpop.f32.mrb[13].mxu0 }
 0x8e2   :  { %v6002_v44 = vpop.f32.mrb[14].mxu0 }
 0x8e3   :  { %v7858_v10 = vpack.c.bf16 %v6002_v44, %v5997_v11  ;;  %v6004_v21 = vpop.f32.mrb[15].mxu0 }
 0x8e5   :  { %7859 = vmatprep.subr.bf16.mxu1 %v7858_v10 }
 0x8e6   :  { %v6007_v37 = vpop.f32.mrb[16].mxu0  ;;  %7861 = vmatpush3.bf16.msra.mxu1 %v7860_v5  ;;  %v6042_v5 = vld [vmem:[%s15540_s3 + $0xd0] sm:$0xff] }
 0x8e7   :  { %v6009_v43 = vpop.f32.mrb[17].mxu0 }
 0x8ea   :  { %v6012_v51 = vpop.f32.mrb[18].mxu0 }
 0x8eb   :  { %v7862_v19 = vpack.c.bf16 %v6012_v51, %v6007_v37  ;;  %v6014_v56 = vpop.f32.mrb[19].mxu0 }
 0x8ed   :  { %7863 = vmatprep.subr.bf16.mxu1 %v7862_v19 }
 0x8ee   :  { %7865 = vmatpush3.bf16.msra.mxu1 %v7864_v46  ;;  %v6063_v46 = vld [vmem:[%s15540_s3 + $0x178] sm:$0xff]  ;;  %s6370_s3 = sld [smem:[#allocation2]] }
 0x8f1   :  { %6290 = vmatmul.mubr.f32.vlgmr.msra.gmra.mrb[76].mxu1 %v6018_v28 }
 0x8f2   :  { %6294 = vmatprep.mubr.f32.mxu1 %v6023_v20 }
 0x8f5   :  { %6295 = vmatmul.mubr.f32.gmra.mrb[78].mxu1 %v6022_v24 }
 0x8f6   :  { %6299 = vmatprep.mubr.f32.mxu1 %v6027_v29 }
 0x8f9   :  { %6300 = vmatmul.mubr.f32.gmra.mrb[80].mxu1 %v6026_v63 }
 0x8fa   :  { %6304 = vmatprep.mubr.f32.mxu1 %v6031_v35 }
 0x8fd   :  { %6305 = vmatmul.mubr.f32.gmra.mrb[82].mxu1 %v6030_v30 }
 0x8fe   :  { %6309 = vmatprep.mubr.f32.mxu1 %v6035_v26 }
 0x901   :  { %6310 = vmatmul.mubr.f32.gmra.mrb[84].mxu1 %v6034_v13 }
 0x902   :  { %6314 = vmatprep.mubr.f32.mxu1 %v6039_v22 }
 0x905   :  { %6315 = vmatmul.mubr.f32.gmra.mrb[86].mxu1 %v6038_v23 }
 0x906   :  { %6319 = vmatprep.mubr.f32.mxu1 %v6043_v16 }
 0x909   :  { %6320 = vmatmul.mubr.f32.gmra.mrb[88].mxu1 %v6042_v5 }
 0x90a   :  { %6324 = vmatprep.mubr.f32.mxu1 %v6047_v47 }
 0x90d   :  { %6325 = vmatmul.mubr.f32.gmra.mrb[90].mxu1 %v6046_v25 }
 0x90e   :  { %6329 = vmatprep.mubr.f32.mxu1 %v6051_v57 }
 0x911   :  { %6330 = vmatmul.mubr.f32.gmra.mrb[92].mxu1 %v6050_v12 }
 0x912   :  { %6334 = vmatprep.mubr.f32.mxu1 %v6055_v8 }
 0x915   :  { %6335 = vmatmul.mubr.f32.gmra.mrb[94].mxu1 %v6054_v59 }
 0x916   :  { %6339 = vmatprep.mubr.f32.mxu1 %v6059_v3 }
 0x919   :  { %6340 = vmatmul.mubr.f32.gmra.mrb[96].mxu1 %v6058_v39 }
 0x91a   :  { %6344 = vmatprep.mubr.f32.mxu1 %v6063_v46 }
 0x91d   :  { %6345 = vmatmul.mubr.f32.gmra.mrb[98].mxu1 %v6062_v2 }
 0x91e   :  { %6349 = vmatprep.mubr.f32.mxu1 %v6067_v6 }
 0x921   :  { %6350 = vmatmul.mubr.f32.gmra.mrb[100].mxu1 %v6066_v18 }
 0x922   :  { %6354 = vmatprep.mubr.f32.mxu1 %v6071_v52 }
 0x925   :  { %6355 = vmatmul.mubr.f32.gmra.mrb[102].mxu1 %v6070_v61 }
 0x926   :  { %6359 = vmatprep.mubr.f32.mxu1 %v6075_v36 }
 0x929   :  { %6360 = vmatmul.mubr.f32.gmra.mrb[104].mxu1 %v6074_v1 }
 0x92a   :  { %6364 = vmatprep.mubr.f32.mxu1 %v6079_v49 }
 0x92d   :  { %6365 = vmatmul.mubr.f32.gmra.mrb[106].mxu1 %v6078_v53 }
 0x944   :  { %v7338_v55 = vpop.f32.mrb[44].mxu1 }
 0x945   :  { %v7339_v45 = vpop.f32.mrb[45].mxu1 }
 0x946   :  { %v7340_v54 = vadd.f32 %v7339_v45, %v7338_v55 }
 0x948   :  { %v7341_v31 = vpop.f32.mrb[46].mxu1 }
 0x949   :  { %v7342_v58 = vpop.f32.mrb[47].mxu1 }
 0x94a   :  { %v7343_v4 = vadd.f32 %v7342_v58, %v7341_v31 }
 0x94c   :  { %v7344_v9 = vpop.f32.mrb[48].mxu1 }
 0x94d   :  { %v7345_v15 = vpop.f32.mrb[49].mxu1 }
 0x94e   :  { %v7346_v42 = vadd.f32 %v7345_v15, %v7344_v9 }
 0x950   :  { %v7347_v50 = vpop.f32.mrb[50].mxu1 }
 0x951   :  { %v7348_v48 = vpop.f32.mrb[51].mxu1 }
 0x952   :  { %v7349_v0 = vadd.f32 %v7348_v48, %v7347_v50 }
 0x954   :  { %v7350_v32 = vpop.f32.mrb[52].mxu1 }
 0x955   :  { %v7351_v60 = vpop.f32.mrb[53].mxu1 }
 0x956   :  { %v7352_v7 = vadd.f32 %v7351_v60, %v7350_v32 }
 0x958   :  { %v7353_v14 = vpop.f32.mrb[54].mxu1 }
 0x959   :  { %v7354_v40 = vpop.f32.mrb[55].mxu1 }
 0x95a   :  { %v7355_v33 = vadd.f32 %v7354_v40, %v7353_v14 }
 0x95c   :  { %v7356_v17 = vpop.f32.mrb[56].mxu1 }
 0x95d   :  { %v7357_v27 = vpop.f32.mrb[57].mxu1 }
 0x95e   :  { %v7358_v62 = vadd.f32 %v7357_v27, %v7356_v17 }
 0x960   :  { %v7359_v38 = vpop.f32.mrb[58].mxu1 }
 0x961   :  { %v7360_v34 = vpop.f32.mrb[59].mxu1 }
 0x962   :  { %v7361_v11 = vadd.f32 %v7360_v34, %v7359_v38  ;;  %v15338_v38 = vstv %s6370_s3  ;;  %v15340_v34 = vstv %s6919_s8 }
 0x964   :  { %v7362_v41 = vpop.f32.mrb[60].mxu1 }
 0x965   :  { %v7363_v44 = vpop.f32.mrb[61].mxu1 }
 0x966   :  { %v7364_v10 = vadd.f32 %v7363_v44, %v7362_v41 }
 0x968   :  { %v7365_v21 = vpop.f32.mrb[62].mxu1 }
 0x969   :  { %v7366_v37 = vpop.f32.mrb[63].mxu1 }
 0x96a   :  { %v15316_v43 = vadd.f32 %v7366_v37, %v7365_v21 }
 0x96c   :  { %v7368_v51 = vpop.f32.mrb[64].mxu1 }
 0x96d   :  { %v7369_v19 = vpop.f32.mrb[65].mxu1 }
 0x96e   :  { %v15318_v56 = vadd.f32 %v7369_v19, %v7368_v51 }
 0x970   :  { %v7371_v28 = vpop.f32.mrb[66].mxu1 }
 0x971   :  { %v7372_v20 = vpop.f32.mrb[67].mxu1 }
 0x972   :  { %v15320_v24 = vadd.f32 %v7372_v20, %v7371_v28 }
 0x974   :  { %v7374_v29 = vpop.f32.mrb[68].mxu1 }
 0x975   :  { %v7375_v63 = vpop.f32.mrb[69].mxu1 }
 0x976   :  { %v15322_v35 = vadd.f32 %v7375_v63, %v7374_v29 }
 0x978   :  { %v7377_v30 = vpop.f32.mrb[70].mxu1 }
 0x979   :  { %v7378_v26 = vpop.f32.mrb[71].mxu1 }
 0x97a   :  { %v15324_v13 = vadd.f32 %v7378_v26, %v7377_v30 }
 0x97c   :  { %v7380_v22 = vpop.f32.mrb[72].mxu1 }
 0x97d   :  { %v7381_v23 = vpop.f32.mrb[73].mxu1 }
 0x97e   :  { %v15326_v16 = vadd.f32 %v7381_v23, %v7380_v22 }
 0x980   :  { %v7383_v5 = vpop.f32.mrb[74].mxu1 }
 0x981   :  { %v7384_v47 = vpop.f32.mrb[75].mxu1 }
 0x982   :  { %v15328_v25 = vadd.f32 %v7384_v47, %v7383_v5 }
 0x9c4   :  { %v7418_v57 = vpop.f32.mrb[76].mxu1 }
 0x9c5   :  { %v7419_v12 = vpop.f32.mrb[77].mxu1 }
 0x9c6   :  { %v7420_v8 = vadd.f32 %v7419_v12, %v7418_v57 }
 0x9c8   :  { %v6292_v59 = vadd.f32 %v7420_v8, %v7340_v54  ;;  %v7421_v3 = vpop.f32.mrb[78].mxu1 }
 0x9c9   :  { %v7422_v39 = vpop.f32.mrb[79].mxu1 }
 0x9ca   :  { %v7423_v46 = vadd.f32 %v7422_v39, %v7421_v3  ;;  %v15343_v21 = vadd.f32 %v15338_v38, %v6292_v59 }
 0x9cc   :  { %v6297_v2 = vadd.f32 %v7423_v46, %v7343_v4  ;;  %v7424_v6 = vpop.f32.mrb[80].mxu1 }
 0x9cd   :  { %v7425_v18 = vpop.f32.mrb[81].mxu1 }
 0x9ce   :  { %v7426_v52 = vadd.f32 %v7425_v18, %v7424_v6  ;;  %v15354_v28 = vadd.f32 %v15338_v38, %v6297_v2 }
 0x9d0   :  { %v6302_v61 = vadd.f32 %v7426_v52, %v7346_v42  ;;  %v7427_v36 = vpop.f32.mrb[82].mxu1 }
 0x9d1   :  { %v7428_v1 = vpop.f32.mrb[83].mxu1 }
 0x9d2   :  { %v7429_v49 = vadd.f32 %v7428_v1, %v7427_v36  ;;  %v15369_v47 = vadd.f32 %v15338_v38, %v6302_v61 }
 0x9d4   :  { %v6307_v53 = vadd.f32 %v7429_v49, %v7349_v0  ;;  %v7430_v55 = vpop.f32.mrb[84].mxu1 }
 0x9d5   :  { %v7431_v45 = vpop.f32.mrb[85].mxu1 }
 0x9d6   :  { %v7432_v31 = vadd.f32 %v7431_v45, %v7430_v55  ;;  %v15388_v1 = vadd.f32 %v15338_v38, %v6307_v53 }
 0x9d8   :  { %v15330_v58 = vadd.f32 %v7432_v31, %v7352_v7  ;;  %v7433_v9 = vpop.f32.mrb[86].mxu1 }
 0x9d9   :  { %v7434_v15 = vpop.f32.mrb[87].mxu1 }
 0x9da   :  { %v7435_v54 = vadd.f32 %v7434_v15, %v7433_v9 }
 0x9dc   :  { %v15332_v50 = vadd.f32 %v7435_v54, %v7355_v33  ;;  %v7436_v48 = vpop.f32.mrb[88].mxu1  ;;  %v15400_v54 = vadd.f32 %v15338_v38, %v15330_v58 }
 0x9dd   :  { %v7437_v4 = vpop.f32.mrb[89].mxu1 }
 0x9de   :  { %v7438_v32 = vadd.f32 %v7437_v4, %v7436_v48 }
 0x9e0   :  { %v15334_v42 = vadd.f32 %v7438_v32, %v7358_v62  ;;  %v7439_v60 = vpop.f32.mrb[90].mxu1 }
 0x9e1   :  { %v7440_v14 = vpop.f32.mrb[91].mxu1 }
 0x9e2   :  { %v7441_v0 = vadd.f32 %v7440_v14, %v7439_v60 }
 0x9e4   :  { %v15336_v40 = vadd.f32 %v7441_v0, %v7361_v11  ;;  %v7442_v17 = vpop.f32.mrb[92].mxu1 }
 0x9e5   :  { %v7443_v7 = vpop.f32.mrb[93].mxu1 }
 0x9e6   :  { %v7444_v27 = vadd.f32 %v7443_v7, %v7442_v17  ;;  %v15416_v17 = vadd.f32 %v15338_v38, %v15332_v50 }
 0x9e8   :  { %v6332_v33 = vadd.f32 %v7444_v27, %v7364_v10  ;;  %v7445_v41 = vpop.f32.mrb[94].mxu1 }
 0x9e9   :  { %v7446_v44 = vpop.f32.mrb[95].mxu1 }
 0x9ea   :  { %v15346_v62 = vadd.f32 %v15340_v34, %v6332_v33  ;;  %v7447_v37 = vadd.f32 %v7446_v44, %v7445_v41 }
 0x9ec   :  { %v15350_v11 = vmax.f32 %v15343_v21, %v15346_v62  ;;  %v6337_v51 = vadd.f32 %v7447_v37, %v15316_v43  ;;  %v7448_v19 = vpop.f32.mrb[96].mxu1 }
 0x9ed   :  { %v7449_v10 = vpop.f32.mrb[97].mxu1 }
 0x9ee   :  { %v6398_v20 = vsub.f32 %v15343_v21, %v15350_v11  ;;  %v6422_v29 = vsub.f32 %v15346_v62, %v15350_v11  ;;  %v15361_v63 = vadd.f32 %v15340_v34, %v6337_v51  ;;  %v7450_v30 = vadd.f32 %v7449_v10, %v7448_v19 }
 0x9f0   :  { %v6406_v26 = vmul.f32 1.442695, %v6398_v20  ;;  %v6430_v22 = vmul.f32 1.442695, %v6422_v29  ;;  %v15365_v43 = vmax.f32 %v15354_v28, %v15361_v63  ;;  %v6342_v23 = vadd.f32 %v7450_v30, %v15318_v56  ;;  %v7451_v5 = vpop.f32.mrb[98].mxu1 }
 0x9f1   :  { %v7452_v57 = vpop.f32.mrb[99].mxu1 }
 0x9f2   :  { %8817 = vpow2.f32 %v6406_v26  ;;  %v6399_v12 = vsub.f32 %v15354_v28, %v15365_v43  ;;  %v6423_v8 = vsub.f32 %v15361_v63, %v15365_v43  ;;  %v15376_v59 = vadd.f32 %v15340_v34, %v6342_v23 }
 0x9f3   :  { %8819 = vpow2.f32 %v6430_v22  ;;  %v7453_v3 = vadd.f32 %v7452_v57, %v7451_v5 }
 0x9f4   :  { %v6408_v39 = vmul.f32 1.442695, %v6399_v12  ;;  %v6432_v46 = vmul.f32 1.442695, %v6423_v8  ;;  %v15380_v56 = vmax.f32 %v15369_v47, %v15376_v59  ;;  %v7454_v2 = vpop.f32.mrb[100].mxu1  ;;  %v15436_v12 = vadd.f32 %v15338_v38, %v15334_v42 }
 0x9f5   :  { %v6347_v6 = vadd.f32 %v7453_v3, %v15320_v24  ;;  %v7455_v18 = vpop.f32.mrb[101].mxu1  ;;  %v15448_v42 = vadd.f32 %v15338_v38, %v15336_v40 }
 0x9f6   :  { %8821 = vpow2.f32 %v6408_v39  ;;  %v6400_v52 = vsub.f32 %v15369_v47, %v15380_v56  ;;  %v6424_v61 = vsub.f32 %v15376_v59, %v15380_v56  ;;  %v7456_v36 = vadd.f32 %v7455_v18, %v7454_v2 }
 0x9f7   :  { %8823 = vpow2.f32 %v6432_v46  ;;  %v15391_v49 = vadd.f32 %v15340_v34, %v6347_v6 }
 0x9f8   :  { %v6410_v55 = vmul.f32 1.442695, %v6400_v52  ;;  %v6434_v45 = vmul.f32 1.442695, %v6424_v61  ;;  %v6352_v24 = vadd.f32 %v7456_v36, %v15322_v35  ;;  %v7457_v31 = vpop.f32.mrb[102].mxu1 }
 0x9f9   :  { %v15396_v9 = vmax.f32 %v15388_v1, %v15391_v49  ;;  %v7458_v15 = vpop.f32.mrb[103].mxu1 }
 0x9fa   :  { %8825 = vpow2.f32 %v6410_v55  ;;  %v15403_v53 = vadd.f32 %v15340_v34, %v6352_v24  ;;  %v7459_v48 = vadd.f32 %v7458_v15, %v7457_v31 }
 0x9fb   :  { %8827 = vpow2.f32 %v6434_v45  ;;  %v6401_v4 = vsub.f32 %v15388_v1, %v15396_v9  ;;  %v6425_v35 = vsub.f32 %v15391_v49, %v15396_v9 }
 0x9fc   :  { %v8818_v32 = vpop.eup %8817  ;;  %v15411_v60 = vmax.f32 %v15400_v54, %v15403_v53  ;;  %v6357_v58 = vadd.f32 %v7459_v48, %v15324_v13  ;;  %v7460_v14 = vpop.f32.mrb[104].mxu1 }
 0x9fd   :  { %v8820_v0 = vpop.eup %8819  ;;  %v6412_v7 = vmul.f32 1.442695, %v6401_v4  ;;  %v6436_v27 = vmul.f32 1.442695, %v6425_v35  ;;  %v7461_v33 = vpop.f32.mrb[105].mxu1 }
 0x9fe   :  { %v6446_v41 = vadd.f32 %v8820_v0, %v8818_v32  ;;  %v6402_v44 = vsub.f32 %v15400_v54, %v15411_v60  ;;  %v6426_v37 = vsub.f32 %v15403_v53, %v15411_v60  ;;  %v15423_v51 = vadd.f32 %v15340_v34, %v6357_v58 }
 0x9ff   :  { %8829 = vpow2.f32 %v6412_v7  ;;  %v7462_v13 = vadd.f32 %v7461_v33, %v7460_v14 }
 0xa00   :  { %v8822_v19 = vpop.eup %8821  ;;  %8831 = vlog2.f32 %v6446_v41  ;;  %v6414_v10 = vmul.f32 1.442695, %v6402_v44  ;;  %v6438_v50 = vmul.f32 1.442695, %v6426_v37  ;;  %v15427_v20 = vmax.f32 %v15416_v17, %v15423_v51  ;;  %v7463_v29 = vpop.f32.mrb[106].mxu1 }
 0xa01   :  { %v8824_v30 = vpop.eup %8823  ;;  %8833 = vpow2.f32 %v6436_v27  ;;  %v6362_v26 = vadd.f32 %v7462_v13, %v15326_v16  ;;  %v7464_v22 = vpop.f32.mrb[107].mxu1 }
 0xa02   :  { %v6447_v23 = vadd.f32 %v8824_v30, %v8822_v19  ;;  %8835 = vpow2.f32 %v6414_v10  ;;  %v6403_v5 = vsub.f32 %v15416_v17, %v15427_v20  ;;  %v6427_v57 = vsub.f32 %v15423_v51, %v15427_v20 }
 0xa03   :  { %8837 = vpow2.f32 %v6438_v50  ;;  %v15439_v8 = vadd.f32 %v15340_v34, %v6362_v26  ;;  %v7465_v3 = vadd.f32 %v7464_v22, %v7463_v29 }
 0xa04   :  { %v8826_v39 = vpop.eup %8825  ;;  %8839 = vlog2.f32 %v6447_v23  ;;  %v6416_v16 = vmul.f32 1.442695, %v6403_v5  ;;  %v6440_v46 = vmul.f32 1.442695, %v6427_v57 }
 0xa05   :  { %v8828_v2 = vpop.eup %8827  ;;  %v15443_v6 = vmax.f32 %v15436_v12, %v15439_v8  ;;  %v6367_v18 = vadd.f32 %v7465_v3, %v15328_v25 }
 0xa06   :  { %v6448_v52 = vadd.f32 %v8828_v2, %v8826_v39  ;;  %8841 = vpow2.f32 %v6416_v16 }
 0xa07   :  { %8843 = vpow2.f32 %v6440_v46  ;;  %v6404_v61 = vsub.f32 %v15436_v12, %v15443_v6  ;;  %v6428_v36 = vsub.f32 %v15439_v8, %v15443_v6  ;;  %v15455_v55 = vadd.f32 %v15340_v34, %v6367_v18 }
 0xa08   :  { %8845 = vlog2.f32 %v6448_v52 }
 0xa09   :  { %v8830_v45 = vpop.eup %8829  ;;  %v6418_v24 = vmul.f32 1.442695, %v6404_v61  ;;  %v6442_v25 = vmul.f32 1.442695, %v6428_v36  ;;  %v15459_v40 = vmax.f32 %v15448_v42, %v15455_v55 }
 0xa0a   :  { %v8832_v38 = vpop.eup %8831 }
 0xa0b   :  { %v8834_v31 = vpop.eup %8833  ;;  %v6455_v15 = vmul.f32 0.6931472, %v8832_v38  ;;  %8847 = vpow2.f32 %v6418_v24  ;;  %v6405_v48 = vsub.f32 %v15448_v42, %v15459_v40  ;;  %v6429_v4 = vsub.f32 %v15455_v55, %v15459_v40 }
 0xa0c   :  { %v8836_v34 = vpop.eup %8835  ;;  %v6449_v35 = vadd.f32 %v8834_v31, %v8830_v45  ;;  %8849 = vpow2.f32 %v6442_v25 }
 0xa0d   :  { %v8838_v32 = vpop.eup %8837  ;;  %v6470_v58 = vadd.f32 %v6455_v15, %v15350_v11  ;;  %v6420_v14 = vmul.f32 1.442695, %v6405_v48  ;;  %v6444_v0 = vmul.f32 1.442695, %v6429_v4 }
 0xa0e   :  { %v8840_v7 = vpop.eup %8839  ;;  %8851 = vlog2.f32 %v6449_v35  ;;  %v6450_v27 = vadd.f32 %v8838_v32, %v8836_v34 }
 0xa0f   :  { %v6478_v33 = vsub.f32 %v15343_v21, %v6470_v58  ;;  %v6494_v41 = vsub.f32 %v15346_v62, %v6470_v58  ;;  %v6457_v44 = vmul.f32 0.6931472, %v8840_v7  ;;  %8853 = vpow2.f32 %v6420_v14 }
 0xa10   :  { %v8842_v37 = vpop.eup %8841  ;;  %8855 = vlog2.f32 %v6450_v27 }
 0xa11   :  { %v8844_v13 = vpop.eup %8843  ;;  %6486 = vst [vmem:[%s15543_s6] sm:$0xff] %v6478_v33  ;;  %6502 = vst [vmem:[%s15543_s6 + $0x40] sm:$0xff] %v6494_v41  ;;  %v6471_v11 = vadd.f32 %v6457_v44, %v15365_v43  ;;  %8857 = vpow2.f32 %v6444_v0 }
 0xa12   :  { %v8846_v19 = vpop.eup %8845  ;;  %v6451_v21 = vadd.f32 %v8844_v13, %v8842_v37 }
 0xa13   :  { %v6479_v62 = vsub.f32 %v15354_v28, %v6471_v11  ;;  %v6495_v10 = vsub.f32 %v15361_v63, %v6471_v11  ;;  %v6459_v50 = vmul.f32 0.6931472, %v8846_v19 }
 0xa14   :  { %8859 = vlog2.f32 %v6451_v21 }
 0xa15   :  { %v8848_v29 = vpop.eup %8847  ;;  %6487 = vst [vmem:[%s15543_s6 + $0x8] sm:$0xff] %v6479_v62  ;;  %6503 = vst [vmem:[%s15543_s6 + $0x48] sm:$0xff] %v6495_v10  ;;  %v6472_v43 = vadd.f32 %v6459_v50, %v15380_v56 }
 0xa16   :  { %v8850_v30 = vpop.eup %8849 }
 0xa17   :  { %v6480_v26 = vsub.f32 %v15369_v47, %v6472_v43  ;;  %v6496_v28 = vsub.f32 %v15376_v59, %v6472_v43  ;;  %v6452_v22 = vadd.f32 %v8850_v30, %v8848_v29 }
 0xa18   :  { %v8852_v63 = vpop.eup %8851 }
 0xa19   :  { %v8854_v23 = vpop.eup %8853  ;;  %6488 = vst [vmem:[%s15543_s6 + $0x10] sm:$0xff] %v6480_v26  ;;  %6504 = vst [vmem:[%s15543_s6 + $0x50] sm:$0xff] %v6496_v28  ;;  %v6461_v5 = vmul.f32 0.6931472, %v8852_v63  ;;  %8861 = vlog2.f32 %v6452_v22 }
 0xa1a   :  { %v8856_v57 = vpop.eup %8855 }
 0xa1b   :  { %v8858_v56 = vpop.eup %8857  ;;  %v6473_v3 = vadd.f32 %v6461_v5, %v15396_v9  ;;  %v6463_v47 = vmul.f32 0.6931472, %v8856_v57 }
 0xa1c   :  { %v6453_v39 = vadd.f32 %v8858_v56, %v8854_v23 }
 0xa1d   :  { %v6481_v59 = vsub.f32 %v15388_v1, %v6473_v3  ;;  %v6497_v16 = vsub.f32 %v15391_v49, %v6473_v3  ;;  %v6474_v46 = vadd.f32 %v6463_v47, %v15411_v60 }
 0xa1e   :  { %v8860_v2 = vpop.eup %8859  ;;  %8863 = vlog2.f32 %v6453_v39 }
 0xa1f   :  { %6489 = vst [vmem:[%s15543_s6 + $0x18] sm:$0xff] %v6481_v59  ;;  %6505 = vst [vmem:[%s15543_s6 + $0x58] sm:$0xff] %v6497_v16  ;;  %v6482_v9 = vsub.f32 %v15400_v54, %v6474_v46  ;;  %v6498_v18 = vsub.f32 %v15403_v53, %v6474_v46  ;;  %v6465_v52 = vmul.f32 0.6931472, %v8860_v2 }
 0xa21   :  { %6490 = vst [vmem:[%s15543_s6 + $0x20] sm:$0xff] %v6482_v9  ;;  %6506 = vst [vmem:[%s15543_s6 + $0x60] sm:$0xff] %v6498_v18  ;;  %v6475_v1 = vadd.f32 %v6465_v52, %v15427_v20 }
 0xa23   :  { %v8862_v49 = vpop.eup %8861  ;;  %v6483_v60 = vsub.f32 %v15416_v17, %v6475_v1  ;;  %v6499_v61 = vsub.f32 %v15423_v51, %v6475_v1 }
 0xa24   :  { %v6467_v36 = vmul.f32 0.6931472, %v8862_v49 }
 0xa25   :  { %6491 = vst [vmem:[%s15543_s6 + $0x28] sm:$0xff] %v6483_v60  ;;  %6507 = vst [vmem:[%s15543_s6 + $0x68] sm:$0xff] %v6499_v61 }
 0xa26   :  { %v6476_v54 = vadd.f32 %v6467_v36, %v15443_v6 }
 0xa28   :  { %v8864_v53 = vpop.eup %8863  ;;  %v6484_v45 = vsub.f32 %v15436_v12, %v6476_v54  ;;  %v6500_v20 = vsub.f32 %v15439_v8, %v6476_v54 }
 0xa29   :  { %v6469_v24 = vmul.f32 0.6931472, %v8864_v53 }
 0xa2a   :  { %6492 = vst [vmem:[%s15543_s6 + $0x30] sm:$0xff] %v6484_v45  ;;  %6508 = vst [vmem:[%s15543_s6 + $0x70] sm:$0xff] %v6500_v20 }
 0xa2b   :  { %v6477_v17 = vadd.f32 %v6469_v24, %v15459_v40 }
 0xa2d   :  { %v6485_v51 = vsub.f32 %v15448_v42, %v6477_v17  ;;  %v6501_v6 = vsub.f32 %v15455_v55, %v6477_v17 }
 0xa2f   :  { %6493 = vst [vmem:[%s15543_s6 + $0x38] sm:$0xff] %v6485_v51  ;;  %6509 = vst [vmem:[%s15543_s6 + $0x78] sm:$0xff] %v6501_v6 }
 0xa30   :  { %6514 = vsyncpa [#allocation3], 1 }

</bundles_post_ra>
